<compile_context>
chip_gen: v5e
topology: v5e:2x2
jax: 0.10.0
libtpu: 0.0.40
codegen_flags: <defaults>
</compile_context>

<pallas_src>
import math
from functools import partial

import jax
import jax.numpy as jnp
from jax.experimental import pallas as pl
from jax.experimental.pallas import tpu as pltpu

D_MODEL = 256      # module default d_model
NHEAD = 8          # module default nhead
LN_EPS = 1e-5
_HI = jax.lax.Precision.HIGHEST


def _layer_norm(x, w, b):
    mu = jnp.mean(x, axis=-1, keepdims=True)
    xc = x - mu
    var = jnp.mean(xc * xc, axis=-1, keepdims=True)
    return xc * jax.lax.rsqrt(var + LN_EPS) * w + b


# ---------------------------------------------------------------------------
# Pallas kernel: fused transformer-decoder part of MSA_layer
# ---------------------------------------------------------------------------
def msa_decoder_kernel(rgb_ref, ert_ref, frdc_ref,
                       w_in_ref, b_in_ref, wo_ref, bo_ref,
                       ln2w_ref, ln2b_ref, w0_ref, b0_ref,
                       w2_ref, b2_ref, ln3w_ref, ln3b_ref,
                       o_ref,
                       qkv_s, ctx_s, rf_s,
                       *, nhead, n_batch, seq_len):
    n, bb = seq_len, n_batch
    rows = bb * n
    c = o_ref.shape[-1]
    dh = c // nhead
    scale = 1.0 / math.sqrt(dh)
    bf16, f32 = jnp.bfloat16, jnp.float32

    # Fold batch into the matmul row dimension (fills the MXU rows).
    ertf = ert_ref[...].reshape(rows, c).astype(bf16)
    rgbf = rgb_ref[...].reshape(rows, c).astype(bf16)

    # Q and fused K|V projections: bf16 inputs, f32 accumulation (1 MXU pass).
    q = jnp.dot(ertf, w_in_ref[:, :c], preferred_element_type=f32) + b_in_ref[:, :c]
    kv = jnp.dot(rgbf, w_in_ref[:, c:], preferred_element_type=f32) + b_in_ref[:, c:]

    # Stash q*scale | k | v in bf16 VMEM scratch; the head loop reads 32-lane
    # slices from the ref (bounds vreg live ranges, avoids spills).
    qkv_s[:, :c] = (q * scale).astype(bf16)
    qkv_s[:, c:] = kv.astype(bf16)

    # Per-(batch, head) attention core; each head's context goes to its static
    # lane slice of ctx_s so the out-projection is a single K=c matmul.
    for b in range(bb):
        r0 = b * n
        for h in range(nhead):
            lo = h * dh
            qh = qkv_s[r0:r0 + n, lo:lo + dh]
            kh = qkv_s[r0:r0 + n, c + lo:c + lo + dh]
            vh = qkv_s[r0:r0 + n, 2 * c + lo:2 * c + lo + dh]
            s = jax.lax.dot_general(qh, kh, (((1,), (1,)), ((), ())),
                                    preferred_element_type=f32)        # (n, n)
            s = s - jnp.max(s, axis=-1, keepdims=True)
            e = jnp.exp(s)
            l = jnp.sum(e, axis=-1, keepdims=True)
            ctx = jnp.dot(e.astype(bf16), vh, preferred_element_type=f32)
            # Normalize the (n, dh) context after the matmul (EUP reciprocal).
            ctx = ctx * pl.reciprocal(l, approx=False)
            ctx_s[r0:r0 + n, lo:lo + dh] = ctx.astype(bf16)

    # Single K=c out-projection over all heads / batches.
    rf_s[...] = jnp.dot(ctx_s[...], wo_ref[...],
                        preferred_element_type=f32) + bo_ref[...]

    fr = _layer_norm(rf_s[...], ln2w_ref[...], ln2b_ref[...])                 # norm2
    fr = jnp.dot(fr.astype(bf16), w0_ref[...],
                 preferred_element_type=f32) + b0_ref[...]                    # linear0
    fr = frdc_ref[...].reshape(rows, c) + fr                                  # + df_c(rgb)
    fr = jnp.maximum(fr, 0.0)                                                 # relu
    fr = jnp.dot(fr.astype(bf16), w2_ref[...],
                 preferred_element_type=f32) + b2_ref[...]                    # linear2
    fr = fr + rf_s[...]                                                       # + index
    fr = _layer_norm(fr, ln3w_ref[...], ln3b_ref[...])                        # norm3
    o_ref[...] = fr.reshape(bb, n, c).astype(o_ref.dtype)


def _default_batch_block(B, N):
    """Batches folded per grid step.  Single-TC chips (v5e/v6e): fold the whole
    batch to fill the MXU rows.  Multi-TensorCore chips (v7x, megacore v4/v5p):
    keep >= 2 parallel grid steps so every core gets work."""
    if B <= 1:
        return 1
    try:
        kind = jax.devices()[0].device_kind.lower()
    except Exception:
        kind = ""
    single_tc = any(tag in kind for tag in
                    ("v5e", "v5 lite", "v5lite", "v6e", "v6 lite", "v6lite"))
    min_groups = 1 if single_tc else 2
    bb = B
    while bb > 1 and (B // bb < min_groups or bb * N > 512):
        bb -= 1
        while B % bb:
            bb -= 1
    return bb


def msa_decoder_pallas(rgb_seq, ert_seq, frdc_seq, p, nhead=NHEAD, batch_block=None):
    B, N, C = rgb_seq.shape
    bb = batch_block if batch_block is not None else _default_batch_block(B, N)
    assert B % bb == 0
    rows = bb * N
    bf16, f32 = jnp.bfloat16, jnp.float32

    # Weights pre-transposed to (in, out) and shipped in bf16 (1 MXU pass,
    # half the weight HBM traffic).  Biases / LN params stay f32.
    w_in_t = p["in_proj_w"].T.astype(bf16)                # (C, 3C) = [Wq|Wk|Wv]
    b_in = p["in_proj_b"].reshape(1, 3 * C).astype(f32)
    wo_t = p["out_w"].T.astype(bf16)
    bo = p["out_b"].reshape(1, C).astype(f32)
    w0_t = p["lin0_w"].T.astype(bf16)
    b0 = p["lin0_b"].reshape(1, C).astype(f32)
    w2_t = p["lin2_w"].T.astype(bf16)
    b2 = p["lin2_b"].reshape(1, C).astype(f32)
    ln2w = p["ln2_w"].reshape(1, C).astype(f32)
    ln2b = p["ln2_b"].reshape(1, C).astype(f32)
    ln3w = p["ln3_w"].reshape(1, C).astype(f32)
    ln3b = p["ln3_b"].reshape(1, C).astype(f32)

    seq_spec = pl.BlockSpec((bb, N, C), lambda g: (g, 0, 0))

    def rep(shape):                                       # resident weight block
        return pl.BlockSpec(shape, lambda g: (0, 0))

    dh = C // nhead
    flops = (2 * B * N * C * (3 * C)              # q + fused kv projections
             + 4 * B * nhead * N * N * dh         # scores + context
             + 3 * 2 * B * N * C * C)             # out-proj + linear0 + linear2
    transcendentals = B * nhead * N * N
    bytes_accessed = (4 * 4 * B * N * C                    # 3 f32 inputs + output
                      + 2 * (C * 3 * C + 3 * C * C)        # bf16 weights
                      + 4 * 10 * C)                        # biases + LN params

    return pl.pallas_call(
        partial(msa_decoder_kernel, nhead=nhead, n_batch=bb, seq_len=N),
        out_shape=jax.ShapeDtypeStruct((B, N, C), f32),
        grid_spec=pltpu.PrefetchScalarGridSpec(
            num_scalar_prefetch=0,
            grid=(B // bb,),
            in_specs=[
                seq_spec, seq_spec, seq_spec,
                rep((C, 3 * C)), rep((1, 3 * C)),
                rep((C, C)), rep((1, C)),
                rep((1, C)), rep((1, C)),
                rep((C, C)), rep((1, C)),
                rep((C, C)), rep((1, C)),
                rep((1, C)), rep((1, C)),
            ],
            out_specs=seq_spec,
            scratch_shapes=[
                pltpu.VMEM((rows, 3 * C), bf16),    # q*scale | k | v
                pltpu.VMEM((rows, C), bf16),        # per-head contexts
                pltpu.VMEM((rows, C), f32),         # attention output (residual)
            ]),
        compiler_params=pltpu.CompilerParams(
            dimension_semantics=("parallel",),
            vmem_limit_bytes=32 * 1024 * 1024),
        cost_estimate=pl.CostEstimate(
            flops=int(flops),
            transcendentals=int(transcendentals),
            bytes_accessed=int(bytes_accessed)),
    )(rgb_seq, ert_seq, frdc_seq,
      w_in_t, b_in, wo_t, bo, ln2w, ln2b, w0_t, b0, w2_t, b2, ln3w, ln3b)


# ---------------------------------------------------------------------------
# Deformable conv branch (df_c) — plain JAX (XLA), torchvision semantics.
# TODO(synk): the offset-driven bilinear gather is a data-dependent gather with
# no clean Pallas TPU equivalent; it stays in XLA and its result feeds the
# Pallas kernel as a precomputed (B,N,C) input.
# ---------------------------------------------------------------------------
def deform_conv2d_jax(x, offset, weight, bias, n_offset_groups, groups,
                      kh=3, kw=3, pad=1):
    B, Cin, H, W = x.shape
    Cout = weight.shape[0]
    K = kh * kw
    cpg_off = Cin // n_offset_groups
    cin_g = Cin // groups
    cout_g = Cout // groups

    off = offset.reshape(B, n_offset_groups, K, 2, H, W)
    off_y = off[:, :, :, 0]
    off_x = off[:, :, :, 1]

    base_y = jnp.arange(H, dtype=x.dtype)[:, None]
    base_x = jnp.arange(W, dtype=x.dtype)[None, :]
    k_idx = jnp.arange(K)
    ky = (k_idx // kw).astype(x.dtype)
    kx = (k_idx % kw).astype(x.dtype)

    py = (base_y - pad)[None, None, None] + ky[None, None, :, None, None] + off_y
    px = (base_x - pad)[None, None, None] + kx[None, None, :, None, None] + off_x

    x_g = x.reshape(B, n_offset_groups, cpg_off, H * W)

    y0 = jnp.floor(py)
    x0 = jnp.floor(px)
    y1 = y0 + 1.0
    x1 = x0 + 1.0
    ly = py - y0
    lx = px - x0
    hy = 1.0 - ly
    hx = 1.0 - lx

    def corner(yi, xi, wgt):
        mask = (yi >= 0) & (yi <= H - 1) & (xi >= 0) & (xi <= W - 1)
        yc = jnp.clip(yi, 0, H - 1).astype(jnp.int32)
        xc = jnp.clip(xi, 0, W - 1).astype(jnp.int32)
        flat = (yc * W + xc).reshape(B, n_offset_groups, 1, K * H * W)
        flat = jnp.broadcast_to(flat, (B, n_offset_groups, cpg_off, K * H * W))
        vals = jnp.take_along_axis(x_g, flat, axis=-1)
        vals = vals.reshape(B, n_offset_groups, cpg_off, K, H, W)
        return vals * (wgt * mask.astype(x.dtype))[:, :, None]

    sampled = (corner(y0, x0, hy * hx) + corner(y0, x1, hy * lx)
               + corner(y1, x0, ly * hx) + corner(y1, x1, ly * lx))
    sampled = sampled.reshape(B, Cin, K, H, W)

    sampled = sampled.reshape(B, groups, cin_g, K, H, W)
    w_g = weight.reshape(groups, cout_g, cin_g, K)
    out = jnp.einsum("goik,bgikhw->bgohw", w_g, sampled, precision=_HI)
    return out.reshape(B, Cout, H, W) + bias[None, :, None, None]


def _offset_conv(x, w):
    return jax.lax.conv_general_dilated(
        x, w, window_strides=(1, 1), padding=((1, 1), (1, 1)),
        dimension_numbers=("NCHW", "OIHW", "NCHW"), precision=_HI)


# ---------------------------------------------------------------------------
# Full MSA forward (eval mode): Pallas kernel + JAX deformable-conv branch
# ---------------------------------------------------------------------------
def msa_forward(rgb, t, erase_r, params):
    B, C, H, W = rgb.shape
    N = H * W

    rgb_seq = rgb.reshape(B, C, N).transpose(0, 2, 1)            # (B, N, C)
    ert_seq = (t + erase_r).reshape(B, C, N).transpose(0, 2, 1)

    offset = _offset_conv(rgb, params["off_w"])
    fr_dc = deform_conv2d_jax(rgb, offset, params["dc_w"], params["dc_b"],
                              n_offset_groups=4, groups=4)
    frdc_seq = fr_dc.reshape(B, C, N).transpose(0, 2, 1)

    out_seq = msa_decoder_pallas(rgb_seq, ert_seq, frdc_seq, params)
    return out_seq.transpose(0, 2, 1).reshape(B, C, H, W)


# ---------------------------------------------------------------------------
# Pure-JAX reference.  mm_dtype=float32 -> exact f32 ('highest') reference;
# mm_dtype=bfloat16 -> same mixed-precision policy as the kernel (bf16 matmul
# inputs, f32 accumulation, f32 softmax/LN) for a tight numerical check.
# ---------------------------------------------------------------------------
def msa_ref(rgb, t, erase_r, p, nhead=NHEAD, mm_dtype=jnp.float32):
    B, C, H, W = rgb.shape
    N = H * W
    dh = C // nhead
    cast = lambda x: x.astype(mm_dtype)

    def mm(a, b):
        return jnp.dot(cast(a), cast(b), precision=_HI,
                       preferred_element_type=jnp.float32)

    rgb_s = rgb.reshape(B, C, N).transpose(0, 2, 1)
    ert_s = (t + erase_r).reshape(B, C, N).transpose(0, 2, 1)

    w_in, b_in = p["in_proj_w"], p["in_proj_b"]
    q = mm(ert_s, w_in[:C].T) + b_in[:C]
    kv = mm(rgb_s, w_in[C:].T) + b_in[C:]
    k, v = kv[..., :C], kv[..., C:]

    qh = cast(q * (1.0 / math.sqrt(dh))).reshape(B, N, nhead, dh)
    kh = cast(k).reshape(B, N, nhead, dh)
    vh = cast(v).reshape(B, N, nhead, dh)
    s = jnp.einsum("bqhd,bkhd->bhqk", qh, kh, precision=_HI,
                   preferred_element_type=jnp.float32)
    s = s - jnp.max(s, axis=-1, keepdims=True)
    e = jnp.exp(s)
    l = jnp.sum(e, axis=-1, keepdims=True)                       # (B, h, N, 1)
    ctx = jnp.einsum("bhqk,bkhd->bqhd", cast(e), vh, precision=_HI,
                     preferred_element_type=jnp.float32)
    ctx = ctx * (1.0 / l).transpose(0, 2, 1, 3)                  # (B, N, h, dh)
    r_f = mm(ctx.reshape(B, N, C), p["out_w"].T) + p["out_b"]

    fr = _layer_norm(r_f, p["ln2_w"], p["ln2_b"])
    fr = mm(fr, p["lin0_w"].T) + p["lin0_b"]
    offset = _offset_conv(rgb, p["off_w"])
    fr_dc = deform_conv2d_jax(rgb, offset, p["dc_w"], p["dc_b"],
                              n_offset_groups=4, groups=4)
    fr = fr_dc.reshape(B, C, N).transpose(0, 2, 1) + fr
    fr = jnp.maximum(fr, 0.0)
    fr = mm(fr, p["lin2_w"].T) + p["lin2_b"]
    fr = fr + r_f
    fr = _layer_norm(fr, p["ln3_w"], p["ln3_b"])
    return fr.transpose(0, 2, 1).reshape(B, C, H, W)


if __name__ == "__main__":
    B, C, H, W = 2, D_MODEL, 8, 8        # d_model=256, nhead=8 (module defaults)

    key = jax.random.PRNGKey(0)
    keys = jax.random.split(key, 18)

    def nrm(k, shape, scale):
        return jax.random.normal(k, shape, dtype=jnp.float32) * scale

    rgb = nrm(keys[0], (B, C, H, W), 1.0)
    t = nrm(keys[1], (B, C, H, W), 1.0)
    erase_r = nrm(keys[2], (B, C, H, W), 1.0)

    s = 1.0 / math.sqrt(C)
    params = {
        "in_proj_w": nrm(keys[3], (3 * C, C), s),
        "in_proj_b": nrm(keys[4], (3 * C,), 0.02),
        "out_w": nrm(keys[5], (C, C), s),
        "out_b": nrm(keys[6], (C,), 0.02),
        "ln2_w": 1.0 + nrm(keys[7], (C,), 0.02),
        "ln2_b": nrm(keys[8], (C,), 0.02),
        "lin0_w": nrm(keys[9], (C, C), s),
        "lin0_b": nrm(keys[10], (C,), 0.02),
        "lin2_w": nrm(keys[11], (C, C), s),
        "lin2_b": nrm(keys[12], (C,), 0.02),
        "ln3_w": 1.0 + nrm(keys[13], (C,), 0.02),
        "ln3_b": nrm(keys[14], (C,), 0.02),
        "off_w": nrm(keys[15], (4 * 2 * 3 * 3, C, 3, 3), 0.01),   # offset conv (no bias)
        "dc_w": nrm(keys[16], (C, C // 4, 3, 3), 1.0 / math.sqrt((C // 4) * 9)),
        "dc_b": nrm(keys[17], (C,), 0.02),
    }

    out = jax.jit(msa_forward)(rgb, t, erase_r, params)
    out = jax.block_until_ready(out)
    assert out.shape == (B, C, H, W)

    # (1) Tight check vs a reference using the kernel's exact precision policy
    #     (bf16 matmul inputs, f32 accumulation, f32 softmax/layernorm).
    ref_mixed = jax.jit(partial(msa_ref, mm_dtype=jnp.bfloat16))(rgb, t, erase_r, params)
    ref_mixed = jax.block_until_ready(ref_mixed)
    err_mixed = float(jnp.max(jnp.abs(out - ref_mixed)))
    assert err_mixed < 5e-3, f"mismatch vs precision-matched reference: {err_mixed}"

    # (2) Sanity check vs the full-f32 (HIGHEST precision) reference: bf16 MXU
    #     inputs cost a small relative error on the layernorm-scaled output.
    ref_f32 = jax.jit(msa_ref)(rgb, t, erase_r, params)
    ref_f32 = jax.block_until_ready(ref_f32)
    rel_rms = float(jnp.sqrt(jnp.mean((out - ref_f32) ** 2) / jnp.mean(ref_f32 ** 2)))
    assert rel_rms < 5e-2, f"excessive deviation from f32 reference: rel_rms={rel_rms}"

    print("KERNEL_OK")
</pallas_src>

<mosaic_0001>
module attributes {stable_mosaic.version = 11 : i64} {
  func.func @msa_decoder_kernel(%arg0: i32, %arg1: memref<1x64x256xf32, #tpu.memory_space<vmem>>, %arg2: memref<1x64x256xf32, #tpu.memory_space<vmem>>, %arg3: memref<1x64x256xf32, #tpu.memory_space<vmem>>, %arg4: memref<256x768xbf16, #tpu.memory_space<vmem>>, %arg5: memref<1x768xf32, #tpu.memory_space<vmem>>, %arg6: memref<256x256xbf16, #tpu.memory_space<vmem>>, %arg7: memref<1x256xf32, #tpu.memory_space<vmem>>, %arg8: memref<1x256xf32, #tpu.memory_space<vmem>>, %arg9: memref<1x256xf32, #tpu.memory_space<vmem>>, %arg10: memref<256x256xbf16, #tpu.memory_space<vmem>>, %arg11: memref<1x256xf32, #tpu.memory_space<vmem>>, %arg12: memref<256x256xbf16, #tpu.memory_space<vmem>>, %arg13: memref<1x256xf32, #tpu.memory_space<vmem>>, %arg14: memref<1x256xf32, #tpu.memory_space<vmem>>, %arg15: memref<1x256xf32, #tpu.memory_space<vmem>>, %arg16: memref<1x64x256xf32, #tpu.memory_space<vmem>>, %arg17: memref<64x768xbf16, #tpu.memory_space<vmem>>, %arg18: memref<64x256xbf16, #tpu.memory_space<vmem>>, %arg19: memref<64x256xf32, #tpu.memory_space<vmem>>) attributes {dimension_semantics = [#tpu.dimension_semantics<parallel>], iteration_bounds = array<i64: 2>, scalar_prefetch = 0 : i64, scratch_operands = 3 : i64, tpu.core_type = #tpu.core_type<tc>, window_params = [{transform_indices = @transform_0, window_bounds = array<i64: 1, 64, 256>}, {transform_indices = @transform_1, window_bounds = array<i64: 1, 64, 256>}, {transform_indices = @transform_2, window_bounds = array<i64: 1, 64, 256>}, {pipeline_mode = #tpu.pipeline_mode<synchronous>, transform_indices = @transform_3, window_bounds = array<i64: 256, 768>}, {pipeline_mode = #tpu.pipeline_mode<synchronous>, transform_indices = @transform_4, window_bounds = array<i64: 1, 768>}, {pipeline_mode = #tpu.pipeline_mode<synchronous>, transform_indices = @transform_5, window_bounds = array<i64: 256, 256>}, {pipeline_mode = #tpu.pipeline_mode<synchronous>, transform_indices = @transform_6, window_bounds = array<i64: 1, 256>}, {pipeline_mode = #tpu.pipeline_mode<synchronous>, transform_indices = @transform_7, window_bounds = array<i64: 1, 256>}, {pipeline_mode = #tpu.pipeline_mode<synchronous>, transform_indices = @transform_8, window_bounds = array<i64: 1, 256>}, {pipeline_mode = #tpu.pipeline_mode<synchronous>, transform_indices = @transform_9, window_bounds = array<i64: 256, 256>}, {pipeline_mode = #tpu.pipeline_mode<synchronous>, transform_indices = @transform_10, window_bounds = array<i64: 1, 256>}, {pipeline_mode = #tpu.pipeline_mode<synchronous>, transform_indices = @transform_11, window_bounds = array<i64: 256, 256>}, {pipeline_mode = #tpu.pipeline_mode<synchronous>, transform_indices = @transform_12, window_bounds = array<i64: 1, 256>}, {pipeline_mode = #tpu.pipeline_mode<synchronous>, transform_indices = @transform_13, window_bounds = array<i64: 1, 256>}, {pipeline_mode = #tpu.pipeline_mode<synchronous>, transform_indices = @transform_14, window_bounds = array<i64: 1, 256>}, {transform_indices = @transform_15, window_bounds = array<i64: 1, 64, 256>}]} {
    %c0 = arith.constant 0 : index
    %c0_0 = arith.constant 0 : index
    %c0_1 = arith.constant 0 : index
    %0 = vector.load %arg2[%c0, %c0_0, %c0_1] : memref<1x64x256xf32, #tpu.memory_space<vmem>>, vector<1x64x256xf32>
    %1 = vector.shape_cast %0 : vector<1x64x256xf32> to vector<64x256xf32>
    %2 = arith.truncf %1 : vector<64x256xf32> to vector<64x256xbf16>
    %c0_2 = arith.constant 0 : index
    %c0_3 = arith.constant 0 : index
    %c0_4 = arith.constant 0 : index
    %3 = vector.load %arg1[%c0_2, %c0_3, %c0_4] : memref<1x64x256xf32, #tpu.memory_space<vmem>>, vector<1x64x256xf32>
    %4 = vector.shape_cast %3 : vector<1x64x256xf32> to vector<64x256xf32>
    %5 = arith.truncf %4 : vector<64x256xf32> to vector<64x256xbf16>
    %c0_5 = arith.constant 0 : index
    %c0_6 = arith.constant 0 : index
    %6 = vector.load %arg4[%c0_5, %c0_6] : memref<256x768xbf16, #tpu.memory_space<vmem>>, vector<256x256xbf16>
    %cst = arith.constant dense<0.000000e+00> : vector<64x256xf32>
    %7 = tpu.matmul %2, %6, %cst {dimension_numbers = #tpu.dot_dimension_numbers<[1], [0], [0], [1], [0, 0, 1, 1], [], []>} : vector<64x256xbf16>, vector<256x256xbf16>, vector<64x256xf32> -> vector<64x256xf32>
    %c0_7 = arith.constant 0 : index
    %c0_8 = arith.constant 0 : index
    %8 = vector.load %arg5[%c0_7, %c0_8] : memref<1x768xf32, #tpu.memory_space<vmem>>, vector<1x256xf32>
    %9 = vector.broadcast %8 : vector<1x256xf32> to vector<64x256xf32>
    %10 = arith.addf %7, %9 : vector<64x256xf32>
    %c0_9 = arith.constant 0 : index
    %c256 = arith.constant 256 : index
    %11 = vector.load %arg4[%c0_9, %c256] : memref<256x768xbf16, #tpu.memory_space<vmem>>, vector<256x512xbf16>
    %cst_10 = arith.constant dense<0.000000e+00> : vector<64x512xf32>
    %12 = tpu.matmul %5, %11, %cst_10 {dimension_numbers = #tpu.dot_dimension_numbers<[1], [0], [0], [1], [0, 0, 1, 1], [], []>} : vector<64x256xbf16>, vector<256x512xbf16>, vector<64x512xf32> -> vector<64x512xf32>
    %c0_11 = arith.constant 0 : index
    %c256_12 = arith.constant 256 : index
    %13 = vector.load %arg5[%c0_11, %c256_12] : memref<1x768xf32, #tpu.memory_space<vmem>>, vector<1x512xf32>
    %14 = vector.broadcast %13 : vector<1x512xf32> to vector<64x512xf32>
    %15 = arith.addf %12, %14 : vector<64x512xf32>
    %cst_13 = arith.constant 0.176776692 : f32
    %16 = vector.broadcast %cst_13 : f32 to vector<64x256xf32>
    %17 = arith.mulf %10, %16 : vector<64x256xf32>
    %18 = arith.truncf %17 : vector<64x256xf32> to vector<64x256xbf16>
    %c0_14 = arith.constant 0 : index
    %c0_15 = arith.constant 0 : index
    %19 = vector.load %arg17[%c0_14, %c0_15] : memref<64x768xbf16, #tpu.memory_space<vmem>>, vector<64x256xbf16>
    tpu.vector_store %arg17[%c0_14, %c0_15], %18 {strides = array<i32>} : memref<64x768xbf16, #tpu.memory_space<vmem>>, vector<64x256xbf16>,
    %20 = arith.truncf %15 : vector<64x512xf32> to vector<64x512xbf16>
    %c0_16 = arith.constant 0 : index
    %c256_17 = arith.constant 256 : index
    %21 = vector.load %arg17[%c0_16, %c256_17] : memref<64x768xbf16, #tpu.memory_space<vmem>>, vector<64x512xbf16>
    tpu.vector_store %arg17[%c0_16, %c256_17], %20 {strides = array<i32>} : memref<64x768xbf16, #tpu.memory_space<vmem>>, vector<64x512xbf16>,
    %c0_18 = arith.constant 0 : index
    %c0_19 = arith.constant 0 : index
    %22 = vector.load %arg17[%c0_18, %c0_19] : memref<64x768xbf16, #tpu.memory_space<vmem>>, vector<64x32xbf16>
    %c0_20 = arith.constant 0 : index
    %c256_21 = arith.constant 256 : index
    %23 = vector.load %arg17[%c0_20, %c256_21] : memref<64x768xbf16, #tpu.memory_space<vmem>>, vector<64x32xbf16>
    %c0_22 = arith.constant 0 : index
    %c512 = arith.constant 512 : index
    %24 = vector.load %arg17[%c0_22, %c512] : memref<64x768xbf16, #tpu.memory_space<vmem>>, vector<64x32xbf16>
    %cst_23 = arith.constant dense<0.000000e+00> : vector<64x64xf32>
    %25 = tpu.matmul %22, %23, %cst_23 {dimension_numbers = #tpu.dot_dimension_numbers<[1], [1], [0], [0], [0, 0, 1, 0], [], []>} : vector<64x32xbf16>, vector<64x32xbf16>, vector<64x64xf32> -> vector<64x64xf32>
    %cst_24 = arith.constant dense<0xFF800000> : vector<64xf32>
    %26 = vector.multi_reduction <maximumf>, %25, %cst_24 [1] : vector<64x64xf32> to vector<64xf32>
    %27 = vector.shape_cast %26 : vector<64xf32> to vector<64x1xf32>
    %28 = vector.broadcast %27 : vector<64x1xf32> to vector<64x64xf32>
    %29 = arith.subf %25, %28 : vector<64x64xf32>
    %30 = math.exp %29 : vector<64x64xf32>
    %cst_25 = arith.constant dense<0.000000e+00> : vector<64xf32>
    %31 = vector.multi_reduction <add>, %30, %cst_25 [1] : vector<64x64xf32> to vector<64xf32>
    %32 = vector.shape_cast %31 : vector<64xf32> to vector<64x1xf32>
    %33 = arith.truncf %30 : vector<64x64xf32> to vector<64x64xbf16>
    %cst_26 = arith.constant dense<0.000000e+00> : vector<64x32xf32>
    %34 = tpu.matmul %33, %24, %cst_26 {dimension_numbers = #tpu.dot_dimension_numbers<[1], [0], [0], [1], [0, 0, 1, 1], [], []>} : vector<64x64xbf16>, vector<64x32xbf16>, vector<64x32xf32> -> vector<64x32xf32>
    %35 = tpu.reciprocal %32 : vector<64x1xf32> -> vector<64x1xf32>
    %36 = vector.broadcast %35 : vector<64x1xf32> to vector<64x32xf32>
    %37 = arith.mulf %34, %36 : vector<64x32xf32>
    %38 = arith.truncf %37 : vector<64x32xf32> to vector<64x32xbf16>
    %c0_27 = arith.constant 0 : index
    %c0_28 = arith.constant 0 : index
    %39 = vector.load %arg18[%c0_27, %c0_28] : memref<64x256xbf16, #tpu.memory_space<vmem>>, vector<64x32xbf16>
    tpu.vector_store %arg18[%c0_27, %c0_28], %38 {strides = array<i32>} : memref<64x256xbf16, #tpu.memory_space<vmem>>, vector<64x32xbf16>,
    %c0_29 = arith.constant 0 : index
    %c32 = arith.constant 32 : index
    %40 = vector.load %arg17[%c0_29, %c32] : memref<64x768xbf16, #tpu.memory_space<vmem>>, vector<64x32xbf16>
    %c0_30 = arith.constant 0 : index
    %c288 = arith.constant 288 : index
    %41 = vector.load %arg17[%c0_30, %c288] : memref<64x768xbf16, #tpu.memory_space<vmem>>, vector<64x32xbf16>
    %c0_31 = arith.constant 0 : index
    %c544 = arith.constant 544 : index
    %42 = vector.load %arg17[%c0_31, %c544] : memref<64x768xbf16, #tpu.memory_space<vmem>>, vector<64x32xbf16>
    %cst_32 = arith.constant dense<0.000000e+00> : vector<64x64xf32>
    %43 = tpu.matmul %40, %41, %cst_32 {dimension_numbers = #tpu.dot_dimension_numbers<[1], [1], [0], [0], [0, 0, 1, 0], [], []>} : vector<64x32xbf16>, vector<64x32xbf16>, vector<64x64xf32> -> vector<64x64xf32>
    %cst_33 = arith.constant dense<0xFF800000> : vector<64xf32>
    %44 = vector.multi_reduction <maximumf>, %43, %cst_33 [1] : vector<64x64xf32> to vector<64xf32>
    %45 = vector.shape_cast %44 : vector<64xf32> to vector<64x1xf32>
    %46 = vector.broadcast %45 : vector<64x1xf32> to vector<64x64xf32>
    %47 = arith.subf %43, %46 : vector<64x64xf32>
    %48 = math.exp %47 : vector<64x64xf32>
    %cst_34 = arith.constant dense<0.000000e+00> : vector<64xf32>
    %49 = vector.multi_reduction <add>, %48, %cst_34 [1] : vector<64x64xf32> to vector<64xf32>
    %50 = vector.shape_cast %49 : vector<64xf32> to vector<64x1xf32>
    %51 = arith.truncf %48 : vector<64x64xf32> to vector<64x64xbf16>
    %cst_35 = arith.constant dense<0.000000e+00> : vector<64x32xf32>
    %52 = tpu.matmul %51, %42, %cst_35 {dimension_numbers = #tpu.dot_dimension_numbers<[1], [0], [0], [1], [0, 0, 1, 1], [], []>} : vector<64x64xbf16>, vector<64x32xbf16>, vector<64x32xf32> -> vector<64x32xf32>
    %53 = tpu.reciprocal %50 : vector<64x1xf32> -> vector<64x1xf32>
    %54 = vector.broadcast %53 : vector<64x1xf32> to vector<64x32xf32>
    %55 = arith.mulf %52, %54 : vector<64x32xf32>
    %56 = arith.truncf %55 : vector<64x32xf32> to vector<64x32xbf16>
    %c0_36 = arith.constant 0 : index
    %c32_37 = arith.constant 32 : index
    %57 = vector.load %arg18[%c0_36, %c32_37] : memref<64x256xbf16, #tpu.memory_space<vmem>>, vector<64x32xbf16>
    tpu.vector_store %arg18[%c0_36, %c32_37], %56 {strides = array<i32>} : memref<64x256xbf16, #tpu.memory_space<vmem>>, vector<64x32xbf16>,
    %c0_38 = arith.constant 0 : index
    %c64 = arith.constant 64 : index
    %58 = vector.load %arg17[%c0_38, %c64] : memref<64x768xbf16, #tpu.memory_space<vmem>>, vector<64x32xbf16>
    %c0_39 = arith.constant 0 : index
    %c320 = arith.constant 320 : index
    %59 = vector.load %arg17[%c0_39, %c320] : memref<64x768xbf16, #tpu.memory_space<vmem>>, vector<64x32xbf16>
    %c0_40 = arith.constant 0 : index
    %c576 = arith.constant 576 : index
    %60 = vector.load %arg17[%c0_40, %c576] : memref<64x768xbf16, #tpu.memory_space<vmem>>, vector<64x32xbf16>
    %cst_41 = arith.constant dense<0.000000e+00> : vector<64x64xf32>
    %61 = tpu.matmul %58, %59, %cst_41 {dimension_numbers = #tpu.dot_dimension_numbers<[1], [1], [0], [0], [0, 0, 1, 0], [], []>} : vector<64x32xbf16>, vector<64x32xbf16>, vector<64x64xf32> -> vector<64x64xf32>
    %cst_42 = arith.constant dense<0xFF800000> : vector<64xf32>
    %62 = vector.multi_reduction <maximumf>, %61, %cst_42 [1] : vector<64x64xf32> to vector<64xf32>
    %63 = vector.shape_cast %62 : vector<64xf32> to vector<64x1xf32>
    %64 = vector.broadcast %63 : vector<64x1xf32> to vector<64x64xf32>
    %65 = arith.subf %61, %64 : vector<64x64xf32>
    %66 = math.exp %65 : vector<64x64xf32>
    %cst_43 = arith.constant dense<0.000000e+00> : vector<64xf32>
    %67 = vector.multi_reduction <add>, %66, %cst_43 [1] : vector<64x64xf32> to vector<64xf32>
    %68 = vector.shape_cast %67 : vector<64xf32> to vector<64x1xf32>
    %69 = arith.truncf %66 : vector<64x64xf32> to vector<64x64xbf16>
    %cst_44 = arith.constant dense<0.000000e+00> : vector<64x32xf32>
    %70 = tpu.matmul %69, %60, %cst_44 {dimension_numbers = #tpu.dot_dimension_numbers<[1], [0], [0], [1], [0, 0, 1, 1], [], []>} : vector<64x64xbf16>, vector<64x32xbf16>, vector<64x32xf32> -> vector<64x32xf32>
    %71 = tpu.reciprocal %68 : vector<64x1xf32> -> vector<64x1xf32>
    %72 = vector.broadcast %71 : vector<64x1xf32> to vector<64x32xf32>
    %73 = arith.mulf %70, %72 : vector<64x32xf32>
    %74 = arith.truncf %73 : vector<64x32xf32> to vector<64x32xbf16>
    %c0_45 = arith.constant 0 : index
    %c64_46 = arith.constant 64 : index
    %75 = vector.load %arg18[%c0_45, %c64_46] : memref<64x256xbf16, #tpu.memory_space<vmem>>, vector<64x32xbf16>
    tpu.vector_store %arg18[%c0_45, %c64_46], %74 {strides = array<i32>} : memref<64x256xbf16, #tpu.memory_space<vmem>>, vector<64x32xbf16>,
    %c0_47 = arith.constant 0 : index
    %c96 = arith.constant 96 : index
    %76 = vector.load %arg17[%c0_47, %c96] : memref<64x768xbf16, #tpu.memory_space<vmem>>, vector<64x32xbf16>
    %c0_48 = arith.constant 0 : index
    %c352 = arith.constant 352 : index
    %77 = vector.load %arg17[%c0_48, %c352] : memref<64x768xbf16, #tpu.memory_space<vmem>>, vector<64x32xbf16>
    %c0_49 = arith.constant 0 : index
    %c608 = arith.constant 608 : index
    %78 = vector.load %arg17[%c0_49, %c608] : memref<64x768xbf16, #tpu.memory_space<vmem>>, vector<64x32xbf16>
    %cst_50 = arith.constant dense<0.000000e+00> : vector<64x64xf32>
    %79 = tpu.matmul %76, %77, %cst_50 {dimension_numbers = #tpu.dot_dimension_numbers<[1], [1], [0], [0], [0, 0, 1, 0], [], []>} : vector<64x32xbf16>, vector<64x32xbf16>, vector<64x64xf32> -> vector<64x64xf32>
    %cst_51 = arith.constant dense<0xFF800000> : vector<64xf32>
    %80 = vector.multi_reduction <maximumf>, %79, %cst_51 [1] : vector<64x64xf32> to vector<64xf32>
    %81 = vector.shape_cast %80 : vector<64xf32> to vector<64x1xf32>
    %82 = vector.broadcast %81 : vector<64x1xf32> to vector<64x64xf32>
    %83 = arith.subf %79, %82 : vector<64x64xf32>
    %84 = math.exp %83 : vector<64x64xf32>
    %cst_52 = arith.constant dense<0.000000e+00> : vector<64xf32>
    %85 = vector.multi_reduction <add>, %84, %cst_52 [1] : vector<64x64xf32> to vector<64xf32>
    %86 = vector.shape_cast %85 : vector<64xf32> to vector<64x1xf32>
    %87 = arith.truncf %84 : vector<64x64xf32> to vector<64x64xbf16>
    %cst_53 = arith.constant dense<0.000000e+00> : vector<64x32xf32>
    %88 = tpu.matmul %87, %78, %cst_53 {dimension_numbers = #tpu.dot_dimension_numbers<[1], [0], [0], [1], [0, 0, 1, 1], [], []>} : vector<64x64xbf16>, vector<64x32xbf16>, vector<64x32xf32> -> vector<64x32xf32>
    %89 = tpu.reciprocal %86 : vector<64x1xf32> -> vector<64x1xf32>
    %90 = vector.broadcast %89 : vector<64x1xf32> to vector<64x32xf32>
    %91 = arith.mulf %88, %90 : vector<64x32xf32>
    %92 = arith.truncf %91 : vector<64x32xf32> to vector<64x32xbf16>
    %c0_54 = arith.constant 0 : index
    %c96_55 = arith.constant 96 : index
    %93 = vector.load %arg18[%c0_54, %c96_55] : memref<64x256xbf16, #tpu.memory_space<vmem>>, vector<64x32xbf16>
    tpu.vector_store %arg18[%c0_54, %c96_55], %92 {strides = array<i32>} : memref<64x256xbf16, #tpu.memory_space<vmem>>, vector<64x32xbf16>,
    %c0_56 = arith.constant 0 : index
    %c128 = arith.constant 128 : index
    %94 = vector.load %arg17[%c0_56, %c128] : memref<64x768xbf16, #tpu.memory_space<vmem>>, vector<64x32xbf16>
    %c0_57 = arith.constant 0 : index
    %c384 = arith.constant 384 : index
    %95 = vector.load %arg17[%c0_57, %c384] : memref<64x768xbf16, #tpu.memory_space<vmem>>, vector<64x32xbf16>
    %c0_58 = arith.constant 0 : index
    %c640 = arith.constant 640 : index
    %96 = vector.load %arg17[%c0_58, %c640] : memref<64x768xbf16, #tpu.memory_space<vmem>>, vector<64x32xbf16>
    %cst_59 = arith.constant dense<0.000000e+00> : vector<64x64xf32>
    %97 = tpu.matmul %94, %95, %cst_59 {dimension_numbers = #tpu.dot_dimension_numbers<[1], [1], [0], [0], [0, 0, 1, 0], [], []>} : vector<64x32xbf16>, vector<64x32xbf16>, vector<64x64xf32> -> vector<64x64xf32>
    %cst_60 = arith.constant dense<0xFF800000> : vector<64xf32>
    %98 = vector.multi_reduction <maximumf>, %97, %cst_60 [1] : vector<64x64xf32> to vector<64xf32>
    %99 = vector.shape_cast %98 : vector<64xf32> to vector<64x1xf32>
    %100 = vector.broadcast %99 : vector<64x1xf32> to vector<64x64xf32>
    %101 = arith.subf %97, %100 : vector<64x64xf32>
    %102 = math.exp %101 : vector<64x64xf32>
    %cst_61 = arith.constant dense<0.000000e+00> : vector<64xf32>
    %103 = vector.multi_reduction <add>, %102, %cst_61 [1] : vector<64x64xf32> to vector<64xf32>
    %104 = vector.shape_cast %103 : vector<64xf32> to vector<64x1xf32>
    %105 = arith.truncf %102 : vector<64x64xf32> to vector<64x64xbf16>
    %cst_62 = arith.constant dense<0.000000e+00> : vector<64x32xf32>
    %106 = tpu.matmul %105, %96, %cst_62 {dimension_numbers = #tpu.dot_dimension_numbers<[1], [0], [0], [1], [0, 0, 1, 1], [], []>} : vector<64x64xbf16>, vector<64x32xbf16>, vector<64x32xf32> -> vector<64x32xf32>
    %107 = tpu.reciprocal %104 : vector<64x1xf32> -> vector<64x1xf32>
    %108 = vector.broadcast %107 : vector<64x1xf32> to vector<64x32xf32>
    %109 = arith.mulf %106, %108 : vector<64x32xf32>
    %110 = arith.truncf %109 : vector<64x32xf32> to vector<64x32xbf16>
    %c0_63 = arith.constant 0 : index
    %c128_64 = arith.constant 128 : index
    %111 = vector.load %arg18[%c0_63, %c128_64] : memref<64x256xbf16, #tpu.memory_space<vmem>>, vector<64x32xbf16>
    tpu.vector_store %arg18[%c0_63, %c128_64], %110 {strides = array<i32>} : memref<64x256xbf16, #tpu.memory_space<vmem>>, vector<64x32xbf16>,
    %c0_65 = arith.constant 0 : index
    %c160 = arith.constant 160 : index
    %112 = vector.load %arg17[%c0_65, %c160] : memref<64x768xbf16, #tpu.memory_space<vmem>>, vector<64x32xbf16>
    %c0_66 = arith.constant 0 : index
    %c416 = arith.constant 416 : index
    %113 = vector.load %arg17[%c0_66, %c416] : memref<64x768xbf16, #tpu.memory_space<vmem>>, vector<64x32xbf16>
    %c0_67 = arith.constant 0 : index
    %c672 = arith.constant 672 : index
    %114 = vector.load %arg17[%c0_67, %c672] : memref<64x768xbf16, #tpu.memory_space<vmem>>, vector<64x32xbf16>
    %cst_68 = arith.constant dense<0.000000e+00> : vector<64x64xf32>
    %115 = tpu.matmul %112, %113, %cst_68 {dimension_numbers = #tpu.dot_dimension_numbers<[1], [1], [0], [0], [0, 0, 1, 0], [], []>} : vector<64x32xbf16>, vector<64x32xbf16>, vector<64x64xf32> -> vector<64x64xf32>
    %cst_69 = arith.constant dense<0xFF800000> : vector<64xf32>
    %116 = vector.multi_reduction <maximumf>, %115, %cst_69 [1] : vector<64x64xf32> to vector<64xf32>
    %117 = vector.shape_cast %116 : vector<64xf32> to vector<64x1xf32>
    %118 = vector.broadcast %117 : vector<64x1xf32> to vector<64x64xf32>
    %119 = arith.subf %115, %118 : vector<64x64xf32>
    %120 = math.exp %119 : vector<64x64xf32>
    %cst_70 = arith.constant dense<0.000000e+00> : vector<64xf32>
    %121 = vector.multi_reduction <add>, %120, %cst_70 [1] : vector<64x64xf32> to vector<64xf32>
    %122 = vector.shape_cast %121 : vector<64xf32> to vector<64x1xf32>
    %123 = arith.truncf %120 : vector<64x64xf32> to vector<64x64xbf16>
    %cst_71 = arith.constant dense<0.000000e+00> : vector<64x32xf32>
    %124 = tpu.matmul %123, %114, %cst_71 {dimension_numbers = #tpu.dot_dimension_numbers<[1], [0], [0], [1], [0, 0, 1, 1], [], []>} : vector<64x64xbf16>, vector<64x32xbf16>, vector<64x32xf32> -> vector<64x32xf32>
    %125 = tpu.reciprocal %122 : vector<64x1xf32> -> vector<64x1xf32>
    %126 = vector.broadcast %125 : vector<64x1xf32> to vector<64x32xf32>
    %127 = arith.mulf %124, %126 : vector<64x32xf32>
    %128 = arith.truncf %127 : vector<64x32xf32> to vector<64x32xbf16>
    %c0_72 = arith.constant 0 : index
    %c160_73 = arith.constant 160 : index
    %129 = vector.load %arg18[%c0_72, %c160_73] : memref<64x256xbf16, #tpu.memory_space<vmem>>, vector<64x32xbf16>
    tpu.vector_store %arg18[%c0_72, %c160_73], %128 {strides = array<i32>} : memref<64x256xbf16, #tpu.memory_space<vmem>>, vector<64x32xbf16>,
    %c0_74 = arith.constant 0 : index
    %c192 = arith.constant 192 : index
    %130 = vector.load %arg17[%c0_74, %c192] : memref<64x768xbf16, #tpu.memory_space<vmem>>, vector<64x32xbf16>
    %c0_75 = arith.constant 0 : index
    %c448 = arith.constant 448 : index
    %131 = vector.load %arg17[%c0_75, %c448] : memref<64x768xbf16, #tpu.memory_space<vmem>>, vector<64x32xbf16>
    %c0_76 = arith.constant 0 : index
    %c704 = arith.constant 704 : index
    %132 = vector.load %arg17[%c0_76, %c704] : memref<64x768xbf16, #tpu.memory_space<vmem>>, vector<64x32xbf16>
    %cst_77 = arith.constant dense<0.000000e+00> : vector<64x64xf32>
    %133 = tpu.matmul %130, %131, %cst_77 {dimension_numbers = #tpu.dot_dimension_numbers<[1], [1], [0], [0], [0, 0, 1, 0], [], []>} : vector<64x32xbf16>, vector<64x32xbf16>, vector<64x64xf32> -> vector<64x64xf32>
    %cst_78 = arith.constant dense<0xFF800000> : vector<64xf32>
    %134 = vector.multi_reduction <maximumf>, %133, %cst_78 [1] : vector<64x64xf32> to vector<64xf32>
    %135 = vector.shape_cast %134 : vector<64xf32> to vector<64x1xf32>
    %136 = vector.broadcast %135 : vector<64x1xf32> to vector<64x64xf32>
    %137 = arith.subf %133, %136 : vector<64x64xf32>
    %138 = math.exp %137 : vector<64x64xf32>
    %cst_79 = arith.constant dense<0.000000e+00> : vector<64xf32>
    %139 = vector.multi_reduction <add>, %138, %cst_79 [1] : vector<64x64xf32> to vector<64xf32>
    %140 = vector.shape_cast %139 : vector<64xf32> to vector<64x1xf32>
    %141 = arith.truncf %138 : vector<64x64xf32> to vector<64x64xbf16>
    %cst_80 = arith.constant dense<0.000000e+00> : vector<64x32xf32>
    %142 = tpu.matmul %141, %132, %cst_80 {dimension_numbers = #tpu.dot_dimension_numbers<[1], [0], [0], [1], [0, 0, 1, 1], [], []>} : vector<64x64xbf16>, vector<64x32xbf16>, vector<64x32xf32> -> vector<64x32xf32>
    %143 = tpu.reciprocal %140 : vector<64x1xf32> -> vector<64x1xf32>
    %144 = vector.broadcast %143 : vector<64x1xf32> to vector<64x32xf32>
    %145 = arith.mulf %142, %144 : vector<64x32xf32>
    %146 = arith.truncf %145 : vector<64x32xf32> to vector<64x32xbf16>
    %c0_81 = arith.constant 0 : index
    %c192_82 = arith.constant 192 : index
    %147 = vector.load %arg18[%c0_81, %c192_82] : memref<64x256xbf16, #tpu.memory_space<vmem>>, vector<64x32xbf16>
    tpu.vector_store %arg18[%c0_81, %c192_82], %146 {strides = array<i32>} : memref<64x256xbf16, #tpu.memory_space<vmem>>, vector<64x32xbf16>,
    %c0_83 = arith.constant 0 : index
    %c224 = arith.constant 224 : index
    %148 = vector.load %arg17[%c0_83, %c224] : memref<64x768xbf16, #tpu.memory_space<vmem>>, vector<64x32xbf16>
    %c0_84 = arith.constant 0 : index
    %c480 = arith.constant 480 : index
    %149 = vector.load %arg17[%c0_84, %c480] : memref<64x768xbf16, #tpu.memory_space<vmem>>, vector<64x32xbf16>
    %c0_85 = arith.constant 0 : index
    %c736 = arith.constant 736 : index
    %150 = vector.load %arg17[%c0_85, %c736] : memref<64x768xbf16, #tpu.memory_space<vmem>>, vector<64x32xbf16>
    %cst_86 = arith.constant dense<0.000000e+00> : vector<64x64xf32>
    %151 = tpu.matmul %148, %149, %cst_86 {dimension_numbers = #tpu.dot_dimension_numbers<[1], [1], [0], [0], [0, 0, 1, 0], [], []>} : vector<64x32xbf16>, vector<64x32xbf16>, vector<64x64xf32> -> vector<64x64xf32>
    %cst_87 = arith.constant dense<0xFF800000> : vector<64xf32>
    %152 = vector.multi_reduction <maximumf>, %151, %cst_87 [1] : vector<64x64xf32> to vector<64xf32>
    %153 = vector.shape_cast %152 : vector<64xf32> to vector<64x1xf32>
    %154 = vector.broadcast %153 : vector<64x1xf32> to vector<64x64xf32>
    %155 = arith.subf %151, %154 : vector<64x64xf32>
    %156 = math.exp %155 : vector<64x64xf32>
    %cst_88 = arith.constant dense<0.000000e+00> : vector<64xf32>
    %157 = vector.multi_reduction <add>, %156, %cst_88 [1] : vector<64x64xf32> to vector<64xf32>
    %158 = vector.shape_cast %157 : vector<64xf32> to vector<64x1xf32>
    %159 = arith.truncf %156 : vector<64x64xf32> to vector<64x64xbf16>
    %cst_89 = arith.constant dense<0.000000e+00> : vector<64x32xf32>
    %160 = tpu.matmul %159, %150, %cst_89 {dimension_numbers = #tpu.dot_dimension_numbers<[1], [0], [0], [1], [0, 0, 1, 1], [], []>} : vector<64x64xbf16>, vector<64x32xbf16>, vector<64x32xf32> -> vector<64x32xf32>
    %161 = tpu.reciprocal %158 : vector<64x1xf32> -> vector<64x1xf32>
    %162 = vector.broadcast %161 : vector<64x1xf32> to vector<64x32xf32>
    %163 = arith.mulf %160, %162 : vector<64x32xf32>
    %164 = arith.truncf %163 : vector<64x32xf32> to vector<64x32xbf16>
    %c0_90 = arith.constant 0 : index
    %c224_91 = arith.constant 224 : index
    %165 = vector.load %arg18[%c0_90, %c224_91] : memref<64x256xbf16, #tpu.memory_space<vmem>>, vector<64x32xbf16>
    tpu.vector_store %arg18[%c0_90, %c224_91], %164 {strides = array<i32>} : memref<64x256xbf16, #tpu.memory_space<vmem>>, vector<64x32xbf16>,
    %c0_92 = arith.constant 0 : index
    %c0_93 = arith.constant 0 : index
    %166 = vector.load %arg18[%c0_92, %c0_93] : memref<64x256xbf16, #tpu.memory_space<vmem>>, vector<64x256xbf16>
    %c0_94 = arith.constant 0 : index
    %c0_95 = arith.constant 0 : index
    %167 = vector.load %arg6[%c0_94, %c0_95] : memref<256x256xbf16, #tpu.memory_space<vmem>>, vector<256x256xbf16>
    %cst_96 = arith.constant dense<0.000000e+00> : vector<64x256xf32>
    %168 = tpu.matmul %166, %167, %cst_96 {dimension_numbers = #tpu.dot_dimension_numbers<[1], [0], [0], [1], [0, 0, 1, 1], [], []>} : vector<64x256xbf16>, vector<256x256xbf16>, vector<64x256xf32> -> vector<64x256xf32>
    %c0_97 = arith.constant 0 : index
    %c0_98 = arith.constant 0 : index
    %169 = vector.load %arg7[%c0_97, %c0_98] : memref<1x256xf32, #tpu.memory_space<vmem>>, vector<1x256xf32>
    %170 = vector.broadcast %169 : vector<1x256xf32> to vector<64x256xf32>
    %171 = arith.addf %168, %170 : vector<64x256xf32>
    %c0_99 = arith.constant 0 : index
    %c0_100 = arith.constant 0 : index
    %172 = vector.load %arg19[%c0_99, %c0_100] : memref<64x256xf32, #tpu.memory_space<vmem>>, vector<64x256xf32>
    tpu.vector_store %arg19[%c0_99, %c0_100], %171 {strides = array<i32>} : memref<64x256xf32, #tpu.memory_space<vmem>>, vector<64x256xf32>,
    %c0_101 = arith.constant 0 : index
    %c0_102 = arith.constant 0 : index
    %173 = vector.load %arg19[%c0_101, %c0_102] : memref<64x256xf32, #tpu.memory_space<vmem>>, vector<64x256xf32>
    %c0_103 = arith.constant 0 : index
    %c0_104 = arith.constant 0 : index
    %174 = vector.load %arg8[%c0_103, %c0_104] : memref<1x256xf32, #tpu.memory_space<vmem>>, vector<1x256xf32>
    %c0_105 = arith.constant 0 : index
    %c0_106 = arith.constant 0 : index
    %175 = vector.load %arg9[%c0_105, %c0_106] : memref<1x256xf32, #tpu.memory_space<vmem>>, vector<1x256xf32>
    %cst_107 = arith.constant dense<0.000000e+00> : vector<64xf32>
    %176 = vector.multi_reduction <add>, %173, %cst_107 [1] : vector<64x256xf32> to vector<64xf32>
    %177 = vector.shape_cast %176 : vector<64xf32> to vector<64x1xf32>
    %cst_108 = arith.constant 2.560000e+02 : f32
    %178 = vector.broadcast %cst_108 : f32 to vector<64x1xf32>
    %179 = arith.divf %177, %178 : vector<64x1xf32>
    %180 = vector.broadcast %179 : vector<64x1xf32> to vector<64x256xf32>
    %181 = arith.subf %173, %180 : vector<64x256xf32>
    %182 = arith.mulf %181, %181 : vector<64x256xf32>
    %cst_109 = arith.constant dense<0.000000e+00> : vector<64xf32>
    %183 = vector.multi_reduction <add>, %182, %cst_109 [1] : vector<64x256xf32> to vector<64xf32>
    %184 = vector.shape_cast %183 : vector<64xf32> to vector<64x1xf32>
    %cst_110 = arith.constant 2.560000e+02 : f32
    %185 = vector.broadcast %cst_110 : f32 to vector<64x1xf32>
    %186 = arith.divf %184, %185 : vector<64x1xf32>
    %cst_111 = arith.constant 9.99999974E-6 : f32
    %187 = vector.broadcast %cst_111 : f32 to vector<64x1xf32>
    %188 = arith.addf %186, %187 : vector<64x1xf32>
    %189 = math.rsqrt %188 : vector<64x1xf32>
    %190 = vector.broadcast %189 : vector<64x1xf32> to vector<64x256xf32>
    %191 = arith.mulf %181, %190 : vector<64x256xf32>
    %192 = vector.broadcast %174 : vector<1x256xf32> to vector<64x256xf32>
    %193 = arith.mulf %191, %192 : vector<64x256xf32>
    %194 = vector.broadcast %175 : vector<1x256xf32> to vector<64x256xf32>
    %195 = arith.addf %193, %194 : vector<64x256xf32>
    %196 = arith.truncf %195 : vector<64x256xf32> to vector<64x256xbf16>
    %c0_112 = arith.constant 0 : index
    %c0_113 = arith.constant 0 : index
    %197 = vector.load %arg10[%c0_112, %c0_113] : memref<256x256xbf16, #tpu.memory_space<vmem>>, vector<256x256xbf16>
    %cst_114 = arith.constant dense<0.000000e+00> : vector<64x256xf32>
    %198 = tpu.matmul %196, %197, %cst_114 {dimension_numbers = #tpu.dot_dimension_numbers<[1], [0], [0], [1], [0, 0, 1, 1], [], []>} : vector<64x256xbf16>, vector<256x256xbf16>, vector<64x256xf32> -> vector<64x256xf32>
    %c0_115 = arith.constant 0 : index
    %c0_116 = arith.constant 0 : index
    %199 = vector.load %arg11[%c0_115, %c0_116] : memref<1x256xf32, #tpu.memory_space<vmem>>, vector<1x256xf32>
    %200 = vector.broadcast %199 : vector<1x256xf32> to vector<64x256xf32>
    %201 = arith.addf %198, %200 : vector<64x256xf32>
    %c0_117 = arith.constant 0 : index
    %c0_118 = arith.constant 0 : index
    %c0_119 = arith.constant 0 : index
    %202 = vector.load %arg3[%c0_117, %c0_118, %c0_119] : memref<1x64x256xf32, #tpu.memory_space<vmem>>, vector<1x64x256xf32>
    %203 = vector.shape_cast %202 : vector<1x64x256xf32> to vector<64x256xf32>
    %204 = arith.addf %203, %201 : vector<64x256xf32>
    %cst_120 = arith.constant 0.000000e+00 : f32
    %205 = vector.broadcast %cst_120 : f32 to vector<64x256xf32>
    %206 = arith.maximumf %204, %205 : vector<64x256xf32>
    %207 = arith.truncf %206 : vector<64x256xf32> to vector<64x256xbf16>
    %c0_121 = arith.constant 0 : index
    %c0_122 = arith.constant 0 : index
    %208 = vector.load %arg12[%c0_121, %c0_122] : memref<256x256xbf16, #tpu.memory_space<vmem>>, vector<256x256xbf16>
    %cst_123 = arith.constant dense<0.000000e+00> : vector<64x256xf32>
    %209 = tpu.matmul %207, %208, %cst_123 {dimension_numbers = #tpu.dot_dimension_numbers<[1], [0], [0], [1], [0, 0, 1, 1], [], []>} : vector<64x256xbf16>, vector<256x256xbf16>, vector<64x256xf32> -> vector<64x256xf32>
    %c0_124 = arith.constant 0 : index
    %c0_125 = arith.constant 0 : index
    %210 = vector.load %arg13[%c0_124, %c0_125] : memref<1x256xf32, #tpu.memory_space<vmem>>, vector<1x256xf32>
    %211 = vector.broadcast %210 : vector<1x256xf32> to vector<64x256xf32>
    %212 = arith.addf %209, %211 : vector<64x256xf32>
    %c0_126 = arith.constant 0 : index
    %c0_127 = arith.constant 0 : index
    %213 = vector.load %arg19[%c0_126, %c0_127] : memref<64x256xf32, #tpu.memory_space<vmem>>, vector<64x256xf32>
    %214 = arith.addf %212, %213 : vector<64x256xf32>
    %c0_128 = arith.constant 0 : index
    %c0_129 = arith.constant 0 : index
    %215 = vector.load %arg14[%c0_128, %c0_129] : memref<1x256xf32, #tpu.memory_space<vmem>>, vector<1x256xf32>
    %c0_130 = arith.constant 0 : index
    %c0_131 = arith.constant 0 : index
    %216 = vector.load %arg15[%c0_130, %c0_131] : memref<1x256xf32, #tpu.memory_space<vmem>>, vector<1x256xf32>
    %cst_132 = arith.constant dense<0.000000e+00> : vector<64xf32>
    %217 = vector.multi_reduction <add>, %214, %cst_132 [1] : vector<64x256xf32> to vector<64xf32>
    %218 = vector.shape_cast %217 : vector<64xf32> to vector<64x1xf32>
    %cst_133 = arith.constant 2.560000e+02 : f32
    %219 = vector.broadcast %cst_133 : f32 to vector<64x1xf32>
    %220 = arith.divf %218, %219 : vector<64x1xf32>
    %221 = vector.broadcast %220 : vector<64x1xf32> to vector<64x256xf32>
    %222 = arith.subf %214, %221 : vector<64x256xf32>
    %223 = arith.mulf %222, %222 : vector<64x256xf32>
    %cst_134 = arith.constant dense<0.000000e+00> : vector<64xf32>
    %224 = vector.multi_reduction <add>, %223, %cst_134 [1] : vector<64x256xf32> to vector<64xf32>
    %225 = vector.shape_cast %224 : vector<64xf32> to vector<64x1xf32>
    %cst_135 = arith.constant 2.560000e+02 : f32
    %226 = vector.broadcast %cst_135 : f32 to vector<64x1xf32>
    %227 = arith.divf %225, %226 : vector<64x1xf32>
    %cst_136 = arith.constant 9.99999974E-6 : f32
    %228 = vector.broadcast %cst_136 : f32 to vector<64x1xf32>
    %229 = arith.addf %227, %228 : vector<64x1xf32>
    %230 = math.rsqrt %229 : vector<64x1xf32>
    %231 = vector.broadcast %230 : vector<64x1xf32> to vector<64x256xf32>
    %232 = arith.mulf %222, %231 : vector<64x256xf32>
    %233 = vector.broadcast %215 : vector<1x256xf32> to vector<64x256xf32>
    %234 = arith.mulf %232, %233 : vector<64x256xf32>
    %235 = vector.broadcast %216 : vector<1x256xf32> to vector<64x256xf32>
    %236 = arith.addf %234, %235 : vector<64x256xf32>
    %237 = vector.shape_cast %236 : vector<64x256xf32> to vector<1x64x256xf32>
    %c0_137 = arith.constant 0 : index
    %c0_138 = arith.constant 0 : index
    %c0_139 = arith.constant 0 : index
    %238 = vector.load %arg16[%c0_137, %c0_138, %c0_139] : memref<1x64x256xf32, #tpu.memory_space<vmem>>, vector<1x64x256xf32>
    tpu.vector_store %arg16[%c0_137, %c0_138, %c0_139], %237 {strides = array<i32>} : memref<1x64x256xf32, #tpu.memory_space<vmem>>, vector<1x64x256xf32>,
    return
  }
  func.func @transform_0(%arg0: i32) -> (i32, i32, i32) {
    %c0_i32 = arith.constant 0 : i32
    %c0_i32_0 = arith.constant 0 : i32
    %c0_i32_1 = arith.constant 0 : i32
    return %arg0, %c0_i32, %c0_i32_0 : i32, i32, i32
  }
  func.func @transform_1(%arg0: i32) -> (i32, i32, i32) {
    %c0_i32 = arith.constant 0 : i32
    %c0_i32_0 = arith.constant 0 : i32
    %c0_i32_1 = arith.constant 0 : i32
    return %arg0, %c0_i32, %c0_i32_0 : i32, i32, i32
  }
  func.func @transform_2(%arg0: i32) -> (i32, i32, i32) {
    %c0_i32 = arith.constant 0 : i32
    %c0_i32_0 = arith.constant 0 : i32
    %c0_i32_1 = arith.constant 0 : i32
    return %arg0, %c0_i32, %c0_i32_0 : i32, i32, i32
  }
  func.func @transform_3(%arg0: i32) -> (i32, i32) {
    %c0_i32 = arith.constant 0 : i32
    %c0_i32_0 = arith.constant 0 : i32
    %c0_i32_1 = arith.constant 0 : i32
    return %c0_i32, %c0_i32_0 : i32, i32
  }
  func.func @transform_4(%arg0: i32) -> (i32, i32) {
    %c0_i32 = arith.constant 0 : i32
    %c0_i32_0 = arith.constant 0 : i32
    %c0_i32_1 = arith.constant 0 : i32
    return %c0_i32, %c0_i32_0 : i32, i32
  }
  func.func @transform_5(%arg0: i32) -> (i32, i32) {
    %c0_i32 = arith.constant 0 : i32
    %c0_i32_0 = arith.constant 0 : i32
    %c0_i32_1 = arith.constant 0 : i32
    return %c0_i32, %c0_i32_0 : i32, i32
  }
  func.func @transform_6(%arg0: i32) -> (i32, i32) {
    %c0_i32 = arith.constant 0 : i32
    %c0_i32_0 = arith.constant 0 : i32
    %c0_i32_1 = arith.constant 0 : i32
    return %c0_i32, %c0_i32_0 : i32, i32
  }
  func.func @transform_7(%arg0: i32) -> (i32, i32) {
    %c0_i32 = arith.constant 0 : i32
    %c0_i32_0 = arith.constant 0 : i32
    %c0_i32_1 = arith.constant 0 : i32
    return %c0_i32, %c0_i32_0 : i32, i32
  }
  func.func @transform_8(%arg0: i32) -> (i32, i32) {
    %c0_i32 = arith.constant 0 : i32
    %c0_i32_0 = arith.constant 0 : i32
    %c0_i32_1 = arith.constant 0 : i32
    return %c0_i32, %c0_i32_0 : i32, i32
  }
  func.func @transform_9(%arg0: i32) -> (i32, i32) {
    %c0_i32 = arith.constant 0 : i32
    %c0_i32_0 = arith.constant 0 : i32
    %c0_i32_1 = arith.constant 0 : i32
    return %c0_i32, %c0_i32_0 : i32, i32
  }
  func.func @transform_10(%arg0: i32) -> (i32, i32) {
    %c0_i32 = arith.constant 0 : i32
    %c0_i32_0 = arith.constant 0 : i32
    %c0_i32_1 = arith.constant 0 : i32
    return %c0_i32, %c0_i32_0 : i32, i32
  }
  func.func @transform_11(%arg0: i32) -> (i32, i32) {
    %c0_i32 = arith.constant 0 : i32
    %c0_i32_0 = arith.constant 0 : i32
    %c0_i32_1 = arith.constant 0 : i32
    return %c0_i32, %c0_i32_0 : i32, i32
  }
  func.func @transform_12(%arg0: i32) -> (i32, i32) {
    %c0_i32 = arith.constant 0 : i32
    %c0_i32_0 = arith.constant 0 : i32
    %c0_i32_1 = arith.constant 0 : i32
    return %c0_i32, %c0_i32_0 : i32, i32
  }
  func.func @transform_13(%arg0: i32) -> (i32, i32) {
    %c0_i32 = arith.constant 0 : i32
    %c0_i32_0 = arith.constant 0 : i32
    %c0_i32_1 = arith.constant 0 : i32
    return %c0_i32, %c0_i32_0 : i32, i32
  }
  func.func @transform_14(%arg0: i32) -> (i32, i32) {
    %c0_i32 = arith.constant 0 : i32
    %c0_i32_0 = arith.constant 0 : i32
    %c0_i32_1 = arith.constant 0 : i32
    return %c0_i32, %c0_i32_0 : i32, i32
  }
  func.func @transform_15(%arg0: i32) -> (i32, i32, i32) {
    %c0_i32 = arith.constant 0 : i32
    %c0_i32_0 = arith.constant 0 : i32
    %c0_i32_1 = arith.constant 0 : i32
    return %arg0, %c0_i32, %c0_i32_0 : i32, i32, i32
  }
}

</mosaic_0001>

<bundles_post_ra>
// kernel: msa_forward.1
= control target key start
LH: loop header
LB: loop body
LE: loop exit
PB: predicated region body
PF: predicated region fallthrough
CT: control target
= control target key end

     0   :  { %s12959_s0 = inlined_call_operand.vmem [shape: f32[2,64,256], index: 0, kind: input, shape index: {}]   ;;  %s12960_s1 = inlined_call_operand.vmem [shape: f32[2,64,256], index: 1, kind: input, shape index: {}]   ;;  %s12961_s2 = inlined_call_operand.vmem [shape: f32[2,64,256], index: 2, kind: input, shape index: {}]   ;;  %s12962_s3 = inlined_call_operand.vmem [shape: bf16[256,768], index: 3, kind: input, shape index: {}]   ;;  %s12963_s4 = inlined_call_operand.vmem [shape: f32[1,768], index: 4, kind: input, shape index: {}]   ;;  %s12964_s5 = inlined_call_operand.vmem [shape: bf16[256,256], index: 5, kind: input, shape index: {}]   ;;  %s12965_s6 = inlined_call_operand.vmem [shape: f32[1,256], index: 6, kind: input, shape index: {}]   ;;  %s12966_s7 = inlined_call_operand.vmem [shape: f32[1,256], index: 7, kind: input, shape index: {}]   ;;  %s12967_s8 = inlined_call_operand.vmem [shape: f32[1,256], index: 8, kind: input, shape index: {}]   ;;  %s12968_s9 = inlined_call_operand.vmem [shape: bf16[256,256], index: 9, kind: input, shape index: {}]   ;;  %s12969_s10 = inlined_call_operand.vmem [shape: f32[1,256], index: 10, kind: input, shape index: {}]   ;;  %s12970_s11 = inlined_call_operand.vmem [shape: bf16[256,256], index: 11, kind: input, shape index: {}]   ;;  %s12971_s12 = inlined_call_operand.vmem [shape: f32[1,256], index: 12, kind: input, shape index: {}]   ;;  %s12972_s13 = inlined_call_operand.vmem [shape: f32[1,256], index: 13, kind: input, shape index: {}]   ;;  %s12973_s14 = inlined_call_operand.vmem [shape: f32[1,256], index: 14, kind: input, shape index: {}]   ;;  %s12974_s15 = inlined_call_operand.hbm [shape: f32[2,64,256], index: 15, kind: output, shape index: {}]  }
   0x1   :  { %12993 = sst [smem:[#allocation34_spill]] %s12959_s0 }
   0x2   :  { %12994 = sst [smem:[#allocation35_spill]] %s12960_s1 }
   0x3   :  { %20 = vsyncpa [#allocation6], 0 }
   0x4   :  { %22 = vsyncpa [#allocation6 + $0x1], 0  ;;  %s8844_s18 = smov 0   ;;  %s8846_s19 = smov 0  }
   0x5   :  { %s8848_s20 = smov 0   ;;  %s8850_s21 = smov 0  }
   0x6 LB: > { %12995 = sst [smem:[#allocation8_spill]] %s8744_s18  ;;  %s8865_s22 = sadd.s32 4294967295, %s8756_s21   ;;  %s8756_s21 = sphi %s8850_s21, %s13126_s21   ;;  %s8752_s20 = sphi %s8848_s20, %s13128_s20   ;;  %s8748_s19 = sphi %s8846_s19, %s13130_s19   ;;  %s8744_s18 = sphi %s8844_s18, %s13129_s18  }
   0x7   : > { %12996 = sst [smem:[#allocation9_spill]] %s8752_s20  ;;  %s6795_s23 = sadd.s32 4294967294, %s8756_s21  }
   0x8   : > { %12997 = sst [smem:[#allocation10_spill]] %s8756_s21  ;;  %s8869_s24 = sadd.s32 1, %s8756_s21  }
   0x9   : > { %12998 = sst [smem:[#allocation11_spill]] %s8869_s24  ;;  %s365_s25 = sadd.s32 1, %s8752_s20 }
   0xa   : > { %s362_s26 = ssub.s32 %s8756_s21, %s8869_s24  ;;  %p375_p0 = scmp.ne.s32.totalorder %s8752_s20, %s8748_s19 }
   0xb   : > { %p363_p1 = scmp.eq.s32.totalorder %s362_s26, 0  ;;  %p376_p2 = scmp.eq.s32.totalorder %s8865_s22, 1 }
   0xc   : > { %p381_p3 = scmp.ne.s32.totalorder %s8748_s19, %s8744_s18  ;;  %p382_p4 = scmp.eq.s32.totalorder %s6795_s23, 1 }
   0xd   : > { %s8880_s27 = scalar_select %p363_p1, %s8752_s20, %s365_s25  }
   0xe   : > { %p8882_p5 = por %p376_p2, %p375_p0  ;;  %p8886_p6 = por %p382_p4, %p381_p3 }
   0xf   : > { %12999 = sst [smem:[#allocation12_spill]] %s8880_s27  ;;  %p6798_p7 = scmp.ge.s32.totalorder %s8756_s21, 1 }
  0x10   : > { %s13000_s28 = scalar_select %p8882_p5, 1, 0 }
  0x11   : > { %s13002_s29 = scalar_select %p8886_p6, 1, 0 }
  0x12   : > { %13001 = sst [smem:[#allocation13_spill]] %s13000_s28  ;;  %p460_p8 = scmp.lt.s32.totalorder %s8756_s21, 3 }
  0x13   : > { %13003 = sst [smem:[#allocation14_spill]] %s13002_s29 }
  0x14   : > { %p461_p9 = pnand %p6798_p7, %p460_p8 }
  0x16   : > { %464 = sbr.rel (%p461_p9) target bundleno = 2438 (0x986), region = 80 }
  0x1b   : > { %v6864_v0 = vld [vmem:[%s12962_s3 + $0x150] sm:$0xf]  ;;  %v8077_v1 = vld [vmem:[%s12962_s3 + $0x164] sm:$0xf0]  ;;  %v8076_v5 = vld [vmem:[%s12962_s3 + $0x154] sm:$0xf] }
  0x1c   : > { %v6928_v2 = vld [vmem:[%s12962_s3 + $0x2d0] sm:$0xf]  ;;  %v6865_v3 = vor.u32 %v8077_v1, %v6864_v0  ;;  %v8093_v4 = vld [vmem:[%s12962_s3 + $0x2e4] sm:$0xf0]  ;;  %v6866_v6 = vld [vmem:[%s12962_s3 + $0x168] sm:$0xf0] }
  0x1d   : > { %v6929_v7 = vor.u32 %v8093_v4, %v6928_v2  ;;  %v6869_v8 = vor.u32 %v8076_v5, %v6866_v6  ;;  %v8092_v9 = vld [vmem:[%s12962_s3 + $0x2d4] sm:$0xf]  ;;  %v6930_v10 = vld [vmem:[%s12962_s3 + $0x2e8] sm:$0xf0]  ;;  %v6856_v11 = vld [vmem:[%s12962_s3 + $0x120] sm:$0xf] }
  0x1e   : > { %780 = vmatpush.bf16.msra.mxu0 %v6865_v3  ;;  %v6933_v12 = vor.u32 %v8092_v9, %v6930_v10  ;;  %v8075_v13 = vld [vmem:[%s12962_s3 + $0x134] sm:$0xf0]  ;;  %v6920_v14 = vld [vmem:[%s12962_s3 + $0x2a0] sm:$0xf]  ;;  %v8074_v18 = vld [vmem:[%s12962_s3 + $0x124] sm:$0xf] }
  0x1f   : > { %v8091_v15 = vld [vmem:[%s12962_s3 + $0x2b4] sm:$0xf0]  ;;  %809 = vmatpush.bf16.msra.mxu1 %v6929_v7  ;;  %838 = vmatpush.bf16.msra.mxu2 %v6869_v8  ;;  %v6857_v16 = vor.u32 %v8075_v13, %v6856_v11  ;;  %v6858_v19 = vld [vmem:[%s12962_s3 + $0x138] sm:$0xf0]  ;;  %v8090_v20 = vld [vmem:[%s12962_s3 + $0x2a4] sm:$0xf] }
  0x20   : > { %v6921_v17 = vor.u32 %v8091_v15, %v6920_v14  ;;  %867 = vmatpush.bf16.msra.mxu3 %v6933_v12  ;;  %v6861_v21 = vor.u32 %v8074_v18, %v6858_v19  ;;  %v6922_v22 = vld [vmem:[%s12962_s3 + $0x2b8] sm:$0xf0]  ;;  %v6848_v23 = vld [vmem:[%s12962_s3 + $0xf0] sm:$0xf]  ;;  %v8073_v24 = vld [vmem:[%s12962_s3 + $0x104] sm:$0xf0] }
  0x21   : > { %v6925_v25 = vor.u32 %v8090_v20, %v6922_v22  ;;  %v6912_v26 = vld [vmem:[%s12962_s3 + $0x270] sm:$0xf]  ;;  %v8089_v27 = vld [vmem:[%s12962_s3 + $0x284] sm:$0xf0]  ;;  %v8072_v28 = vld [vmem:[%s12962_s3 + $0xf4] sm:$0xf]  ;;  %v6849_v29 = vor.u32 %v8073_v24, %v6848_v23 }
  0x22   : > { %781 = vmatpush.bf16.msra.mxu0 %v6857_v16  ;;  %v6850_v30 = vld [vmem:[%s12962_s3 + $0x108] sm:$0xf0]  ;;  %v8088_v31 = vld [vmem:[%s12962_s3 + $0x274] sm:$0xf]  ;;  %v6913_v33 = vor.u32 %v8089_v27, %v6912_v26  ;;  %v6840_v35 = vld [vmem:[%s12962_s3 + $0xc0] sm:$0xf] }
  0x23   : > { %v6914_v32 = vld [vmem:[%s12962_s3 + $0x288] sm:$0xf0]  ;;  %810 = vmatpush.bf16.msra.mxu1 %v6921_v17  ;;  %839 = vmatpush.bf16.msra.mxu2 %v6861_v21  ;;  %v6853_v34 = vor.u32 %v8072_v28, %v6850_v30  ;;  %v8071_v36 = vld [vmem:[%s12962_s3 + $0xd4] sm:$0xf0]  ;;  %v6904_v37 = vld [vmem:[%s12962_s3 + $0x240] sm:$0xf] }
  0x24   : > { %868 = vmatpush.bf16.msra.mxu3 %v6925_v25  ;;  %v6917_v38 = vor.u32 %v8088_v31, %v6914_v32  ;;  %v8087_v39 = vld [vmem:[%s12962_s3 + $0x254] sm:$0xf0]  ;;  %v8070_v40 = vld [vmem:[%s12962_s3 + $0xc4] sm:$0xf]  ;;  %v6842_v41 = vld [vmem:[%s12962_s3 + $0xd8] sm:$0xf0]  ;;  %v6841_v44 = vor.u32 %v8071_v36, %v6840_v35 }
  0x25   : > { %v8086_v42 = vld [vmem:[%s12962_s3 + $0x244] sm:$0xf]  ;;  %v6906_v43 = vld [vmem:[%s12962_s3 + $0x258] sm:$0xf0]  ;;  %v6905_v45 = vor.u32 %v8087_v39, %v6904_v37  ;;  %v6845_v46 = vor.u32 %v8070_v40, %v6842_v41  ;;  %v6832_v47 = vld [vmem:[%s12962_s3 + $0x90] sm:$0xf] }
  0x26   : > { %782 = vmatpush.bf16.msra.mxu0 %v6849_v29  ;;  %v8069_v48 = vld [vmem:[%s12962_s3 + $0xa4] sm:$0xf0]  ;;  %v6896_v49 = vld [vmem:[%s12962_s3 + $0x210] sm:$0xf]  ;;  %v6909_v50 = vor.u32 %v8086_v42, %v6906_v43  ;;  %v8068_v52 = vld [vmem:[%s12962_s3 + $0x94] sm:$0xf] }
  0x27   : > { %811 = vmatpush.bf16.msra.mxu1 %v6913_v33  ;;  %840 = vmatpush.bf16.msra.mxu2 %v6853_v34  ;;  %v8085_v51 = vld [vmem:[%s12962_s3 + $0x224] sm:$0xf0]  ;;  %v6834_v53 = vld [vmem:[%s12962_s3 + $0xa8] sm:$0xf0]  ;;  %v8084_v54 = vld [vmem:[%s12962_s3 + $0x214] sm:$0xf]  ;;  %v6833_v56 = vor.u32 %v8069_v48, %v6832_v47 }
  0x28   : > { %869 = vmatpush.bf16.msra.mxu3 %v6917_v38  ;;  %v6898_v55 = vld [vmem:[%s12962_s3 + $0x228] sm:$0xf0]  ;;  %v6897_v57 = vor.u32 %v8085_v51, %v6896_v49  ;;  %v6837_v58 = vor.u32 %v8068_v52, %v6834_v53  ;;  %v6824_v59 = vld [vmem:[%s12962_s3 + $0x60] sm:$0xf]  ;;  %v8067_v60 = vld [vmem:[%s12962_s3 + $0x74] sm:$0xf0] }
  0x29   : > { %v6888_v61 = vld [vmem:[%s12962_s3 + $0x1e0] sm:$0xf]  ;;  %v6901_v62 = vor.u32 %v8084_v54, %v6898_v55  ;;  %v8083_v63 = vld [vmem:[%s12962_s3 + $0x1f4] sm:$0xf0]  ;;  %v8066_v0 = vld [vmem:[%s12962_s3 + $0x64] sm:$0xf]  ;;  %v6825_v4 = vor.u32 %v8067_v60, %v6824_v59 }
  0x2a   : > { %783 = vmatpush.bf16.msra.mxu0 %v6841_v44  ;;  %v6826_v1 = vld [vmem:[%s12962_s3 + $0x78] sm:$0xf0]  ;;  %v8082_v2 = vld [vmem:[%s12962_s3 + $0x1e4] sm:$0xf]  ;;  %v6816_v5 = vld [vmem:[%s12962_s3 + $0x30] sm:$0xf]  ;;  %v6889_v6 = vor.u32 %v8083_v63, %v6888_v61 }
  0x2b   : > { %812 = vmatpush.bf16.msra.mxu1 %v6905_v45  ;;  %841 = vmatpush.bf16.msra.mxu2 %v6845_v46  ;;  %v6890_v3 = vld [vmem:[%s12962_s3 + $0x1f8] sm:$0xf0]  ;;  %v6829_v7 = vor.u32 %v8066_v0, %v6826_v1  ;;  %v8065_v8 = vld [vmem:[%s12962_s3 + $0x44] sm:$0xf0]  ;;  %v6880_v9 = vld [vmem:[%s12962_s3 + $0x1b0] sm:$0xf] }
  0x2c   : > { %870 = vmatpush.bf16.msra.mxu3 %v6909_v50  ;;  %v8081_v10 = vld [vmem:[%s12962_s3 + $0x1c4] sm:$0xf0]  ;;  %v6893_v11 = vor.u32 %v8082_v2, %v6890_v3  ;;  %v8064_v12 = vld [vmem:[%s12962_s3 + $0x34] sm:$0xf]  ;;  %v6818_v13 = vld [vmem:[%s12962_s3 + $0x48] sm:$0xf0]  ;;  %v6817_v16 = vor.u32 %v8065_v8, %v6816_v5 }
  0x2d   : > { %p518_p10 = scmp.lt.s32.totalorder %s8865_s22, 1  ;;  %v8080_v14 = vld [vmem:[%s12962_s3 + $0x1b4] sm:$0xf]  ;;  %v6882_v15 = vld [vmem:[%s12962_s3 + $0x1c8] sm:$0xf0]  ;;  %v6881_v18 = vor.u32 %v8081_v10, %v6880_v9  ;;  %v6821_v19 = vor.u32 %v8064_v12, %v6818_v13  ;;  %s13004_s1 = sld [smem:[#allocation35_spill]] }
  0x2e   : > { %784 = vmatpush.bf16.msra.mxu0 %v6833_v56  ;;  %v6808_v17 = vld [vmem:[%s12962_s3] sm:$0xf]  ;;  %v8063_v20 = vld [vmem:[%s12962_s3 + $0x14] sm:$0xf0]  ;;  %v6885_v23 = vor.u32 %v8080_v14, %v6882_v15  ;;  %v8062_v24 = vld [vmem:[%s12962_s3 + $0x4] sm:$0xf] }
  0x2f   : > { %813 = vmatpush.bf16.msra.mxu1 %v6897_v57  ;;  %842 = vmatpush.bf16.msra.mxu2 %v6837_v58  ;;  %s519_s25 = scalar_select %p518_p10, %s8865_s22, 1  ;;  %v6872_v21 = vld [vmem:[%s12962_s3 + $0x180] sm:$0xf]  ;;  %v8079_v22 = vld [vmem:[%s12962_s3 + $0x194] sm:$0xf0]  ;;  %v6809_v28 = vor.u32 %v8063_v20, %v6808_v17  ;;  %vm1650_vm0 = vcmask 261120  }
  0x30   : > { %871 = vmatpush.bf16.msra.mxu3 %v6901_v62  ;;  %v6810_v25 = vld [vmem:[%s12962_s3 + $0x18] sm:$0xf0]  ;;  %v8078_v26 = vld [vmem:[%s12962_s3 + $0x184] sm:$0xf]  ;;  %v6873_v31 = vor.u32 %v8079_v22, %v6872_v21  ;;  %v7048_v38 = vld [vmem:[%s12962_s3 + $0x158] sm:$0xf] }
  0x31   : > { %s9080_s20 = sshll.u32 %s519_s25, 7  ;;  %v6874_v27 = vld [vmem:[%s12962_s3 + $0x198] sm:$0xf0]  ;;  %v6813_v32 = vor.u32 %v8062_v24, %v6810_v25  ;;  %v8124_v39 = vld [vmem:[%s12962_s3 + $0x16c] sm:$0xf0]  ;;  %s13005_s0 = sld [smem:[#allocation34_spill]] }
  0x32   : > { %785 = vmatpush.bf16.msra.mxu0 %v6825_v4  ;;  %v6877_v35 = vor.u32 %v8078_v26, %v6874_v27  ;;  %v7176_v40 = vld [vmem:[%s12962_s3 + $0x2d8] sm:$0xf]  ;;  %v7049_v41 = vor.u32 %v8124_v39, %v7048_v38  ;;  %v8156_v42 = vld [vmem:[%s12962_s3 + $0x2ec] sm:$0xf0]  ;;  %v8122_v43 = vld [vmem:[%s12962_s3 + $0x15c] sm:$0xf]  ;;  %s12632_s27 = scalar_lea.vmem %s12961_s2, %s9080_s20 }
  0x33   : > { %814 = vmatpush.bf16.msra.mxu1 %v6889_v6  ;;  %843 = vmatpush.bf16.msra.mxu2 %v6829_v7  ;;  %s9092_s30 = scalar_lea.vmem %s13004_s1, %s9080_s20  ;;  %v7050_v44 = vld [vmem:[%s12962_s3 + $0x170] sm:$0xf0]  ;;  %v7177_v45 = vor.u32 %v8156_v42, %v7176_v40  ;;  %v8154_v47 = vld [vmem:[%s12962_s3 + $0x2dc] sm:$0xf]  ;;  %v7032_v49 = vld [vmem:[%s12962_s3 + $0x128] sm:$0xf] }
  0x34   : > { %872 = vmatpush.bf16.msra.mxu3 %v6893_v11  ;;  %v534_v29 = vld [vmem:[%s9092_s30] sm:$0xff]  ;;  %v536_v30 = vld [vmem:[%s9092_s30 + $0x10] sm:$0xff]  ;;  %v535_v33 = vld [vmem:[%s9092_s30 + $0x8] sm:$0xff]  ;;  %v7053_v46 = vor.u32 %v8122_v43, %v7050_v44  ;;  %s8759_s1 = smov 32   ;;  %s8760_s28 = smov 64   ;;  %vm1704_vm1 = vcmask 523264  }
  0x35   : > { %v537_v34 = vld [vmem:[%s9092_s30 + $0x18] sm:$0xff]  ;;  %v550_v36 = vpack.c.bf16 %v536_v30, %v534_v29  ;;  %v7178_v48 = vld [vmem:[%s12962_s3 + $0x2f0] sm:$0xf0]  ;;  %v8120_v51 = vld [vmem:[%s12962_s3 + $0x13c] sm:$0xf0]  ;;  %vm1974_vm6 = vcmask 257024  }
  0x36   : > { %786 = vmatpush.bf16.msra.mxu0 %v6817_v16  ;;  %v551_v37 = vpack.c.bf16 %v537_v34, %v535_v33  ;;  %v7181_v50 = vor.u32 %v8154_v47, %v7178_v48  ;;  %v7160_v52 = vld [vmem:[%s12962_s3 + $0x2a8] sm:$0xf]  ;;  %v8152_v53 = vld [vmem:[%s12962_s3 + $0x2bc] sm:$0xf0]  ;;  %v7033_v54 = vor.u32 %v8120_v51, %v7032_v49  ;;  %v8118_v56 = vld [vmem:[%s12962_s3 + $0x12c] sm:$0xf] }
  0x37   : > { %815 = vmatpush.bf16.msra.mxu1 %v6881_v18  ;;  %844 = vmatpush.bf16.msra.mxu2 %v6821_v19  ;;  %v7161_v55 = vor.u32 %v8152_v53, %v7160_v52  ;;  %v7034_v57 = vld [vmem:[%s12962_s3 + $0x140] sm:$0xf0]  ;;  %v8150_v58 = vld [vmem:[%s12962_s3 + $0x2ac] sm:$0xf]  ;;  %v7016_v61 = vld [vmem:[%s12962_s3 + $0xf8] sm:$0xf]  ;;  %s9306_s16 = scalar_lea.vmem %s13005_s0, %s9080_s20 }
  0x38   : > { %873 = vmatpush.bf16.msra.mxu3 %v6885_v23  ;;  %v7037_v59 = vor.u32 %v8118_v56, %v7034_v57  ;;  %v7162_v60 = vld [vmem:[%s12962_s3 + $0x2c0] sm:$0xf0]  ;;  %v8116_v62 = vld [vmem:[%s12962_s3 + $0x10c] sm:$0xf0]  ;;  %v7144_v0 = vld [vmem:[%s12962_s3 + $0x278] sm:$0xf] }
  0x39   : > { %v7165_v63 = vor.u32 %v8150_v58, %v7162_v60  ;;  %v8148_v1 = vld [vmem:[%s12962_s3 + $0x28c] sm:$0xf0]  ;;  %v8114_v2 = vld [vmem:[%s12962_s3 + $0xfc] sm:$0xf]  ;;  %v7017_v3 = vor.u32 %v8116_v62, %v7016_v61  ;;  %v7018_v4 = vld [vmem:[%s12962_s3 + $0x110] sm:$0xf0] }
  0x3a   : > { %787 = vmatpush.bf16.msra.mxu0 %v6809_v28  ;;  %v8146_v5 = vld [vmem:[%s12962_s3 + $0x27c] sm:$0xf]  ;;  %v7146_v6 = vld [vmem:[%s12962_s3 + $0x290] sm:$0xf0]  ;;  %v538_v7 = vld [vmem:[%s9092_s30 + $0x20] sm:$0xff]  ;;  %v7145_v8 = vor.u32 %v8148_v1, %v7144_v0  ;;  %v7021_v9 = vor.u32 %v8114_v2, %v7018_v4  ;;  %s515_s21 = sand.u32 1, %s8748_s19  }
  0x3b   : > { %816 = vmatpush.bf16.msra.mxu1 %v6873_v31  ;;  %845 = vmatpush.bf16.msra.mxu2 %v6813_v32  ;;  %v7000_v10 = vld [vmem:[%s12962_s3 + $0xc8] sm:$0xf]  ;;  %v8112_v11 = vld [vmem:[%s12962_s3 + $0xdc] sm:$0xf0]  ;;  %v540_v12 = vld [vmem:[%s9092_s30 + $0x30] sm:$0xff]  ;;  %v7149_v13 = vor.u32 %v8146_v5, %v7146_v6  ;;  %s6799_s25 = sshll.u32 %s515_s21, 7 }
  0x3c   : > { %874 = vmatpush.bf16.msra.mxu3 %v6877_v35  ;;  %v7128_v14 = vld [vmem:[%s12962_s3 + $0x248] sm:$0xf]  ;;  %v8144_v15 = vld [vmem:[%s12962_s3 + $0x25c] sm:$0xf0]  ;;  %v541_v17 = vld [vmem:[%s9092_s30 + $0x38] sm:$0xff]  ;;  %v7001_v18 = vor.u32 %v8112_v11, %v7000_v10  ;;  %v552_v21 = vpack.c.bf16 %v540_v12, %v538_v7  ;;  %s6694_s24 = scalar_lea.sflag [#allocation6], %s515_s21 }
  0x3d   : > { %788 = vmatmul.bf16.vlgmr.msra.gmra.mxu0 %v550_v36  ;;  %v539_v16 = vld [vmem:[%s9092_s30 + $0x28] sm:$0xff]  ;;  %v7002_v20 = vld [vmem:[%s12962_s3 + $0xe0] sm:$0xf0]  ;;  %v7129_v22 = vor.u32 %v8144_v15, %v7128_v14  ;;  %v6984_v28 = vld [vmem:[%s12962_s3 + $0x98] sm:$0xf] }
  0x3e   : > { %817 = vmatmul.bf16.vlgmr.msra.gmra.mxu1 %v551_v37  ;;  %846 = vmatmul.bf16.vlgmr.msra.gmra.mxu2 %v550_v36  ;;  %v8110_v19 = vld [vmem:[%s12962_s3 + $0xcc] sm:$0xf]  ;;  %v7130_v24 = vld [vmem:[%s12962_s3 + $0x260] sm:$0xf0]  ;;  %v553_v25 = vpack.c.bf16 %v541_v17, %v539_v16  ;;  %v8108_v29 = vld [vmem:[%s12962_s3 + $0xac] sm:$0xf0] }
  0x3f   : > { %875 = vmatmul.bf16.vlgmr.msra.gmra.mxu3 %v551_v37  ;;  %1290 = vmatpush.bf16.msrb.mxu0 %v7049_v41  ;;  %v8142_v23 = vld [vmem:[%s12962_s3 + $0x24c] sm:$0xf]  ;;  %v7005_v26 = vor.u32 %v8110_v19, %v7002_v20  ;;  %v7112_v30 = vld [vmem:[%s12962_s3 + $0x218] sm:$0xf]  ;;  %v6985_v31 = vor.u32 %v8108_v29, %v6984_v28  ;;  %v8140_v32 = vld [vmem:[%s12962_s3 + $0x22c] sm:$0xf0] }
  0x40   : > { %1319 = vmatpush.bf16.msrb.mxu1 %v7177_v45  ;;  %1348 = vmatpush.bf16.msrb.mxu2 %v7053_v46  ;;  %v7133_v27 = vor.u32 %v8142_v23, %v7130_v24  ;;  %v8106_v33 = vld [vmem:[%s12962_s3 + $0x9c] sm:$0xf]  ;;  %v6986_v34 = vld [vmem:[%s12962_s3 + $0xb0] sm:$0xf0]  ;;  %v7113_v35 = vor.u32 %v8140_v32, %v7112_v30  ;;  %v6968_v39 = vld [vmem:[%s12962_s3 + $0x68] sm:$0xf] }
  0x41   : > { %1377 = vmatpush.bf16.msrb.mxu3 %v7181_v50  ;;  %v6989_v36 = vor.u32 %v8106_v33, %v6986_v34  ;;  %v8138_v37 = vld [vmem:[%s12962_s3 + $0x21c] sm:$0xf]  ;;  %v7114_v38 = vld [vmem:[%s12962_s3 + $0x230] sm:$0xf0]  ;;  %v8104_v41 = vld [vmem:[%s12962_s3 + $0x7c] sm:$0xf0] }
  0x42   : > { %v7117_v40 = vor.u32 %v8138_v37, %v7114_v38  ;;  %v7096_v42 = vld [vmem:[%s12962_s3 + $0x1e8] sm:$0xf]  ;;  %v8136_v43 = vld [vmem:[%s12962_s3 + $0x1fc] sm:$0xf0]  ;;  %v6969_v44 = vor.u32 %v8104_v41, %v6968_v39  ;;  %v8102_v46 = vld [vmem:[%s12962_s3 + $0x6c] sm:$0xf] }
  0x43   : > { %1291 = vmatpush.bf16.msrb.mxu0 %v7033_v54  ;;  %v7097_v45 = vor.u32 %v8136_v43, %v7096_v42  ;;  %v6970_v47 = vld [vmem:[%s12962_s3 + $0x80] sm:$0xf0]  ;;  %v8134_v48 = vld [vmem:[%s12962_s3 + $0x1ec] sm:$0xf]  ;;  %v6952_v50 = vld [vmem:[%s12962_s3 + $0x38] sm:$0xf] }
  0x44   : > { %1320 = vmatpush.bf16.msrb.mxu1 %v7161_v55  ;;  %1349 = vmatpush.bf16.msrb.mxu2 %v7037_v59  ;;  %v7098_v49 = vld [vmem:[%s12962_s3 + $0x200] sm:$0xf0]  ;;  %v8100_v51 = vld [vmem:[%s12962_s3 + $0x4c] sm:$0xf0]  ;;  %v6973_v52 = vor.u32 %v8102_v46, %v6970_v47  ;;  %v7080_v53 = vld [vmem:[%s12962_s3 + $0x1b8] sm:$0xf] }
  0x45   : > { %1378 = vmatpush.bf16.msrb.mxu3 %v7165_v63  ;;  %v8132_v54 = vld [vmem:[%s12962_s3 + $0x1cc] sm:$0xf0]  ;;  %v542_v55 = vld [vmem:[%s9092_s30 + $0x40] sm:$0xff]  ;;  %v7101_v56 = vor.u32 %v8134_v48, %v7098_v49  ;;  %v6953_v57 = vor.u32 %v8100_v51, %v6952_v50  ;;  %v8098_v58 = vld [vmem:[%s12962_s3 + $0x3c] sm:$0xf] }
  0x46   : > { %v6954_v59 = vld [vmem:[%s12962_s3 + $0x50] sm:$0xf0]  ;;  %v8130_v60 = vld [vmem:[%s12962_s3 + $0x1bc] sm:$0xf]  ;;  %v7081_v61 = vor.u32 %v8132_v54, %v7080_v53  ;;  %v6936_v63 = vld [vmem:[%s12962_s3 + $0x8] sm:$0xf] }
  0x47   : > { %1292 = vmatpush.bf16.msrb.mxu0 %v7017_v3  ;;  %v7082_v62 = vld [vmem:[%s12962_s3 + $0x1d0] sm:$0xf0]  ;;  %v8096_v0 = vld [vmem:[%s12962_s3 + $0x1c] sm:$0xf0]  ;;  %v7064_v2 = vld [vmem:[%s12962_s3 + $0x188] sm:$0xf]  ;;  %v6957_v6 = vor.u32 %v8098_v58, %v6954_v59 }
  0x48   : > { %1321 = vmatpush.bf16.msrb.mxu1 %v7145_v8  ;;  %1350 = vmatpush.bf16.msrb.mxu2 %v7021_v9  ;;  %v544_v1 = vld [vmem:[%s9092_s30 + $0x50] sm:$0xff]  ;;  %v8128_v3 = vld [vmem:[%s12962_s3 + $0x19c] sm:$0xf0]  ;;  %v543_v4 = vld [vmem:[%s9092_s30 + $0x48] sm:$0xff]  ;;  %v7085_v7 = vor.u32 %v8130_v60, %v7082_v62  ;;  %v6937_v8 = vor.u32 %v8096_v0, %v6936_v63 }
  0x49   : > { %1379 = vmatpush.bf16.msrb.mxu3 %v7149_v13  ;;  %v545_v5 = vld [vmem:[%s9092_s30 + $0x58] sm:$0xff]  ;;  %v8094_v9 = vld [vmem:[%s12962_s3 + $0xc] sm:$0xf]  ;;  %v6938_v10 = vld [vmem:[%s12962_s3 + $0x20] sm:$0xf0]  ;;  %v554_v11 = vpack.c.bf16 %v544_v1, %v542_v55  ;;  %v7065_v12 = vor.u32 %v8128_v3, %v7064_v2 }
  0x4a   : > { %v8126_v13 = vld [vmem:[%s12962_s3 + $0x18c] sm:$0xf]  ;;  %v7066_v14 = vld [vmem:[%s12962_s3 + $0x1a0] sm:$0xf0]  ;;  %v555_v15 = vpack.c.bf16 %v545_v5, %v543_v4  ;;  %v6941_v16 = vor.u32 %v8094_v9, %v6938_v10  ;;  %v548_v19 = vld [vmem:[%s9092_s30 + $0x70] sm:$0xff] }
  0x4b   : > { %1293 = vmatpush.bf16.msrb.mxu0 %v7001_v18  ;;  %v7069_v17 = vor.u32 %v8126_v13, %v7066_v14  ;;  %v546_v18 = vld [vmem:[%s9092_s30 + $0x60] sm:$0xff]  ;;  %v547_v20 = vld [vmem:[%s9092_s30 + $0x68] sm:$0xff]  ;;  %v7186_v34 = vld [vmem:[%s12962_s3 + $0x2f8] sm:$0xf0] }
  0x4c   : > { %1322 = vmatpush.bf16.msrb.mxu1 %v7129_v22  ;;  %1351 = vmatpush.bf16.msrb.mxu2 %v7005_v26  ;;  %v556_v22 = vpack.c.bf16 %v548_v19, %v546_v18  ;;  %v558_v24 = vld [vmem:[%s9306_s16] sm:$0xff]  ;;  %v559_v26 = vld [vmem:[%s9306_s16 + $0x8] sm:$0xff]  ;;  %v8125_v39 = vld [vmem:[%s12962_s3 + $0x174] sm:$0xf0] }
  0x4d   : > { %793 = vmatmul.bf16.gmra.mxu0 %v552_v21  ;;  %1380 = vmatpush.bf16.msrb.mxu3 %v7133_v27  ;;  %v561_v27 = vld [vmem:[%s9306_s16 + $0x18] sm:$0xff]  ;;  %v8123_v30 = vld [vmem:[%s12962_s3 + $0x164] sm:$0xf]  ;;  %v7042_v37 = vld [vmem:[%s12962_s3 + $0x148] sm:$0xf0] }
  0x4e   : > { %822 = vmatmul.bf16.gmra.mxu1 %v553_v25  ;;  %851 = vmatmul.bf16.gmra.mxu2 %v552_v21  ;;  %v549_v21 = vld [vmem:[%s9092_s30 + $0x78] sm:$0xff]  ;;  %v9314_v29 = vpack.c.bf16 %v561_v27, %v559_v26  ;;  %v8155_v33 = vld [vmem:[%s12962_s3 + $0x2e4] sm:$0xf]  ;;  %v7056_v38 = vld [vmem:[%s12962_s3 + $0x160] sm:$0xf]  ;;  %s12861_s30 = scalar_lea.vmem [#allocation5], %s6799_s25 }
  0x4f   : > { %880 = vmatmul.bf16.gmra.mxu3 %v553_v25  ;;  %1294 = vmatpush.bf16.msrb.mxu0 %v6985_v31  ;;  %v557_v23 = vpack.c.bf16 %v549_v21, %v547_v20  ;;  %v560_v25 = vld [vmem:[%s9306_s16 + $0x10] sm:$0xff]  ;;  %v7058_v31 = vld [vmem:[%s12962_s3 + $0x178] sm:$0xf0]  ;;  %v7057_v41 = vor.u32 %v8125_v39, %v7056_v38  ;;  %v7170_v43 = vld [vmem:[%s12962_s3 + $0x2c8] sm:$0xf0]  ;;  %s6706_s20 = sshll.u32 %s12861_s30, 4  ;;  %s6707_s20 = int_to_ptr.vmem [resolvable:$true] %s6706_s20 }
  0x50   : > { %1323 = vmatpush.bf16.msrb.mxu1 %v7113_v35  ;;  %1352 = vmatpush.bf16.msrb.mxu2 %v6989_v36  ;;  %v9312_v28 = vpack.c.bf16 %v560_v25, %v558_v24  ;;  %v7061_v32 = vor.u32 %v8123_v30, %v7058_v31  ;;  %v8119_v35 = vld [vmem:[%s12962_s3 + $0x134] sm:$0xf]  ;;  %v7189_v36 = vor.u32 %v8155_v33, %v7186_v34  ;;  %v8157_v46 = vld [vmem:[%s12962_s3 + $0x2f4] sm:$0xf0]  ;;  %v8115_v47 = vld [vmem:[%s12962_s3 + $0x104] sm:$0xf] }
  0x51   : > { %1381 = vmatpush.bf16.msrb.mxu3 %v7117_v40  ;;  %v7045_v40 = vor.u32 %v8119_v35, %v7042_v37  ;;  %v8151_v42 = vld [vmem:[%s12962_s3 + $0x2b4] sm:$0xf]  ;;  %v7026_v48 = vld [vmem:[%s12962_s3 + $0x118] sm:$0xf0]  ;;  %v562_v51 = vld [vmem:[%s9306_s16 + $0x20] sm:$0xff]  ;;  %s8714_s25 = scalar_lea.hbm %s12974_s15, 256 }
  0x52   : > { %v7029_v50 = vor.u32 %v8115_v47, %v7026_v48  ;;  %v563_v53 = vld [vmem:[%s9306_s16 + $0x28] sm:$0xff]  ;;  %v565_v54 = vld [vmem:[%s9306_s16 + $0x38] sm:$0xff]  ;;  %v7040_v55 = vld [vmem:[%s12962_s3 + $0x130] sm:$0xf] }
  0x53   : > { %1295 = vmatpush.bf16.msrb.mxu0 %v6969_v44  ;;  %v7184_v44 = vld [vmem:[%s12962_s3 + $0x2e0] sm:$0xf]  ;;  %v7154_v59 = vld [vmem:[%s12962_s3 + $0x298] sm:$0xf0]  ;;  %v7168_v62 = vld [vmem:[%s12962_s3 + $0x2b0] sm:$0xf]  ;;  %v9389_v1 = vpack.c.bf16 %v565_v54, %v563_v53 }
  0x54   : > { %1324 = vmatpush.bf16.msrb.mxu1 %v7097_v45  ;;  %1353 = vmatpush.bf16.msrb.mxu2 %v6973_v52  ;;  %v7173_v45 = vor.u32 %v8151_v42, %v7170_v43  ;;  %v7185_v49 = vor.u32 %v8157_v46, %v7184_v44  ;;  %v564_v52 = vld [vmem:[%s9306_s16 + $0x30] sm:$0xff]  ;;  %v8153_v63 = vld [vmem:[%s12962_s3 + $0x2c4] sm:$0xf0]  ;;  %v7010_v3 = vld [vmem:[%s12962_s3 + $0xe8] sm:$0xf0] }
  0x55   : > { %1382 = vmatpush.bf16.msrb.mxu3 %v7101_v56  ;;  %v8121_v56 = vld [vmem:[%s12962_s3 + $0x144] sm:$0xf0]  ;;  %v9378_v60 = vpack.c.bf16 %v564_v52, %v562_v51  ;;  %v8111_v0 = vld [vmem:[%s12962_s3 + $0xd4] sm:$0xf]  ;;  %v7169_v2 = vor.u32 %v8153_v63, %v7168_v62  ;;  %v7024_v5 = vld [vmem:[%s12962_s3 + $0x100] sm:$0xf] }
  0x56   : > { %v7041_v58 = vor.u32 %v8121_v56, %v7040_v55  ;;  %v7013_v4 = vor.u32 %v8111_v0, %v7010_v3  ;;  %v7138_v9 = vld [vmem:[%s12962_s3 + $0x268] sm:$0xf0]  ;;  %v8107_v13 = vld [vmem:[%s12962_s3 + $0xa4] sm:$0xf]  ;;  %v8113_v18 = vld [vmem:[%s12962_s3 + $0xe4] sm:$0xf0] }
  0x57   : > { %1296 = vmatpush.bf16.msrb.mxu0 %v6953_v57  ;;  %v8147_v57 = vld [vmem:[%s12962_s3 + $0x284] sm:$0xf]  ;;  %v7122_v21 = vld [vmem:[%s12962_s3 + $0x238] sm:$0xf0]  ;;  %v8103_v26 = vld [vmem:[%s12962_s3 + $0x74] sm:$0xf] }
  0x58   : > { %1325 = vmatpush.bf16.msrb.mxu1 %v7081_v61  ;;  %1354 = vmatpush.bf16.msrb.mxu2 %v6957_v6  ;;  %v7157_v61 = vor.u32 %v8147_v57, %v7154_v59  ;;  %v8117_v6 = vld [vmem:[%s12962_s3 + $0x114] sm:$0xf0]  ;;  %v8139_v19 = vld [vmem:[%s12962_s3 + $0x224] sm:$0xf]  ;;  %v6978_v27 = vld [vmem:[%s12962_s3 + $0x88] sm:$0xf0] }
  0x59   : > { %1383 = vmatpush.bf16.msrb.mxu3 %v7085_v7  ;;  %v8143_v7 = vld [vmem:[%s12962_s3 + $0x254] sm:$0xf]  ;;  %v7125_v24 = vor.u32 %v8139_v19, %v7122_v21  ;;  %v6981_v30 = vor.u32 %v8103_v26, %v6978_v27  ;;  %v6992_v31 = vld [vmem:[%s12962_s3 + $0xa0] sm:$0xf]  ;;  %v7106_v37 = vld [vmem:[%s12962_s3 + $0x208] sm:$0xf0] }
  0x5a   : > { %v7141_v10 = vor.u32 %v8143_v7, %v7138_v9  ;;  %v8135_v33 = vld [vmem:[%s12962_s3 + $0x1f4] sm:$0xf]  ;;  %v566_v34 = vld [vmem:[%s9306_s16 + $0x40] sm:$0xff]  ;;  %v567_v42 = vld [vmem:[%s9306_s16 + $0x48] sm:$0xff] }
  0x5b   : > { %1297 = vmatpush.bf16.msrb.mxu0 %v6937_v8  ;;  %v7025_v8 = vor.u32 %v8117_v6, %v7024_v5  ;;  %v568_v35 = vld [vmem:[%s9306_s16 + $0x50] sm:$0xff]  ;;  %v7109_v38 = vor.u32 %v8135_v33, %v7106_v37  ;;  %v7120_v39 = vld [vmem:[%s12962_s3 + $0x220] sm:$0xf]  ;;  %v569_v43 = vld [vmem:[%s9306_s16 + $0x58] sm:$0xff] }
  0x5c   : > { %1326 = vmatpush.bf16.msrb.mxu1 %v7065_v12  ;;  %1355 = vmatpush.bf16.msrb.mxu2 %v6941_v16  ;;  %v8149_v12 = vld [vmem:[%s12962_s3 + $0x294] sm:$0xf0]  ;;  %v6976_v47 = vld [vmem:[%s12962_s3 + $0x70] sm:$0xf]  ;;  %v8105_v48 = vld [vmem:[%s12962_s3 + $0x84] sm:$0xf0]  ;;  %v9486_v52 = vpack.c.bf16 %v568_v35, %v566_v34  ;;  %v9497_v57 = vpack.c.bf16 %v569_v43, %v567_v42 }
  0x5d   : > { %798 = vmatmul.bf16.gmra.mxu0 %v554_v11  ;;  %1384 = vmatpush.bf16.msrb.mxu3 %v7069_v17  ;;  %v7008_v17 = vld [vmem:[%s12962_s3 + $0xd0] sm:$0xf]  ;;  %v7090_v51 = vld [vmem:[%s12962_s3 + $0x1d8] sm:$0xf0]  ;;  %v8137_v55 = vld [vmem:[%s12962_s3 + $0x204] sm:$0xf0] }
  0x5e   : > { %827 = vmatmul.bf16.gmra.mxu1 %v555_v15  ;;  %856 = vmatmul.bf16.gmra.mxu2 %v554_v11  ;;  %v7152_v11 = vld [vmem:[%s12962_s3 + $0x280] sm:$0xf]  ;;  %v7009_v20 = vor.u32 %v8113_v18, %v7008_v17  ;;  %v7104_v54 = vld [vmem:[%s12962_s3 + $0x1f0] sm:$0xf]  ;;  %v8095_v56 = vld [vmem:[%s12962_s3 + $0x14] sm:$0xf] }
  0x5f   : > { %885 = vmatmul.bf16.gmra.mxu3 %v555_v15  ;;  %1406 = vmatpush.bf16.msra.mxu0 %v7057_v41  ;;  %v7153_v14 = vor.u32 %v8149_v12, %v7152_v11  ;;  %v6994_v15 = vld [vmem:[%s12962_s3 + $0xb8] sm:$0xf0]  ;;  %v8099_v41 = vld [vmem:[%s12962_s3 + $0x44] sm:$0xf]  ;;  %v6946_v59 = vld [vmem:[%s12962_s3 + $0x28] sm:$0xf0] }
  0x60   : > { %1464 = vmatpush.bf16.msra.mxu2 %v7061_v32  ;;  %1435 = vmatpush.bf16.msra.mxu1 %v7185_v49  ;;  %v6997_v16 = vor.u32 %v8107_v13, %v6994_v15  ;;  %v8109_v32 = vld [vmem:[%s12962_s3 + $0xb4] sm:$0xf0]  ;;  %v8131_v49 = vld [vmem:[%s12962_s3 + $0x1c4] sm:$0xf]  ;;  %v6960_v62 = vld [vmem:[%s12962_s3 + $0x40] sm:$0xf] }
  0x61   : > { %1493 = vmatpush.bf16.msra.mxu3 %v7189_v36  ;;  %v6993_v36 = vor.u32 %v8109_v32, %v6992_v31  ;;  %v7093_v53 = vor.u32 %v8131_v49, %v7090_v51  ;;  %v8101_v63 = vld [vmem:[%s12962_s3 + $0x54] sm:$0xf0]  ;;  %v8127_v0 = vld [vmem:[%s12962_s3 + $0x194] sm:$0xf]  ;;  %v7074_v3 = vld [vmem:[%s12962_s3 + $0x1a8] sm:$0xf0] }
  0x62   : > { %v7088_v5 = vld [vmem:[%s12962_s3 + $0x1c0] sm:$0xf]  ;;  %v8133_v6 = vld [vmem:[%s12962_s3 + $0x1d4] sm:$0xf0]  ;;  %v8097_v9 = vld [vmem:[%s12962_s3 + $0x24] sm:$0xf0] }
  0x63   : > { %1407 = vmatpush.bf16.msra.mxu0 %v7041_v58  ;;  %v7105_v58 = vor.u32 %v8137_v55, %v7104_v54  ;;  %v7089_v7 = vor.u32 %v8133_v6, %v7088_v5  ;;  %v7072_v11 = vld [vmem:[%s12962_s3 + $0x190] sm:$0xf]  ;;  %v8129_v12 = vld [vmem:[%s12962_s3 + $0x1a4] sm:$0xf0]  ;;  %v573_v17 = vld [vmem:[%s9306_s16 + $0x78] sm:$0xff] }
  0x64   : > { %1465 = vmatpush.bf16.msra.mxu2 %v7045_v40  ;;  %1436 = vmatpush.bf16.msra.mxu1 %v7169_v2  ;;  %v8141_v40 = vld [vmem:[%s12962_s3 + $0x234] sm:$0xf0]  ;;  %v6961_v2 = vor.u32 %v8101_v63, %v6960_v62  ;;  %v7073_v13 = vor.u32 %v8129_v12, %v7072_v11  ;;  %v572_v15 = vld [vmem:[%s9306_s16 + $0x70] sm:$0xff] }
  0x65   : > { %1494 = vmatpush.bf16.msra.mxu3 %v7173_v45  ;;  %v7121_v44 = vor.u32 %v8141_v40, %v7120_v39  ;;  %v6962_v45 = vld [vmem:[%s12962_s3 + $0x58] sm:$0xf0] }
  0x66   : > { %v6965_v46 = vor.u32 %v8099_v41, %v6962_v45 }
  0x67   : > { %1408 = vmatpush.bf16.msra.mxu0 %v7025_v8  ;;  %v6944_v8 = vld [vmem:[%s12962_s3 + $0x10] sm:$0xf] }
  0x68   : > { %1466 = vmatpush.bf16.msra.mxu2 %v7029_v50  ;;  %1437 = vmatpush.bf16.msra.mxu1 %v7153_v14  ;;  %v6977_v50 = vor.u32 %v8105_v48, %v6976_v47  ;;  %v570_v14 = vld [vmem:[%s9306_s16 + $0x60] sm:$0xff] }
  0x69   : > { %1495 = vmatpush.bf16.msra.mxu3 %v7157_v61  ;;  %v6949_v61 = vor.u32 %v8095_v56, %v6946_v59  ;;  %v9540_v18 = vpack.c.bf16 %v572_v15, %v570_v14 }
  0x6b   : > { %1409 = vmatpush.bf16.msra.mxu0 %v7009_v20  ;;  %v614_v20 = vld [vmem:[%s12963_s4] sm:$0x3] }
  0x6c   : > { %1467 = vmatpush.bf16.msra.mxu2 %v7013_v4  ;;  %v7077_v4 = vor.u32 %v8127_v0, %v7074_v3  ;;  %v9551_v21 = vperm.slane %v614_v20, 0 }
  0x6d   : > { %803 = vmatmul.bf16.gmra.mxu0 %v556_v22  ;;  %1496 = vmatpush.bf16.msra.mxu3 %v7141_v10  ;;  %v6945_v10 = vor.u32 %v8097_v9, %v6944_v8 }
  0x6e   : > { %832 = vmatmul.bf16.gmra.mxu1 %v557_v23  ;;  %861 = vmatmul.bf16.gmra.mxu2 %v556_v22  ;;  %v7136_v22 = vld [vmem:[%s12962_s3 + $0x250] sm:$0xf] }
  0x6f   : > { %890 = vmatmul.bf16.gmra.mxu3 %v557_v23  ;;  %v8145_v23 = vld [vmem:[%s12962_s3 + $0x264] sm:$0xf0]  ;;  %1410 = vmatpush.bf16.msra.mxu0 %v6993_v36 }
  0x70   : > { %1468 = vmatpush.bf16.msra.mxu2 %v6997_v16  ;;  %v7137_v25 = vor.u32 %v8145_v23, %v7136_v22  ;;  %v571_v16 = vld [vmem:[%s9306_s16 + $0x68] sm:$0xff]  ;;  %s8758_s16 = smov 96  }
  0x71   : > { %1497 = vmatpush.bf16.msra.mxu3 %v7125_v24  ;;  %v9542_v19 = vpack.c.bf16 %v573_v17, %v571_v16 }
  0x72   : > { %1438 = vmatpush.bf16.msra.mxu1 %v7137_v25  ;;  %v9555_v25 = vperm.slane %v614_v20, 1 }
  0x73   : > { %1411 = vmatpush.bf16.msra.mxu0 %v6977_v50 }
  0x74   : > { %1469 = vmatpush.bf16.msra.mxu2 %v6981_v30 }
  0x75   : > { %1498 = vmatpush.bf16.msra.mxu3 %v7109_v38 }
  0x76   : > { %1439 = vmatpush.bf16.msra.mxu1 %v7121_v44 }
  0x77   : > { %1412 = vmatpush.bf16.msra.mxu0 %v6961_v2 }
  0x78   : > { %1470 = vmatpush.bf16.msra.mxu2 %v6965_v46 }
  0x79   : > { %1499 = vmatpush.bf16.msra.mxu3 %v7093_v53 }
  0x7a   : > { %1440 = vmatpush.bf16.msra.mxu1 %v7105_v58 }
  0x7b   : > { %1413 = vmatpush.bf16.msra.mxu0 %v6945_v10 }
  0x7c   : > { %1471 = vmatpush.bf16.msra.mxu2 %v6949_v61 }
  0x7d   : > { %1298 = vmatmul.bf16.vlgmr.msrb.gmra.mxu0 %v9312_v28  ;;  %1500 = vmatpush.bf16.msra.mxu3 %v7077_v4 }
  0x7e   : > { %1327 = vmatmul.bf16.vlgmr.msrb.gmra.mxu1 %v9314_v29  ;;  %1356 = vmatmul.bf16.vlgmr.msrb.gmra.mxu2 %v9312_v28 }
  0x7f   : > { %1385 = vmatmul.bf16.vlgmr.msrb.gmra.mxu3 %v9314_v29  ;;  %1441 = vmatpush.bf16.msra.mxu1 %v7089_v7 }
  0x83   : > { %1442 = vmatpush.bf16.msra.mxu1 %v7073_v13 }
  0x8d   : > { %1303 = vmatmul.bf16.gmra.mxu0 %v9378_v60 }
  0x8e   : > { %1332 = vmatmul.bf16.gmra.mxu1 %v9389_v1  ;;  %1361 = vmatmul.bf16.gmra.mxu2 %v9378_v60 }
  0x8f   : > { %1390 = vmatmul.bf16.gmra.mxu3 %v9389_v1 }
  0x9d   : > { %1308 = vmatmul.bf16.gmra.mxu0 %v9486_v52 }
  0x9e   : > { %1337 = vmatmul.bf16.gmra.mxu1 %v9497_v57  ;;  %1366 = vmatmul.bf16.gmra.mxu2 %v9486_v52 }
  0x9f   : > { %1395 = vmatmul.bf16.gmra.mxu3 %v9497_v57 }
  0xad   : > { %1313 = vmatmul.bf16.gmra.mxu0 %v9540_v18 }
  0xae   : > { %1342 = vmatmul.bf16.gmra.mxu1 %v9542_v19  ;;  %1371 = vmatmul.bf16.gmra.mxu2 %v9540_v18 }
  0xaf   : > { %1400 = vmatmul.bf16.gmra.mxu3 %v9542_v19 }
  0xba   : > { %v789_v22 = vpop.f32.mrf.mxu0 }
  0xbb   : > { %v818_v23 = vpop.f32.mrf.mxu1  ;;  %v790_v24 = vadd.f32 %v789_v22, %v9551_v21 }
  0xbd   : > { %1414 = vmatmul.bf16.vlgmr.msra.gmra.mxu0 %v9312_v28  ;;  %v819_v26 = vadd.f32 %v818_v23, %v790_v24 }
  0xbe   : > { %1472 = vmatmul.bf16.vlgmr.msra.gmra.mxu2 %v9312_v28  ;;  %1443 = vmatmul.bf16.vlgmr.msra.gmra.mxu1 %v9314_v29 }
  0xbf   : > { %1501 = vmatmul.bf16.vlgmr.msra.gmra.mxu3 %v9314_v29  ;;  %v1522_v34 = vmul.f32 0.17677669, %v819_v26 }
  0xc1   : > { %v847_v27 = vpop.f32.mrf.mxu2 }
  0xc2   : > { %v848_v30 = vadd.f32 %v847_v27, %v9555_v25  ;;  %v876_v31 = vpop.f32.mrf.mxu3  ;;  %v791_v32 = vpop.f32.mrf.mxu0 }
  0xc3   : > { %v820_v33 = vpop.f32.mrf.mxu1  ;;  %v792_v37 = vadd.f32 %v791_v32, %v9551_v21 }
  0xc4   : > { %v877_v35 = vadd.f32 %v876_v31, %v848_v30 }
  0xc5   : > { %v821_v28 = vadd.f32 %v820_v33, %v792_v37 }
  0xc6   : > { %v1523_v36 = vmul.f32 0.17677669, %v877_v35 }
  0xc7   : > { %v1524_v45 = vmul.f32 0.17677669, %v821_v28 }
  0xc8   : > { %v1538_v38 = vpack.c.bf16 %v1523_v36, %v1522_v34 }
  0xc9   : > { %v849_v39 = vpop.f32.mrf.mxu2 }
  0xca   : > { %1546 = vst [vmem:[#allocation2] sm:$0xff] %v1538_v38  ;;  %v850_v40 = vadd.f32 %v849_v39, %v9555_v25  ;;  %v878_v41 = vpop.f32.mrf.mxu3  ;;  %v794_v29 = vpop.f32.mrf.mxu0 }
  0xcb   : > { %v823_v42 = vpop.f32.mrf.mxu1  ;;  %v795_v44 = vadd.f32 %v794_v29, %v9551_v21 }
  0xcc   : > { %v879_v43 = vadd.f32 %v878_v41, %v850_v40 }
  0xcd   : > { %1419 = vmatmul.bf16.gmra.mxu0 %v9378_v60  ;;  %v824_v48 = vadd.f32 %v823_v42, %v795_v44 }
  0xce   : > { %v1525_v46 = vmul.f32 0.17677669, %v879_v43  ;;  %1477 = vmatmul.bf16.gmra.mxu2 %v9378_v60  ;;  %1448 = vmatmul.bf16.gmra.mxu1 %v9389_v1 }
  0xcf   : > { %1506 = vmatmul.bf16.gmra.mxu3 %v9389_v1  ;;  %v1526_v55 = vmul.f32 0.17677669, %v824_v48 }
  0xd0   : > { %v1539_v47 = vpack.c.bf16 %v1525_v46, %v1524_v45 }
  0xd1   : > { %v852_v49 = vpop.f32.mrf.mxu2  ;;  %v7472_v60 = vld [vmem:[#allocation2 + $0x4] sm:$0xf]  ;;  %v7360_v62 = vld [vmem:[#allocation2] sm:$0xf] }
  0xd2   : > { %1547 = vst [vmem:[#allocation2 + $0x18] sm:$0xff] %v1539_v47  ;;  %v853_v50 = vadd.f32 %v852_v49, %v9555_v25  ;;  %v881_v51 = vpop.f32.mrf.mxu3  ;;  %v796_v53 = vpop.f32.mrf.mxu0  ;;  %v7248_v63 = vld [vmem:[#allocation2] sm:$0xf]  ;;  %v7584_v24 = vld [vmem:[#allocation2 + $0x4] sm:$0xf] }
  0xd3   : > { %v825_v54 = vpop.f32.mrf.mxu1  ;;  %v797_v58 = vadd.f32 %v796_v53, %v9551_v21  ;;  %v7304_v32 = vld [vmem:[#allocation2] sm:$0xf]  ;;  %v7528_v48 = vld [vmem:[#allocation2 + $0x4] sm:$0xf] }
  0xd4   : > { %v882_v56 = vadd.f32 %v881_v51, %v853_v50 }
  0xd5   : > { %v826_v0 = vadd.f32 %v825_v54, %v797_v58 }
  0xd6   : > { %v1527_v59 = vmul.f32 0.17677669, %v882_v56 }
  0xd7   : > { %v1528_v14 = vmul.f32 0.17677669, %v826_v0 }
  0xd8   : > { %v1540_v61 = vpack.c.bf16 %v1527_v59, %v1526_v55 }
  0xd9   : > { %v854_v1 = vpop.f32.mrf.mxu2  ;;  %v8218_v2 = vld [vmem:[#allocation2 + $0x18] sm:$0xf0]  ;;  %v8194_v3 = vld [vmem:[#allocation2 + $0x14] sm:$0xf0] }
  0xda   : > { %v8170_v4 = vld [vmem:[#allocation2 + $0x14] sm:$0xf0]  ;;  %1548 = vst [vmem:[#allocation2 + $0x30] sm:$0xff] %v1540_v61  ;;  %v855_v5 = vadd.f32 %v854_v1, %v9555_v25  ;;  %v883_v6 = vpop.f32.mrf.mxu3  ;;  %v799_v7 = vpop.f32.mrf.mxu0  ;;  %v7473_v8 = vor.u32 %v8218_v2, %v7472_v60  ;;  %v7361_v9 = vor.u32 %v8194_v3, %v7360_v62  ;;  %v8242_v16 = vld [vmem:[#allocation2 + $0x18] sm:$0xf0] }
  0xdb   : > { %v7249_v10 = vor.u32 %v8170_v4, %v7248_v63  ;;  %v828_v11 = vpop.f32.mrf.mxu1  ;;  %v800_v13 = vadd.f32 %v799_v7, %v9551_v21  ;;  %v8182_v22 = vld [vmem:[#allocation2 + $0x14] sm:$0xf0]  ;;  %v7585_v31 = vor.u32 %v8242_v16, %v7584_v24  ;;  %v8230_v39 = vld [vmem:[#allocation2 + $0x18] sm:$0xf0] }
  0xdc   : > { %v884_v12 = vadd.f32 %v883_v6, %v855_v5  ;;  %3774 = vrot.lane.b32.xlu1 %v7473_v8, %s8758_s16  ;;  %2929 = vrot.lane.b32.xlu0 %v7361_v9, %s8759_s1  ;;  %v7305_v34 = vor.u32 %v8182_v22, %v7304_v32  ;;  %v7529_v50 = vor.u32 %v8230_v39, %v7528_v48 }
  0xdd   : > { %2027 = vrot.lane.b32.xlu2 %v7249_v10, %s8758_s16  ;;  %1424 = vmatmul.bf16.gmra.mxu0 %v9486_v52  ;;  %v829_v20 = vadd.f32 %v828_v11, %v800_v13 }
  0xde   : > { %v1529_v15 = vmul.f32 0.17677669, %v884_v12  ;;  %1482 = vmatmul.bf16.gmra.mxu2 %v9486_v52  ;;  %1453 = vmatmul.bf16.gmra.mxu1 %v9497_v57 }
  0xdf   : > { %1511 = vmatmul.bf16.gmra.mxu3 %v9497_v57  ;;  %v1530_v52 = vmul.f32 0.17677669, %v829_v20 }
  0xe0   : > { %v1541_v17 = vpack.c.bf16 %v1529_v15, %v1528_v14 }
  0xe1   : > { %v857_v23 = vpop.f32.mrf.mxu2  ;;  %v7308_v38 = vld [vmem:[#allocation2 + $0x30] sm:$0xf]  ;;  %v7532_v63 = vld [vmem:[#allocation2 + $0x34] sm:$0xf] }
  0xe2   : > { %1549 = vst [vmem:[#allocation2 + $0x48] sm:$0xff] %v1541_v17  ;;  %v858_v26 = vadd.f32 %v857_v23, %v9555_v25  ;;  %v886_v27 = vpop.f32.mrf.mxu3  ;;  %v801_v30 = vpop.f32.mrf.mxu0  ;;  %v7364_v41 = vld [vmem:[#allocation2 + $0x30] sm:$0xf]  ;;  %v7588_v0 = vld [vmem:[#allocation2 + $0x34] sm:$0xf] }
  0xe3   : > { %v830_v33 = vpop.f32.mrf.mxu1  ;;  %v802_v36 = vadd.f32 %v801_v30, %v9551_v21  ;;  %v7476_v32 = vld [vmem:[#allocation2 + $0x34] sm:$0xf] }
  0xe4   : > { %v887_v35 = vadd.f32 %v886_v27, %v858_v26  ;;  %4674 = vrot.lane.b32.xlu0 %v7585_v31, %s8759_s1 }
  0xe5   : > { %2478 = vrot.lane.b32.xlu2 %v7305_v34, %s8760_s28  ;;  %v831_v42 = vadd.f32 %v830_v33, %v802_v36 }
  0xe6   : > { %v1531_v57 = vmul.f32 0.17677669, %v887_v35 }
  0xe7   : > { %v1532_v54 = vmul.f32 0.17677669, %v831_v42 }
  0xe8   : > { %v1542_v37 = vpack.c.bf16 %v1531_v57, %v1530_v52 }
  0xe9   : > { %v859_v28 = vpop.f32.mrf.mxu2  ;;  %v8183_v40 = vld [vmem:[#allocation2 + $0x44] sm:$0xf0]  ;;  %v8231_v56 = vld [vmem:[#allocation2 + $0x48] sm:$0xf0] }
  0xea   : > { %v8195_v29 = vld [vmem:[#allocation2 + $0x44] sm:$0xf0]  ;;  %1550 = vst [vmem:[#allocation2 + $0x60] sm:$0xff] %v1542_v37  ;;  %v860_v43 = vadd.f32 %v859_v28, %v9555_v25  ;;  %v888_v44 = vpop.f32.mrf.mxu3  ;;  %v804_v45 = vpop.f32.mrf.mxu0  ;;  %v7309_v46 = vor.u32 %v8183_v40, %v7308_v38  ;;  %v8243_v58 = vld [vmem:[#allocation2 + $0x48] sm:$0xf0]  ;;  %v7533_v4 = vor.u32 %v8231_v56, %v7532_v63 }
  0xeb   : > { %v7365_v47 = vor.u32 %v8195_v29, %v7364_v41  ;;  %v833_v49 = vpop.f32.mrf.mxu1  ;;  %v805_v53 = vadd.f32 %v804_v45, %v9551_v21  ;;  %v8171_v60 = vld [vmem:[#allocation2 + $0x44] sm:$0xf0]  ;;  %v7589_v5 = vor.u32 %v8243_v58, %v7588_v0  ;;  %v8219_v15 = vld [vmem:[#allocation2 + $0x48] sm:$0xf0] }
  0xec   : > { %v889_v51 = vadd.f32 %v888_v44, %v860_v43  ;;  %2480 = vrot.lane.b32.xlu1 %v7309_v46, %s8760_s28  ;;  %v7477_v33 = vor.u32 %v8219_v15, %v7476_v32 }
  0xed   : > { %2931 = vrot.lane.b32.xlu0 %v7365_v47, %s8759_s1  ;;  %4224 = vrot.lane.b32.xlu2 %v7529_v50, %s8760_s28  ;;  %v834_v61 = vadd.f32 %v833_v49, %v805_v53 }
  0xee   : > { %1429 = vmatmul.bf16.gmra.mxu0 %v9540_v18  ;;  %v1533_v55 = vmul.f32 0.17677669, %v889_v51  ;;  %1487 = vmatmul.bf16.gmra.mxu2 %v9540_v18  ;;  %v7252_v18 = vld [vmem:[#allocation2 + $0x30] sm:$0xf] }
  0xef   : > { %1458 = vmatmul.bf16.gmra.mxu1 %v9542_v19  ;;  %1516 = vmatmul.bf16.gmra.mxu3 %v9542_v19  ;;  %v7253_v7 = vor.u32 %v8171_v60, %v7252_v18  ;;  %v1534_v8 = vmul.f32 0.17677669, %v834_v61  ;;  %v9599_v19 = vld [vmem:[%s12963_s4 + $0x2] sm:$0xf] }
  0xf0   : > { %v1543_v59 = vpack.c.bf16 %v1533_v55, %v1532_v54  ;;  %v9603_v13 = vperm.slane %v9599_v19, 0 }
  0xf1   : > { %v862_v62 = vpop.f32.mrf.mxu2  ;;  %v7592_v14 = vld [vmem:[#allocation2 + $0x64] sm:$0xf]  ;;  %v7256_v20 = vld [vmem:[#allocation2 + $0x60] sm:$0xf] }
  0xf2   : > { %1551 = vst [vmem:[#allocation2 + $0x78] sm:$0xff] %v1543_v59  ;;  %v863_v1 = vadd.f32 %v862_v62, %v9555_v25  ;;  %v891_v2 = vpop.f32.mrf.mxu3  ;;  %v806_v3 = vpop.f32.mrf.mxu0  ;;  %v7480_v28 = vld [vmem:[#allocation2 + $0x64] sm:$0xf]  ;;  %v7368_v44 = vld [vmem:[#allocation2 + $0x60] sm:$0xf] }
  0xf3   : > { %v835_v6 = vpop.f32.mrf.mxu1  ;;  %v807_v11 = vadd.f32 %v806_v3, %v9551_v21  ;;  %v7536_v56 = vld [vmem:[#allocation2 + $0x64] sm:$0xf]  ;;  %v7312_v63 = vld [vmem:[#allocation2 + $0x60] sm:$0xf] }
  0xf4   : > { %v892_v9 = vadd.f32 %v891_v2, %v863_v1  ;;  %4226 = vrot.lane.b32.xlu1 %v7533_v4, %s8760_s28 }
  0xf5   : > { %4676 = vrot.lane.b32.xlu0 %v7589_v5, %s8759_s1  ;;  %2029 = vrot.lane.b32.xlu2 %v7253_v7, %s8758_s16  ;;  %v836_v23 = vadd.f32 %v835_v6, %v807_v11 }
  0xf6   : > { %v1535_v10 = vmul.f32 0.17677669, %v892_v9 }
  0xf7   : > { %v1536_v52 = vmul.f32 0.17677669, %v836_v23 }
  0xf8   : > { %v1544_v12 = vpack.c.bf16 %v1535_v10, %v1534_v8 }
  0xf9   : > { %v864_v16 = vpop.f32.mrf.mxu2  ;;  %v8244_v17 = vld [vmem:[#allocation2 + $0x78] sm:$0xf0]  ;;  %v8172_v22 = vld [vmem:[#allocation2 + $0x74] sm:$0xf0] }
  0xfa   : > { %1552 = vst [vmem:[#allocation2 + $0x90] sm:$0xff] %v1544_v12  ;;  %v865_v24 = vadd.f32 %v864_v16, %v9555_v25  ;;  %v893_v26 = vpop.f32.mrf.mxu3  ;;  %v1299_v27 = vpop.f32.mrf.mxu0  ;;  %v7593_v30 = vor.u32 %v8244_v17, %v7592_v14  ;;  %v7257_v31 = vor.u32 %v8172_v22, %v7256_v20  ;;  %v9611_v25 = vperm.slane %v9599_v19, 1  ;;  %v8220_v36 = vld [vmem:[#allocation2 + $0x78] sm:$0xf0]  ;;  %v8196_v38 = vld [vmem:[#allocation2 + $0x74] sm:$0xf0] }
  0xfb   : > { %v1328_v21 = vpop.f32.mrf.mxu1  ;;  %v1300_v57 = vadd.f32 %v1299_v27, %v9603_v13  ;;  %v7481_v43 = vor.u32 %v8220_v36, %v7480_v28  ;;  %v7369_v46 = vor.u32 %v8196_v38, %v7368_v44  ;;  %v8232_v49 = vld [vmem:[#allocation2 + $0x78] sm:$0xf0]  ;;  %v8184_v51 = vld [vmem:[#allocation2 + $0x74] sm:$0xf0] }
  0xfc   : > { %v894_v34 = vadd.f32 %v893_v26, %v865_v24  ;;  %4678 = vrot.lane.b32.xlu1 %v7593_v30, %s8759_s1  ;;  %v7537_v62 = vor.u32 %v8232_v49, %v7536_v56  ;;  %v7313_v1 = vor.u32 %v8184_v51, %v7312_v63 }
  0xfd   : > { %2031 = vrot.lane.b32.xlu0 %v7257_v31, %s8758_s16  ;;  %3776 = vrot.lane.b32.xlu2 %v7477_v33, %s8758_s16  ;;  %v1329_v40 = vadd.f32 %v1328_v21, %v1300_v57 }
  0xfe   : > { %v1537_v35 = vmul.f32 0.17677669, %v894_v34 }
 0x100   : > { %v1545_v37 = vpack.c.bf16 %v1537_v35, %v1536_v52 }
 0x101   : > { %v1357_v39 = vpop.f32.mrf.mxu2  ;;  %v7260_v54 = vld [vmem:[#allocation2 + $0x90] sm:$0xf]  ;;  %v7484_v9 = vld [vmem:[#allocation2 + $0x94] sm:$0xf] }
 0x102   : > { %1553 = vst [vmem:[#allocation2 + $0xa8] sm:$0xff] %v1545_v37  ;;  %v1358_v41 = vadd.f32 %v1357_v39, %v9611_v25  ;;  %v1386_v29 = vpop.f32.mrf.mxu3  ;;  %v1301_v42 = vpop.f32.mrf.mxu0  ;;  %v7372_v10 = vld [vmem:[#allocation2 + $0x90] sm:$0xf]  ;;  %v7596_v20 = vld [vmem:[#allocation2 + $0x94] sm:$0xf] }
 0x103   : > { %v1330_v45 = vpop.f32.mrf.mxu1  ;;  %v1302_v50 = vadd.f32 %v1301_v42, %v9603_v13  ;;  %v7316_v33 = vld [vmem:[#allocation2 + $0x90] sm:$0xf]  ;;  %v7540_v37 = vld [vmem:[#allocation2 + $0x94] sm:$0xf] }
 0x104   : > { %v1387_v47 = vadd.f32 %v1386_v29, %v1358_v41 }
 0x105   : > { %3778 = vrot.lane.b32.xlu0 %v7481_v43, %s8758_s16  ;;  %2933 = vrot.lane.b32.xlu2 %v7369_v46, %s8759_s1  ;;  %v1331_v2 = vadd.f32 %v1330_v45, %v1302_v50 }
 0x106   : > { %v1554_v48 = vpack.c.bf16 %v1387_v47, %v1329_v40 }
 0x108   : > { %1570 = vst [vmem:[#allocation2 + $0x8] sm:$0xff] %v1554_v48 }
 0x109   : > { %v1359_v53 = vpop.f32.mrf.mxu2  ;;  %v8173_v55 = vld [vmem:[#allocation2 + $0xa4] sm:$0xf0]  ;;  %v8221_v18 = vld [vmem:[#allocation2 + $0xa8] sm:$0xf0] }
 0x10a   : > { %v1360_v58 = vadd.f32 %v1359_v53, %v9611_v25  ;;  %v1388_v59 = vpop.f32.mrf.mxu3  ;;  %v1304_v61 = vpop.f32.mrf.mxu0  ;;  %v7261_v60 = vor.u32 %v8173_v55, %v7260_v54  ;;  %v8197_v6 = vld [vmem:[#allocation2 + $0xa4] sm:$0xf0]  ;;  %v8245_v7 = vld [vmem:[#allocation2 + $0xa8] sm:$0xf0]  ;;  %v7485_v16 = vor.u32 %v8221_v18, %v7484_v9 }
 0x10b   : > { %v1333_v0 = vpop.f32.mrf.mxu1  ;;  %v1305_v5 = vadd.f32 %v1304_v61, %v9603_v13  ;;  %v7373_v17 = vor.u32 %v8197_v6, %v7372_v10  ;;  %v7597_v23 = vor.u32 %v8245_v7, %v7596_v20  ;;  %v8185_v27 = vld [vmem:[#allocation2 + $0xa4] sm:$0xf0]  ;;  %v8233_v32 = vld [vmem:[#allocation2 + $0xa8] sm:$0xf0] }
 0x10c   : > { %v1389_v3 = vadd.f32 %v1388_v59, %v1360_v58  ;;  %2033 = vrot.lane.b32.xlu1 %v7261_v60, %s8758_s16  ;;  %v7317_v36 = vor.u32 %v8185_v27, %v7316_v33  ;;  %v7541_v28 = vor.u32 %v8233_v32, %v7540_v37 }
 0x10d   : > { %4228 = vrot.lane.b32.xlu0 %v7537_v62, %s8760_s28  ;;  %2482 = vrot.lane.b32.xlu2 %v7313_v1, %s8760_s28  ;;  %v1334_v11 = vadd.f32 %v1333_v0, %v1305_v5 }
 0x10e   : > { %v1556_v4 = vpack.c.bf16 %v1389_v3, %v1331_v2 }
 0x10f   : > { %v7264_v34 = vld [vmem:[#allocation2 + $0x8] sm:$0xf]  ;;  %v7488_v51 = vld [vmem:[#allocation2 + $0xc] sm:$0xf] }
 0x110   : > { %1572 = vst [vmem:[#allocation2 + $0x20] sm:$0xff] %v1556_v4  ;;  %v7376_v46 = vld [vmem:[#allocation2 + $0x8] sm:$0xf]  ;;  %v7544_v18 = vld [vmem:[#allocation2 + $0xc] sm:$0xf] }
 0x111   : > { %v1362_v8 = vpop.f32.mrf.mxu2  ;;  %v7320_v2 = vld [vmem:[#allocation2 + $0x8] sm:$0xf] }
 0x112   : > { %v1363_v12 = vadd.f32 %v1362_v8, %v9611_v25  ;;  %v1391_v14 = vpop.f32.mrf.mxu3  ;;  %v1306_v15 = vpop.f32.mrf.mxu0 }
 0x113   : > { %v1335_v22 = vpop.f32.mrf.mxu1  ;;  %v1307_v31 = vadd.f32 %v1306_v15, %v9603_v13 }
 0x114   : > { %v1392_v24 = vadd.f32 %v1391_v14, %v1363_v12  ;;  %3780 = vrot.lane.b32.xlu1 %v7485_v16, %s8758_s16 }
 0x115   : > { %2935 = vrot.lane.b32.xlu0 %v7373_v17, %s8759_s1  ;;  %4680 = vrot.lane.b32.xlu2 %v7597_v23, %s8759_s1  ;;  %v1336_v40 = vadd.f32 %v1335_v22, %v1307_v31  ;;  %v7600_v17 = vld [vmem:[#allocation2 + $0xc] sm:$0xf] }
 0x116   : > { %v1558_v26 = vpack.c.bf16 %v1392_v24, %v1334_v11 }
 0x117   : > { %v8174_v30 = vld [vmem:[#allocation2 + $0x1c] sm:$0xf0]  ;;  %v8222_v44 = vld [vmem:[#allocation2 + $0x20] sm:$0xf0] }
 0x118   : > { %1574 = vst [vmem:[#allocation2 + $0x38] sm:$0xff] %v1558_v26  ;;  %v7265_v38 = vor.u32 %v8174_v30, %v7264_v34  ;;  %v8198_v43 = vld [vmem:[#allocation2 + $0x1c] sm:$0xf0]  ;;  %v7489_v55 = vor.u32 %v8222_v44, %v7488_v51  ;;  %v8234_v0 = vld [vmem:[#allocation2 + $0x20] sm:$0xf0] }
 0x119   : > { %v1364_v21 = vpop.f32.mrf.mxu2  ;;  %v7377_v53 = vor.u32 %v8198_v43, %v7376_v46  ;;  %v8186_v60 = vld [vmem:[#allocation2 + $0x1c] sm:$0xf0]  ;;  %v7545_v8 = vor.u32 %v8234_v0, %v7544_v18  ;;  %v8246_v14 = vld [vmem:[#allocation2 + $0x20] sm:$0xf0] }
 0x11a   : > { %v1365_v52 = vadd.f32 %v1364_v21, %v9611_v25  ;;  %v1393_v35 = vpop.f32.mrf.mxu3  ;;  %v1309_v57 = vpop.f32.mrf.mxu0  ;;  %v7321_v6 = vor.u32 %v8186_v60, %v7320_v2  ;;  %v7601_v27 = vor.u32 %v8246_v14, %v7600_v17 }
 0x11b   : > { %v1338_v39 = vpop.f32.mrf.mxu1  ;;  %v1310_v42 = vadd.f32 %v1309_v57, %v9603_v13 }
 0x11c   : > { %v1394_v41 = vadd.f32 %v1393_v35, %v1365_v52  ;;  %2055 = vrot.lane.b32.xlu1 %v7265_v38, %s8758_s16 }
 0x11d   : > { %2484 = vrot.lane.b32.xlu0 %v7317_v36, %s8760_s28  ;;  %4230 = vrot.lane.b32.xlu2 %v7541_v28, %s8760_s28  ;;  %v1339_v47 = vadd.f32 %v1338_v39, %v1310_v42 }
 0x11e   : > { %v1560_v29 = vpack.c.bf16 %v1394_v41, %v1336_v40 }
 0x11f   : > { %v7548_v59 = vld [vmem:[#allocation2 + $0x3c] sm:$0xf]  ;;  %v7380_v26 = vld [vmem:[#allocation2 + $0x38] sm:$0xf] }
 0x120   : > { %1576 = vst [vmem:[#allocation2 + $0x50] sm:$0xff] %v1560_v29  ;;  %v7268_v38 = vld [vmem:[#allocation2 + $0x38] sm:$0xf]  ;;  %v9648_v29 = vperm.slane %v9599_v19, 2 }
 0x121   : > { %v1367_v45 = vpop.f32.mrf.mxu2  ;;  %v7324_v40 = vld [vmem:[#allocation2 + $0x38] sm:$0xf] }
 0x122   : > { %v1368_v48 = vadd.f32 %v1367_v45, %v9611_v25  ;;  %v1396_v49 = vpop.f32.mrf.mxu3  ;;  %v1311_v50 = vpop.f32.mrf.mxu0 }
 0x123   : > { %v1340_v54 = vpop.f32.mrf.mxu1  ;;  %v1312_v62 = vadd.f32 %v1311_v50, %v9603_v13 }
 0x124   : > { %v1397_v56 = vadd.f32 %v1396_v49, %v1368_v48  ;;  %2957 = vrot.lane.b32.xlu1 %v7377_v53, %s8759_s1  ;;  %v9654_v48 = vperm.slane %v9599_v19, 3 }
 0x125   : > { %3802 = vrot.lane.b32.xlu2 %v7489_v55, %s8758_s16  ;;  %v1341_v9 = vadd.f32 %v1340_v54, %v1312_v62  ;;  %v7492_v54 = vld [vmem:[#allocation2 + $0x3c] sm:$0xf] }
 0x126   : > { %v1562_v58 = vpack.c.bf16 %v1397_v56, %v1339_v47  ;;  %v7604_v56 = vld [vmem:[#allocation2 + $0x3c] sm:$0xf] }
 0x127   : > { %v8235_v61 = vld [vmem:[#allocation2 + $0x50] sm:$0xf0]  ;;  %v8199_v15 = vld [vmem:[#allocation2 + $0x4c] sm:$0xf0] }
 0x128   : > { %1578 = vst [vmem:[#allocation2 + $0x68] sm:$0xff] %v1562_v58  ;;  %v7549_v63 = vor.u32 %v8235_v61, %v7548_v59  ;;  %v7381_v31 = vor.u32 %v8199_v15, %v7380_v26  ;;  %v8175_v52 = vld [vmem:[#allocation2 + $0x4c] sm:$0xf0]  ;;  %v8223_v50 = vld [vmem:[#allocation2 + $0x50] sm:$0xf0] }
 0x129   : > { %v1369_v1 = vpop.f32.mrf.mxu2  ;;  %v8187_v36 = vld [vmem:[#allocation2 + $0x4c] sm:$0xf0]  ;;  %v7269_v41 = vor.u32 %v8175_v52, %v7268_v38  ;;  %v8247_v53 = vld [vmem:[#allocation2 + $0x50] sm:$0xf0]  ;;  %v7493_v58 = vor.u32 %v8223_v50, %v7492_v54  ;;  %v7212_v50 = vld [vmem:[#allocation2 + $0x38] sm:$0xf] }
 0x12a   : > { %v1370_v3 = vadd.f32 %v1369_v1, %v9611_v25  ;;  %v1398_v4 = vpop.f32.mrf.mxu3  ;;  %4254 = vrot.lane.b32.xlu0 %v7549_v63, %s8760_s28  ;;  %v1314_v5 = vpop.f32.mrf.mxu0  ;;  %v7325_v43 = vor.u32 %v8187_v36, %v7324_v40  ;;  %v7605_v63 = vor.u32 %v8247_v53, %v7604_v56 }
 0x12b   : > { %v1343_v7 = vpop.f32.mrf.mxu1  ;;  %v1315_v12 = vadd.f32 %v1314_v5, %v9603_v13 }
 0x12c   : > { %v1399_v10 = vadd.f32 %v1398_v4, %v1370_v3  ;;  %2506 = vrot.lane.b32.xlu1 %v7321_v6, %s8760_s28 }
 0x12d   : > { %4252 = vrot.lane.b32.xlu2 %v7545_v8, %s8760_s28  ;;  %v1344_v20 = vadd.f32 %v1343_v7, %v1315_v12 }
 0x12e   : > { %v1564_v11 = vpack.c.bf16 %v1399_v10, %v1341_v9 }
 0x12f   : > { %v7272_v33 = vld [vmem:[#allocation2 + $0x68] sm:$0xf]  ;;  %v7496_v10 = vld [vmem:[#allocation2 + $0x6c] sm:$0xf] }
 0x130   : > { %1580 = vst [vmem:[#allocation2 + $0x80] sm:$0xff] %v1564_v11  ;;  %v7328_v49 = vld [vmem:[#allocation2 + $0x68] sm:$0xf]  ;;  %v7552_v38 = vld [vmem:[#allocation2 + $0x6c] sm:$0xf] }
 0x131   : > { %v1372_v16 = vpop.f32.mrf.mxu2  ;;  %v7384_v14 = vld [vmem:[#allocation2 + $0x68] sm:$0xf]  ;;  %v7608_v40 = vld [vmem:[#allocation2 + $0x6c] sm:$0xf] }
 0x132   : > { %v1373_v22 = vadd.f32 %v1372_v16, %v9611_v25  ;;  %v1401_v23 = vpop.f32.mrf.mxu3  ;;  %v1316_v24 = vpop.f32.mrf.mxu0 }
 0x133   : > { %v1345_v30 = vpop.f32.mrf.mxu1  ;;  %v1317_v35 = vadd.f32 %v1316_v24, %v9603_v13 }
 0x134   : > { %v1402_v32 = vadd.f32 %v1401_v23, %v1373_v22  ;;  %4702 = vrot.lane.b32.xlu1 %v7601_v27, %s8759_s1 }
 0x135   : > { %2959 = vrot.lane.b32.xlu2 %v7381_v31, %s8759_s1  ;;  %v1346_v45 = vadd.f32 %v1345_v30, %v1317_v35  ;;  %v7216_v31 = vld [vmem:[#allocation2 + $0x68] sm:$0xf] }
 0x136   : > { %v1566_v21 = vpack.c.bf16 %v1402_v32, %v1344_v20 }
 0x137   : > { %v8176_v34 = vld [vmem:[#allocation2 + $0x7c] sm:$0xf0]  ;;  %v8224_v3 = vld [vmem:[#allocation2 + $0x80] sm:$0xf0]  ;;  %v9666_v32 = vpop.permute.xlu2 %2027 }
 0x138   : > { %1582 = vst [vmem:[#allocation2 + $0x98] sm:$0xff] %v1566_v21  ;;  %v7273_v57 = vor.u32 %v8176_v34, %v7272_v33  ;;  %v8188_v13 = vld [vmem:[#allocation2 + $0x7c] sm:$0xf0]  ;;  %v7497_v15 = vor.u32 %v8224_v3, %v7496_v10 }
 0x139   : > { %v1374_v37 = vpop.f32.mrf.mxu2  ;;  %v7329_v51 = vor.u32 %v8188_v13, %v7328_v49  ;;  %v8200_v9 = vld [vmem:[#allocation2 + $0x7c] sm:$0xf0]  ;;  %v8163_v13 = vld [vmem:[#allocation2 + $0x4c] sm:$0xf0] }
 0x13a   : > { %v1375_v39 = vadd.f32 %v1374_v37, %v9611_v25  ;;  %v1403_v28 = vpop.f32.mrf.mxu3  ;;  %2059 = vrot.lane.b32.xlu0 %v7273_v57, %s8758_s16  ;;  %v1415_v42 = vpop.f32.mrf.mxu0  ;;  %v7385_v23 = vor.u32 %v8200_v9, %v7384_v14  ;;  %v8164_v24 = vld [vmem:[#allocation2 + $0x7c] sm:$0xf0]  ;;  %v8236_v57 = vld [vmem:[#allocation2 + $0x80] sm:$0xf0]  ;;  %v7213_v54 = vor.u32 %v8163_v13, %v7212_v50 }
 0x13b   : > { %v1444_v44 = vpop.f32.mrf.mxu1  ;;  %v1416_v25 = vadd.f32 %v1415_v42, %v9648_v29  ;;  %v7217_v34 = vor.u32 %v8164_v24, %v7216_v31  ;;  %v8248_v37 = vld [vmem:[#allocation2 + $0x80] sm:$0xf0] }
 0x13c   : > { %v1404_v46 = vadd.f32 %v1403_v28, %v1375_v39  ;;  %2057 = vrot.lane.b32.xlu1 %v7269_v41, %s8758_s16  ;;  %v7553_v41 = vor.u32 %v8236_v57, %v7552_v38 }
 0x13d   : > { %2508 = vrot.lane.b32.xlu2 %v7325_v43, %s8760_s28  ;;  %v1445_v61 = vadd.f32 %v1444_v44, %v1416_v25  ;;  %v1670_v28 = vsel %vm1650_vm0, %v7217_v34, 0 }
 0x13e   : > { %v1568_v47 = vpack.c.bf16 %v1404_v46, %v1346_v45  ;;  %v7609_v46 = vor.u32 %v8248_v37, %v7608_v40 }
 0x13f   : > { %v7276_v2 = vld [vmem:[#allocation2 + $0x98] sm:$0xf] }
 0x140   : > { %1584 = vst [vmem:[#allocation2 + $0xb0] sm:$0xff] %v1568_v47  ;;  %v7220_v18 = vld [vmem:[#allocation2 + $0x98] sm:$0xf] }
 0x141   : > { %v1473_v55 = vpop.f32.mrf.mxu2  ;;  %v7332_v35 = vld [vmem:[#allocation2 + $0x98] sm:$0xf] }
 0x142   : > { %2510 = vrot.lane.b32.xlu0 %v7329_v51, %s8760_s28  ;;  %v1474_v59 = vadd.f32 %v1473_v55, %v9654_v48  ;;  %v1502_v60 = vpop.f32.mrf.mxu3  ;;  %v1417_v62 = vpop.f32.mrf.mxu0 }
 0x143   : > { %v1446_v0 = vpop.f32.mrf.mxu1  ;;  %v1418_v4 = vadd.f32 %v1417_v62, %v9648_v29 }
 0x144   : > { %3804 = vrot.lane.b32.xlu1 %v7493_v58, %s8758_s16  ;;  %v1503_v19 = vadd.f32 %v1502_v60, %v1474_v59  ;;  %v7500_v58 = vld [vmem:[#allocation2 + $0x9c] sm:$0xf] }
 0x145   : > { %4704 = vrot.lane.b32.xlu2 %v7605_v63, %s8759_s1  ;;  %v1447_v17 = vadd.f32 %v1446_v0, %v1418_v4  ;;  %v7388_v0 = vld [vmem:[#allocation2 + $0x98] sm:$0xf] }
 0x146   : > { %v1555_v1 = vpack.c.bf16 %v1503_v19, %v1445_v61  ;;  %v9679_v61 = vpop.permute.xlu2 %2478 }
 0x147   : > { %v8177_v5 = vld [vmem:[#allocation2 + $0xac] sm:$0xf0]  ;;  %v8225_v49 = vld [vmem:[#allocation2 + $0xb0] sm:$0xf0] }
 0x148   : > { %v8165_v6 = vld [vmem:[#allocation2 + $0xac] sm:$0xf0]  ;;  %1571 = vst [vmem:[#allocation2 + $0x10] sm:$0xff] %v1555_v1  ;;  %v7277_v7 = vor.u32 %v8177_v5, %v7276_v2  ;;  %v7501_v60 = vor.u32 %v8225_v49, %v7500_v58  ;;  %v1667_v2 = vsel %vm1650_vm0, %v7213_v54, 0  ;;  %v8237_v10 = vld [vmem:[#allocation2 + $0xb0] sm:$0xf0] }
 0x149   : > { %v7221_v8 = vor.u32 %v8165_v6, %v7220_v18  ;;  %v1475_v11 = vpop.f32.mrf.mxu2  ;;  %v8189_v30 = vld [vmem:[#allocation2 + $0xac] sm:$0xf0] }
 0x14a   : > { %2061 = vrot.lane.b32.xlu0 %v7277_v7, %s8758_s16  ;;  %v1476_v16 = vadd.f32 %v1475_v11, %v9654_v48  ;;  %v1504_v20 = vpop.f32.mrf.mxu3  ;;  %v1420_v22 = vpop.f32.mrf.mxu0  ;;  %v7333_v36 = vor.u32 %v8189_v30, %v7332_v35  ;;  %v8201_v59 = vld [vmem:[#allocation2 + $0xac] sm:$0xf0]  ;;  %v8162_v7 = vld [vmem:[#allocation2 + $0x1c] sm:$0xf0]  ;;  %v7208_v11 = vld [vmem:[#allocation2 + $0x8] sm:$0xf] }
 0x14b   : > { %v1673_v12 = vsel %vm1650_vm0, %v7221_v8, 0  ;;  %v1449_v26 = vpop.f32.mrf.mxu1  ;;  %v1421_v52 = vadd.f32 %v1420_v22, %v9648_v29  ;;  %v7389_v3 = vor.u32 %v8201_v59, %v7388_v0  ;;  %v7209_v14 = vor.u32 %v8162_v7, %v7208_v11  ;;  %v7556_v22 = vld [vmem:[#allocation2 + $0x9c] sm:$0xf] }
 0x14c   : > { %1679 = vmatpush.bf16.xpose.msrb.mxu0 %v1673_v12  ;;  %3806 = vrot.lane.b32.xlu1 %v7497_v15, %s8758_s16  ;;  %v1505_v27 = vadd.f32 %v1504_v20, %v1476_v16  ;;  %v7557_v24 = vor.u32 %v8237_v10, %v7556_v22 }
 0x14d   : > { %2961 = vrot.lane.b32.xlu2 %v7385_v23, %s8759_s1  ;;  %v1450_v43 = vadd.f32 %v1449_v26, %v1421_v52  ;;  %v8249_v23 = vld [vmem:[#allocation2 + $0xb0] sm:$0xf0] }
 0x14e   : > { %v9668_v21 = vpop.permute.xlu0 %2929  ;;  %v1557_v33 = vpack.c.bf16 %v1505_v27, %v1447_v17  ;;  %v9681_v63 = vpop.permute.xlu1 %3774  ;;  %v7612_v27 = vld [vmem:[#allocation2 + $0x9c] sm:$0xf] }
 0x14f   : > { %v7340_v56 = vld [vmem:[#allocation2 + $0x10] sm:$0xf]  ;;  %v7508_v16 = vld [vmem:[#allocation2 + $0x14] sm:$0xf]  ;;  %v7613_v34 = vor.u32 %v8249_v23, %v7612_v27  ;;  %v9696_v37 = vpop.permute.xlu2 %4224  ;;  %v8159_v23 = vld [vmem:[#allocation2 + $0x44] sm:$0xf0] }
 0x150   : > { %1573 = vst [vmem:[#allocation2 + $0x28] sm:$0xff] %v1557_v33  ;;  %v1664_v33 = vsel %vm1650_vm0, %v7209_v14, 0  ;;  %v7396_v38 = vld [vmem:[#allocation2 + $0x10] sm:$0xf]  ;;  %v7564_v13 = vld [vmem:[#allocation2 + $0x14] sm:$0xf] }
 0x151   : > { %v1478_v39 = vpop.f32.mrf.mxu2 }
 0x152   : > { %2512 = vrot.lane.b32.xlu0 %v7333_v36, %s8760_s28  ;;  %v1479_v42 = vadd.f32 %v1478_v39, %v9654_v48  ;;  %v1507_v44 = vpop.f32.mrf.mxu3  ;;  %v1422_v45 = vpop.f32.mrf.mxu0 }
 0x153   : > { %v1451_v47 = vpop.f32.mrf.mxu1  ;;  %v1423_v55 = vadd.f32 %v1422_v45, %v9648_v29 }
 0x154   : > { %1680 = vmatpush.bf16.xpose.msrb.mxu0 %v1670_v28  ;;  %4256 = vrot.lane.b32.xlu1 %v7553_v41, %s8760_s28  ;;  %v1508_v25 = vadd.f32 %v1507_v44, %v1479_v42  ;;  %v8158_v41 = vld [vmem:[#allocation2 + $0x14] sm:$0xf0]  ;;  %v7284_v42 = vld [vmem:[#allocation2 + $0x10] sm:$0xf] }
 0x155   : > { %4706 = vrot.lane.b32.xlu2 %v7609_v46, %s8759_s1  ;;  %v1452_v5 = vadd.f32 %v1451_v47, %v1423_v55 }
 0x156   : > { %v9676_v51 = vpop.permute.xlu0 %4674  ;;  %v1559_v53 = vpack.c.bf16 %v1508_v25, %v1450_v43  ;;  %v7192_v25 = vld [vmem:[#allocation2] sm:$0xf] }
 0x157   : > { %v8190_v62 = vld [vmem:[#allocation2 + $0x24] sm:$0xf0]  ;;  %v8226_v17 = vld [vmem:[#allocation2 + $0x28] sm:$0xf0]  ;;  %v7193_v49 = vor.u32 %v8158_v41, %v7192_v25 }
 0x158   : > { %1575 = vst [vmem:[#allocation2 + $0x40] sm:$0xff] %v1559_v53  ;;  %v7341_v1 = vor.u32 %v8190_v62, %v7340_v56  ;;  %v7509_v31 = vor.u32 %v8226_v17, %v7508_v16  ;;  %v8202_v39 = vld [vmem:[#allocation2 + $0x24] sm:$0xf0]  ;;  %v8238_v47 = vld [vmem:[#allocation2 + $0x28] sm:$0xf0] }
 0x159   : > { %v1480_v19 = vpop.f32.mrf.mxu2  ;;  %v8178_v43 = vld [vmem:[#allocation2 + $0x24] sm:$0xf0]  ;;  %v7397_v46 = vor.u32 %v8202_v39, %v7396_v38  ;;  %v7565_v55 = vor.u32 %v8238_v47, %v7564_v13 }
 0x15a   : > { %3808 = vrot.lane.b32.xlu0 %v7501_v60, %s8758_s16  ;;  %v1481_v4 = vadd.f32 %v1480_v19, %v9654_v48  ;;  %v1509_v18 = vpop.f32.mrf.mxu3  ;;  %v1425_v6 = vpop.f32.mrf.mxu0  ;;  %v7285_v50 = vor.u32 %v8178_v43, %v7284_v42 }
 0x15b   : > { %v1454_v8 = vpop.f32.mrf.mxu1  ;;  %v1426_v15 = vadd.f32 %v1425_v6, %v9648_v29 }
 0x15c   : > { %1681 = vmatpush.bf16.xpose.msrb.mxu0 %v1667_v2  ;;  %2963 = vrot.lane.b32.xlu1 %v7389_v3, %s8759_s1  ;;  %v1510_v9 = vadd.f32 %v1509_v18, %v1481_v4  ;;  %v9709_v2 = vpop.permute.xlu2 %2029  ;;  %v7620_v3 = vld [vmem:[#allocation2 + $0x14] sm:$0xf]  ;;  %v8250_v4 = vld [vmem:[#allocation2 + $0x28] sm:$0xf0] }
 0x15d   : > { %2663 = vrot.lane.b32.xlu2 %v7341_v1, %s8760_s28  ;;  %v1455_v35 = vadd.f32 %v1454_v8, %v1426_v15  ;;  %v7621_v8 = vor.u32 %v8250_v4, %v7620_v3  ;;  %v7200_v4 = vld [vmem:[#allocation2 + $0x60] sm:$0xf] }
 0x15e   : > { %v1561_v12 = vpack.c.bf16 %v1510_v9, %v1452_v5  ;;  %v9691_v26 = vpop.permute.xlu1 %2480 }
 0x15f   : > { %v9689_v20 = vpop.permute.xlu0 %2931  ;;  %v7400_v62 = vld [vmem:[#allocation2 + $0x40] sm:$0xf]  ;;  %v7512_v13 = vld [vmem:[#allocation2 + $0x44] sm:$0xf] }
 0x160   : > { %1577 = vst [vmem:[#allocation2 + $0x58] sm:$0xff] %v1561_v12  ;;  %v7288_v14 = vld [vmem:[#allocation2 + $0x40] sm:$0xf] }
 0x161   : > { %v1483_v30 = vpop.f32.mrf.mxu2  ;;  %v7344_v27 = vld [vmem:[#allocation2 + $0x40] sm:$0xf] }
 0x162   : > { %4258 = vrot.lane.b32.xlu0 %v7557_v24, %s8760_s28  ;;  %v1484_v52 = vadd.f32 %v1483_v30, %v9654_v48  ;;  %v1512_v57 = vpop.f32.mrf.mxu3  ;;  %v1427_v36 = vpop.f32.mrf.mxu0 }
 0x163   : > { %v1456_v28 = vpop.f32.mrf.mxu1  ;;  %v1428_v45 = vadd.f32 %v1427_v36, %v9648_v29 }
 0x164   : > { %1682 = vmatpush.bf16.xpose.msrb.mxu0 %v1664_v33  ;;  %4708 = vrot.lane.b32.xlu1 %v7613_v34, %s8759_s1  ;;  %v1513_v40 = vadd.f32 %v1512_v57, %v1484_v52  ;;  %v7196_v57 = vld [vmem:[#allocation2 + $0x30] sm:$0xf] }
 0x165   : > { %3959 = vrot.lane.b32.xlu2 %v7509_v31, %s8758_s16  ;;  %v1457_v58 = vadd.f32 %v1456_v28, %v1428_v45  ;;  %v7197_v39 = vor.u32 %v8159_v23, %v7196_v57 }
 0x166   : > { %v1563_v44 = vpack.c.bf16 %v1513_v40, %v1455_v35  ;;  %v9706_v19 = vpop.permute.xlu1 %4226  ;;  %v9722_v35 = vpop.permute.xlu2 %3776 }
 0x167   : > { %v9701_v53 = vpop.permute.xlu0 %4676  ;;  %v8203_v0 = vld [vmem:[#allocation2 + $0x54] sm:$0xf0]  ;;  %v8227_v47 = vld [vmem:[#allocation2 + $0x58] sm:$0xf0] }
 0x168   : > { %1579 = vst [vmem:[#allocation2 + $0x70] sm:$0xff] %v1563_v44  ;;  %v7401_v6 = vor.u32 %v8203_v0, %v7400_v62  ;;  %v8179_v15 = vld [vmem:[#allocation2 + $0x54] sm:$0xf0]  ;;  %v8251_v62 = vld [vmem:[#allocation2 + $0x58] sm:$0xf0] }
 0x169   : > { %v1485_v54 = vpop.f32.mrf.mxu2  ;;  %v7289_v17 = vor.u32 %v8179_v15, %v7288_v14  ;;  %v8191_v30 = vld [vmem:[#allocation2 + $0x54] sm:$0xf0] }
 0x16a   : > { %v1486_v56 = vadd.f32 %v1485_v54, %v9654_v48  ;;  %3114 = vrot.lane.b32.xlu0 %v7397_v46, %s8759_s1  ;;  %v1514_v59 = vpop.f32.mrf.mxu3  ;;  %v7345_v28 = vor.u32 %v8191_v30, %v7344_v27  ;;  %v7568_v27 = vld [vmem:[#allocation2 + $0x44] sm:$0xf]  ;;  %v8239_v30 = vld [vmem:[#allocation2 + $0x58] sm:$0xf0] }
 0x16b   : > { %7222 = vmatmul.msk.bf16.vlgmr.msrb.gmra.mxu0 %vm1650_vm0, %v7193_v49  ;;  %v1430_v60 = vpop.f32.mrf.mxu0 }
 0x16c   : > { %2212 = vrot.lane.b32.xlu1 %v7285_v50, %s8758_s16  ;;  %v1515_v1 = vadd.f32 %v1514_v59, %v1486_v56  ;;  %v1459_v5 = vpop.f32.mrf.mxu1  ;;  %v1431_v7 = vadd.f32 %v1430_v60, %v9648_v29  ;;  %v8160_v59 = vld [vmem:[#allocation2 + $0x74] sm:$0xf0]  ;;  %v7624_v60 = vld [vmem:[#allocation2 + $0x44] sm:$0xf] }
 0x16d   : > { %4409 = vrot.lane.b32.xlu2 %v7565_v55, %s8760_s28  ;;  %v7513_v55 = vor.u32 %v8227_v47, %v7512_v13  ;;  %v7204_v47 = vld [vmem:[#allocation2 + $0x90] sm:$0xf] }
 0x16e   : > { %v1565_v18 = vpack.c.bf16 %v1515_v1, %v1457_v58  ;;  %v1460_v11 = vadd.f32 %v1459_v5, %v1431_v7  ;;  %v9719_v33 = vpop.permute.xlu1 %4678  ;;  %v9732_v56 = vpop.permute.xlu2 %2933  ;;  %v7625_v7 = vor.u32 %v8251_v62, %v7624_v60 }
 0x16f   : > { %v9715_v22 = vpop.permute.xlu0 %2031  ;;  %v7348_v31 = vld [vmem:[#allocation2 + $0x70] sm:$0xf]  ;;  %v7516_v45 = vld [vmem:[#allocation2 + $0x74] sm:$0xf] }
 0x170   : > { %1581 = vst [vmem:[#allocation2 + $0x88] sm:$0xff] %v1565_v18 }
 0x171   : > { %v1488_v9 = vpop.f32.mrf.mxu2 }
 0x172   : > { %3116 = vrot.lane.b32.xlu0 %v7401_v6, %s8759_s1  ;;  %v1489_v10 = vadd.f32 %v1488_v9, %v9654_v48  ;;  %v1517_v12 = vpop.f32.mrf.mxu3  ;;  %v7201_v6 = vor.u32 %v8160_v59, %v7200_v4  ;;  %v7236_v9 = vld [vmem:[#allocation2 + $0x70] sm:$0xf] }
 0x173   : > { %v1432_v16 = vpop.f32.mrf.mxu0 }
 0x174   : > { %4859 = vrot.lane.b32.xlu1 %v7621_v8, %s8759_s1  ;;  %v1518_v24 = vadd.f32 %v1517_v12, %v1489_v10  ;;  %v1433_v52 = vadd.f32 %v1432_v16, %v9648_v29  ;;  %v1461_v38 = vpop.f32.mrf.mxu1  ;;  %v7232_v16 = vld [vmem:[#allocation2 + $0x40] sm:$0xf] }
 0x175   : > { %2214 = vrot.lane.b32.xlu2 %v7289_v17, %s8758_s16  ;;  %v8167_v17 = vld [vmem:[#allocation2 + $0x54] sm:$0xf0] }
 0x176   : > { %v1567_v34 = vpack.c.bf16 %v1518_v24, %v1460_v11  ;;  %v1462_v43 = vadd.f32 %v1461_v38, %v1433_v52  ;;  %v9742_v11 = vpop.permute.xlu2 %2482  ;;  %v7569_v38 = vor.u32 %v8239_v30, %v7568_v27 }
 0x177   : > { %v8192_v36 = vld [vmem:[#allocation2 + $0x84] sm:$0xf0]  ;;  %v8228_v29 = vld [vmem:[#allocation2 + $0x88] sm:$0xf0]  ;;  %v9728_v25 = vpop.permute.xlu0 %3778 }
 0x178   : > { %1583 = vst [vmem:[#allocation2 + $0xa0] sm:$0xff] %v1567_v34  ;;  %v7349_v40 = vor.u32 %v8192_v36, %v7348_v31  ;;  %v7517_v54 = vor.u32 %v8228_v29, %v7516_v45  ;;  %v8252_v58 = vld [vmem:[#allocation2 + $0x88] sm:$0xf0]  ;;  %v8168_v10 = vld [vmem:[#allocation2 + $0x84] sm:$0xf0]  ;;  %v7233_v31 = vor.u32 %v8167_v17, %v7232_v16 }
 0x179   : > { %v1490_v41 = vpop.f32.mrf.mxu2  ;;  %v7237_v15 = vor.u32 %v8168_v10, %v7236_v9  ;;  %v7404_v34 = vld [vmem:[#allocation2 + $0x70] sm:$0xf]  ;;  %v8204_v52 = vld [vmem:[#allocation2 + $0x84] sm:$0xf0] }
 0x17a   : > { %2667 = vrot.lane.b32.xlu0 %v7349_v40, %s8760_s28  ;;  %v1491_v42 = vadd.f32 %v1490_v41, %v9654_v48  ;;  %v1519_v44 = vpop.f32.mrf.mxu3  ;;  %v7628_v48 = vld [vmem:[#allocation2 + $0x74] sm:$0xf]  ;;  %v7405_v57 = vor.u32 %v8204_v52, %v7404_v34  ;;  %v8180_v45 = vld [vmem:[#allocation2 + $0x84] sm:$0xf0] }
 0x17b   : > { %7223 = vmatmul.msk.bf16.gmra.mxu0 %vm1650_vm0, %v7197_v39  ;;  %v7629_v3 = vor.u32 %v8252_v58, %v7628_v48  ;;  %v7228_v39 = vld [vmem:[#allocation2 + $0x10] sm:$0xf]  ;;  %v7572_v48 = vld [vmem:[#allocation2 + $0x74] sm:$0xf]  ;;  %v8240_v58 = vld [vmem:[#allocation2 + $0x88] sm:$0xf0] }
 0x17c   : > { %2665 = vrot.lane.b32.xlu1 %v7345_v28, %s8760_s28  ;;  %v1520_v46 = vadd.f32 %v1519_v44, %v1491_v42  ;;  %v8166_v28 = vld [vmem:[#allocation2 + $0x24] sm:$0xf0]  ;;  %v7292_v44 = vld [vmem:[#allocation2 + $0x70] sm:$0xf]  ;;  %v7573_v62 = vor.u32 %v8240_v58, %v7572_v48 }
 0x17d   : > { %3118 = vrot.lane.b32.xlu2 %v7405_v57, %s8759_s1  ;;  %v7229_v29 = vor.u32 %v8166_v28, %v7228_v39 }
 0x17e   : > { %v9730_v49 = vpop.permute.xlu1 %2033  ;;  %v1569_v50 = vpack.c.bf16 %v1520_v46, %v1462_v43  ;;  %v9752_v42 = vpop.permute.xlu2 %4680  ;;  %v8161_v43 = vld [vmem:[#allocation2 + $0xa4] sm:$0xf0] }
 0x17f   : > { %v7240_v0 = vld [vmem:[#allocation2 + $0xa0] sm:$0xf]  ;;  %v9738_v18 = vpop.permute.xlu0 %4228  ;;  %v7576_v30 = vld [vmem:[#allocation2 + $0xa4] sm:$0xf] }
 0x180   : > { %1585 = vst [vmem:[#allocation2 + $0xb8] sm:$0xff] %v1569_v50  ;;  %v7296_v12 = vld [vmem:[#allocation2 + $0xa0] sm:$0xf]  ;;  %v7205_v50 = vor.u32 %v8161_v43, %v7204_v47 }
 0x181   : > { %v7408_v40 = vld [vmem:[#allocation2 + $0xa0] sm:$0xf] }
 0x182   : > { %3963 = vrot.lane.b32.xlu0 %v7517_v54, %s8758_s16  ;;  %v7293_v54 = vor.u32 %v8180_v45, %v7292_v44 }
 0x184   : > { %3961 = vrot.lane.b32.xlu1 %v7513_v55, %s8758_s16 }
 0x186   : > { %v9736_v1 = vpop.permute.xlu1 %3780  ;;  %v9761_v60 = vpop.permute.xlu2 %4230 }
 0x187   : > { %v8169_v5 = vld [vmem:[#allocation2 + $0xb4] sm:$0xf0]  ;;  %v9747_v36 = vpop.permute.xlu0 %2935 }
 0x188   : > { %v7241_v8 = vor.u32 %v8169_v5, %v7240_v0  ;;  %v8181_v14 = vld [vmem:[#allocation2 + $0xb4] sm:$0xf0]  ;;  %v7632_v0 = vld [vmem:[#allocation2 + $0xa4] sm:$0xf] }
 0x189   : > { %v7297_v24 = vor.u32 %v8181_v14, %v7296_v12  ;;  %v8205_v41 = vld [vmem:[#allocation2 + $0xb4] sm:$0xf0]  ;;  %v7520_v14 = vld [vmem:[#allocation2 + $0xa4] sm:$0xf] }
 0x18a   : > { %4863 = vrot.lane.b32.xlu0 %v7629_v3, %s8759_s1  ;;  %1821 = vmatpush.bf16.msrb.mxu1 %v7241_v8  ;;  %v7409_v13 = vor.u32 %v8205_v41, %v7408_v40  ;;  %v8253_v3 = vld [vmem:[#allocation2 + $0xb8] sm:$0xf0] }
 0x18b   : > { %7224 = vmatmul.msk.bf16.gmra.mxu0 %vm1650_vm0, %v7201_v6  ;;  %v7633_v4 = vor.u32 %v8253_v3, %v7632_v0  ;;  %v7352_v6 = vld [vmem:[#allocation2 + $0xa0] sm:$0xf] }
 0x18c   : > { %4861 = vrot.lane.b32.xlu1 %v7625_v7, %s8759_s1  ;;  %v8193_v7 = vld [vmem:[#allocation2 + $0xb4] sm:$0xf0] }
 0x18d   : > { %4865 = vrot.lane.b32.xlu2 %v7633_v4, %s8759_s1  ;;  %v7353_v9 = vor.u32 %v8193_v7, %v7352_v6  ;;  %v8213_v4 = vld [vmem:[#allocation2 + $0xb0] sm:$0xf0]  ;;  %v7444_v6 = vld [vmem:[#allocation2 + $0x9c] sm:$0xf] }
 0x18e   : > { %v9745_v23 = vpop.permute.xlu1 %2055  ;;  %1822 = vmatpush.bf16.msrb.mxu1 %v7237_v15  ;;  %v9769_v10 = vpop.permute.xlu2 %3802  ;;  %v8229_v15 = vld [vmem:[#allocation2 + $0xb8] sm:$0xf0]  ;;  %v7445_v7 = vor.u32 %v8213_v4, %v7444_v6 }
 0x18f   : > { %v9758_v55 = vpop.permute.xlu0 %2484  ;;  %v7521_v17 = vor.u32 %v8229_v15, %v7520_v14  ;;  %v2076_v58 = vsel %vm1650_vm0, %v9745_v23, 0 }
 0x192   : > { %2218 = vrot.lane.b32.xlu0 %v7297_v24, %s8758_s16  ;;  %1823 = vmatpush.bf16.msrb.mxu1 %v7233_v31  ;;  %v8241_v31 = vld [vmem:[#allocation2 + $0xb8] sm:$0xf0] }
 0x193   : > { %v7577_v52 = vor.u32 %v8241_v31, %v7576_v30 }
 0x194   : > { %4411 = vrot.lane.b32.xlu1 %v7569_v38, %s8760_s28 }
 0x196   : > { %v9754_v46 = vpop.permute.xlu1 %2957  ;;  %1824 = vmatpush.bf16.msrb.mxu1 %v7229_v29  ;;  %v9772_v24 = vpop.permute.xlu2 %4252 }
 0x19a   : > { %3120 = vrot.lane.b32.xlu0 %v7409_v13, %s8759_s1 }
 0x19b   : > { %7225 = vmatmul.msk.bf16.gmra.mxu0 %vm1650_vm0, %v7205_v50 }
 0x19c   : > { %2216 = vrot.lane.b32.xlu1 %v7293_v54, %s8758_s16  ;;  %v9764_v5 = vpop.permute.xlu0 %4254 }
 0x19e   : > { %v2507_v59 = vpop.permute.xlu1 %2506  ;;  %v2960_v38 = vpop.permute.xlu2 %2959 }
 0x19f   : > { %v2527_v23 = vsel %vm1650_vm0, %v2507_v59, 0  ;;  %v2981_v59 = vsel %vm1650_vm0, %v2960_v38, 0 }
 0x1a4   : > { %4413 = vrot.lane.b32.xlu1 %v7573_v62, %s8760_s28 }
 0x1a6   : > { %v9767_v8 = vpop.permute.xlu1 %4702  ;;  %v2509_v45 = vpop.permute.xlu2 %2508 }
 0x1a7   : > { %v2530_v62 = vsel %vm1650_vm0, %v2509_v45, 0 }
 0x1ac   : > { %v2060_v12 = vpop.permute.xlu0 %2059  ;;  %2669 = vrot.lane.b32.xlu1 %v7353_v9, %s8760_s28 }
 0x1ad   : > { %v2082_v43 = vsel %vm1650_vm0, %v2060_v12, 0 }
 0x1ae   : > { %v2058_v16 = vpop.permute.xlu1 %2057  ;;  %v9787_v54 = vpop.permute.xlu2 %4704 }
 0x1af   : > { %v2079_v13 = vsel %vm1650_vm0, %v2058_v16, 0  ;;  %v3422_v16 = vsel %vm1650_vm0, %v7445_v7, 0 }
 0x1b4   : > { %v2511_v27 = vpop.permute.xlu0 %2510  ;;  %3965 = vrot.lane.b32.xlu1 %v7521_v17, %s8758_s16  ;;  %v8212_v17 = vld [vmem:[#allocation2 + $0x80] sm:$0xf0] }
 0x1b5   : > { %v2533_v47 = vsel %vm1650_vm0, %v2511_v27, 0  ;;  %v7440_v27 = vld [vmem:[#allocation2 + $0x6c] sm:$0xf] }
 0x1b6   : > { %v9775_v34 = vpop.permute.xlu1 %3804  ;;  %v2962_v9 = vpop.permute.xlu2 %2961  ;;  %v7441_v30 = vor.u32 %v8212_v17, %v7440_v27 }
 0x1b7   : > { %v2984_v15 = vsel %vm1650_vm0, %v2962_v9, 0  ;;  %v3826_v27 = vsel %vm1650_vm0, %v9775_v34, 0  ;;  %v3823_v34 = vsel %vm1650_vm0, %v9769_v10, 0  ;;  %v4273_v10 = vsel %vm1650_vm0, %v9772_v24, 0 }
 0x1bc   : > { %v2062_v57 = vpop.permute.xlu0 %2061  ;;  %4415 = vrot.lane.b32.xlu1 %v7577_v52, %s8760_s28  ;;  %v3419_v52 = vsel %vm1650_vm0, %v7441_v30, 0 }
 0x1bd   : > { %v2085_v39 = vsel %vm1650_vm0, %v2062_v57, 0 }
 0x1be   : > { %2091 = vmatpush.bf16.xpose.msrb.mxu2 %v2085_v39  ;;  %v9779_v28 = vpop.permute.xlu1 %3806  ;;  %v8211_v39 = vld [vmem:[#allocation2 + $0x50] sm:$0xf0] }
 0x1c4   : > { %v2513_v40 = vpop.permute.xlu0 %2512 }
 0x1c5   : > { %v2536_v41 = vsel %vm1650_vm0, %v2513_v40, 0 }
 0x1c6   : > { %2092 = vmatpush.bf16.xpose.msrb.mxu2 %v2082_v43  ;;  %v9783_v44 = vpop.permute.xlu1 %4256  ;;  %2542 = vmatpush.bf16.xpose.msra.mxu0 %v2536_v41  ;;  %v7436_v41 = vld [vmem:[#allocation2 + $0x3c] sm:$0xf] }
 0x1c7   : > { %v7437_v43 = vor.u32 %v8211_v39, %v7436_v41 }
 0x1cc   : > { %v3809_v29 = vpop.permute.xlu0 %3808 }
 0x1ce   : > { %2093 = vmatpush.bf16.xpose.msrb.mxu2 %v2079_v13  ;;  %v2964_v50 = vpop.permute.xlu1 %2963  ;;  %2543 = vmatpush.bf16.xpose.msra.mxu0 %v2533_v47  ;;  %v2978_v13 = vsel %vm1650_vm0, %v9754_v46, 0  ;;  %v3416_v47 = vsel %vm1650_vm0, %v7437_v43, 0 }
 0x1cf   : > { %v2987_v0 = vsel %vm1650_vm0, %v2964_v50, 0  ;;  %v3832_v50 = vsel %vm1650_vm0, %v3809_v29, 0 }
 0x1d4   : > { %v4259_v48 = vpop.permute.xlu0 %4258 }
 0x1d5   : > { %v4282_v9 = vsel %vm1650_vm0, %v4259_v48, 0 }
 0x1d6   : > { %2094 = vmatpush.bf16.xpose.msrb.mxu2 %v2076_v58  ;;  %v9793_v3 = vpop.permute.xlu1 %4708  ;;  %2544 = vmatpush.bf16.xpose.msra.mxu0 %v2530_v62  ;;  %v8210_v62 = vld [vmem:[#allocation2 + $0x20] sm:$0xf0] }
 0x1dc   : > { %v9795_v12 = vpop.permute.xlu0 %3114 }
 0x1dd   : > { %7278 = vmatmul.msk.bf16.vlgmr.msrb.gmra.mxu2 %vm1650_vm0, %v9666_v32 }
 0x1de   : > { %2993 = vmatpush.bf16.xpose.msra.mxu2 %v2987_v0  ;;  %v9800_v14 = vpop.permute.xlu1 %2212  ;;  %2545 = vmatpush.bf16.xpose.msra.mxu0 %v2527_v23  ;;  %v7432_v0 = vld [vmem:[#allocation2 + $0xc] sm:$0xf] }
 0x1df   : > { %v7433_v4 = vor.u32 %v8210_v62, %v7432_v0 }
 0x1e1   : > { %v3413_v7 = vsel %vm1650_vm0, %v7433_v4, 0  ;;  %v8206_v4 = vld [vmem:[#allocation2 + $0x18] sm:$0xf0] }
 0x1e4   : > { %v9804_v31 = vpop.permute.xlu0 %3116 }
 0x1e5   : > { %7334 = vmatmul.msk.bf16.vlgmr.msra.gmra.mxu0 %vm1650_vm0, %v9679_v61  ;;  %v9820_v61 = vpop.permute.xlu2 %4706 }
 0x1e6   : > { %2994 = vmatpush.bf16.xpose.msra.mxu2 %v2984_v15  ;;  %3428 = vmatpush.bf16.xpose.msrb.mxu0 %v3422_v16  ;;  %v9808_v32 = vpop.permute.xlu1 %4859  ;;  %v3829_v15 = vsel %vm1650_vm0, %v9779_v28, 0  ;;  %v4279_v28 = vsel %vm1650_vm0, %v9783_v44, 0  ;;  %v4276_v44 = vsel %vm1650_vm0, %v9764_v5, 0 }
 0x1e8   : > { %v9812_v57 = vpop.f32.mrf.mxu0 }
 0x1e9   : > { %v1705_v40 = vsel %vm1704_vm1, %v9812_v57, -inf }
 0x1ea   : > { %1706 = vmax.xlane.f32.xlu1 %v1705_v40 }
 0x1ec   : > { %v9816_v45 = vpop.permute.xlu0 %2667 }
 0x1ed   : > { %7279 = vmatmul.msk.bf16.gmra.mxu2 %vm1650_vm0, %v9709_v2  ;;  %v9836_v46 = vpop.permute.xlu2 %2663 }
 0x1ee   : > { %2995 = vmatpush.bf16.xpose.msra.mxu2 %v2981_v59  ;;  %3429 = vmatpush.bf16.xpose.msrb.mxu0 %v3419_v52  ;;  %v9822_v38 = vpop.permute.xlu1 %2665 }
 0x1f0   : > { %v9828_v58 = vpop.f32.mrf.mxu0 }
 0x1f1   : > { %v1708_v2 = vsel %vm1704_vm1, %v9828_v58, -inf }
 0x1f2   : > { %1709 = vmax.xlane.f32.xlu2 %v1708_v2  ;;  %v4732_v2 = vsel %vm1650_vm0, %v9793_v3, 0  ;;  %v4726_v3 = vsel %vm1650_vm0, %v9787_v54, 0  ;;  %v8209_v54 = vld [vmem:[#allocation2 + $0xa8] sm:$0xf0] }
 0x1f4   : > { %v9832_v6 = vpop.permute.xlu0 %3963 }
 0x1f5   : > { %7335 = vmatmul.msk.bf16.gmra.mxu0 %vm1650_vm0, %v9691_v26  ;;  %v9860_v30 = vpop.permute.xlu2 %3959 }
 0x1f6   : > { %2996 = vmatpush.bf16.xpose.msra.mxu2 %v2978_v13  ;;  %3430 = vmatpush.bf16.xpose.msrb.mxu0 %v3416_v47  ;;  %v9838_v29 = vpop.permute.xlu1 %3961 }
 0x1f8   : > { %v9842_v23 = vpop.f32.mrf.mxu0 }
 0x1f9   : > { %v1711_v16 = vsel %vm1704_vm1, %v9842_v23, -inf }
 0x1fa   : > { %1712 = vmax.xlane.f32.xlu1 %v1711_v16  ;;  %v7428_v16 = vld [vmem:[#allocation2 + $0x94] sm:$0xf] }
 0x1fc   : > { %v9848_v26 = vpop.permute.xlu0 %4863 }
 0x1fd   : > { %7280 = vmatmul.msk.bf16.gmra.mxu2 %vm1650_vm0, %v9715_v22  ;;  %v9876_v41 = vpop.permute.xlu2 %4409 }
 0x1fe   : > { %3838 = vmatpush.bf16.xpose.msrb.mxu2 %v3832_v50  ;;  %3431 = vmatpush.bf16.xpose.msrb.mxu0 %v3413_v7  ;;  %v9852_v17 = vpop.permute.xlu1 %4861  ;;  %v7416_v7 = vld [vmem:[#allocation2 + $0x4] sm:$0xf] }
 0x200   : > { %v9854_v48 = vpop.f32.mrf.mxu0 }
 0x201   : > { %v1714_v59 = vsel %vm1704_vm1, %v9854_v48, -inf }
 0x202   : > { %1715 = vmax.xlane.f32.xlu0 %v1714_v59 }
 0x204   : > { %v2219_v52 = vpop.permute.xlu0 %2218 }
 0x205   : > { %7336 = vmatmul.msk.bf16.gmra.mxu0 %vm1650_vm0, %v9742_v11  ;;  %2240 = vmatpush.bf16.msrb.mxu3 %v2219_v52  ;;  %v2215_v13 = vpop.permute.xlu2 %2214 }
 0x206   : > { %3839 = vmatpush.bf16.xpose.msrb.mxu2 %v3829_v15  ;;  %4288 = vmatpush.bf16.xpose.msra.mxu0 %v4282_v9  ;;  %v9866_v22 = vpop.permute.xlu1 %4411  ;;  %v7417_v9 = vor.u32 %v8206_v4, %v7416_v7 }
 0x208   : > { %v9868_v39 = vpop.f32.mrf.mxu0 }
 0x209   : > { %v1717_v40 = vsel %vm1704_vm1, %v9868_v39, -inf }
 0x20a   : > { %1718 = vmax.xlane.f32.xlu2 %v1717_v40 }
 0x20c   : > { %v3121_v47 = vpop.permute.xlu0 %3120 }
 0x20d   : > { %7281 = vmatmul.msk.bf16.gmra.mxu2 %vm1650_vm0, %v9730_v49  ;;  %v3119_v62 = vpop.permute.xlu2 %3118 }
 0x20e   : > { %3840 = vmatpush.bf16.xpose.msrb.mxu2 %v3826_v27  ;;  %4289 = vmatpush.bf16.xpose.msra.mxu0 %v4279_v28  ;;  %v2217_v11 = vpop.permute.xlu1 %2216  ;;  %v7429_v27 = vor.u32 %v8209_v54, %v7428_v16 }
 0x20f   : > { %2241 = vmatpush.bf16.msrb.mxu3 %v2217_v11 }
 0x210   : > { %v9880_v43 = vpop.f32.mrf.mxu0 }
 0x211   : > { %v1720_v5 = vsel %vm1704_vm1, %v9880_v43, -inf }
 0x212   : > { %1721 = vmax.xlane.f32.xlu0 %v1720_v5 }
 0x213   : > { %2242 = vmatpush.bf16.msrb.mxu3 %v2215_v13 }
 0x215   : > { %7337 = vmatmul.msk.bf16.gmra.mxu0 %vm1650_vm0, %v9758_v55 }
 0x216   : > { %3841 = vmatpush.bf16.xpose.msrb.mxu2 %v3823_v34  ;;  %4290 = vmatpush.bf16.xpose.msra.mxu0 %v4276_v44  ;;  %v9888_v50 = vpop.permute.xlu1 %4413 }
 0x217   : > { %2243 = vmatpush.bf16.msrb.mxu3 %v9800_v14 }
 0x218   : > { %v9890_v49 = vpop.f32.mrf.mxu0 }
 0x219   : > { %v1723_v24 = vsel %vm1704_vm1, %v9890_v49, -inf }
 0x21a   : > { %1724 = vmax.xlane.f32.xlu0 %v1723_v24 }
 0x21b   : > { %3142 = vmatpush.bf16.msra.mxu3 %v3121_v47 }
 0x21d   : > { %7390 = vmatmul.msk.bf16.vlgmr.msra.gmra.mxu2 %vm1650_vm0, %v9668_v21  ;;  %v4729_v21 = vsel %vm1650_vm0, %v9820_v61, 0  ;;  %v4723_v61 = vsel %vm1650_vm0, %v9767_v8, 0  ;;  %v9928_v8 = vpop.permute.xlu2 %4865 }
 0x21e   : > { %4291 = vmatpush.bf16.xpose.msra.mxu0 %v4273_v10  ;;  %4738 = vmatpush.bf16.xpose.msra.mxu2 %v4732_v2  ;;  %v2670_v55 = vpop.permute.xlu1 %2669  ;;  %v8217_v2 = vld [vmem:[#allocation2 + $0xb8] sm:$0xf0] }
 0x21f   : > { %3143 = vmatpush.bf16.msra.mxu3 %v3119_v62  ;;  %2691 = vmatpush.bf16.msra.mxu1 %v2670_v55  ;;  %v7464_v62 = vld [vmem:[#allocation2 + $0xa4] sm:$0xf] }
 0x220   : > { %v9899_v0 = vpop.f32.mrf.mxu0 }
 0x221   : > { %v1726_v14 = vsel %vm1704_vm1, %v9899_v0, -inf }
 0x222   : > { %1727 = vmax.xlane.f32.xlu2 %v1726_v14 }
 0x223   : > { %3144 = vmatpush.bf16.msra.mxu3 %v9804_v31  ;;  %2692 = vmatpush.bf16.msra.mxu1 %v9816_v45  ;;  %v8207_v31 = vld [vmem:[#allocation2 + $0x48] sm:$0xf0]  ;;  %v7420_v45 = vld [vmem:[#allocation2 + $0x34] sm:$0xf] }
 0x225   : > { %7446 = vmatmul.msk.bf16.vlgmr.msrb.gmra.mxu0 %vm1650_vm0, %v7417_v9 }
 0x226   : > { %4739 = vmatpush.bf16.xpose.msra.mxu2 %v4729_v21  ;;  %v7465_v21 = vor.u32 %v8217_v2, %v7464_v62 }
 0x227   : > { %3145 = vmatpush.bf16.msra.mxu3 %v9795_v12  ;;  %2693 = vmatpush.bf16.msra.mxu1 %v9822_v38  ;;  %v7421_v12 = vor.u32 %v8207_v31, %v7420_v45  ;;  %v8208_v38 = vld [vmem:[#allocation2 + $0x78] sm:$0xf0]  ;;  %v8216_v31 = vld [vmem:[#allocation2 + $0x88] sm:$0xf0] }
 0x22b   : > { %2694 = vmatpush.bf16.msra.mxu1 %v9836_v46  ;;  %v7424_v46 = vld [vmem:[#allocation2 + $0x64] sm:$0xf] }
 0x22c   : > { %v7425_v15 = vor.u32 %v8208_v38, %v7424_v46  ;;  %v7456_v46 = vld [vmem:[#allocation2 + $0x44] sm:$0xf] }
 0x22d   : > { %7391 = vmatmul.msk.bf16.gmra.mxu2 %vm1650_vm0, %v9689_v20  ;;  %v9921_v20 = vpop.permute.xlu1 %3965 }
 0x22e   : > { %4740 = vmatpush.bf16.xpose.msra.mxu2 %v4726_v3 }
 0x235   : > { %7447 = vmatmul.msk.bf16.gmra.mxu0 %vm1650_vm0, %v7421_v12  ;;  %v9925_v28 = vpop.permute.xlu1 %4415 }
 0x236   : > { %4741 = vmatpush.bf16.xpose.msra.mxu2 %v4723_v61 }
 0x23d   : > { %7392 = vmatmul.msk.bf16.gmra.mxu2 %vm1650_vm0, %v9732_v56 }
 0x245   : > { %7448 = vmatmul.msk.bf16.gmra.mxu0 %vm1650_vm0, %v7425_v15  ;;  %v8215_v15 = vld [vmem:[#allocation2 + $0x58] sm:$0xf0] }
 0x24d   : > { %7393 = vmatmul.msk.bf16.gmra.mxu2 %vm1650_vm0, %v9747_v36 }
 0x255   : > { %7449 = vmatmul.msk.bf16.gmra.mxu0 %vm1650_vm0, %v7429_v27 }
 0x25d   : > { %v1707_v56 = vpop.xlane.xlu1 %1706  ;;  %7502 = vmatmul.msk.bf16.vlgmr.msrb.gmra.mxu2 %vm1650_vm0, %v9681_v63 }
 0x25e   : > { %v1729_v59 = vsub.f32 %v9812_v57, %v1707_v56 }
 0x260   : > { %v1737_v52 = vmul.f32 1.442695, %v1729_v59  ;;  %v9933_v34 = vpop.f32.mrf.mxu2  ;;  %v7457_v59 = vor.u32 %v8215_v15, %v7456_v46 }
 0x261   : > { %v2116_v24 = vsel %vm1704_vm1, %v9933_v34, -inf }
 0x262   : > { %8404 = vpow2.f32 %v1737_v52  ;;  %v9935_v36 = vpop.f32.mrf.mxu0 }
 0x263   : > { %v2567_v44 = vsel %vm1704_vm1, %v9935_v36, -inf }
 0x264   : > { %2568 = vmax.xlane.f32.xlu2 %v2567_v44  ;;  %v8214_v44 = vld [vmem:[#allocation2 + $0x28] sm:$0xf0] }
 0x265   : > { %v1710_v40 = vpop.xlane.xlu2 %1709  ;;  %7558 = vmatmul.msk.bf16.vlgmr.msra.gmra.mxu0 %vm1650_vm0, %v9696_v37 }
 0x266   : > { %v1730_v11 = vsub.f32 %v9828_v58, %v1710_v40 }
 0x268   : > { %v8405_v57 = vpop.eup %8404  ;;  %v1739_v10 = vmul.f32 1.442695, %v1730_v11  ;;  %v9942_v5 = vpop.f32.mrf.mxu2 }
 0x269   : > { %v1753_v63 = vsel %vm1704_vm1, %v8405_v57, 0.0  ;;  %v2119_v9 = vsel %vm1704_vm1, %v9942_v5, -inf }
 0x26a   : > { %8406 = vpow2.f32 %v1739_v10  ;;  %1754 = vadd.xlane.f32.xlu0 %v1753_v63  ;;  %v9945_v13 = vpop.f32.mrf.mxu0 }
 0x26b   : > { %v2570_v47 = vsel %vm1704_vm1, %v9945_v13, -inf }
 0x26c   : > { %2571 = vmax.xlane.f32.xlu1 %v2570_v47  ;;  %2117 = vmax.xlane.f32.xlu2 %v2116_v24 }
 0x26d   : > { %v1713_v58 = vpop.xlane.xlu1 %1712  ;;  %7503 = vmatmul.msk.bf16.gmra.mxu2 %vm1650_vm0, %v9722_v35 }
 0x26e   : > { %v1731_v37 = vsub.f32 %v9842_v23, %v1713_v58  ;;  %v7460_v23 = vld [vmem:[#allocation2 + $0x74] sm:$0xf] }
 0x26f   : > { %v7461_v38 = vor.u32 %v8216_v31, %v7460_v23 }
 0x270   : > { %v8407_v55 = vpop.eup %8406  ;;  %v1741_v14 = vmul.f32 1.442695, %v1731_v37  ;;  %v9954_v7 = vpop.f32.mrf.mxu2 }
 0x271   : > { %v1777_v4 = vpack.c.bf16 %v8407_v55, %v8405_v57  ;;  %v1756_v45 = vsel %vm1704_vm1, %v8407_v55, 0.0  ;;  %v2122_v56 = vsel %vm1704_vm1, %v9954_v7, -inf }
 0x272   : > { %2120 = vmax.xlane.f32.xlu0 %v2119_v9  ;;  %8408 = vpow2.f32 %v1741_v14  ;;  %v9959_v3 = vpop.f32.mrf.mxu0 }
 0x273   : > { %7242 = vmatmul.msk.bf16.vlgmr.msrb.gmra.mxu1 %vm1704_vm1, %v1777_v4  ;;  %v2573_v35 = vsel %vm1704_vm1, %v9959_v3, -inf }
 0x274   : > { %3569 = vmatpush.bf16.msrb.mxu1 %v7465_v21  ;;  %2574 = vmax.xlane.f32.xlu1 %v2573_v35 }
 0x275   : > { %v1716_v12 = vpop.xlane.xlu0 %1715  ;;  %1757 = vadd.xlane.f32.xlu2 %v1756_v45  ;;  %7559 = vmatmul.msk.bf16.gmra.mxu0 %vm1650_vm0, %v9706_v19 }
 0x276   : > { %v1732_v61 = vsub.f32 %v9854_v48, %v1716_v12  ;;  %v7452_v48 = vld [vmem:[#allocation2 + $0x14] sm:$0xf] }
 0x277   : > { %v7453_v11 = vor.u32 %v8214_v44, %v7452_v48 }
 0x278   : > { %v1743_v54 = vmul.f32 1.442695, %v1732_v61  ;;  %3570 = vmatpush.bf16.msrb.mxu1 %v7461_v38  ;;  %v8409_v16 = vpop.eup %8408  ;;  %v9967_v27 = vpop.f32.mrf.mxu2 }
 0x279   : > { %v1759_v19 = vsel %vm1704_vm1, %v8409_v16, 0.0 }
 0x27a   : > { %8410 = vpow2.f32 %v1743_v54  ;;  %2123 = vmax.xlane.f32.xlu0 %v2122_v56  ;;  %v9971_v52 = vpop.f32.mrf.mxu0 }
 0x27b   : > { %v2576_v24 = vsel %vm1704_vm1, %v9971_v52, -inf }
 0x27c   : > { %3571 = vmatpush.bf16.msrb.mxu1 %v7457_v59 }
 0x27d   : > { %1760 = vadd.xlane.f32.xlu2 %v1759_v19  ;;  %v1719_v40 = vpop.xlane.xlu2 %1718  ;;  %7504 = vmatmul.msk.bf16.gmra.mxu2 %vm1650_vm0, %v9728_v25  ;;  %v2125_v25 = vsel %vm1704_vm1, %v9967_v27, -inf }
 0x27e   : > { %v1733_v10 = vsub.f32 %v9868_v39, %v1719_v40 }
 0x280   : > { %v8411_v57 = vpop.eup %8410  ;;  %3572 = vmatpush.bf16.msrb.mxu1 %v7453_v11  ;;  %v9977_v63 = vpop.f32.mrf.mxu2  ;;  %v1745_v62 = vmul.f32 1.442695, %v1733_v10 }
 0x281   : > { %v1762_v47 = vsel %vm1704_vm1, %v8411_v57, 0.0  ;;  %v1778_v58 = vpack.c.bf16 %v8411_v57, %v8409_v16  ;;  %v2128_v4 = vsel %vm1704_vm1, %v9977_v63, -inf }
 0x282   : > { %1763 = vadd.xlane.f32.xlu1 %v1762_v47  ;;  %2577 = vmax.xlane.f32.xlu0 %v2576_v24  ;;  %v9983_v37 = vpop.f32.mrf.mxu0  ;;  %8412 = vpow2.f32 %v1745_v62 }
 0x283   : > { %7243 = vmatmul.msk.bf16.gmra.mxu1 %vm1704_vm1, %v1778_v58 }
 0x285   : > { %v1722_v2 = vpop.xlane.xlu0 %1721  ;;  %2126 = vmax.xlane.f32.xlu2 %v2125_v25  ;;  %7560 = vmatmul.msk.bf16.gmra.mxu0 %vm1650_vm0, %v9738_v18 }
 0x286   : > { %v1734_v39 = vsub.f32 %v9880_v43, %v1722_v2  ;;  %v2579_v43 = vsel %vm1704_vm1, %v9983_v37, -inf }
 0x288   : > { %v1747_v55 = vmul.f32 1.442695, %v1734_v39  ;;  %v9990_v14 = vpop.f32.mrf.mxu2  ;;  %v10002_v23 = vpop.eup %8412 }
 0x289   : > { %13006 = vst [vmem:[#allocation15_spill] sm:$0xff] %v10002_v23  ;;  %v2131_v12 = vsel %vm1704_vm1, %v9990_v14, -inf }
 0x28a   : > { %8414 = vpow2.f32 %v1747_v55  ;;  %2129 = vmax.xlane.f32.xlu1 %v2128_v4  ;;  %v9994_v9 = vpop.f32.mrf.mxu0 }
 0x28b   : > { %v2582_v21 = vsel %vm1704_vm1, %v9994_v9, -inf }
 0x28c   : > { %2583 = vmax.xlane.f32.xlu0 %v2582_v21 }
 0x28d   : > { %2580 = vmax.xlane.f32.xlu2 %v2579_v43  ;;  %v1725_v18 = vpop.xlane.xlu0 %1724  ;;  %7505 = vmatmul.msk.bf16.gmra.mxu2 %vm1650_vm0, %v9736_v1 }
 0x28e   : > { %v1735_v35 = vsub.f32 %v9890_v49, %v1725_v18 }
 0x290   : > { %v10004_v31 = vpop.eup %8414  ;;  %v10007_v45 = vpop.f32.mrf.mxu2  ;;  %v1749_v46 = vmul.f32 1.442695, %v1735_v35 }
 0x291   : > { %13007 = vst [vmem:[#allocation16_spill] sm:$0xff] %v10004_v31  ;;  %v1779_v61 = vpack.c.bf16 %v10004_v31, %v10002_v23  ;;  %v2134_v56 = vsel %vm1704_vm1, %v10007_v45, -inf }
 0x292   : > { %2132 = vmax.xlane.f32.xlu1 %v2131_v12  ;;  %v10014_v38 = vpop.f32.mrf.mxu0  ;;  %8416 = vpow2.f32 %v1749_v46 }
 0x293   : > { %7244 = vmatmul.msk.bf16.gmra.mxu1 %vm1704_vm1, %v1779_v61  ;;  %v2585_v1 = vsel %vm1704_vm1, %v10014_v38, -inf }
 0x294   : > { %2586 = vmax.xlane.f32.xlu0 %v2585_v1 }
 0x295   : > { %v1728_v15 = vpop.xlane.xlu2 %1727  ;;  %7561 = vmatmul.msk.bf16.gmra.mxu0 %vm1650_vm0, %v9761_v60 }
 0x296   : > { %v1736_v49 = vsub.f32 %v9899_v0, %v1728_v15 }
 0x298   : > { %v1751_v54 = vmul.f32 1.442695, %v1736_v49  ;;  %v10021_v16 = vpop.f32.mrf.mxu2  ;;  %v10031_v0 = vpop.eup %8416 }
 0x299   : > { %13008 = vst [vmem:[#allocation17_spill] sm:$0xff] %v10031_v0 }
 0x29a   : > { %8418 = vpow2.f32 %v1751_v54  ;;  %2135 = vmax.xlane.f32.xlu1 %v2134_v56  ;;  %v10025_v59 = vpop.f32.mrf.mxu0 }
 0x29b   : > { %v2588_v48 = vsel %vm1704_vm1, %v10025_v59, -inf }
 0x29c   : > { %2589 = vmax.xlane.f32.xlu2 %v2588_v48 }
 0x29d   : > { %7614 = vmatmul.msk.bf16.vlgmr.msra.gmra.mxu2 %vm1650_vm0, %v9676_v51  ;;  %v2137_v51 = vsel %vm1704_vm1, %v10021_v16, -inf }
 0x2a0   : > { %v10033_v60 = vpop.eup %8418  ;;  %v10035_v44 = vpop.f32.mrf.mxu2 }
 0x2a1   : > { %13009 = vst [vmem:[#allocation18_spill] sm:$0xff] %v10033_v60  ;;  %v1780_v19 = vpack.c.bf16 %v10033_v60, %v10031_v0  ;;  %v3018_v40 = vsel %vm1704_vm1, %v10035_v44, -inf }
 0x2a2   : > { %3019 = vmax.xlane.f32.xlu1 %v3018_v40  ;;  %v10042_v11 = vpop.f32.mrf.mxu0 }
 0x2a3   : > { %7245 = vmatmul.msk.bf16.gmra.mxu1 %vm1704_vm1, %v1780_v19  ;;  %v3453_v24 = vsel %vm1704_vm1, %v10042_v11, -inf }
 0x2a4   : > { %2138 = vmax.xlane.f32.xlu2 %v2137_v51 }
 0x2a8   : > { %v10046_v57 = vpop.f32.mrf.mxu2 }
 0x2a9   : > { %v3021_v10 = vsel %vm1704_vm1, %v10046_v57, -inf }
 0x2aa   : > { %3022 = vmax.xlane.f32.xlu0 %v3021_v10  ;;  %v10050_v47 = vpop.f32.mrf.mxu0 }
 0x2ab   : > { %v3456_v2 = vsel %vm1704_vm1, %v10050_v47, -inf }
 0x2ac   : > { %3454 = vmax.xlane.f32.xlu2 %v3453_v24 }
 0x2ad   : > { %7615 = vmatmul.msk.bf16.gmra.mxu2 %vm1650_vm0, %v9701_v53 }
 0x2b0   : > { %v10056_v58 = vpop.f32.mrf.mxu2 }
 0x2b1   : > { %v3024_v25 = vsel %vm1704_vm1, %v10056_v58, -inf }
 0x2b2   : > { %3025 = vmax.xlane.f32.xlu0 %v3024_v25  ;;  %v10060_v62 = vpop.f32.mrf.mxu0 }
 0x2b3   : > { %v3459_v53 = vsel %vm1704_vm1, %v10060_v62, -inf }
 0x2b4   : > { %3457 = vmax.xlane.f32.xlu2 %v3456_v2 }
 0x2b8   : > { %v10064_v39 = vpop.f32.mrf.mxu2 }
 0x2b9   : > { %v3027_v35 = vsel %vm1704_vm1, %v10064_v39, -inf }
 0x2ba   : > { %v10066_v55 = vpop.f32.mrf.mxu0 }
 0x2bb   : > { %v3462_v4 = vsel %vm1704_vm1, %v10066_v55, -inf }
 0x2bc   : > { %3463 = vmax.xlane.f32.xlu0 %v3462_v4  ;;  %3460 = vmax.xlane.f32.xlu2 %v3459_v53 }
 0x2bd   : > { %7616 = vmatmul.msk.bf16.gmra.mxu2 %vm1650_vm0, %v9719_v33 }
 0x2c0   : > { %v10074_v21 = vpop.f32.mrf.mxu2 }
 0x2c1   : > { %v3030_v33 = vsel %vm1704_vm1, %v10074_v21, -inf }
 0x2c2   : > { %v10076_v43 = vpop.f32.mrf.mxu0 }
 0x2c3   : > { %v3465_v18 = vsel %vm1704_vm1, %v10076_v43, -inf }
 0x2c4   : > { %3466 = vmax.xlane.f32.xlu1 %v3465_v18  ;;  %3028 = vmax.xlane.f32.xlu2 %v3027_v35 }
 0x2c8   : > { %v10082_v12 = vpop.f32.mrf.mxu2 }
 0x2c9   : > { %v3033_v49 = vsel %vm1704_vm1, %v10082_v12, -inf }
 0x2ca   : > { %v10084_v61 = vpop.f32.mrf.mxu0 }
 0x2cb   : > { %v3468_v1 = vsel %vm1704_vm1, %v10084_v61, -inf }
 0x2cc   : > { %3469 = vmax.xlane.f32.xlu0 %v3468_v1  ;;  %3031 = vmax.xlane.f32.xlu2 %v3030_v33 }
 0x2cd   : > { %7617 = vmatmul.msk.bf16.gmra.mxu2 %vm1650_vm0, %v9752_v42 }
 0x2d0   : > { %v10092_v46 = vpop.f32.mrf.mxu2 }
 0x2d1   : > { %v3036_v54 = vsel %vm1704_vm1, %v10092_v46, -inf }
 0x2d2   : > { %v10094_v15 = vpop.f32.mrf.mxu0 }
 0x2d3   : > { %v3471_v42 = vsel %vm1704_vm1, %v10094_v15, -inf }
 0x2d4   : > { %3034 = vmax.xlane.f32.xlu0 %v3033_v49  ;;  %3037 = vmax.xlane.f32.xlu2 %v3036_v54 }
 0x2d7   : > { %v2569_v56 = vpop.xlane.xlu2 %2568 }
 0x2d8   : > { %v10100_v48 = vpop.f32.mrf.mxu2  ;;  %v2591_v19 = vsub.f32 %v9935_v36, %v2569_v56 }
 0x2d9   : > { %v3039_v54 = vsel %vm1704_vm1, %v10100_v48, -inf }
 0x2da   : > { %v10103_v40 = vpop.f32.mrf.mxu0  ;;  %v2599_v24 = vmul.f32 1.442695, %v2591_v19 }
 0x2db   : > { %v3474_v51 = vsel %vm1704_vm1, %v10103_v40, -inf }
 0x2dc   : > { %3472 = vmax.xlane.f32.xlu0 %v3471_v42  ;;  %3475 = vmax.xlane.f32.xlu1 %v3474_v51 }
 0x2dd   : > { %v1755_v10 = vpop.xlane.xlu0 %1754 }
 0x2de   : > { %8420 = vrcp.f32 %v1755_v10  ;;  %vm1851_vm3 = vweird.f32 %v1755_v10 }
 0x2df   : > { %v2572_v25 = vpop.xlane.xlu1 %2571  ;;  %v2118_v2 = vpop.xlane.xlu2 %2117  ;;  %8422 = vpow2.f32 %v2599_v24 }
 0x2e0   : > { %v2592_v4 = vsub.f32 %v9945_v13, %v2572_v25  ;;  %v2140_v53 = vsub.f32 %v9933_v34, %v2118_v2  ;;  %v10111_v36 = vpop.f32.mrf.mxu2 }
 0x2e1   : > { %v3863_v49 = vsel %vm1704_vm1, %v10111_v36, -inf }
 0x2e2   : > { %v2601_v18 = vmul.f32 1.442695, %v2592_v4  ;;  %v2148_v35 = vmul.f32 1.442695, %v2140_v53  ;;  %v10113_v1 = vpop.f32.mrf.mxu0 }
 0x2e3   : > { %13010 = vst [vmem:[#allocation19_spill] sm:$0xff] %v10113_v1  ;;  %v4313_v56 = vsel %vm1704_vm1, %v10113_v1, -inf }
 0x2e4   : > { %v8421_v33 = vpop.eup %8420  ;;  %8424 = vpow2.f32 %v2601_v18  ;;  %3864 = vmax.xlane.f32.xlu0 %v3863_v49  ;;  %3040 = vmax.xlane.f32.xlu1 %v3039_v54  ;;  %v1857_v49 = vand.u32 2147483648, %v1755_v10 }
 0x2e5   : > { %v1847_v13 = vmul.f32 %v8421_v33, %v1755_v10  ;;  %v2121_v34 = vpop.xlane.xlu0 %2120  ;;  %8426 = vpow2.f32 %v2148_v35  ;;  %4314 = vmax.xlane.f32.xlu2 %v4313_v56  ;;  %v8423_v2 = vpop.eup %8422  ;;  %vm1852_vm2 = vweird.f32 %v8421_v33  ;;  %v1855_v56 = vand.u32 2147483647, %v1755_v10 }
 0x2e6   : > { %v2141_v19 = vsub.f32 %v9942_v5, %v2121_v34  ;;  %vm10132_vm4 = vmor %vm1851_vm3, %vm1852_vm2 }
 0x2e7   : > { %v1848_v42 = vsub.f32 1.0, %v1847_v13  ;;  %v2575_v24 = vpop.xlane.xlu1 %2574  ;;  %vm1856_vm5 = vcmp.eq.f32.partialorder %v1855_v56, 8.507059e+37 }
 0x2e8   : > { %v2150_v51 = vmul.f32 1.442695, %v2141_v19  ;;  %v10122_v25 = vpop.xlane.xlu2 %1757  ;;  %v2593_v4 = vsub.f32 %v9959_v3, %v2575_v24  ;;  %v10126_v53 = vpop.f32.mrf.mxu2  ;;  %v2615_v19 = vsel %vm1704_vm1, %v8423_v2, 0.0 }
 0x2e9   : > { %8428 = vrcp.f32 %v10122_v25  ;;  %v1849_v18 = vmul.f32 %v8421_v33, %v1848_v42  ;;  %v3866_v24 = vsel %vm1704_vm1, %v10126_v53, -inf  ;;  %vm1865_vm8 = vweird.f32 %v10122_v25 }
 0x2ea   : > { %8430 = vpow2.f32 %v2150_v51  ;;  %v10128_v35 = vpop.eup %8424  ;;  %v2603_v5 = vmul.f32 1.442695, %v2593_v4  ;;  %v10136_v42 = vpop.f32.mrf.mxu0 }
 0x2eb   : > { %v1850_v54 = vadd.f32 %v8421_v33, %v1849_v18  ;;  %v8427_v13 = vpop.eup %8426  ;;  %v2639_v34 = vpack.c.bf16 %v10128_v35, %v8423_v2  ;;  %v1858_v2 = vor.u32 1.1754944e-38, %v1857_v49 }
 0x2ec   : > { %8432 = vpow2.f32 %v2603_v5  ;;  %2616 = vadd.xlane.f32.xlu1 %v2615_v19  ;;  %v2164_v4 = vsel %vm1704_vm1, %v8427_v13, 0.0 }
 0x2ed   : > { %v2124_v51 = vpop.xlane.xlu0 %2123  ;;  %v1854_v10 = vsel %vm10132_vm4, %v8421_v33, %v1850_v54  ;;  %3867 = vmax.xlane.f32.xlu2 %v3866_v24  ;;  %2165 = vadd.xlane.f32.xlu0 %v2164_v4 }
 0x2ee   : > { %7354 = vmatmul.msk.bf16.vlgmr.msra.gmra.mxu1 %vm1704_vm1, %v2639_v34  ;;  %v1859_v23 = vsel %vm1856_vm5, %v1858_v2, %v1854_v10  ;;  %v2142_v56 = vsub.f32 %v9954_v7, %v2124_v51 }
 0x2ef   : > { %v8429_v18 = vpop.eup %8428  ;;  %4437 = vmatpush.bf16.msra.mxu1 %v9925_v28  ;;  %v1871_v28 = vand.u32 2147483648, %v10122_v25 }
 0x2f0   : > { %v8431_v5 = vpop.eup %8430  ;;  %v1861_v0 = vmul.f32 %v8429_v18, %v10122_v25  ;;  %v1826_v60 = vpop.f32.mrf.mxu1  ;;  %vm1866_vm7 = vweird.f32 %v8429_v18  ;;  %v2152_v51 = vmul.f32 1.442695, %v2142_v56 }
 0x2f1   : > { %v10146_v19 = vpop.xlane.xlu2 %1760  ;;  %v2188_v31 = vpack.c.bf16 %v8431_v5, %v8427_v13  ;;  %v1958_v1 = vmul.f32 %v1859_v23, %v1826_v60  ;;  %v10149_v33 = vpop.f32.mrf.mxu2  ;;  %vm1867_vm9 = vmor %vm1865_vm8, %vm1866_vm7  ;;  %v1872_v4 = vor.u32 1.1754944e-38, %v1871_v28 }
 0x2f2   : > { %8434 = vrcp.f32 %v10146_v19  ;;  %v1862_v49 = vsub.f32 1.0, %v1861_v0  ;;  %v10151_v54 = vpop.eup %8432  ;;  %v1869_v0 = vand.u32 2147483647, %v10122_v25  ;;  %v10170_v24 = vpop.f32.mrf.mxu0  ;;  %vm1879_vm12 = vweird.f32 %v10146_v19 }
 0x2f3   : > { %v1966_v34 = vpack.c.bf16 %v1958_v1, %v1958_v1  ;;  %7298 = vmatmul.msk.bf16.vlgmr.msrb.gmra.mxu3 %vm1704_vm1, %v2188_v31  ;;  %4438 = vmatpush.bf16.msra.mxu1 %v9888_v50  ;;  %v2621_v23 = vsel %vm1704_vm1, %v10151_v54, 0.0  ;;  %v2167_v31 = vsel %vm1704_vm1, %v8431_v5, 0.0  ;;  %v4316_v50 = vsel %vm1704_vm1, %v10136_v42, -inf }
 0x2f4   : > { %3987 = vmatpush.bf16.msrb.mxu3 %v9921_v20  ;;  %v1863_v60 = vmul.f32 %v8429_v18, %v1862_v49  ;;  %2622 = vadd.xlane.f32.xlu1 %v2621_v23  ;;  %vm1870_vm10 = vcmp.eq.f32.partialorder %v1869_v0, 8.507059e+37 }
 0x2f5   : > { %1975 = vst.msk [vmem:[#allocation3] sm:$0xf] %vm1974_vm6, %v1966_v34  ;;  %v10162_v13 = vpop.xlane.xlu1 %1763  ;;  %v2578_v7 = vpop.xlane.xlu0 %2577  ;;  %2168 = vadd.xlane.f32.xlu2 %v2167_v31  ;;  %4317 = vmax.xlane.f32.xlu0 %v4316_v50 }
 0x2f6   : > { %8436 = vrcp.f32 %v10162_v13  ;;  %v2594_v20 = vsub.f32 %v9971_v52, %v2578_v7  ;;  %v1864_v1 = vadd.f32 %v8429_v18, %v1863_v60  ;;  %v1883_v7 = vand.u32 2147483647, %v10146_v19 }
 0x2f7   : > { %4439 = vmatpush.bf16.msra.mxu1 %v9866_v22  ;;  %v1885_v22 = vand.u32 2147483648, %v10146_v19  ;;  %vm1893_vm0 = vweird.f32 %v10162_v13 }
 0x2f8   : > { %v8435_v3 = vpop.eup %8434  ;;  %v2605_v2 = vmul.f32 1.442695, %v2594_v20  ;;  %3988 = vmatpush.bf16.msrb.mxu3 %v9832_v6  ;;  %v1828_v52 = vpop.f32.mrf.mxu1  ;;  %v1868_v5 = vsel %vm1867_vm9, %v8429_v18, %v1864_v1  ;;  %v2618_v20 = vsel %vm1704_vm1, %v10128_v35, 0.0  ;;  %vm1884_vm14 = vcmp.eq.f32.partialorder %v1883_v7, 8.507059e+37 }
 0x2f9   : > { %v1875_v10 = vmul.f32 %v8435_v3, %v10146_v19  ;;  %v2127_v49 = vpop.xlane.xlu2 %2126  ;;  %v1873_v34 = vsel %vm1870_vm10, %v1872_v4, %v1868_v5  ;;  %v10177_v56 = vpop.f32.mrf.mxu2  ;;  %vm1880_vm11 = vweird.f32 %v8435_v3  ;;  %v1886_v1 = vor.u32 1.1754944e-38, %v1885_v22 }
 0x2fa   : > { %v2143_v25 = vsub.f32 %v9967_v27, %v2127_v49  ;;  %8438 = vpow2.f32 %v2605_v2  ;;  %v1959_v23 = vmul.f32 %v1873_v34, %v1828_v52  ;;  %v3872_v27 = vsel %vm1704_vm1, %v10177_v56, -inf  ;;  %vm1881_vm13 = vmor %vm1879_vm12, %vm1880_vm11 }
 0x2fb   : > { %v1876_v60 = vsub.f32 1.0, %v1875_v10  ;;  %8440 = vpow2.f32 %v2152_v51  ;;  %4440 = vmatpush.bf16.msra.mxu1 %v9876_v41  ;;  %v1897_v22 = vand.u32 2147483647, %v10162_v13 }
 0x2fc   : > { %v2154_v28 = vmul.f32 1.442695, %v2143_v25  ;;  %v10181_v31 = vpop.eup %8436  ;;  %v1967_v6 = vpack.c.bf16 %v1959_v23, %v1959_v23  ;;  %3989 = vmatpush.bf16.msrb.mxu3 %v9838_v29  ;;  %3873 = vmax.xlane.f32.xlu1 %v3872_v27 }
 0x2fd   : > { %v1877_v18 = vmul.f32 %v8435_v3, %v1876_v60  ;;  %v1889_v0 = vmul.f32 %v10181_v31, %v10162_v13  ;;  %v2130_v50 = vpop.xlane.xlu1 %2129  ;;  %2619 = vadd.xlane.f32.xlu0 %v2618_v20  ;;  %vm1894_vm15 = vweird.f32 %v10181_v31  ;;  %v1899_v60 = vand.u32 2147483648, %v10162_v13 }
 0x2fe   : > { %8442 = vpow2.f32 %v2154_v28  ;;  %1976 = vst.msk [vmem:[#allocation3 + $0x8] sm:$0xf] %vm1974_vm6, %v1967_v6  ;;  %vm10217_vm2 = vmor %vm1893_vm0, %vm1894_vm15  ;;  %v4319_v20 = vsel %vm1704_vm1, %v10170_v24, -inf  ;;  %vm1898_vm3 = vcmp.eq.f32.partialorder %v1897_v22, 8.507059e+37 }
 0x2ff   : > { %v1878_v41 = vadd.f32 %v8435_v3, %v1877_v18  ;;  %v1890_v29 = vsub.f32 1.0, %v1889_v0  ;;  %v2584_v2 = vpop.xlane.xlu0 %2583 }
 0x300   : > { %v10193_v51 = vpop.eup %8438  ;;  %3990 = vmatpush.bf16.msrb.mxu3 %v9860_v30  ;;  %v1831_v4 = vpop.f32.mrf.mxu1  ;;  %v2596_v5 = vsub.f32 %v9994_v9, %v2584_v2 }
 0x301   : > { %v1882_v10 = vsel %vm1881_vm13, %v8435_v3, %v1878_v41  ;;  %v10197_v35 = vpop.eup %8440  ;;  %v2581_v49 = vpop.xlane.xlu2 %2580  ;;  %v2640_v34 = vpack.c.bf16 %v10193_v51, %v10151_v54  ;;  %v1891_v25 = vmul.f32 %v10181_v31, %v1890_v29  ;;  %v2144_v41 = vsub.f32 %v9977_v63, %v2130_v50 }
 0x302   : > { %v1887_v52 = vsel %vm1884_vm14, %v1886_v1, %v1882_v10  ;;  %v10200_v19 = vpop.f32.mrf.mxu2  ;;  %v10205_v30 = vpop.f32.mrf.mxu0  ;;  %v2595_v23 = vsub.f32 %v9983_v37, %v2581_v49  ;;  %v2609_v7 = vmul.f32 1.442695, %v2596_v5  ;;  %v1900_v1 = vor.u32 1.1754944e-38, %v1899_v60 }
 0x303   : > { %v1960_v3 = vmul.f32 %v1887_v52, %v1831_v4  ;;  %7355 = vmatmul.msk.bf16.gmra.mxu1 %vm1704_vm1, %v2640_v34  ;;  %v1892_v9 = vadd.f32 %v10181_v31, %v1891_v25  ;;  %v3869_v34 = vsel %vm1704_vm1, %v10149_v33, -inf }
 0x304   : > { %v8443_v28 = vpop.eup %8442  ;;  %v2607_v6 = vmul.f32 1.442695, %v2595_v23 }
 0x305   : > { %v1968_v54 = vpack.c.bf16 %v1960_v3, %v1960_v3  ;;  %v2173_v27 = vsel %vm1704_vm1, %v8443_v28, 0.0  ;;  %v2189_v18 = vpack.c.bf16 %v8443_v28, %v10197_v35  ;;  %v2133_v0 = vpop.xlane.xlu1 %2132  ;;  %v1896_v13 = vsel %vm10217_vm2, %v10181_v31, %v1892_v9  ;;  %4320 = vmax.xlane.f32.xlu0 %v4319_v20 }
 0x306   : > { %2174 = vadd.xlane.f32.xlu2 %v2173_v27  ;;  %8444 = vpow2.f32 %v2607_v6  ;;  %v2145_v29 = vsub.f32 %v9990_v14, %v2133_v0  ;;  %v1901_v2 = vsel %vm1898_vm3, %v1900_v1, %v1896_v13  ;;  %v2156_v31 = vmul.f32 1.442695, %v2144_v41 }
 0x307   : > { %1977 = vst.msk [vmem:[#allocation3 + $0x10] sm:$0xf] %vm1974_vm6, %v1968_v54  ;;  %7299 = vmatmul.msk.bf16.gmra.mxu3 %vm1704_vm1, %v2189_v18  ;;  %8446 = vpow2.f32 %v2609_v7  ;;  %v2587_v60 = vpop.xlane.xlu0 %2586  ;;  %v2170_v0 = vsel %vm1704_vm1, %v10197_v35, 0.0 }
 0x308   : > { %v2158_v4 = vmul.f32 1.442695, %v2145_v29  ;;  %v1833_v10 = vpop.f32.mrf.mxu1  ;;  %v2597_v18 = vsub.f32 %v10014_v38, %v2587_v60 }
 0x309   : > { %v1961_v52 = vmul.f32 %v1901_v2, %v1833_v10 }
 0x30a   : > { %v10230_v5 = vpop.f32.mrf.mxu2  ;;  %8448 = vpow2.f32 %v2158_v4  ;;  %v10232_v49 = vpop.f32.mrf.mxu0  ;;  %v2611_v13 = vmul.f32 1.442695, %v2597_v18 }
 0x30b   : > { %v1969_v63 = vpack.c.bf16 %v1961_v52, %v1961_v52  ;;  %8450 = vpow2.f32 %v2156_v31  ;;  %v4322_v52 = vsel %vm1704_vm1, %v10205_v30, -inf }
 0x30c   : > { %v8445_v50 = vpop.eup %8444 }
 0x30d   : > { %1978 = vst.msk [vmem:[#allocation3 + $0x18] sm:$0xf] %vm1974_vm6, %v1969_v63  ;;  %v2136_v14 = vpop.xlane.xlu1 %2135  ;;  %v2627_v25 = vsel %vm1704_vm1, %v8445_v50, 0.0  ;;  %v10238_v3 = vpop.eup %8446  ;;  %3870 = vmax.xlane.f32.xlu0 %v3869_v34 }
 0x30e   : > { %v2146_v23 = vsub.f32 %v10007_v45, %v2136_v14  ;;  %2628 = vadd.xlane.f32.xlu1 %v2627_v25  ;;  %v2641_v27 = vpack.c.bf16 %v10238_v3, %v8445_v50 }
 0x30f   : > { %v2590_v9 = vpop.xlane.xlu2 %2589 }
 0x310   : > { %v8449_v28 = vpop.eup %8448  ;;  %v2160_v7 = vmul.f32 1.442695, %v2146_v23  ;;  %v2598_v22 = vsub.f32 %v10025_v59, %v2590_v9  ;;  %v3875_v59 = vsel %vm1704_vm1, %v10200_v19, -inf }
 0x311   : > { %v2179_v6 = vsel %vm1704_vm1, %v8449_v28, 0.0  ;;  %v10248_v45 = vpop.eup %8450 }
 0x312   : > { %v10242_v54 = vpop.f32.mrf.mxu2  ;;  %8452 = vpow2.f32 %v2160_v7  ;;  %2180 = vadd.xlane.f32.xlu2 %v2179_v6  ;;  %v2613_v37 = vmul.f32 1.442695, %v2598_v22  ;;  %v2190_v20 = vpack.c.bf16 %v8449_v28, %v10248_v45  ;;  %v10255_v41 = vpop.f32.mrf.mxu0 }
 0x313   : > { %7356 = vmatmul.msk.bf16.gmra.mxu1 %vm1704_vm1, %v2641_v27  ;;  %v4328_v31 = vsel %vm1704_vm1, %v10255_v41, -inf  ;;  %v3881_v18 = vsel %vm1704_vm1, %v10242_v54, -inf }
 0x314   : > { %8454 = vpow2.f32 %v2613_v37 }
 0x315   : > { %2171 = vadd.xlane.f32.xlu0 %v2170_v0  ;;  %8456 = vpow2.f32 %v2611_v13  ;;  %v3020_v2 = vpop.xlane.xlu1 %3019 }
 0x316   : > { %3876 = vmax.xlane.f32.xlu1 %v3875_v59  ;;  %v3042_v34 = vsub.f32 %v10035_v44, %v3020_v2  ;;  %v2624_v44 = vsel %vm1704_vm1, %v10193_v51, 0.0 }
 0x317   : > { %7300 = vmatmul.msk.bf16.gmra.mxu3 %vm1704_vm1, %v2190_v20  ;;  %v2139_v29 = vpop.xlane.xlu2 %2138 }
 0x318   : > { %v8453_v38 = vpop.eup %8452  ;;  %v2147_v1 = vsub.f32 %v10021_v16, %v2139_v29  ;;  %v3050_v22 = vmul.f32 1.442695, %v3042_v34 }
 0x319   : > { %v2182_v35 = vsel %vm1704_vm1, %v8453_v38, 0.0 }
 0x31a   : > { %v10259_v4 = vpop.f32.mrf.mxu2  ;;  %2183 = vadd.xlane.f32.xlu2 %v2182_v35  ;;  %v2162_v10 = vmul.f32 1.442695, %v2147_v1  ;;  %v8455_v63 = vpop.eup %8454  ;;  %v4325_v35 = vsel %vm1704_vm1, %v10232_v49, -inf }
 0x31b   : > { %v10266_v16 = vpop.eup %8456  ;;  %v10268_v14 = vpop.f32.mrf.mxu0  ;;  %v2636_v60 = vsel %vm1704_vm1, %v8455_v63, 0.0  ;;  %v3884_v51 = vsel %vm1704_vm1, %v10259_v4, -inf }
 0x31c   : > { %8458 = vpow2.f32 %v2162_v10  ;;  %v2642_v28 = vpack.c.bf16 %v8455_v63, %v10266_v16 }
 0x31d   : > { %4323 = vmax.xlane.f32.xlu0 %v4322_v52  ;;  %v3023_v50 = vpop.xlane.xlu0 %3022  ;;  %8460 = vpow2.f32 %v3050_v22 }
 0x31e   : > { %4329 = vmax.xlane.f32.xlu1 %v4328_v31  ;;  %v3043_v9 = vsub.f32 %v10046_v57, %v3023_v50 }
 0x31f   : > { %v3455_v25 = vpop.xlane.xlu2 %3454 }
 0x320   : > { %v3477_v6 = vsub.f32 %v10042_v11, %v3455_v25  ;;  %v3052_v0 = vmul.f32 1.442695, %v3043_v9 }
 0x322   : > { %v10271_v23 = vpop.f32.mrf.mxu2  ;;  %2637 = vadd.xlane.f32.xlu2 %v2636_v60  ;;  %v8459_v7 = vpop.eup %8458  ;;  %v3485_v57 = vmul.f32 1.442695, %v3477_v6  ;;  %8462 = vpow2.f32 %v3052_v0  ;;  %v2176_v6 = vsel %vm1704_vm1, %v10248_v45, 0.0  ;;  %v2630_v0 = vsel %vm1704_vm1, %v10238_v3, 0.0 }
 0x323   : > { %7357 = vmatmul.msk.bf16.gmra.mxu1 %vm1704_vm1, %v2642_v28  ;;  %v2191_v27 = vpack.c.bf16 %v8459_v7, %v8453_v38  ;;  %v10289_v38 = vpop.f32.mrf.mxu0 }
 0x324   : > { %8464 = vpow2.f32 %v3485_v57 }
 0x325   : > { %2625 = vadd.xlane.f32.xlu0 %v2624_v44  ;;  %v3026_v37 = vpop.xlane.xlu0 %3025 }
 0x326   : > { %3882 = vmax.xlane.f32.xlu1 %v3881_v18  ;;  %v3044_v59 = vsub.f32 %v10056_v58, %v3026_v37  ;;  %v4334_v58 = vsel %vm1704_vm1, %v10289_v38, -inf }
 0x327   : > { %7301 = vmatmul.msk.bf16.gmra.mxu3 %vm1704_vm1, %v2191_v27  ;;  %v3458_v20 = vpop.xlane.xlu2 %3457 }
 0x328   : > { %v3478_v11 = vsub.f32 %v10050_v47, %v3458_v20  ;;  %v3054_v1 = vmul.f32 1.442695, %v3044_v59  ;;  %v8461_v47 = vpop.eup %8460 }
 0x329   : > { %v10295_v52 = vpop.eup %8462  ;;  %v3066_v63 = vsel %vm1704_vm1, %v8461_v47, 0.0 }
 0x32a   : > { %v10285_v13 = vpop.f32.mrf.mxu2  ;;  %3885 = vmax.xlane.f32.xlu2 %v3884_v51  ;;  %v3487_v29 = vmul.f32 1.442695, %v3478_v11  ;;  %v8465_v50 = vpop.eup %8464  ;;  %v3090_v22 = vpack.c.bf16 %v10295_v52, %v8461_v47 }
 0x32b   : > { %v3501_v57 = vsel %vm1704_vm1, %v8465_v50, 0.0 }
 0x32c   : > { %8466 = vpow2.f32 %v3487_v29 }
 0x32d   : > { %4326 = vmax.xlane.f32.xlu0 %v4325_v35  ;;  %8468 = vpow2.f32 %v3054_v1  ;;  %v4766_v35 = vsel %vm1704_vm1, %v10285_v13, -inf }
 0x32e   : > { %4335 = vmax.xlane.f32.xlu1 %v4334_v58 }
 0x32f   : > { %v3464_v10 = vpop.xlane.xlu0 %3463  ;;  %v3461_v2 = vpop.xlane.xlu2 %3460 }
 0x330   : > { %v3480_v31 = vsub.f32 %v10066_v55, %v3464_v10  ;;  %v3479_v9 = vsub.f32 %v10060_v62, %v3461_v2  ;;  %v2185_v55 = vsel %vm1704_vm1, %v8459_v7, 0.0 }
 0x332   : > { %v10299_v34 = vpop.f32.mrf.mxu2  ;;  %3067 = vadd.xlane.f32.xlu2 %v3066_v63  ;;  %v10301_v25 = vpop.eup %8466  ;;  %v3491_v28 = vmul.f32 1.442695, %v3480_v31  ;;  %v3489_v44 = vmul.f32 1.442695, %v3479_v9 }
 0x333   : > { %v3525_v60 = vpack.c.bf16 %v10301_v25, %v8465_v50  ;;  %v8469_v27 = vpop.eup %8468 }
 0x334   : > { %8470 = vpow2.f32 %v3491_v28  ;;  %v3072_v37 = vsel %vm1704_vm1, %v8469_v27, 0.0  ;;  %v3069_v28 = vsel %vm1704_vm1, %v10295_v52, 0.0 }
 0x335   : > { %2177 = vadd.xlane.f32.xlu0 %v2176_v6  ;;  %7466 = vmatmul.msk.bf16.vlgmr.msrb.gmra.mxu1 %vm1704_vm1, %v3525_v60  ;;  %8472 = vpow2.f32 %v3489_v44  ;;  %v4331_v60 = vsel %vm1704_vm1, %v10268_v14, -inf }
 0x336   : > { %2186 = vadd.xlane.f32.xlu1 %v2185_v55 }
 0x337   : > { %7410 = vmatmul.msk.bf16.vlgmr.msra.gmra.mxu3 %vm1704_vm1, %v3090_v22  ;;  %v3029_v18 = vpop.xlane.xlu2 %3028 }
 0x338   : > { %4887 = vmatpush.bf16.msra.mxu3 %v9928_v8  ;;  %v3045_v62 = vsub.f32 %v10064_v39, %v3029_v18 }
 0x33a   : > { %3073 = vadd.xlane.f32.xlu2 %v3072_v37  ;;  %v3056_v45 = vmul.f32 1.442695, %v3045_v62  ;;  %v10314_v7 = vpop.f32.mrf.mxu2  ;;  %v8471_v59 = vpop.eup %8470 }
 0x33b   : > { %v3510_v11 = vsel %vm1704_vm1, %v8471_v59, 0.0  ;;  %v10323_v51 = vpop.eup %8472 }
 0x33c   : > { %4888 = vmatpush.bf16.msra.mxu3 %v9848_v26  ;;  %8474 = vpow2.f32 %v3056_v45  ;;  %v3467_v26 = vpop.xlane.xlu1 %3466  ;;  %v3526_v58 = vpack.c.bf16 %v8471_v59, %v10323_v51  ;;  %v4769_v59 = vsel %vm1704_vm1, %v10299_v34, -inf }
 0x33d   : > { %2631 = vadd.xlane.f32.xlu0 %v2630_v0  ;;  %v3481_v47 = vsub.f32 %v10076_v43, %v3467_v26 }
 0x33e   : > { %3502 = vadd.xlane.f32.xlu1 %v3501_v57  ;;  %v2633_v57 = vsel %vm1704_vm1, %v10266_v16, 0.0 }
 0x33f   : > { %v3470_v8 = vpop.xlane.xlu0 %3469  ;;  %v3032_v39 = vpop.xlane.xlu2 %3031  ;;  %v3493_v50 = vmul.f32 1.442695, %v3481_v47 }
 0x340   : > { %4889 = vmatpush.bf16.msra.mxu3 %v9852_v17  ;;  %v3046_v20 = vsub.f32 %v10074_v21, %v3032_v39  ;;  %v3482_v3 = vsub.f32 %v10084_v61, %v3470_v8  ;;  %v3878_v17 = vsel %vm1704_vm1, %v10230_v5, -inf }
 0x342   : > { %3511 = vadd.xlane.f32.xlu2 %v3510_v11  ;;  %v10325_v29 = vpop.eup %8474  ;;  %v3058_v1 = vmul.f32 1.442695, %v3046_v20  ;;  %v10336_v10 = vpop.f32.mrf.mxu2  ;;  %v3495_v61 = vmul.f32 1.442695, %v3482_v3 }
 0x343   : > { %v3091_v21 = vpack.c.bf16 %v10325_v29, %v8469_v27  ;;  %v4775_v63 = vsel %vm1704_vm1, %v10336_v10, -inf }
 0x344   : > { %4890 = vmatpush.bf16.msra.mxu3 %v9808_v32  ;;  %v10340_v32 = vpop.f32.mrf.mxu1  ;;  %8476 = vpow2.f32 %v3058_v1  ;;  %v4763_v1 = vsel %vm1704_vm1, %v10271_v23, -inf }
 0x345   : > { %3879 = vmax.xlane.f32.xlu0 %v3878_v17  ;;  %7467 = vmatmul.msk.bf16.gmra.mxu1 %vm1704_vm1, %v3526_v58  ;;  %13015 = vst [vmem:[#allocation20_spill] sm:$0xff] %v10340_v32  ;;  %8478 = vpow2.f32 %v3495_v61  ;;  %v3075_v17 = vsel %vm1704_vm1, %v10325_v29, 0.0 }
 0x346   : > { %4767 = vmax.xlane.f32.xlu1 %v4766_v35 }
 0x347   : > { %7411 = vmatmul.msk.bf16.gmra.mxu3 %vm1704_vm1, %v3091_v21  ;;  %v3035_v2 = vpop.xlane.xlu0 %3034  ;;  %v3038_v6 = vpop.xlane.xlu2 %3037 }
 0x348   : > { %v3047_v31 = vsub.f32 %v10082_v12, %v3035_v2  ;;  %v3048_v0 = vsub.f32 %v10092_v46, %v3038_v6 }
 0x34a   : > { %4776 = vmax.xlane.f32.xlu2 %v4775_v63  ;;  %v3060_v43 = vmul.f32 1.442695, %v3047_v31  ;;  %v8477_v9 = vpop.eup %8476  ;;  %v3062_v46 = vmul.f32 1.442695, %v3048_v0  ;;  %v10374_v35 = vpop.f32.mrf.mxu2 }
 0x34b   : > { %v3078_v55 = vsel %vm1704_vm1, %v8477_v9, 0.0  ;;  %v10350_v27 = vpop.eup %8478 }
 0x34c   : > { %8480 = vpow2.f32 %v3060_v43  ;;  %v10352_v44 = vpop.f32.mrf.mxu1  ;;  %v13018_v43 = vld [vmem:[#allocation19_spill] sm:$0xff] }
 0x34d   : > { %8482 = vpow2.f32 %v3493_v50  ;;  %4332 = vmax.xlane.f32.xlu0 %v4331_v60  ;;  %v3504_v50 = vsel %vm1704_vm1, %v10301_v25, 0.0 }
 0x34e   : > { %3070 = vadd.xlane.f32.xlu1 %v3069_v28 }
 0x34f   : > { %v3473_v22 = vpop.xlane.xlu0 %3472  ;;  %v3476_v12 = vpop.xlane.xlu1 %3475 }
 0x350   : > { %v3483_v62 = vsub.f32 %v10094_v15, %v3473_v22  ;;  %v3484_v52 = vsub.f32 %v10103_v40, %v3476_v12 }
 0x352   : > { %3079 = vadd.xlane.f32.xlu2 %v3078_v55  ;;  %v8481_v18 = vpop.eup %8480  ;;  %v3497_v39 = vmul.f32 1.442695, %v3483_v62  ;;  %v3499_v15 = vmul.f32 1.442695, %v3484_v52 }
 0x353   : > { %v10355_v37 = vpop.eup %8482  ;;  %v3092_v45 = vpack.c.bf16 %v8481_v18, %v8477_v9  ;;  %v3081_v28 = vsel %vm1704_vm1, %v8481_v18, 0.0 }
 0x354   : > { %v3527_v8 = vpack.c.bf16 %v10350_v27, %v10355_v37  ;;  %8484 = vpow2.f32 %v3497_v39  ;;  %v10368_v3 = vpop.f32.mrf.mxu1  ;;  %v3507_v39 = vsel %vm1704_vm1, %v10323_v51, 0.0 }
 0x355   : > { %2634 = vadd.xlane.f32.xlu0 %v2633_v57  ;;  %13016 = vst [vmem:[#allocation21_spill] sm:$0xff] %v10368_v3  ;;  %8486 = vpow2.f32 %v3499_v15 }
 0x356   : > { %4770 = vmax.xlane.f32.xlu1 %v4769_v59  ;;  %7468 = vmatmul.msk.bf16.gmra.mxu1 %vm1704_vm1, %v3527_v8  ;;  %8488 = vpow2.f32 %v3062_v46 }
 0x357   : > { %7412 = vmatmul.msk.bf16.gmra.mxu3 %vm1704_vm1, %v3092_v45  ;;  %v3865_v40 = vpop.xlane.xlu0 %3864  ;;  %v3041_v20 = vpop.xlane.xlu1 %3040 }
 0x358   : > { %v3049_v11 = vsub.f32 %v10100_v48, %v3041_v20  ;;  %v4315_v16 = vpop.xlane.xlu2 %4314  ;;  %v3887_v31 = vsub.f32 %v10111_v36, %v3865_v40 }
 0x359   : > { %v4337_v60 = vsub.f32 %v13018_v43, %v4315_v16 }
 0x35a   : > { %v3064_v26 = vmul.f32 1.442695, %v3049_v11  ;;  %v10376_v48 = vpop.eup %8484  ;;  %v3895_v6 = vmul.f32 1.442695, %v3887_v31 }
 0x35b   : > { %v10380_v61 = vpop.eup %8486  ;;  %v4345_v18 = vmul.f32 1.442695, %v4337_v60  ;;  %v4772_v60 = vsel %vm1704_vm1, %v10314_v7, -inf }
 0x35c   : > { %8490 = vpow2.f32 %v3064_v26  ;;  %13017 = vst [vmem:[#allocation22_spill] sm:$0xff] %v10380_v61  ;;  %v8489_v2 = vpop.eup %8488  ;;  %v3528_v22 = vpack.c.bf16 %v10380_v61, %v10376_v48  ;;  %v10393_v12 = vpop.f32.mrf.mxu1 }
 0x35d   : > { %4764 = vmax.xlane.f32.xlu0 %v4763_v1  ;;  %13019 = vst [vmem:[#allocation19_spill] sm:$0xff] %v10393_v12  ;;  %v3084_v15 = vsel %vm1704_vm1, %v8489_v2, 0.0 }
 0x35e   : > { %3076 = vadd.xlane.f32.xlu1 %v3075_v17 }
 0x35f   : > { %v2617_v21 = vpop.xlane.xlu1 %2616 }
 0x360   : > { %8492 = vrcp.f32 %v2617_v21  ;;  %v10378_v58 = vpop.xlane.xlu0 %2165  ;;  %v3868_v47 = vpop.xlane.xlu2 %3867  ;;  %v2725_v0 = vand.u32 2147483647, %v2617_v21  ;;  %v2727_v57 = vand.u32 2147483648, %v2617_v21  ;;  %vm2721_vm5 = vweird.f32 %v2617_v21 }
 0x361   : > { %v3888_v29 = vsub.f32 %v10126_v53, %v3868_v47  ;;  %v10397_v53 = vpop.f32.mrf.mxu2  ;;  %8494 = vpow2.f32 %v3895_v6  ;;  %vm2270_vm10 = vweird.f32 %v10378_v58 }
 0x362   : > { %v10383_v63 = vpop.eup %8490  ;;  %v2728_v46 = vor.u32 1.1754944e-38, %v2727_v57  ;;  %vm2726_vm8 = vcmp.eq.f32.partialorder %v2725_v0, 8.507059e+37 }
 0x363   : > { %v3093_v9 = vpack.c.bf16 %v10383_v63, %v8489_v2  ;;  %v3897_v55 = vmul.f32 1.442695, %v3888_v29 }
 0x365   : > { %3505 = vadd.xlane.f32.xlu0 %v3504_v50  ;;  %8496 = vpow2.f32 %v3897_v55 }
 0x366   : > { %3082 = vadd.xlane.f32.xlu1 %v3081_v28  ;;  %v8493_v36 = vpop.eup %8492  ;;  %7469 = vmatmul.msk.bf16.gmra.mxu1 %vm1704_vm1, %v3528_v22  ;;  %8498 = vpow2.f32 %v4345_v18 }
 0x367   : > { %7413 = vmatmul.msk.bf16.gmra.mxu3 %vm1704_vm1, %v3093_v9  ;;  %v2717_v25 = vmul.f32 %v8493_v36, %v2617_v21  ;;  %vm2722_vm4 = vweird.f32 %v8493_v36  ;;  %v10405_v16 = vpop.eup %8494 }
 0x368   : > { %v4318_v62 = vpop.xlane.xlu0 %4317  ;;  %vm2723_vm7 = vmor %vm2721_vm5, %vm2722_vm4  ;;  %v10418_v43 = vpop.xlane.xlu2 %2168 }
 0x369   : > { %v4338_v52 = vsub.f32 %v10136_v42, %v4318_v62  ;;  %v2718_v45 = vsub.f32 1.0, %v2717_v25  ;;  %v10403_v42 = vpop.xlane.xlu1 %2622  ;;  %v10411_v17 = vpop.f32.mrf.mxu2 }
 0x36a   : > { %v4784_v28 = vsel %vm1704_vm1, %v10411_v17, -inf }
 0x36b   : > { %v4347_v59 = vmul.f32 1.442695, %v4338_v52  ;;  %v2719_v8 = vmul.f32 %v8493_v36, %v2718_v45  ;;  %v2696_v40 = vpop.f32.mrf.mxu1  ;;  %v10409_v51 = vpop.eup %8496  ;;  %v4778_v52 = vsel %vm1704_vm1, %v10374_v35, -inf }
 0x36c   : > { %v8499_v2 = vpop.eup %8498  ;;  %v3935_v29 = vpack.c.bf16 %v10409_v51, %v10405_v16 }
 0x36d   : > { %8500 = vpow2.f32 %v4347_v59  ;;  %v2720_v20 = vadd.f32 %v8493_v36, %v2719_v8  ;;  %3508 = vadd.xlane.f32.xlu0 %v3507_v39  ;;  %v4361_v45 = vsel %vm1704_vm1, %v8499_v2, 0.0 }
 0x36e   : > { %3085 = vadd.xlane.f32.xlu1 %v3084_v15  ;;  %8502 = vrcp.f32 %v10378_v58 }
 0x36f   : > { %v2724_v11 = vsel %vm2723_vm7, %v8493_v36, %v2720_v20 }
 0x370   : > { %v2729_v26 = vsel %vm2726_vm8, %v2728_v46, %v2724_v11  ;;  %v10407_v1 = vpop.xlane.xlu0 %2619  ;;  %v4781_v46 = vsel %vm1704_vm1, %v10397_v53, -inf }
 0x371   : > { %v2828_v47 = vmul.f32 %v2729_v26, %v2696_v40  ;;  %v3874_v36 = vpop.xlane.xlu1 %3873  ;;  %vm2735_vm15 = vweird.f32 %v10407_v1 }
 0x372   : > { %v3890_v18 = vsub.f32 %v10177_v56, %v3874_v36  ;;  %v3087_v36 = vsel %vm1704_vm1, %v10383_v63, 0.0 }
 0x373   : > { %v10413_v21 = vpop.eup %8500  ;;  %v2836_v31 = vpack.c.bf16 %v2828_v47, %v2828_v47  ;;  %v10426_v9 = vpop.f32.mrf.mxu1 }
 0x374   : > { %v4385_v50 = vpack.c.bf16 %v10413_v21, %v8499_v2  ;;  %v3901_v57 = vmul.f32 1.442695, %v3890_v18  ;;  %v8503_v8 = vpop.eup %8502 }
 0x375   : > { %4773 = vmax.xlane.f32.xlu0 %v4772_v60  ;;  %2852 = vrot.lane.b32.xlu2 %v2836_v31, %s8760_s28  ;;  %v2266_v20 = vmul.f32 %v8503_v8, %v10378_v58  ;;  %vm2271_vm9 = vweird.f32 %v8503_v8 }
 0x376   : > { %4785 = vmax.xlane.f32.xlu1 %v4784_v28  ;;  %v10428_v22 = vpop.f32.mrf.mxu3  ;;  %7578 = vmatmul.msk.bf16.vlgmr.msra.gmra.mxu1 %vm1704_vm1, %v4385_v50  ;;  %vm2272_vm11 = vmor %vm2270_vm10, %vm2271_vm9 }
 0x377   : > { %7522 = vmatmul.msk.bf16.vlgmr.msrb.gmra.mxu3 %vm1704_vm1, %v3935_v29 }
 0x378   : > { %v4321_v6 = vpop.xlane.xlu0 %4320 }
 0x379   : > { %v4339_v25 = vsub.f32 %v10170_v24, %v4321_v6  ;;  %v10434_v62 = vpop.xlane.xlu2 %2174 }
 0x37b   : > { %v4349_v55 = vmul.f32 1.442695, %v4339_v25 }
 0x37d   : > { %8504 = vpow2.f32 %v4349_v55  ;;  %4779 = vmax.xlane.f32.xlu0 %v4778_v52 }
 0x37e   : > { %4362 = vadd.xlane.f32.xlu1 %v4361_v45  ;;  %v10443_v39 = vpop.f32.mrf.mxu3  ;;  %8506 = vpow2.f32 %v3901_v57  ;;  %v2276_v57 = vand.u32 2147483648, %v10378_v58 }
 0x380   : > { %v10439_v0 = vpop.f32.mrf.mxu1  ;;  %v3871_v59 = vpop.xlane.xlu0 %3870 }
 0x381   : > { %v10441_v24 = vpop.xlane.xlu1 %2628  ;;  %v3889_v56 = vsub.f32 %v10149_v33, %v3871_v59  ;;  %v2267_v33 = vsub.f32 1.0, %v2266_v20 }
 0x382   : > { %13020 = vst [vmem:[#allocation23_spill] sm:$0xff] %v10441_v24 }
 0x383   : > { %v10446_v15 = vpop.eup %8504  ;;  %v3899_v40 = vmul.f32 1.442695, %v3889_v56  ;;  %v2268_v28 = vmul.f32 %v8503_v8, %v2267_v33  ;;  %v3911_v33 = vsel %vm1704_vm1, %v10405_v16, 0.0 }
 0x384   : > { %v4367_v11 = vsel %vm1704_vm1, %v10446_v15, 0.0  ;;  %v10463_v50 = vpop.eup %8506 }
 0x385   : > { %v10453_v26 = vpop.xlane.xlu2 %2180  ;;  %8508 = vpow2.f32 %v3899_v40  ;;  %4782 = vmax.xlane.f32.xlu0 %v4781_v46  ;;  %v2269_v18 = vadd.f32 %v8503_v8, %v2268_v28  ;;  %v2274_v40 = vand.u32 2147483647, %v10378_v58 }
 0x386   : > { %4368 = vadd.xlane.f32.xlu1 %v4367_v11  ;;  %8510 = vrcp.f32 %v10407_v1 }
 0x387   : > { %v2273_v11 = vsel %vm2272_vm11, %v8503_v8, %v2269_v18  ;;  %vm2275_vm12 = vcmp.eq.f32.partialorder %v2274_v40, 8.507059e+37 }
 0x388   : > { %v10455_v47 = vpop.f32.mrf.mxu1  ;;  %v10457_v2 = vpop.xlane.xlu0 %2171 }
 0x389   : > { %v10459_v31 = vpop.xlane.xlu1 %3876 }
 0x38a   : > { %v10461_v29 = vpop.f32.mrf.mxu3 }
 0x38b   : > { %v10465_v60 = vpop.eup %8508 }
 0x38c   : > { %v3936_v25 = vpack.c.bf16 %v10463_v50, %v10465_v60  ;;  %v10482_v56 = vpop.eup %8510 }
 0x38d   : > { %v10470_v6 = vpop.xlane.xlu2 %2183  ;;  %3088 = vadd.xlane.f32.xlu0 %v3087_v36  ;;  %v2277_v36 = vor.u32 1.1754944e-38, %v2276_v57  ;;  %vm2736_vm13 = vweird.f32 %v10482_v56 }
 0x38e   : > { %8512 = vrcp.f32 %v10470_v6  ;;  %7523 = vmatmul.msk.bf16.gmra.mxu3 %vm1704_vm1, %v3936_v25  ;;  %vm2737_vm0 = vmor %vm2735_vm15, %vm2736_vm13  ;;  %vm2354_vm2 = vweird.f32 %v10470_v6 }
 0x38f   : > { %v2278_v25 = vsel %vm2275_vm12, %v2277_v36, %v2273_v11  ;;  %v4364_v11 = vsel %vm1704_vm1, %v10413_v21, 0.0 }
 0x390   : > { %v10476_v55 = vpop.f32.mrf.mxu1  ;;  %v4324_v52 = vpop.xlane.xlu0 %4323  ;;  %v2377_v8 = vmul.f32 %v2278_v25, %v10428_v22 }
 0x391   : > { %13021 = vst [vmem:[#allocation24_spill] sm:$0xff] %v10476_v55  ;;  %v4330_v45 = vpop.xlane.xlu1 %4329  ;;  %v4340_v63 = vsub.f32 %v10205_v30, %v4324_v52  ;;  %v2731_v30 = vmul.f32 %v10482_v56, %v10407_v1 }
 0x392   : > { %v10480_v59 = vpop.f32.mrf.mxu3  ;;  %v4342_v40 = vsub.f32 %v10255_v41, %v4330_v45 }
 0x393   : > { %v4351_v20 = vmul.f32 1.442695, %v4340_v63  ;;  %v2732_v63 = vsub.f32 1.0, %v2731_v30  ;;  %v3914_v30 = vsel %vm1704_vm1, %v10409_v51, 0.0 }
 0x394   : > { %v10486_v46 = vpop.eup %8512  ;;  %v4355_v45 = vmul.f32 1.442695, %v4342_v40 }
 0x395   : > { %v10490_v28 = vpop.xlane.xlu2 %2637  ;;  %8514 = vpow2.f32 %v4351_v20  ;;  %3912 = vadd.xlane.f32.xlu0 %v3911_v33  ;;  %v2350_v58 = vmul.f32 %v10486_v46, %v10470_v6  ;;  %v2385_v20 = vpack.c.bf16 %v2377_v8, %v2377_v8  ;;  %v2733_v36 = vmul.f32 %v10482_v56, %v2732_v63 }
 0x396   : > { %13022 = vst [vmem:[#allocation25_spill] sm:$0xff] %v10490_v28  ;;  %vm2355_vm14 = vweird.f32 %v10486_v46  ;;  %8516 = vpow2.f32 %v4355_v45 }
 0x397   : > { %v2351_v12 = vsub.f32 1.0, %v2350_v58  ;;  %v2734_v25 = vadd.f32 %v10482_v56, %v2733_v36  ;;  %vm2356_vm3 = vmor %vm2354_vm2, %vm2355_vm14 }
 0x398   : > { %v10496_v52 = vpop.f32.mrf.mxu1  ;;  %v10499_v18 = vpop.xlane.xlu0 %2625 }
 0x399   : > { %13023 = vst [vmem:[#allocation26_spill] sm:$0xff] %v10496_v52  ;;  %v10501_v16 = vpop.xlane.xlu1 %3882  ;;  %v2352_v41 = vmul.f32 %v10486_v46, %v2351_v12  ;;  %v2739_v12 = vand.u32 2147483647, %v10407_v1  ;;  %v2738_v36 = vsel %vm2737_vm0, %v10482_v56, %v2734_v25 }
 0x39a   : > { %v10503_v3 = vpop.f32.mrf.mxu3 }
 0x39b   : > { %13024 = vst [vmem:[#allocation27_spill] sm:$0xff] %v10503_v3  ;;  %v10505_v57 = vpop.eup %8514  ;;  %v2353_v51 = vadd.f32 %v10486_v46, %v2352_v41  ;;  %v3920_v41 = vsel %vm1704_vm1, %v10463_v50, 0.0  ;;  %vm2740_vm4 = vcmp.eq.f32.partialorder %v2739_v12, 8.507059e+37 }
 0x39c   : > { %v4386_v22 = vpack.c.bf16 %v10505_v57, %v10446_v15  ;;  %v10547_v56 = vpop.eup %8516 }
 0x39d   : > { %v10510_v33 = vpop.xlane.xlu2 %3885  ;;  %4365 = vadd.xlane.f32.xlu0 %v4364_v11  ;;  %v2360_v11 = vand.u32 2147483648, %v10470_v6 }
 0x39e   : > { %7579 = vmatmul.msk.bf16.gmra.mxu1 %vm1704_vm1, %v4386_v22  ;;  %3915 = vadd.xlane.f32.xlu2 %v3914_v30  ;;  %v2358_v22 = vand.u32 2147483647, %v10470_v6 }
 0x39f   : > { %2401 = vrot.lane.b32.xlu1 %v2385_v20, %s8759_s1  ;;  %v2741_v20 = vand.u32 2147483648, %v10407_v1  ;;  %v2357_v1 = vsel %vm2356_vm3, %v10486_v46, %v2353_v51 }
 0x3a0   : > { %v4327_v21 = vpop.xlane.xlu0 %4326  ;;  %v10525_v8 = vpop.f32.mrf.mxu1  ;;  %vm2359_vm5 = vcmp.eq.f32.partialorder %v2358_v22, 8.507059e+37 }
 0x3a1   : > { %v10520_v58 = vpop.xlane.xlu1 %4335  ;;  %v4341_v15 = vsub.f32 %v10232_v49, %v4327_v21  ;;  %v2742_v30 = vor.u32 1.1754944e-38, %v2741_v20  ;;  %v2361_v21 = vor.u32 1.1754944e-38, %v2360_v11 }
 0x3a2   : > { %v10527_v63 = vpop.f32.mrf.mxu3  ;;  %v4344_v3 = vsub.f32 %v10289_v38, %v10520_v58 }
 0x3a3   : > { %13025 = vst [vmem:[#allocation28_spill] sm:$0xff] %v10527_v63  ;;  %v4353_v40 = vmul.f32 1.442695, %v4341_v15  ;;  %v2743_v45 = vsel %vm2740_vm4, %v2742_v30, %v2738_v36  ;;  %v2362_v61 = vsel %vm2359_vm5, %v2361_v21, %v2357_v1  ;;  %v3891_v30 = vsub.f32 %v10200_v19, %v10459_v31 }
 0x3a4   : > { %v2829_v50 = vmul.f32 %v2743_v45, %v10426_v9  ;;  %v3893_v19 = vsub.f32 %v10242_v54, %v10501_v16  ;;  %v4359_v38 = vmul.f32 1.442695, %v4344_v3 }
 0x3a5   : > { %v10535_v49 = vpop.xlane.xlu2 %3067  ;;  %8518 = vpow2.f32 %v4353_v40  ;;  %v3903_v45 = vmul.f32 1.442695, %v3891_v30 }
 0x3a6   : > { %3921 = vadd.xlane.f32.xlu2 %v3920_v41  ;;  %v2837_v40 = vpack.c.bf16 %v2829_v50, %v2829_v50  ;;  %v3907_v16 = vmul.f32 1.442695, %v3893_v19 }
 0x3a8   : > { %v10543_v15 = vpop.xlane.xlu0 %2177  ;;  %v10554_v46 = vpop.f32.mrf.mxu1 }
 0x3a9   : > { %13026 = vst [vmem:[#allocation29_spill] sm:$0xff] %v10543_v15  ;;  %v10545_v55 = vpop.xlane.xlu1 %2186 }
 0x3aa   : > { %13027 = vst [vmem:[#allocation30_spill] sm:$0xff] %v10545_v55  ;;  %v2260_v6 = vpop.f32.mrf.mxu3 }
 0x3ab   : > { %v10549_v25 = vmul.f32 %v2362_v61, %v2260_v6  ;;  %v10551_v20 = vpop.eup %8518  ;;  %13029 = vst [vmem:[#allocation32_spill] sm:$0xff] %v10554_v46 }
 0x3ac   : > { %v4387_v12 = vpack.c.bf16 %v10547_v56, %v10551_v20 }
 0x3ad   : > { %13028 = vst [vmem:[#allocation31_spill] sm:$0xff] %v10549_v25  ;;  %v10556_v51 = vpop.xlane.xlu2 %3073 }
 0x3ae   : > { %8520 = vrcp.f32 %v10556_v51  ;;  %7580 = vmatmul.msk.bf16.gmra.mxu1 %vm1704_vm1, %v4387_v12  ;;  %vm3200_vm12 = vweird.f32 %v10556_v51 }
 0x3b0   : > { %v10562_v11 = vpop.xlane.xlu0 %2631 }
 0x3b1   : > { %v3503_v61 = vpop.xlane.xlu1 %3502  ;;  %2854 = vrot.lane.b32.xlu0 %v2837_v40, %s8760_s28 }
 0x3b2   : > { %v10564_v22 = vpop.f32.mrf.mxu3  ;;  %8522 = vrcp.f32 %v3503_v61  ;;  %v3574_v36 = vpop.f32.mrf.mxu1  ;;  %v3605_v25 = vand.u32 2147483648, %v3503_v61  ;;  %v3603_v54 = vand.u32 2147483647, %v3503_v61  ;;  %vm3599_vm8 = vweird.f32 %v3503_v61 }
 0x3b3   : > { %13030 = vst [vmem:[#allocation33_spill] sm:$0xff] %v10564_v22 }
 0x3b4   : > { %v10567_v9 = vpop.eup %8520  ;;  %vm3604_vm10 = vcmp.eq.f32.partialorder %v3603_v54, 8.507059e+37 }
 0x3b5   : > { %v10571_v41 = vpop.xlane.xlu2 %3511  ;;  %v3196_v1 = vmul.f32 %v10567_v9, %v10556_v51  ;;  %vm3201_vm11 = vweird.f32 %v10567_v9 }
 0x3b6   : > { %8524 = vrcp.f32 %v10571_v41  ;;  %vm10617_vm13 = vmor %vm3200_vm12, %vm3201_vm11  ;;  %vm3641_vm15 = vweird.f32 %v10571_v41 }
 0x3b7   : > { %v3197_v31 = vsub.f32 1.0, %v3196_v1  ;;  %8526 = vpow2.f32 %v3903_v45  ;;  %v3894_v45 = vsub.f32 %v10259_v4, %v10510_v33 }
 0x3b8   : > { %v8523_v21 = vpop.eup %8522  ;;  %v3880_v6 = vpop.xlane.xlu0 %3879 }
 0x3b9   : > { %v10576_v50 = vpop.xlane.xlu1 %4767  ;;  %v3595_v12 = vmul.f32 %v8523_v21, %v3503_v61  ;;  %v3892_v40 = vsub.f32 %v10230_v5, %v3880_v6  ;;  %vm3600_vm7 = vweird.f32 %v8523_v21  ;;  %v3198_v15 = vmul.f32 %v10567_v9, %v3197_v31 }
 0x3ba   : > { %v10579_v22 = vpop.f32.mrf.mxu3  ;;  %v10587_v30 = vpop.f32.mrf.mxu1  ;;  %vm3601_vm9 = vmor %vm3599_vm8, %vm3600_vm7 }
 0x3bb   : > { %v3596_v46 = vsub.f32 1.0, %v3595_v12  ;;  %v3905_v24 = vmul.f32 1.442695, %v3892_v40  ;;  %v3606_v12 = vor.u32 1.1754944e-38, %v3605_v25  ;;  %v3199_v3 = vadd.f32 %v10567_v9, %v3198_v15 }
 0x3bc   : > { %v10583_v55 = vpop.eup %8524 }
 0x3bd   : > { %v3637_v5 = vmul.f32 %v10583_v55, %v10571_v41  ;;  %v10591_v6 = vpop.xlane.xlu2 %4776  ;;  %v3597_v32 = vmul.f32 %v8523_v21, %v3596_v46  ;;  %8528 = vpow2.f32 %v3905_v24  ;;  %v10602_v31 = vpop.eup %8526  ;;  %vm3642_vm14 = vweird.f32 %v10583_v55 }
 0x3be   : > { %8530 = vpow2.f32 %v3907_v16  ;;  %vm3643_vm2 = vmor %vm3641_vm15, %vm3642_vm14  ;;  %vm2284_vm14 = vweird.f32 %v10418_v43 }
 0x3bf   : > { %v3638_v1 = vsub.f32 1.0, %v3637_v5  ;;  %v3598_v58 = vadd.f32 %v8523_v21, %v3597_v32  ;;  %8532 = vpow2.f32 %v4359_v38  ;;  %v3647_v38 = vand.u32 2147483648, %v10571_v41 }
 0x3c0   : > { %v4333_v40 = vpop.xlane.xlu0 %4332 }
 0x3c1   : > { %v10596_v28 = vpop.xlane.xlu1 %3070  ;;  %v3602_v52 = vsel %vm3601_vm9, %v8523_v21, %v3598_v58  ;;  %v3639_v46 = vmul.f32 %v10583_v55, %v3638_v1  ;;  %v4343_v24 = vsub.f32 %v10268_v14, %v4333_v40  ;;  %v3206_v21 = vand.u32 2147483648, %v10556_v51 }
 0x3c2   : > { %v10600_v19 = vpop.f32.mrf.mxu3  ;;  %v3607_v32 = vsel %vm3604_vm10, %v3606_v12, %v3602_v52  ;;  %v10606_v61 = vpop.f32.mrf.mxu1  ;;  %v3204_v52 = vand.u32 2147483647, %v10556_v51  ;;  %v3909_v1 = vmul.f32 1.442695, %v3894_v45  ;;  %v3203_v51 = vsel %vm10617_vm13, %v10567_v9, %v3199_v3 }
 0x3c3   : > { %v8529_v4 = vpop.eup %8528  ;;  %v3706_v33 = vmul.f32 %v3607_v32, %v3574_v36  ;;  %v4357_v25 = vmul.f32 1.442695, %v4343_v24  ;;  %v3640_v16 = vadd.f32 %v10583_v55, %v3639_v46  ;;  %v4373_v58 = vsel %vm1704_vm1, %v10551_v20, 0.0 }
 0x3c4   : > { %v3926_v14 = vsel %vm1704_vm1, %v8529_v4, 0.0  ;;  %v3937_v54 = vpack.c.bf16 %v8529_v4, %v10602_v31  ;;  %v3207_v12 = vor.u32 1.1754944e-38, %v3206_v21  ;;  %v3645_v45 = vand.u32 2147483647, %v10571_v41  ;;  %v8531_v40 = vpop.eup %8530 }
 0x3c5   : > { %v10610_v5 = vpop.xlane.xlu2 %3079  ;;  %v3714_v15 = vpack.c.bf16 %v3706_v33, %v3706_v33  ;;  %8534 = vpow2.f32 %v4357_v25  ;;  %3927 = vadd.xlane.f32.xlu2 %v3926_v14  ;;  %vm3205_vm0 = vcmp.eq.f32.partialorder %v3204_v52, 8.507059e+37  ;;  %v8533_v9 = vpop.eup %8532  ;;  %v3644_v3 = vsel %vm3643_vm2, %v10583_v55, %v3640_v16 }
 0x3c6   : > { %8536 = vrcp.f32 %v10610_v5  ;;  %7524 = vmatmul.msk.bf16.gmra.mxu3 %vm1704_vm1, %v3937_v54  ;;  %v3208_v32 = vsel %vm3205_vm0, %v3207_v12, %v3203_v51  ;;  %v3648_v4 = vor.u32 1.1754944e-38, %v3647_v38  ;;  %vm3646_vm3 = vcmp.eq.f32.partialorder %v3645_v45, 8.507059e+37 }
 0x3c7   : > { %3722 = vst.msk [vmem:[#allocation3 + $0x4] sm:$0xf] %vm1974_vm6, %v3714_v15  ;;  %8538 = vrcp.f32 %v10418_v43  ;;  %v3929_v54 = vsel %vm1704_vm1, %v8531_v40, 0.0  ;;  %v4788_v55 = vsub.f32 %v10285_v13, %v10576_v50  ;;  %vm3228_vm5 = vweird.f32 %v10610_v5 }
 0x3c8   : > { %v10635_v46 = vpop.xlane.xlu0 %2634  ;;  %v3649_v14 = vsel %vm3646_vm3, %v3648_v4, %v3644_v3 }
 0x3c9   : > { %v10637_v24 = vpop.xlane.xlu1 %4770  ;;  %4374 = vadd.xlane.f32.xlu1 %v4373_v58  ;;  %8540 = vrcp.f32 %v10635_v46  ;;  %v13033_v58 = vld [vmem:[#allocation16_spill] sm:$0xff]  ;;  %v4797_v4 = vmul.f32 1.442695, %v4788_v55  ;;  %vm2805_vm9 = vweird.f32 %v10635_v46 }
 0x3ca   : > { %v3152_v20 = vpop.f32.mrf.mxu3  ;;  %8542 = vpow2.f32 %v3909_v1  ;;  %v3581_v25 = vpop.f32.mrf.mxu1  ;;  %v1768_v12 = vsel %vm1704_vm1, %v13033_v58, 0.0 }
 0x3cb   : > { %v10643_v41 = vmul.f32 %v3208_v32, %v3152_v20  ;;  %v10645_v33 = vpop.eup %8534  ;;  %v3709_v15 = vmul.f32 %v3649_v14, %v3581_v25  ;;  %8544 = vrcp.f32 %v10535_v49 }
 0x3cc   : > { %v8537_v21 = vpop.eup %8536  ;;  %v4388_v36 = vpack.c.bf16 %v8533_v9, %v10645_v33  ;;  %8546 = vpow2.f32 %v4797_v4 }
 0x3cd   : > { %v3224_v52 = vmul.f32 %v8537_v21, %v10610_v5  ;;  %3930 = vadd.xlane.f32.xlu2 %v3929_v54  ;;  %v10650_v51 = vpop.eup %8538  ;;  %v3717_v38 = vpack.c.bf16 %v3709_v15, %v3709_v15  ;;  %vm3229_vm4 = vweird.f32 %v8537_v21 }
 0x3ce   : > { %7581 = vmatmul.msk.bf16.gmra.mxu1 %vm1704_vm1, %v4388_v36  ;;  %v2280_v13 = vmul.f32 %v10650_v51, %v10418_v43  ;;  %v4382_v36 = vsel %vm1704_vm1, %v8533_v9, 0.0  ;;  %vm3230_vm8 = vmor %vm3228_vm5, %vm3229_vm4  ;;  %vm2285_vm13 = vweird.f32 %v10650_v51  ;;  %vm3172_vm4 = vweird.f32 %v10535_v49 }
 0x3cf   : > { %v10654_v16 = vpop.eup %8540  ;;  %v3225_v1 = vsub.f32 1.0, %v3224_v52  ;;  %3725 = vst.msk [vmem:[#allocation3 + $0x1c] sm:$0xf] %vm1974_vm6, %v3717_v38  ;;  %v3234_v52 = vand.u32 2147483648, %v10610_v5  ;;  %vm10724_vm15 = vmor %vm2284_vm14, %vm2285_vm13 }
 0x3d0   : > { %v2801_v45 = vmul.f32 %v10654_v16, %v10635_v46  ;;  %v4765_v20 = vpop.xlane.xlu0 %4764  ;;  %v8543_v3 = vpop.eup %8542  ;;  %v2281_v63 = vsub.f32 1.0, %v2280_v13  ;;  %vm2806_vm7 = vweird.f32 %v10654_v16 }
 0x3d1   : > { %v10661_v32 = vpop.xlane.xlu1 %3076  ;;  %1769 = vadd.xlane.f32.xlu1 %v1768_v12  ;;  %v4787_v14 = vsub.f32 %v10271_v23, %v4765_v20  ;;  %v3226_v54 = vmul.f32 %v8537_v21, %v3225_v1  ;;  %v3938_v58 = vpack.c.bf16 %v8543_v3, %v8531_v40  ;;  %v3232_v12 = vand.u32 2147483647, %v10610_v5  ;;  %vm10687_vm11 = vmor %vm2805_vm9, %vm2806_vm7 }
 0x3d2   : > { %v10666_v50 = vpop.f32.mrf.mxu3  ;;  %v2802_v25 = vsub.f32 1.0, %v2801_v45  ;;  %v3932_v55 = vsel %vm1704_vm1, %v8543_v3, 0.0  ;;  %v2811_v40 = vand.u32 2147483648, %v10635_v46  ;;  %v3235_v45 = vor.u32 1.1754944e-38, %v3234_v52  ;;  %v10701_v52 = vpop.eup %8544 }
 0x3d3   : > { %v3227_v38 = vadd.f32 %v8537_v21, %v3226_v54  ;;  %v4795_v9 = vmul.f32 1.442695, %v4787_v14  ;;  %v2809_v5 = vand.u32 2147483647, %v10635_v46  ;;  %vm3233_vm10 = vcmp.eq.f32.partialorder %v3232_v12, 8.507059e+37 }
 0x3d4   : > { %v2803_v15 = vmul.f32 %v10654_v16, %v2802_v25  ;;  %v3917_v46 = vsel %vm1704_vm1, %v10465_v60, 0.0 }
 0x3d5   : > { %4383 = vadd.xlane.f32.xlu2 %v4382_v36  ;;  %v3231_v1 = vsel %vm3230_vm8, %v8537_v21, %v3227_v38  ;;  %v4789_v21 = vsub.f32 %v10299_v34, %v10637_v24  ;;  %v2812_v36 = vor.u32 1.1754944e-38, %v2811_v40  ;;  %vm2810_vm12 = vcmp.eq.f32.partialorder %v2809_v5, 8.507059e+37 }
 0x3d6   : > { %v2804_v23 = vadd.f32 %v10654_v16, %v2803_v15  ;;  %7525 = vmatmul.msk.bf16.gmra.mxu3 %vm1704_vm1, %v3938_v58  ;;  %v3236_v25 = vsel %vm3233_vm10, %v3235_v45, %v3231_v1  ;;  %v2282_v15 = vmul.f32 %v10650_v51, %v2281_v63  ;;  %v8547_v58 = vpop.eup %8546  ;;  %v3513_v34 = vsel %vm1704_vm1, %v10355_v37, 0.0 }
 0x3d7   : > { %v3168_v24 = vmul.f32 %v10701_v52, %v10535_v49  ;;  %v2290_v1 = vand.u32 2147483648, %v10418_v43  ;;  %vm3173_vm8 = vweird.f32 %v10701_v52 }
 0x3d8   : > { %v10683_v20 = vpop.xlane.xlu0 %3505  ;;  %v2808_v54 = vsel %vm10687_vm11, %v10654_v16, %v2804_v23  ;;  %v4799_v16 = vmul.f32 1.442695, %v4789_v21  ;;  %v2283_v38 = vadd.f32 %v10650_v51, %v2282_v15  ;;  %v4814_v23 = vsel %vm1704_vm1, %v8547_v58, 0.0  ;;  %vm10767_vm11 = vmor %vm3172_vm4, %vm3173_vm8 }
 0x3d9   : > { %v10685_v13 = vpop.xlane.xlu1 %3082  ;;  %3933 = vadd.xlane.f32.xlu1 %v3932_v55  ;;  %8548 = vrcp.f32 %v10683_v20  ;;  %v2813_v60 = vsel %vm2810_vm12, %v2812_v36, %v2808_v54  ;;  %v3169_v5 = vsub.f32 1.0, %v3168_v24  ;;  %vm3613_vm3 = vweird.f32 %v10683_v20 }
 0x3da   : > { %v3157_v3 = vpop.f32.mrf.mxu3  ;;  %8550 = vpow2.f32 %v4795_v9  ;;  %v10710_v12 = vmul.f32 %v2813_v60, %v10525_v8  ;;  %v2288_v8 = vand.u32 2147483647, %v10418_v43  ;;  %v2287_v21 = vsel %vm10724_vm15, %v10650_v51, %v2283_v38 }
 0x3db   : > { %v10694_v14 = vmul.f32 %v3236_v25, %v3157_v3  ;;  %3918 = vadd.xlane.f32.xlu0 %v3917_v46  ;;  %8552 = vrcp.f32 %v10596_v28  ;;  %v4370_v3 = vsel %vm1704_vm1, %v10505_v57, 0.0  ;;  %v3617_v43 = vand.u32 2147483647, %v10683_v20 }
 0x3dc   : > { %v3619_v46 = vand.u32 2147483648, %v10683_v20  ;;  %vm2289_vm2 = vcmp.eq.f32.partialorder %v2288_v8, 8.507059e+37  ;;  %v2291_v57 = vor.u32 1.1754944e-38, %v2290_v1 }
 0x3dd   : > { %3514 = vadd.xlane.f32.xlu2 %v3513_v34  ;;  %v3170_v34 = vmul.f32 %v10701_v52, %v3169_v5  ;;  %vm3618_vm7 = vcmp.eq.f32.partialorder %v3617_v43, 8.507059e+37 }
 0x3df   : > { %v8549_v63 = vpop.eup %8548 }
 0x3e0   : > { %v3609_v37 = vmul.f32 %v8549_v63, %v10683_v20  ;;  %v10716_v55 = vpop.xlane.xlu0 %3508  ;;  %v8551_v9 = vpop.eup %8550  ;;  %vm3614_vm0 = vweird.f32 %v8549_v63  ;;  %v3178_v20 = vand.u32 2147483648, %v10535_v49 }
 0x3e1   : > { %v10718_v40 = vpop.xlane.xlu1 %3085  ;;  %4815 = vadd.xlane.f32.xlu1 %v4814_v23  ;;  %8554 = vrcp.f32 %v10716_v55  ;;  %v10730_v25 = vpop.eup %8552  ;;  %v4835_v54 = vpack.c.bf16 %v8547_v58, %v8551_v9  ;;  %v4811_v36 = vsel %vm1704_vm1, %v8551_v9, 0.0  ;;  %vm3615_vm5 = vmor %vm3613_vm3, %vm3614_vm0  ;;  %v3620_v58 = vor.u32 1.1754944e-38, %v3619_v46 }
 0x3e2   : > { %8556 = vpow2.f32 %v4799_v16  ;;  %v3610_v4 = vsub.f32 1.0, %v3609_v37  ;;  %v3182_v51 = vmul.f32 %v10730_v25, %v10596_v28  ;;  %v2292_v16 = vsel %vm2289_vm2, %v2291_v57, %v2287_v21  ;;  %v10751_v45 = vpop.f32.mrf.mxu3 }
 0x3e3   : > { %8558 = vrcp.f32 %v10718_v40  ;;  %4371 = vadd.xlane.f32.xlu0 %v4370_v3  ;;  %v3176_v23 = vand.u32 2147483647, %v10535_v49  ;;  %v3171_v3 = vadd.f32 %v10701_v52, %v3170_v34  ;;  %vm3627_vm9 = vweird.f32 %v10716_v55 }
 0x3e4   : > { %v3611_v15 = vmul.f32 %v8549_v63, %v3610_v4  ;;  %v3183_v21 = vsub.f32 1.0, %v3182_v51  ;;  %v3633_v57 = vand.u32 2147483648, %v10716_v55  ;;  %v3262_v34 = vand.u32 2147483648, %v10718_v40 }
 0x3e5   : > { %4812 = vadd.xlane.f32.xlu2 %v4811_v36  ;;  %vm3256_vm14 = vweird.f32 %v10718_v40  ;;  %vm3177_vm15 = vcmp.eq.f32.partialorder %v3176_v23, 8.507059e+37  ;;  %vm3187_vm4 = vweird.f32 %v10730_v25 }
 0x3e6   : > { %v3612_v60 = vadd.f32 %v8549_v63, %v3611_v15  ;;  %7634 = vmatmul.msk.bf16.vlgmr.msra.gmra.mxu3 %vm1704_vm1, %v4835_v54 }
 0x3e7   : > { %v8555_v24 = vpop.eup %8554 }
 0x3e8   : > { %v10745_v38 = vpop.eup %8556  ;;  %v3623_v37 = vmul.f32 %v8555_v24, %v10716_v55  ;;  %v4774_v9 = vpop.xlane.xlu0 %4773  ;;  %v3616_v8 = vsel %vm3615_vm5, %v8549_v63, %v3612_v60  ;;  %vm3628_vm10 = vweird.f32 %v8555_v24  ;;  %v3631_v60 = vand.u32 2147483647, %v10716_v55 }
 0x3e9   : > { %v8559_v1 = vpop.eup %8558  ;;  %v4790_v5 = vsub.f32 %v10314_v7, %v4774_v9  ;;  %v3621_v4 = vsel %vm3618_vm7, %v3620_v58, %v3616_v8  ;;  %v4817_v63 = vsel %vm1704_vm1, %v10745_v38, 0.0  ;;  %v3260_v9 = vand.u32 2147483647, %v10718_v40  ;;  %vm10779_vm13 = vmor %vm3627_vm9, %vm3628_vm10 }
 0x3ea   : > { %v3624_v46 = vsub.f32 1.0, %v3623_v37  ;;  %v3252_v43 = vmul.f32 %v8559_v1, %v10718_v40  ;;  %v3707_v15 = vmul.f32 %v3621_v4, %v10587_v30  ;;  %vm3257_vm12 = vweird.f32 %v8559_v1  ;;  %v3162_v40 = vpop.f32.mrf.mxu3 }
 0x3eb   : > { %v4801_v54 = vmul.f32 1.442695, %v4790_v5  ;;  %v2378_v8 = vmul.f32 %v2292_v16, %v10443_v39  ;;  %v3175_v5 = vsel %vm10767_vm11, %v10701_v52, %v3171_v3  ;;  %v3179_v4 = vor.u32 1.1754944e-38, %v3178_v20  ;;  %vm3258_vm2 = vmor %vm3256_vm14, %vm3257_vm12 }
 0x3ec   : > { %v3625_v36 = vmul.f32 %v8555_v24, %v3624_v46  ;;  %v3253_v7 = vsub.f32 1.0, %v3252_v43  ;;  %v3715_v51 = vpack.c.bf16 %v3707_v15, %v3707_v15  ;;  %v3634_v46 = vor.u32 1.1754944e-38, %v3633_v57 }
 0x3ed   : > { %8560 = vpow2.f32 %v4801_v54  ;;  %4818 = vadd.xlane.f32.xlu2 %v4817_v63  ;;  %v3184_v52 = vmul.f32 %v10730_v25, %v3183_v21  ;;  %vm3632_vm0 = vcmp.eq.f32.partialorder %v3631_v60, 8.507059e+37  ;;  %v3263_v55 = vor.u32 1.1754944e-38, %v3262_v34  ;;  %v4786_v21 = vpop.xlane.xlu1 %4785 }
 0x3ee   : > { %v3626_v30 = vadd.f32 %v8555_v24, %v3625_v36  ;;  %v3254_v37 = vmul.f32 %v8559_v1, %v3253_v7  ;;  %3723 = vst.msk [vmem:[#allocation3 + $0xc] sm:$0xf] %vm1974_vm6, %v3715_v51  ;;  %v3180_v16 = vsel %vm3177_vm15, %v3179_v4, %v3175_v5  ;;  %vm3261_vm3 = vcmp.eq.f32.partialorder %v3260_v9, 8.507059e+37 }
 0x3ef   : > { %v3279_v15 = vmul.f32 %v3180_v16, %v10579_v22  ;;  %v2386_v23 = vpack.c.bf16 %v2378_v8, %v2378_v8  ;;  %v3185_v34 = vadd.f32 %v10730_v25, %v3184_v52  ;;  %v3192_v51 = vand.u32 2147483648, %v10596_v28  ;;  %v10832_v16 = vpop.f32.mrf.mxu1 }
 0x3f0   : > { %v3255_v43 = vadd.f32 %v8559_v1, %v3254_v37  ;;  %v4780_v54 = vpop.xlane.xlu0 %4779  ;;  %v3630_v39 = vsel %vm10779_vm13, %v8555_v24, %v3626_v30  ;;  %vm3186_vm5 = vweird.f32 %v10596_v28  ;;  %vm2425_vm9 = vcmask 519424  }
 0x3f1   : > { %v3635_v3 = vsel %vm3632_vm0, %v3634_v46, %v3630_v39  ;;  %v4792_v57 = vsub.f32 %v10374_v35, %v4780_v54  ;;  %v3287_v35 = vpack.c.bf16 %v3279_v15, %v3279_v15  ;;  %vm3188_vm7 = vmor %vm3186_vm5, %vm3187_vm4  ;;  %v4794_v46 = vsub.f32 %v10411_v17, %v4786_v21 }
 0x3f2   : > { %v3259_v20 = vsel %vm3258_vm2, %v8559_v1, %v3255_v43  ;;  %v3708_v24 = vmul.f32 %v3635_v3, %v10606_v61  ;;  %v4791_v1 = vsub.f32 %v10336_v10, %v10591_v6  ;;  %v3190_v61 = vand.u32 2147483647, %v10596_v28 }
 0x3f3   : > { %v10789_v63 = vpop.eup %8560  ;;  %v3264_v36 = vsel %vm3261_vm3, %v3263_v55, %v3259_v20  ;;  %v4805_v58 = vmul.f32 1.442695, %v4792_v57  ;;  %v3189_v6 = vsel %vm3188_vm7, %v10730_v25, %v3185_v34  ;;  %v4809_v39 = vmul.f32 1.442695, %v4794_v46  ;;  %v10834_v20 = vpop.f32.mrf.mxu3 }
 0x3f4   : > { %v10794_v7 = vmul.f32 %v3264_v36, %v3162_v40  ;;  %v4836_v60 = vpack.c.bf16 %v10789_v63, %v10745_v38  ;;  %v3716_v22 = vpack.c.bf16 %v3708_v24, %v3708_v24  ;;  %v4803_v10 = vmul.f32 1.442695, %v4791_v1 }
 0x3f5   : > { %v3193_v38 = vor.u32 1.1754944e-38, %v3192_v51  ;;  %vm3191_vm8 = vcmp.eq.f32.partialorder %v3190_v61, 8.507059e+37  ;;  %8562 = vpow2.f32 %v4805_v58  ;;  %v10810_v37 = vpop.xlane.xlu1 %4362  ;;  %vm2876_vm10 = vcmask 781824  }
 0x3f6   : > { %7635 = vmatmul.msk.bf16.gmra.mxu3 %vm1704_vm1, %v4836_v60  ;;  %3724 = vst.msk [vmem:[#allocation3 + $0x14] sm:$0xf] %vm1974_vm6, %v3716_v22  ;;  %8564 = vpow2.f32 %v4803_v10  ;;  %v3923_v40 = vsel %vm1704_vm1, %v10602_v31, 0.0  ;;  %v4820_v36 = vsel %vm1704_vm1, %v10789_v63, 0.0  ;;  %v4376_v31 = vsel %vm1704_vm1, %v10547_v56, 0.0 }
 0x3f7   : > { %2403 = vrot.lane.b32.xlu0 %v2386_v23, %s8759_s1  ;;  %v3194_v30 = vsel %vm3191_vm8, %v3193_v38, %v3189_v6  ;;  %v10842_v24 = vpop.f32.mrf.mxu1  ;;  %v2304_v22 = vand.u32 2147483648, %v10457_v2  ;;  %vm2298_vm12 = vweird.f32 %v10457_v2  ;;  %v2302_v56 = vand.u32 2147483647, %v10457_v2 }
 0x3f8   : > { %v3280_v28 = vmul.f32 %v3194_v30, %v10600_v19  ;;  %v4783_v9 = vpop.xlane.xlu0 %4782  ;;  %v4379_v30 = vsel %vm1704_vm1, %v10645_v33, 0.0  ;;  %vm2312_vm0 = vweird.f32 %v10434_v62  ;;  %vm3214_vm5 = vweird.f32 %v10661_v32 }
 0x3f9   : > { %v4793_v49 = vsub.f32 %v10397_v53, %v4783_v9  ;;  %v2853_v53 = vpop.permute.xlu2 %2852  ;;  %vm2303_vm14 = vcmp.eq.f32.partialorder %v2302_v56, 8.507059e+37 }
 0x3fa   : > { %3303 = vrot.lane.b32.xlu1 %v3287_v35, %s8758_s16  ;;  %v3288_v4 = vpack.c.bf16 %v3280_v28, %v3280_v28  ;;  %v2305_v28 = vor.u32 1.1754944e-38, %v2304_v22 }
 0x3fb   : > { %v10813_v8 = vpop.eup %8562  ;;  %v4807_v43 = vmul.f32 1.442695, %v4793_v49  ;;  %v10844_v23 = vpop.f32.mrf.mxu3 }
 0x3fc   : > { %v8565_v5 = vpop.eup %8564 }
 0x3fd   : > { %v4837_v25 = vpack.c.bf16 %v10813_v8, %v8565_v5  ;;  %v10820_v54 = vpop.xlane.xlu1 %4368  ;;  %8566 = vpow2.f32 %v4807_v43  ;;  %v4823_v51 = vsel %vm1704_vm1, %v8565_v5, 0.0 }
 0x3fe   : > { %8568 = vpow2.f32 %v4809_v39 }
 0x3ff   : > { %8570 = vrcp.f32 %v10457_v2  ;;  %v10862_v61 = vpop.f32.mrf.mxu1 }
 0x400   : > { %8572 = vrcp.f32 %v10434_v62  ;;  %v10873_v5 = vpop.xlane.xlu0 %3088 }
 0x401   : > { %8574 = vrcp.f32 %v10661_v32 }
 0x402   : > { %8576 = vrcp.f32 %v10403_v42 }
 0x403   : > { %v10822_v52 = vpop.eup %8566  ;;  %v10864_v58 = vpop.f32.mrf.mxu3  ;;  %8578 = vrcp.f32 %v10810_v37 }
 0x404   : > { %v10826_v17 = vpop.eup %8568  ;;  %8580 = vrcp.f32 %v10499_v18 }
 0x405   : > { %3305 = vrot.lane.b32.xlu2 %v3288_v4, %s8758_s16  ;;  %v4838_v55 = vpack.c.bf16 %v10826_v17, %v10822_v52  ;;  %v8571_v3 = vpop.eup %8570  ;;  %8582 = vrcp.f32 %v10820_v54 }
 0x406   : > { %7636 = vmatmul.msk.bf16.gmra.mxu3 %vm1704_vm1, %v4837_v25  ;;  %v2294_v15 = vmul.f32 %v8571_v3, %v10457_v2  ;;  %v10851_v1 = vpop.eup %8572  ;;  %vm2299_vm11 = vweird.f32 %v8571_v3 }
 0x407   : > { %v2308_v63 = vmul.f32 %v10851_v1, %v10434_v62  ;;  %v10857_v35 = vpop.eup %8574  ;;  %vm2300_vm13 = vmor %vm2298_vm12, %vm2299_vm11  ;;  %vm2313_vm15 = vweird.f32 %v10851_v1 }
 0x408   : > { %v2295_v57 = vsub.f32 1.0, %v2294_v15  ;;  %v3210_v9 = vmul.f32 %v10857_v35, %v10661_v32  ;;  %v10875_v4 = vpop.eup %8576  ;;  %vm10900_vm2 = vmor %vm2312_vm0, %vm2313_vm15  ;;  %vm3215_vm4 = vweird.f32 %v10857_v35  ;;  %vm4467_vm15 = vweird.f32 %v10810_v37 }
 0x409   : > { %v2309_v10 = vsub.f32 1.0, %v2308_v63  ;;  %v10880_v33 = vpop.eup %8578  ;;  %v2745_v43 = vmul.f32 %v10875_v4, %v10403_v42  ;;  %vm10933_vm7 = vmor %vm3214_vm5, %vm3215_vm4  ;;  %v7722_v63 = vld [vmem:[%s12964_s5 + $0x68] sm:$0xf0]  ;;  %vm2750_vm11 = vweird.f32 %v10875_v4  ;;  %vm2763_vm5 = vweird.f32 %v10499_v18 }
 0x40a   : > { %v2296_v60 = vmul.f32 %v8571_v3, %v2295_v57  ;;  %v3211_v25 = vsub.f32 1.0, %v3210_v9  ;;  %vm4468_vm12 = vweird.f32 %v10880_v33 }
 0x40b   : > { %v2310_v49 = vmul.f32 %v10851_v1, %v2309_v10  ;;  %v10917_v10 = vpop.xlane.xlu0 %3912 }
 0x40c   : > { %v2297_v34 = vadd.f32 %v8571_v3, %v2296_v60  ;;  %v4463_v60 = vmul.f32 %v10880_v33, %v10810_v37 }
 0x40e   : > { %v2301_v6 = vsel %vm2300_vm13, %v8571_v3, %v2297_v34  ;;  %v2316_v3 = vand.u32 2147483647, %v10434_v62  ;;  %v10905_v34 = vpop.eup %8580  ;;  %v4464_v9 = vsub.f32 1.0, %v4463_v60  ;;  %vm2749_vm13 = vweird.f32 %v10403_v42 }
 0x40f   : > { %v2306_v2 = vsel %vm2303_vm14, %v2305_v28, %v2301_v6  ;;  %v8276_v6 = vld [vmem:[%s12964_s5 + $0x74] sm:$0xf]  ;;  %v3220_v28 = vand.u32 2147483648, %v10661_v32  ;;  %vm11000_vm14 = vmor %vm2749_vm13, %vm2750_vm11  ;;  %vm4495_vm11 = vweird.f32 %v10820_v54 }
 0x410   : > { %v2379_v46 = vmul.f32 %v2306_v2, %v10461_v29  ;;  %v2318_v29 = vand.u32 2147483648, %v10434_v62  ;;  %vm2317_vm3 = vcmp.eq.f32.partialorder %v2316_v3, 8.507059e+37  ;;  %v7728_v62 = vld [vmem:[%s12964_s5 + $0x70] sm:$0xf] }
 0x411   : > { %v2402_v19 = vpop.permute.xlu1 %2401  ;;  %v10846_v21 = vpop.xlane.xlu2 %3915 }
 0x412   : > { %2426 = vst.msk [vmem:[#allocation3] sm:$0xf] %vm2425_vm9, %v2402_v19  ;;  %v10884_v39 = vpop.f32.mrf.mxu3  ;;  %v13042_v19 = vld [vmem:[#allocation15_spill] sm:$0xff]  ;;  %v2387_v57 = vpack.c.bf16 %v2379_v46, %v2379_v46  ;;  %v2759_v46 = vmul.f32 %v10905_v34, %v10499_v18 }
 0x413   : > { %2877 = vst.msk [vmem:[#allocation3] sm:$0xf] %vm2876_vm10, %v2853_v53  ;;  %v1765_v53 = vsel %vm1704_vm1, %v13042_v19, 0.0  ;;  %v3218_v19 = vand.u32 2147483647, %v10661_v32 }
 0x414   : > { %v8274_v32 = vld [vmem:[%s12964_s5 + $0x64] sm:$0xf] }
 0x415   : > { %vm3219_vm8 = vcmp.eq.f32.partialorder %v3218_v19, 8.507059e+37  ;;  %v8272_v19 = vld [vmem:[%s12964_s5 + $0x54] sm:$0xf] }
 0x416   : > { %7637 = vmatmul.msk.bf16.gmra.mxu3 %vm1704_vm1, %v4838_v55  ;;  %v2311_v55 = vadd.f32 %v10851_v1, %v2310_v49 }
 0x418   : > { %v2315_v22 = vsel %vm10900_vm2, %v10851_v1, %v2311_v55  ;;  %v8277_v1 = vld [vmem:[%s12964_s5 + $0x74] sm:$0xf0]  ;;  %vm11016_vm2 = vmor %vm4467_vm15, %vm4468_vm12 }
 0x419   : > { %v10866_v38 = vpop.xlane.xlu2 %3921  ;;  %v7729_v2 = vor.u32 %v8277_v1, %v7728_v62 }
 0x41a   : > { %v10958_v60 = vpop.f32.mrf.mxu3 }
 0x41b   : > { %5326 = vmatpush.bf16.msrb.mxu0 %v7729_v2 }
 0x421   : > { %3924 = vadd.xlane.f32.xlu0 %v3923_v40  ;;  %v3212_v40 = vmul.f32 %v10857_v35, %v3211_v25 }
 0x423   : > { %v3213_v56 = vadd.f32 %v10857_v35, %v3212_v40  ;;  %v8275_v40 = vld [vmem:[%s12964_s5 + $0x64] sm:$0xf0] }
 0x424   : > { %4821 = vadd.xlane.f32.xlu1 %v4820_v36  ;;  %v10895_v36 = vpop.f32.mrf.mxu1 }
 0x429   : > { %4377 = vadd.xlane.f32.xlu0 %v4376_v31  ;;  %v2746_v31 = vsub.f32 1.0, %v2745_v43 }
 0x42e   : > { %4824 = vadd.xlane.f32.xlu2 %v4823_v51  ;;  %v2319_v51 = vor.u32 1.1754944e-38, %v2318_v29  ;;  %v7720_v29 = vld [vmem:[%s12964_s5 + $0x60] sm:$0xf] }
 0x42f   : > { %v7721_v1 = vor.u32 %v8275_v40, %v7720_v29  ;;  %v4473_v29 = vand.u32 2147483648, %v10810_v37 }
 0x430   : > { %v2320_v25 = vsel %vm2317_vm3, %v2319_v51, %v2315_v22  ;;  %v3221_v22 = vor.u32 1.1754944e-38, %v3220_v28  ;;  %v4465_v51 = vmul.f32 %v10880_v33, %v4464_v9  ;;  %v7712_v28 = vld [vmem:[%s12964_s5 + $0x50] sm:$0xf]  ;;  %v8273_v9 = vld [vmem:[%s12964_s5 + $0x54] sm:$0xf0]  ;;  %vm2764_vm3 = vweird.f32 %v10905_v34 }
 0x431   : > { %4380 = vadd.xlane.f32.xlu0 %v4379_v30  ;;  %v7730_v30 = vld [vmem:[%s12964_s5 + $0x78] sm:$0xf0]  ;;  %v2380_v55 = vmul.f32 %v2320_v25, %v10480_v59  ;;  %v3217_v59 = vsel %vm10933_vm7, %v10857_v35, %v3213_v56  ;;  %v2753_v35 = vand.u32 2147483647, %v10403_v42  ;;  %5327 = vmatpush.bf16.msrb.mxu0 %v7721_v1  ;;  %v7713_v43 = vor.u32 %v8273_v9, %v7712_v28  ;;  %v7704_v9 = vld [vmem:[%s12964_s5 + $0x40] sm:$0xf]  ;;  %vm11060_vm7 = vmor %vm2763_vm5, %vm2764_vm3 }
 0x432   : > { %v7733_v49 = vor.u32 %v8276_v6, %v7730_v30  ;;  %v2760_v6 = vsub.f32 1.0, %v2759_v46  ;;  %v10967_v30 = vpop.f32.mrf.mxu1  ;;  %v3222_v2 = vsel %vm3219_vm8, %v3221_v22, %v3217_v59  ;;  %v2755_v46 = vand.u32 2147483648, %v10403_v42 }
 0x433   : > { %v2388_v56 = vpack.c.bf16 %v2380_v55, %v2380_v55  ;;  %v4466_v55 = vadd.f32 %v10880_v33, %v4465_v51  ;;  %v3282_v59 = vmul.f32 %v3222_v2, %v10666_v50  ;;  %v4471_v51 = vand.u32 2147483647, %v10810_v37 }
 0x434   : > { %5384 = vmatpush.bf16.msrb.mxu2 %v7733_v49  ;;  %vm11010_vm0 = vcmp.eq.f32.partialorder %v2753_v35, 8.507059e+37  ;;  %v2767_v22 = vand.u32 2147483647, %v10499_v18 }
 0x435   : > { %5328 = vmatpush.bf16.msrb.mxu0 %v7713_v43  ;;  %v4470_v35 = vsel %vm11016_vm2, %v10880_v33, %v4466_v55  ;;  %v8271_v43 = vld [vmem:[%s12964_s5 + $0x44] sm:$0xf0]  ;;  %v7706_v33 = vld [vmem:[%s12964_s5 + $0x48] sm:$0xf0]  ;;  %vm4472_vm4 = vcmp.eq.f32.partialorder %v4471_v51, 8.507059e+37 }
 0x436   : > { %vm2768_vm12 = vcmp.eq.f32.partialorder %v2767_v22, 8.507059e+37 }
 0x438   : > { %v10892_v15 = vpop.xlane.xlu2 %3927 }
 0x439   : > { %1766 = vadd.xlane.f32.xlu0 %v1765_v53  ;;  %v3516_v53 = vsel %vm1704_vm1, %v10350_v27, 0.0  ;;  %v2747_v27 = vmul.f32 %v10875_v4, %v2746_v31  ;;  %v7725_v31 = vor.u32 %v8274_v32, %v7722_v63  ;;  %v10996_v63 = vpop.xlane.xlu0 %4365 }
 0x43b   : > { %5385 = vmatpush.bf16.msrb.mxu2 %v7725_v31  ;;  %v2748_v25 = vadd.f32 %v10875_v4, %v2747_v27  ;;  %v2761_v27 = vmul.f32 %v10905_v34, %v2760_v6  ;;  %v2756_v6 = vor.u32 1.1754944e-38, %v2755_v46 }
 0x43c   : > { %v10965_v62 = vpop.xlane.xlu1 %4374 }
 0x43d   : > { %2405 = vrot.lane.b32.xlu1 %v2387_v57, %s8759_s1  ;;  %v10952_v57 = vpop.eup %8582  ;;  %v2752_v2 = vsel %vm11000_vm14, %v10875_v4, %v2748_v25  ;;  %v2762_v46 = vadd.f32 %v10905_v34, %v2761_v27  ;;  %v8270_v4 = vld [vmem:[%s12964_s5 + $0x44] sm:$0xf]  ;;  %v2769_v25 = vand.u32 2147483648, %v10499_v18  ;;  %v11049_v27 = vpop.f32.mrf.mxu1 }
 0x43e   : > { %v4491_v49 = vmul.f32 %v10952_v57, %v10820_v54  ;;  %v7709_v50 = vor.u32 %v8270_v4, %v7706_v33  ;;  %vm4496_vm8 = vweird.f32 %v10952_v57 }
 0x43f   : > { %vm11089_vm14 = vmor %vm4495_vm11, %vm4496_vm8 }
 0x440   : > { %v10941_v3 = vpop.xlane.xlu2 %3930  ;;  %v4492_v1 = vsub.f32 1.0, %v4491_v49  ;;  %v4474_v49 = vor.u32 1.1754944e-38, %v4473_v29  ;;  %v2757_v29 = vsel %vm11010_vm0, %v2756_v6, %v2752_v2  ;;  %v2766_v2 = vsel %vm11060_vm7, %v10905_v34, %v2762_v46 }
 0x441   : > { %8584 = vrcp.f32 %v10941_v3  ;;  %3517 = vadd.xlane.f32.xlu0 %v3516_v53  ;;  %v7714_v53 = vld [vmem:[%s12964_s5 + $0x58] sm:$0xf0]  ;;  %v2830_v6 = vmul.f32 %v2757_v29, %v10439_v0  ;;  %v2770_v0 = vor.u32 1.1754944e-38, %v2769_v25  ;;  %v4499_v34 = vand.u32 2147483647, %v10820_v54 }
 0x442   : > { %v7717_v40 = vor.u32 %v8272_v19, %v7714_v53  ;;  %v3290_v19 = vpack.c.bf16 %v3282_v59, %v3282_v59  ;;  %v4493_v53 = vmul.f32 %v10952_v57, %v4492_v1  ;;  %v8269_v59 = vld [vmem:[%s12964_s5 + $0x34] sm:$0xf0]  ;;  %8586 = vrcp.f32 %v10965_v62 }
 0x443   : > { %v7705_v1 = vor.u32 %v8271_v43, %v7704_v9  ;;  %v4501_v9 = vand.u32 2147483648, %v10820_v54  ;;  %v2838_v46 = vpack.c.bf16 %v2830_v6, %v2830_v6  ;;  %v4107_v33 = vand.u32 2147483648, %v10941_v3  ;;  %v8268_v54 = vld [vmem:[%s12964_s5 + $0x34] sm:$0xf] }
 0x444   : > { %5386 = vmatpush.bf16.msrb.mxu2 %v7717_v40  ;;  %v11044_v55 = vpop.xlane.xlu1 %1769  ;;  %v4475_v40 = vsel %vm4472_vm4, %v4474_v49, %v4470_v35  ;;  %v4494_v49 = vadd.f32 %v10952_v57, %v4493_v53  ;;  %v2771_v25 = vsel %vm2768_vm12, %v2770_v0, %v2766_v2  ;;  %v7698_v53 = vld [vmem:[%s12964_s5 + $0x38] sm:$0xf0]  ;;  %vm4101_vm15 = vweird.f32 %v10941_v3 }
 0x445   : > { %8588 = vrcp.f32 %v11044_v55  ;;  %v4574_v35 = vmul.f32 %v4475_v40, %v10967_v30  ;;  %5329 = vmatpush.bf16.msrb.mxu0 %v7705_v1  ;;  %v4447_v51 = vpop.f32.mrf.mxu1  ;;  %vm4500_vm2 = vcmp.eq.f32.partialorder %v4499_v34, 8.507059e+37  ;;  %v4108_v2 = vor.u32 1.1754944e-38, %v4107_v33  ;;  %v8265_v1 = vld [vmem:[%s12964_s5 + $0x14] sm:$0xf0] }
 0x446   : > { %2407 = vrot.lane.b32.xlu2 %v2388_v56, %s8759_s1  ;;  %v11068_v56 = vpop.permute.xlu0 %2854  ;;  %v4498_v22 = vsel %vm11089_vm14, %v10952_v57, %v4494_v49  ;;  %v7701_v57 = vor.u32 %v8268_v54, %v7698_v53  ;;  %vm4523_vm7 = vweird.f32 %v10965_v62  ;;  %vm1921_vm11 = vweird.f32 %v11044_v55 }
 0x447   : > { %v10991_v32 = vpop.eup %8584  ;;  %v4582_v40 = vpack.c.bf16 %v4574_v35, %v4574_v35  ;;  %v2831_v35 = vmul.f32 %v2771_v25, %v10455_v47 }
 0x448   : > { %v4097_v42 = vmul.f32 %v10991_v32, %v10941_v3  ;;  %v11008_v31 = vpop.xlane.xlu2 %4383  ;;  %5387 = vmatpush.bf16.msrb.mxu2 %v7709_v50  ;;  %vm4102_vm13 = vweird.f32 %v10991_v32  ;;  %v11100_v29 = vpop.eup %8586 }
 0x449   : > { %v11020_v37 = vpop.f32.mrf.mxu3  ;;  %vm11112_vm0 = vmor %vm4101_vm15, %vm4102_vm13  ;;  %v4519_v0 = vmul.f32 %v11100_v29, %v10965_v62  ;;  %v2839_v33 = vpack.c.bf16 %v2831_v35, %v2831_v35  ;;  %vm4524_vm4 = vweird.f32 %v11100_v29  ;;  %vm3327_vm15 = vcmask 1044224  }
 0x44a   : > { %v4098_v28 = vsub.f32 1.0, %v4097_v42  ;;  %v7696_v42 = vld [vmem:[%s12964_s5 + $0x30] sm:$0xf]  ;;  %vm11195_vm8 = vmor %vm4523_vm7, %vm4524_vm4  ;;  %vm4031_vm7 = vweird.f32 %v10846_v21 }
 0x44b   : > { %v4520_v54 = vsub.f32 1.0, %v4519_v0 }
 0x44c   : > { %v4099_v18 = vmul.f32 %v10991_v32, %v4098_v28  ;;  %v7697_v28 = vor.u32 %v8269_v59, %v7696_v42  ;;  %v4105_v42 = vand.u32 2147483647, %v10941_v3  ;;  %v11107_v59 = vpop.eup %8588  ;;  %5388 = vmatpush.bf16.msrb.mxu2 %v7701_v57 }
 0x44d   : > { %v4521_v35 = vmul.f32 %v11100_v29, %v4520_v54  ;;  %v8263_v54 = vld [vmem:[%s12964_s5 + $0x4] sm:$0xf0]  ;;  %vm1922_vm5 = vweird.f32 %v11107_v59 }
 0x44e   : > { %3309 = vrot.lane.b32.xlu2 %v3290_v19, %s8758_s16  ;;  %v4100_v30 = vadd.f32 %v10991_v32, %v4099_v18  ;;  %5330 = vmatpush.bf16.msrb.mxu0 %v7697_v28  ;;  %v4502_v18 = vor.u32 1.1754944e-38, %v4501_v9  ;;  %v11120_v6 = vpop.xlane.xlu0 %3918  ;;  %v1917_v9 = vmul.f32 %v11107_v59, %v11044_v55  ;;  %vm4106_vm3 = vcmp.eq.f32.partialorder %v4105_v42, 8.507059e+37  ;;  %v8266_v42 = vld [vmem:[%s12964_s5 + $0x24] sm:$0xf]  ;;  %vm11202_vm12 = vmor %vm1921_vm11, %vm1922_vm5 }
 0x450   : > { %v11077_v19 = vpop.xlane.xlu2 %3514  ;;  %v4104_v3 = vsel %vm11112_vm0, %v10991_v32, %v4100_v30  ;;  %v4503_v50 = vsel %vm4500_vm2, %v4502_v18, %v4498_v22  ;;  %v11131_v32 = vpop.xlane.xlu1 %3933  ;;  %v1918_v53 = vsub.f32 1.0, %v1917_v9  ;;  %v8267_v22 = vld [vmem:[%s12964_s5 + $0x24] sm:$0xf0]  ;;  %v7680_v18 = vld [vmem:[%s12964_s5 + $0x10] sm:$0xf] }
 0x451   : > { %v11081_v43 = vpop.f32.mrf.mxu3  ;;  %8590 = vrcp.f32 %v11077_v19  ;;  %v4576_v28 = vmul.f32 %v4503_v50, %v4447_v51  ;;  %v7690_v51 = vld [vmem:[%s12964_s5 + $0x28] sm:$0xf0]  ;;  %v8264_v50 = vld [vmem:[%s12964_s5 + $0x14] sm:$0xf]  ;;  %vm3655_vm14 = vweird.f32 %v11077_v19 }
 0x452   : > { %v7693_v0 = vor.u32 %v8266_v42, %v7690_v51  ;;  %v7674_v42 = vld [vmem:[%s12964_s5 + $0x8] sm:$0xf0]  ;;  %v4522_v51 = vadd.f32 %v11100_v29, %v4521_v35  ;;  %v4527_v35 = vand.u32 2147483647, %v10965_v62  ;;  %8592 = vrcp.f32 %v10846_v21 }
 0x453   : > { %v4584_v25 = vpack.c.bf16 %v4576_v28, %v4576_v28  ;;  %v1919_v28 = vmul.f32 %v11107_v59, %v1918_v53  ;;  %8594 = vrcp.f32 %v10866_v38 }
 0x454   : > { %5389 = vmatpush.bf16.msrb.mxu2 %v7693_v0  ;;  %vm4528_vm0 = vcmp.eq.f32.partialorder %v4527_v35, 8.507059e+37  ;;  %8596 = vrcp.f32 %v10996_v63 }
 0x455   : > { %2856 = vrot.lane.b32.xlu0 %v2838_v46, %s8760_s28  ;;  %v4109_v46 = vsel %vm4106_vm3, %v4108_v2, %v4104_v3  ;;  %v7682_v2 = vld [vmem:[%s12964_s5 + $0x18] sm:$0xf0]  ;;  %8598 = vrcp.f32 %v10453_v26 }
 0x456   : > { %4598 = vrot.lane.b32.xlu2 %v4582_v40, %s8760_s28  ;;  %v7688_v40 = vld [vmem:[%s12964_s5 + $0x20] sm:$0xf]  ;;  %v11165_v9 = vpop.xlane.xlu0 %4371  ;;  %8600 = vrcp.f32 %v10917_v10 }
 0x457   : > { %v11123_v49 = vpop.eup %8590  ;;  %v7689_v57 = vor.u32 %v8267_v22, %v7688_v40  ;;  %v8262_v22 = vld [vmem:[%s12964_s5 + $0x4] sm:$0xf]  ;;  %8602 = vrcp.f32 %v10562_v11 }
 0x458   : > { %v11129_v34 = vpop.xlane.xlu2 %4812  ;;  %v3651_v47 = vmul.f32 %v11123_v49, %v11077_v19  ;;  %v11179_v40 = vpop.xlane.xlu1 %4815  ;;  %vm3656_vm13 = vweird.f32 %v11123_v49  ;;  %8604 = vrcp.f32 %v11165_v9 }
 0x459   : > { %v4007_v30 = vpop.f32.mrf.mxu3  ;;  %5331 = vmatpush.bf16.msrb.mxu0 %v7689_v57  ;;  %v1927_v57 = vand.u32 2147483648, %v11044_v55  ;;  %vm11218_vm3 = vmor %vm3655_vm14, %vm3656_vm13  ;;  %vm4059_vm13 = vweird.f32 %v10866_v38  ;;  %8606 = vrcp.f32 %v11179_v40 }
 0x45a   : > { %v11133_v4 = vmul.f32 %v4109_v46, %v4007_v30  ;;  %v3652_v3 = vsub.f32 1.0, %v3651_v47  ;;  %v7681_v46 = vor.u32 %v8265_v1, %v7680_v18  ;;  %v11169_v47 = vpop.f32.mrf.mxu1  ;;  %v1920_v18 = vadd.f32 %v11107_v59, %v1919_v28 }
 0x45b   : > { %v4826_v1 = vsel %vm1704_vm1, %v10813_v8, 0.0  ;;  %v1925_v28 = vand.u32 2147483647, %v11044_v55  ;;  %v7677_v8 = vor.u32 %v8262_v22, %v7674_v42  ;;  %v4526_v55 = vsel %vm11195_vm8, %v11100_v29, %v4522_v51 }
 0x45c   : > { %v3653_v53 = vmul.f32 %v11123_v49, %v3652_v3  ;;  %v4529_v3 = vand.u32 2147483648, %v10965_v62  ;;  %v1924_v62 = vsel %vm11202_vm12, %v11107_v59, %v1920_v18  ;;  %v1928_v22 = vor.u32 1.1754944e-38, %v1927_v57 }
 0x45d   : > { %2858 = vrot.lane.b32.xlu0 %v2839_v33, %s8760_s28  ;;  %v7685_v33 = vor.u32 %v8264_v50, %v7682_v2  ;;  %5332 = vmatpush.bf16.msrb.mxu0 %v7681_v46  ;;  %vm1926_vm2 = vcmp.eq.f32.partialorder %v1925_v28, 8.507059e+37  ;;  %v4829_v57 = vsel %vm1704_vm1, %v10822_v52, 0.0  ;;  %v4037_v42 = vand.u32 2147483648, %v10846_v21 }
 0x45e   : > { %4602 = vrot.lane.b32.xlu2 %v4584_v25, %s8760_s28  ;;  %v7672_v25 = vld [vmem:[%s12964_s5] sm:$0xf]  ;;  %v3654_v46 = vadd.f32 %v11123_v49, %v3653_v53  ;;  %v1929_v51 = vsel %vm1926_vm2, %v1928_v22, %v1924_v62  ;;  %vm4481_vm2 = vweird.f32 %v10996_v63  ;;  %8608 = vrcp.f32 %v11120_v6 }
 0x45f   : > { %v7673_v50 = vor.u32 %v8263_v54, %v7672_v25  ;;  %5390 = vmatpush.bf16.msrb.mxu2 %v7685_v33  ;;  %v3661_v25 = vand.u32 2147483648, %v11077_v19  ;;  %v3659_v54 = vand.u32 2147483647, %v11077_v19  ;;  %v4530_v33 = vor.u32 1.1754944e-38, %v4529_v3 }
 0x460   : > { %v11167_v30 = vpop.xlane.xlu2 %4818 }
 0x461   : > { %5333 = vmatpush.bf16.msrb.mxu0 %v7673_v50  ;;  %v3662_v59 = vor.u32 1.1754944e-38, %v3661_v25  ;;  %v4531_v18 = vsel %vm4528_vm0, %v4530_v33, %v4526_v55  ;;  %vm3660_vm4 = vcmp.eq.f32.partialorder %v3659_v54, 8.507059e+37  ;;  %v1963_v50 = vmul.f32 %v1929_v51, %v10352_v44 }
 0x462   : > { %v4452_v3 = vpop.f32.mrf.mxu1 }
 0x463   : > { %5391 = vmatpush.bf16.msrb.mxu2 %v7677_v8  ;;  %v11233_v2 = vmul.f32 %v4531_v18, %v4452_v3  ;;  %v1971_v28 = vpack.c.bf16 %v1963_v50, %v1963_v50  ;;  %v8593_v8 = vpop.eup %8592  ;;  %v4038_v3 = vor.u32 1.1754944e-38, %v4037_v42  ;;  %v3519_v50 = vsel %vm1704_vm1, %v10376_v48, 0.0 }
 0x464   : > { %v4027_v0 = vmul.f32 %v8593_v8, %v10846_v21  ;;  %vm4032_vm5 = vweird.f32 %v8593_v8  ;;  %v4065_v48 = vand.u32 2147483648, %v10866_v38 }
 0x465   : > { %1980 = vst.msk [vmem:[#allocation3 + $0x28] sm:$0xf] %vm1974_vm6, %v1971_v28  ;;  %vm4033_vm8 = vmor %vm4031_vm7, %vm4032_vm5 }
 0x466   : > { %v4028_v25 = vsub.f32 1.0, %v4027_v0 }
 0x467   : > { %4827 = vadd.xlane.f32.xlu1 %v4826_v1  ;;  %v3658_v1 = vsel %vm11218_vm3, %v11123_v49, %v3654_v46 }
 0x468   : > { %v3306_v29 = vpop.permute.xlu2 %3305  ;;  %v4029_v54 = vmul.f32 %v8593_v8, %v4028_v25 }
 0x469   : > { %v2404_v53 = vpop.permute.xlu0 %2403 }
 0x46a   : > { %2427 = vst.msk [vmem:[#allocation3 + $0x8] sm:$0xf] %vm2425_vm9, %v2404_v53  ;;  %v4030_v22 = vadd.f32 %v8593_v8, %v4029_v54 }
 0x46b   : > { %2878 = vst.msk [vmem:[#allocation3 + $0x8] sm:$0xf] %vm2876_vm10, %v11068_v56  ;;  %v3663_v56 = vsel %vm3660_vm4, %v3662_v59, %v3658_v1  ;;  %v4035_v59 = vand.u32 2147483647, %v10846_v21  ;;  %v4832_v21 = vsel %vm1704_vm1, %v10826_v17, 0.0 }
 0x46c   : > { %v3304_v19 = vpop.permute.xlu1 %3303  ;;  %3329 = vst.msk [vmem:[#allocation3 + $0x8] sm:$0xf] %vm3327_vm15, %v3306_v29  ;;  %v3710_v35 = vmul.f32 %v3663_v56, %v10832_v16  ;;  %v8595_v16 = vpop.eup %8594  ;;  %v4034_v18 = vsel %vm4033_vm8, %v8593_v8, %v4030_v22  ;;  %v4063_v17 = vand.u32 2147483647, %v10866_v38  ;;  %v4485_v22 = vand.u32 2147483647, %v10996_v63 }
 0x46d   : > { %3328 = vst.msk [vmem:[#allocation3] sm:$0xf] %vm3327_vm15, %v3304_v19  ;;  %v4055_v62 = vmul.f32 %v8595_v16, %v10866_v38  ;;  %v11242_v55 = vpop.eup %8596  ;;  %vm4036_vm11 = vcmp.eq.f32.partialorder %v4035_v59, 8.507059e+37  ;;  %vm4060_vm12 = vweird.f32 %v8595_v16  ;;  %v4066_v38 = vor.u32 1.1754944e-38, %v4065_v48 }
 0x46e   : > { %v3718_v49 = vpack.c.bf16 %v3710_v35, %v3710_v35  ;;  %v4477_v33 = vmul.f32 %v11242_v55, %v10996_v63  ;;  %v11252_v29 = vpop.eup %8598  ;;  %v4039_v35 = vsel %vm4036_vm11, %v4038_v3, %v4034_v18  ;;  %vm11277_vm14 = vmor %vm4059_vm13, %vm4060_vm12  ;;  %vm4482_vm0 = vweird.f32 %v11242_v55  ;;  %v11298_v3 = vpop.f32.mrf.mxu3 }
 0x46f   : > { %4830 = vadd.xlane.f32.xlu1 %v4829_v57  ;;  %v4056_v53 = vsub.f32 1.0, %v4055_v62  ;;  %v11254_v1 = vpop.eup %8600  ;;  %v3289_v57 = vpack.c.bf16 %v10643_v41, %v10643_v41  ;;  %v2336_v56 = vmul.f32 %v11252_v29, %v10453_v26  ;;  %v4125_v0 = vmul.f32 %v4039_v35, %v10864_v58  ;;  %vm4483_vm4 = vmor %vm4481_vm2, %vm4482_vm0 }
 0x470   : > { %3726 = vst.msk [vmem:[#allocation3 + $0x24] sm:$0xf] %vm1974_vm6, %v3718_v49  ;;  %v4478_v19 = vsub.f32 1.0, %v4477_v33  ;;  %v11265_v28 = vpop.eup %8602  ;;  %v4013_v8 = vmul.f32 %v11254_v1, %v10917_v10  ;;  %v4487_v58 = vand.u32 2147483648, %v10996_v63  ;;  %vm4064_vm3 = vcmp.eq.f32.partialorder %v4063_v17, 8.507059e+37 }
 0x471   : > { %v4057_v51 = vmul.f32 %v8595_v16, %v4056_v53  ;;  %v11285_v33 = vpop.eup %8604  ;;  %v4133_v53 = vpack.c.bf16 %v4125_v0, %v4125_v0  ;;  %vm4486_vm5 = vcmp.eq.f32.partialorder %v4485_v22, 8.507059e+37  ;;  %vm2341_vm7 = vweird.f32 %v11252_v29 }
 0x472   : > { %v4479_v41 = vmul.f32 %v11242_v55, %v4478_v19  ;;  %v4014_v25 = vsub.f32 1.0, %v4013_v8  ;;  %v4488_v18 = vor.u32 1.1754944e-38, %v4487_v58  ;;  %v11304_v35 = vpop.eup %8606  ;;  %v2346_v8 = vand.u32 2147483648, %v10453_v26 }
 0x473   : > { %v8255_v52 = vld [vmem:[#allocation3 + $0x4] sm:$0xf0]  ;;  %v4058_v49 = vadd.f32 %v8595_v16, %v4057_v51  ;;  %v4505_v51 = vmul.f32 %v11285_v33, %v11165_v9  ;;  %vm4018_vm8 = vweird.f32 %v11254_v1  ;;  %vm2340_vm11 = vweird.f32 %v10453_v26 }
 0x474   : > { %v7640_v46 = vld [vmem:[#allocation3] sm:$0xf]  ;;  %v4480_v54 = vadd.f32 %v11242_v55, %v4479_v41  ;;  %v4015_v19 = vmul.f32 %v11254_v1, %v4014_v25  ;;  %vm4017_vm12 = vweird.f32 %v10917_v10  ;;  %v4023_v48 = vand.u32 2147483648, %v10917_v10  ;;  %vm11317_vm13 = vmor %vm2340_vm11, %vm2341_vm7 }
 0x475   : > { %v7641_v44 = vor.u32 %v8255_v52, %v7640_v46  ;;  %v2337_v52 = vsub.f32 1.0, %v2336_v56  ;;  %v2787_v46 = vmul.f32 %v11265_v28, %v10562_v11  ;;  %v4062_v62 = vsel %vm11277_vm14, %v8595_v16, %v4058_v49  ;;  %v11309_v49 = vpop.eup %8608  ;;  %vm11331_vm0 = vmor %vm4017_vm12, %vm4018_vm8 }
 0x476   : > { %v4067_v16 = vsel %vm4064_vm3, %v4066_v38, %v4062_v62  ;;  %v4484_v63 = vsel %vm4483_vm4, %v11242_v55, %v4480_v54  ;;  %v4016_v41 = vadd.f32 %v11254_v1, %v4015_v19  ;;  %v4506_v55 = vsub.f32 1.0, %v4505_v51  ;;  %v13073_v51 = vld [vmem:[#allocation28_spill] sm:$0xff] }
 0x477   : > { %5334 = vmatmul.bf16.vlgmr.msrb.gmra.mxu0 %v7641_v44  ;;  %5392 = vmatmul.bf16.vlgmr.msrb.gmra.mxu2 %v7641_v44  ;;  %v2338_v42 = vmul.f32 %v11252_v29, %v2337_v52  ;;  %v2788_v59 = vsub.f32 1.0, %v2787_v46  ;;  %v4021_v52 = vand.u32 2147483647, %v10917_v10  ;;  %vm2792_vm14 = vweird.f32 %v11265_v28 }
 0x478   : > { %v4927_v10 = vmul.f32 %v11304_v35, %v11179_v40  ;;  %v2347_v62 = vor.u32 1.1754944e-38, %v2346_v8  ;;  %v4507_v58 = vmul.f32 %v11285_v33, %v4506_v55  ;;  %vm2791_vm3 = vweird.f32 %v10562_v11  ;;  %v11361_v8 = vpop.f32.mrf.mxu3 }
 0x479   : > { %v2789_v56 = vmul.f32 %v11265_v28, %v2788_v59  ;;  %v2797_v38 = vand.u32 2147483648, %v10562_v11  ;;  %v4024_v22 = vor.u32 1.1754944e-38, %v4023_v48  ;;  %vm11348_vm4 = vmor %vm2791_vm3, %vm2792_vm14  ;;  %vm4510_vm7 = vweird.f32 %v11285_v33 }
 0x47a   : > { %vm4509_vm11 = vweird.f32 %v11165_v9  ;;  %vm4932_vm14 = vweird.f32 %v11304_v35  ;;  %v4935_v59 = vand.u32 2147483647, %v11179_v40  ;;  %vm4045_vm3 = vweird.f32 %v11120_v6 }
 0x47b   : > { %v2790_v25 = vadd.f32 %v11265_v28, %v2789_v56  ;;  %vm11374_vm12 = vmor %vm4509_vm11, %vm4510_vm7 }
 0x47c   : > { %vm4936_vm7 = vcmp.eq.f32.partialorder %v4935_v59, 8.507059e+37  ;;  %v13081_v59 = vld [vmem:[#allocation25_spill] sm:$0xff] }
 0x487   : > { %4833 = vadd.xlane.f32.xlu0 %v4832_v21  ;;  %3520 = vadd.xlane.f32.xlu2 %v3519_v50  ;;  %v2339_v50 = vadd.f32 %v11252_v29, %v2338_v42  ;;  %v4489_v21 = vsel %vm4486_vm5, %v4488_v18, %v4484_v63  ;;  %vm4022_vm5 = vcmp.eq.f32.partialorder %v4021_v52, 8.507059e+37 }
 0x488   : > { %3307 = vrot.lane.b32.xlu1 %v3289_v57, %s8758_s16  ;;  %v4127_v57 = vmul.f32 %v4067_v16, %v10958_v60  ;;  %v2344_v60 = vand.u32 2147483647, %v10453_v26  ;;  %v4575_v44 = vmul.f32 %v4489_v21, %v11049_v27  ;;  %v4041_v27 = vmul.f32 %v11309_v49, %v11120_v6 }
 0x489   : > { %v2343_v26 = vsel %vm11317_vm13, %v11252_v29, %v2339_v50  ;;  %v4020_v29 = vsel %vm11331_vm0, %v11254_v1, %v4016_v41  ;;  %v2795_v16 = vand.u32 2147483647, %v10562_v11  ;;  %v4928_v1 = vsub.f32 1.0, %v4927_v10 }
 0x48a   : > { %v4135_v46 = vpack.c.bf16 %v4127_v57, %v4127_v57  ;;  %vm2345_vm2 = vcmp.eq.f32.partialorder %v2344_v60, 8.507059e+37  ;;  %v4583_v19 = vpack.c.bf16 %v4575_v44, %v4575_v44  ;;  %v4025_v18 = vsel %vm4022_vm5, %v4024_v22, %v4020_v29 }
 0x48b   : > { %v2348_v42 = vsel %vm2345_vm2, %v2347_v62, %v2343_v26  ;;  %v2794_v57 = vsel %vm11348_vm4, %v11265_v28, %v2790_v25  ;;  %v4042_v56 = vsub.f32 1.0, %v4041_v27  ;;  %v4508_v21 = vadd.f32 %v11285_v33, %v4507_v58  ;;  %v13076_v27 = vld [vmem:[#allocation26_spill] sm:$0xff] }
 0x48c   : > { %v2382_v63 = vmul.f32 %v2348_v42, %v13073_v51  ;;  %v2798_v11 = vor.u32 1.1754944e-38, %v2797_v38  ;;  %v4515_v41 = vand.u32 2147483648, %v11165_v9  ;;  %vm2796_vm8 = vcmp.eq.f32.partialorder %v2795_v16, 8.507059e+37 }
 0x48d   : > { %v4513_v60 = vand.u32 2147483647, %v11165_v9  ;;  %v4124_v48 = vmul.f32 %v4025_v18, %v10844_v23  ;;  %v4929_v52 = vmul.f32 %v11304_v35, %v4928_v1  ;;  %v4043_v26 = vmul.f32 %v11309_v49, %v4042_v56  ;;  %v4894_v1 = vpop.f32.mrf.mxu3 }
 0x48e   : > { %v2390_v0 = vpack.c.bf16 %v2382_v63, %v2382_v63  ;;  %v2799_v44 = vsel %vm2796_vm8, %v2798_v11, %v2794_v57  ;;  %v4512_v25 = vsel %vm11374_vm12, %v11285_v33, %v4508_v21  ;;  %v4516_v54 = vor.u32 1.1754944e-38, %v4515_v41 }
 0x48f   : > { %vm4514_vm13 = vcmp.eq.f32.partialorder %v4513_v60, 8.507059e+37  ;;  %v4132_v62 = vpack.c.bf16 %v4124_v48, %v4124_v48  ;;  %v2833_v58 = vmul.f32 %v2799_v44, %v13076_v27  ;;  %v4051_v29 = vand.u32 2147483648, %v11120_v6 }
 0x490   : > { %4150 = vrot.lane.b32.xlu1 %v4133_v53, %s8759_s1  ;;  %v4930_v38 = vadd.f32 %v11304_v35, %v4929_v52  ;;  %v4517_v22 = vsel %vm4514_vm13, %v4516_v54, %v4512_v25  ;;  %v4044_v33 = vadd.f32 %v11309_v49, %v4043_v26  ;;  %vm4046_vm0 = vweird.f32 %v11309_v49 }
 0x491   : > { %v4937_v42 = vand.u32 2147483648, %v11179_v40  ;;  %vm4931_vm2 = vweird.f32 %v11179_v40  ;;  %v4049_v63 = vand.u32 2147483647, %v11120_v6  ;;  %v4577_v40 = vmul.f32 %v4517_v22, %v11169_v47  ;;  %vm11412_vm5 = vmor %vm4045_vm3, %vm4046_vm0 }
 0x492   : > { %vm11407_vm4 = vmor %vm4931_vm2, %vm4932_vm14  ;;  %v2841_v21 = vpack.c.bf16 %v2833_v58, %v2833_v58  ;;  %v4052_v11 = vor.u32 1.1754944e-38, %v4051_v29  ;;  %v4048_v41 = vsel %vm11412_vm5, %v11309_v49, %v4044_v33 }
 0x493   : > { %v4934_v56 = vsel %vm11407_vm4, %v11304_v35, %v4930_v38  ;;  %v4938_v6 = vor.u32 1.1754944e-38, %v4937_v42  ;;  %vm4050_vm11 = vcmp.eq.f32.partialorder %v4049_v63, 8.507059e+37  ;;  %v4585_v52 = vpack.c.bf16 %v4577_v40, %v4577_v40  ;;  %v13082_v63 = vld [vmem:[#allocation29_spill] sm:$0xff] }
 0x494   : > { %v11315_v17 = vpop.xlane.xlu0 %3924  ;;  %v4053_v44 = vsel %vm4050_vm11, %v4052_v11, %v4048_v41 }
 0x495   : > { %8610 = vrcp.f32 %v11315_v17  ;;  %v4939_v48 = vsel %vm4936_vm7, %v4938_v6, %v4934_v56  ;;  %v4079_v35 = vand.u32 2147483648, %v11315_v17  ;;  %vm4073_vm12 = vweird.f32 %v11315_v17  ;;  %v11437_v29 = vpop.f32.mrf.mxu3 }
 0x496   : > { %v4077_v49 = vand.u32 2147483647, %v11315_v17  ;;  %v4126_v27 = vmul.f32 %v4053_v44, %v10884_v39 }
 0x497   : > { %v11346_v53 = vpop.xlane.xlu1 %4821 }
 0x498   : > { %4154 = vrot.lane.b32.xlu1 %v4135_v46, %s8759_s1  ;;  %8612 = vrcp.f32 %v11346_v53  ;;  %v5025_v46 = vmul.f32 %v4939_v48, %v4894_v1  ;;  %vm4078_vm14 = vcmp.eq.f32.partialorder %v4077_v49, 8.507059e+37  ;;  %v4134_v42 = vpack.c.bf16 %v4126_v27, %v4126_v27 }
 0x499   : > { %vm4959_vm2 = vweird.f32 %v11346_v53  ;;  %v4963_v39 = vand.u32 2147483647, %v11346_v53 }
 0x49a   : > { %v5033_v58 = vpack.c.bf16 %v5025_v46, %v5025_v46 }
 0x49b   : > { %v11357_v50 = vpop.eup %8610  ;;  %4600 = vrot.lane.b32.xlu0 %v4583_v19, %s8760_s28  ;;  %vm4964_vm4 = vcmp.eq.f32.partialorder %v4963_v39, 8.507059e+37 }
 0x49c   : > { %v4069_v55 = vmul.f32 %v11357_v50, %v11315_v17  ;;  %v11368_v28 = vpop.xlane.xlu0 %4377  ;;  %vm4074_vm8 = vweird.f32 %v11357_v50 }
 0x49d   : > { %8614 = vrcp.f32 %v11368_v28  ;;  %vm4075_vm13 = vmor %vm4073_vm12, %vm4074_vm8  ;;  %v4899_v48 = vpop.f32.mrf.mxu3  ;;  %vm4537_vm8 = vweird.f32 %v11368_v28 }
 0x49e   : > { %v4070_v10 = vsub.f32 1.0, %v4069_v55  ;;  %v11383_v9 = vpop.eup %8612 }
 0x49f   : > { %2411 = vrot.lane.b32.xlu2 %v2390_v0, %s8759_s1  ;;  %v4955_v19 = vmul.f32 %v11383_v9, %v11346_v53  ;;  %vm4960_vm0 = vweird.f32 %v11383_v9 }
 0x4a0   : > { %v4071_v16 = vmul.f32 %v11357_v50, %v4070_v10  ;;  %vm4961_vm3 = vmor %vm4959_vm2, %vm4960_vm0 }
 0x4a1   : > { %v11385_v23 = vpop.xlane.xlu2 %4824  ;;  %v4956_v47 = vsub.f32 1.0, %v4955_v19 }
 0x4a2   : > { %v4072_v55 = vadd.f32 %v11357_v50, %v4071_v16 }
 0x4a3   : > { %4148 = vrot.lane.b32.xlu0 %v4132_v62, %s8759_s1  ;;  %v11425_v60 = vpop.eup %8614  ;;  %v4957_v26 = vmul.f32 %v11383_v9, %v4956_v47  ;;  %v4080_v62 = vor.u32 1.1754944e-38, %v4079_v35 }
 0x4a4   : > { %v11401_v51 = vpop.xlane.xlu0 %4380  ;;  %v4533_v25 = vmul.f32 %v11425_v60, %v11368_v28  ;;  %v4076_v10 = vsel %vm4075_vm13, %v11357_v50, %v4072_v55  ;;  %v4965_v50 = vand.u32 2147483648, %v11346_v53  ;;  %vm4538_vm5 = vweird.f32 %v11425_v60 }
 0x4a5   : > { %v4081_v38 = vsel %vm4078_vm14, %v4080_v62, %v4076_v10  ;;  %v4958_v22 = vadd.f32 %v11383_v9, %v4957_v26  ;;  %vm11461_vm11 = vmor %vm4537_vm8, %vm4538_vm5 }
 0x4a6   : > { %v4534_v33 = vsub.f32 1.0, %v4533_v25  ;;  %v4128_v16 = vmul.f32 %v4081_v38, %v11020_v37  ;;  %v4966_v56 = vor.u32 1.1754944e-38, %v4965_v50 }
 0x4a7   : > { %2862 = vrot.lane.b32.xlu2 %v2841_v21, %s8760_s28  ;;  %v4962_v57 = vsel %vm4961_vm3, %v11383_v9, %v4958_v22  ;;  %v4543_v9 = vand.u32 2147483648, %v11368_v28  ;;  %v13085_v22 = vld [vmem:[#allocation20_spill] sm:$0xff] }
 0x4a8   : > { %v4535_v1 = vmul.f32 %v11425_v60, %v4534_v33  ;;  %v4136_v11 = vpack.c.bf16 %v4128_v16, %v4128_v16  ;;  %v4967_v53 = vsel %vm4964_vm4, %v4966_v56, %v4962_v57  ;;  %v4454_v57 = vpop.f32.mrf.mxu1 }
 0x4a9   : > { %v2408_v0 = vpop.permute.xlu2 %2407  ;;  %v5027_v49 = vmul.f32 %v4967_v53, %v4899_v48 }
 0x4aa   : > { %2429 = vst.msk [vmem:[#allocation3 + $0x18] sm:$0xf] %vm2425_vm9, %v2408_v0  ;;  %v4536_v41 = vadd.f32 %v11425_v60, %v4535_v1 }
 0x4ab   : > { %4604 = vrot.lane.b32.xlu0 %v4585_v52, %s8760_s28  ;;  %v4541_v52 = vand.u32 2147483647, %v11368_v28  ;;  %v4544_v28 = vor.u32 1.1754944e-38, %v4543_v9  ;;  %v5035_v38 = vpack.c.bf16 %v5027_v49, %v5027_v49 }
 0x4ac   : > { %v1767_v54 = vpop.xlane.xlu0 %1766  ;;  %v4540_v62 = vsel %vm11461_vm11, %v11425_v60, %v4536_v41  ;;  %vm2326_vm11 = vweird.f32 %v13082_v63 }
 0x4ad   : > { %8616 = vrcp.f32 %v1767_v54  ;;  %v1913_v37 = vand.u32 2147483648, %v1767_v54  ;;  %v1911_v47 = vand.u32 2147483647, %v1767_v54  ;;  %vm1907_vm12 = vweird.f32 %v1767_v54 }
 0x4ae   : > { %8618 = vrcp.f32 %v13081_v59  ;;  %vm4542_vm0 = vcmp.eq.f32.partialorder %v4541_v52, 8.507059e+37 }
 0x4af   : > { %v2406_v17 = vpop.permute.xlu1 %2405  ;;  %5050 = vrot.lane.b32.xlu2 %v5033_v58, %s8758_s16  ;;  %8620 = vrcp.f32 %v13082_v63  ;;  %v1914_v25 = vor.u32 1.1754944e-38, %v1913_v37  ;;  %vm1912_vm14 = vcmp.eq.f32.partialorder %v1911_v47, 8.507059e+37  ;;  %v4545_v16 = vsel %vm4542_vm0, %v4544_v28, %v4540_v62 }
 0x4b0   : > { %2428 = vst.msk [vmem:[#allocation3 + $0x10] sm:$0xf] %vm2425_vm9, %v2406_v17  ;;  %v2330_v62 = vand.u32 2147483647, %v13082_v63 }
 0x4b2   : > { %vm2331_vm0 = vcmp.eq.f32.partialorder %v2330_v62, 8.507059e+37 }
 0x4b3   : > { %v8617_v19 = vpop.eup %8616  ;;  %4152 = vrot.lane.b32.xlu0 %v4134_v42, %s8759_s1  ;;  %v13086_v42 = vld [vmem:[#allocation18_spill] sm:$0xff] }
 0x4b4   : > { %v1903_v18 = vmul.f32 %v8617_v19, %v1767_v54  ;;  %v3518_v40 = vpop.xlane.xlu0 %3517  ;;  %v11453_v6 = vpop.eup %8618  ;;  %vm1908_vm7 = vweird.f32 %v8617_v19  ;;  %v1774_v39 = vsel %vm1704_vm1, %v13086_v42, 0.0 }
 0x4b5   : > { %8622 = vrcp.f32 %v3518_v40  ;;  %v11459_v35 = vpop.eup %8620  ;;  %v2815_v26 = vmul.f32 %v11453_v6, %v13081_v59  ;;  %vm1909_vm13 = vmor %vm1907_vm12, %vm1908_vm7  ;;  %v3675_v50 = vand.u32 2147483648, %v3518_v40  ;;  %v3673_v60 = vand.u32 2147483647, %v3518_v40 }
 0x4b6   : > { %v1904_v21 = vsub.f32 1.0, %v1903_v18  ;;  %v2322_v58 = vmul.f32 %v11459_v35, %v13082_v63  ;;  %8624 = vrcp.f32 %v11129_v34  ;;  %vm3669_vm3 = vweird.f32 %v3518_v40 }
 0x4b7   : > { %4156 = vrot.lane.b32.xlu2 %v4136_v11, %s8759_s1  ;;  %v2816_v56 = vsub.f32 1.0, %v2815_v26  ;;  %v4579_v11 = vmul.f32 %v4545_v16, %v4454_v57  ;;  %8626 = vrcp.f32 %v11008_v31  ;;  %v3676_v53 = vor.u32 1.1754944e-38, %v3675_v50 }
 0x4b8   : > { %v1905_v55 = vmul.f32 %v8617_v19, %v1904_v21  ;;  %v2323_v18 = vsub.f32 1.0, %v2322_v58  ;;  %vm3674_vm5 = vcmp.eq.f32.partialorder %v3673_v60, 8.507059e+37  ;;  %vm2327_vm7 = vweird.f32 %v11459_v35  ;;  %v13093_v60 = vld [vmem:[#allocation32_spill] sm:$0xff] }
 0x4b9   : > { %v2817_v48 = vmul.f32 %v11453_v6, %v2816_v56  ;;  %v2332_v26 = vand.u32 2147483648, %v13082_v63  ;;  %vm2820_vm8 = vweird.f32 %v11453_v6  ;;  %vm11500_vm12 = vmor %vm2326_vm11, %vm2327_vm7  ;;  %v2823_v58 = vand.u32 2147483647, %v13081_v59  ;;  %v13094_v56 = vld [vmem:[#allocation27_spill] sm:$0xff] }
 0x4ba   : > { %v1906_v46 = vadd.f32 %v8617_v19, %v1905_v55  ;;  %v2324_v55 = vmul.f32 %v11459_v35, %v2323_v18  ;;  %8628 = vrcp.f32 %v11167_v30  ;;  %v4923_v57 = vand.u32 2147483648, %v11129_v34 }
 0x4bb   : > { %v8623_v44 = vpop.eup %8622  ;;  %v2333_v63 = vor.u32 1.1754944e-38, %v2332_v26  ;;  %vm4565_vm11 = vweird.f32 %v11008_v31 }
 0x4bc   : > { %v3665_v10 = vmul.f32 %v8623_v44, %v3518_v40  ;;  %v1910_v27 = vsel %vm1909_vm13, %v8617_v19, %v1906_v46  ;;  %vm3670_vm2 = vweird.f32 %v8623_v44  ;;  %v11479_v37 = vpop.eup %8624  ;;  %v4587_v40 = vpack.c.bf16 %v4579_v11, %v4579_v11 }
 0x4bd   : > { %v1915_v54 = vsel %vm1912_vm14, %v1914_v25, %v1910_v27  ;;  %vm3671_vm4 = vmor %vm3669_vm3, %vm3670_vm2  ;;  %v4913_v9 = vmul.f32 %v11479_v37, %v11129_v34  ;;  %v11489_v49 = vpop.eup %8626  ;;  %v2818_v25 = vadd.f32 %v11453_v6, %v2817_v48  ;;  %vm2819_vm13 = vweird.f32 %v13081_v59 }
 0x4be   : > { %v3666_v17 = vsub.f32 1.0, %v3665_v10  ;;  %v1962_v33 = vmul.f32 %v1915_v54, %v13085_v22  ;;  %v4561_v28 = vmul.f32 %v11489_v49, %v11008_v31  ;;  %vm11508_vm14 = vmor %vm2819_vm13, %vm2820_vm8  ;;  %v13091_v22 = vld [vmem:[#allocation31_spill] sm:$0xff]  ;;  %vm2824_vm2 = vcmp.eq.f32.partialorder %v2823_v58, 8.507059e+37 }
 0x4bf   : > { %5054 = vrot.lane.b32.xlu2 %v5035_v38, %s8758_s16  ;;  %v4914_v10 = vsub.f32 1.0, %v4913_v9  ;;  %v2822_v38 = vsel %vm11508_vm14, %v11453_v6, %v2818_v25  ;;  %vm4918_vm3 = vweird.f32 %v11479_v37  ;;  %vm4566_vm7 = vweird.f32 %v11489_v49 }
 0x4c0   : > { %v3667_v1 = vmul.f32 %v8623_v44, %v3666_v17  ;;  %v1970_v19 = vpack.c.bf16 %v1962_v33, %v1962_v33  ;;  %v2391_v33 = vpack.c.bf16 %v13091_v22, %v13091_v22  ;;  %v4562_v16 = vsub.f32 1.0, %v4561_v28 }
 0x4c1   : > { %v4569_v25 = vand.u32 2147483647, %v11008_v31 }
 0x4c2   : > { %1775 = vadd.xlane.f32.xlu1 %v1774_v39  ;;  %v3668_v21 = vadd.f32 %v8623_v44, %v3667_v1  ;;  %1979 = vst.msk [vmem:[#allocation3 + $0x20] sm:$0xf] %vm1974_vm6, %v1970_v19  ;;  %v13092_v39 = vld [vmem:[#allocation23_spill] sm:$0xff]  ;;  %v4563_v11 = vmul.f32 %v11489_v49, %v4562_v16 }
 0x4c3   : > { %8630 = vrcp.f32 %v13092_v39  ;;  %vm4570_vm13 = vcmp.eq.f32.partialorder %v4569_v25, 8.507059e+37 }
 0x4c4   : > { %v3672_v41 = vsel %vm3671_vm4, %v8623_v44, %v3668_v21  ;;  %v2325_v44 = vadd.f32 %v11459_v35, %v2324_v55  ;;  %vm4917_vm4 = vweird.f32 %v11129_v34  ;;  %8632 = vrcp.f32 %v10892_v15 }
 0x4c5   : > { %v3677_v47 = vsel %vm3674_vm5, %v3676_v53, %v3672_v41  ;;  %v4921_v53 = vand.u32 2147483647, %v11129_v34  ;;  %v11534_v41 = vpop.eup %8628  ;;  %vm11536_vm5 = vmor %vm4917_vm4, %vm4918_vm3  ;;  %v4564_v34 = vadd.f32 %v11489_v49, %v4563_v11  ;;  %8634 = vrcp.f32 %v10685_v13 }
 0x4c6   : > { %v3711_v0 = vmul.f32 %v3677_v47, %v10842_v24  ;;  %v2825_v24 = vand.u32 2147483648, %v13081_v59  ;;  %v2329_v17 = vsel %vm11500_vm12, %v11459_v35, %v2325_v44  ;;  %v4915_v59 = vmul.f32 %v11479_v37, %v4914_v10  ;;  %v3310_v35 = vpop.permute.xlu2 %3309  ;;  %vm4567_vm12 = vmor %vm4565_vm11, %vm4566_vm7  ;;  %v13097_v10 = vld [vmem:[#allocation17_spill] sm:$0xff] }
 0x4c7   : > { %v2857_v52 = vpop.permute.xlu0 %2856  ;;  %4608 = vrot.lane.b32.xlu2 %v4587_v40, %s8760_s28  ;;  %v2334_v6 = vsel %vm2331_vm0, %v2333_v63, %v2329_v17  ;;  %v11546_v40 = vpop.f32.mrf.mxu1  ;;  %vm4922_vm8 = vcmp.eq.f32.partialorder %v4921_v53, 8.507059e+37  ;;  %v4568_v62 = vsel %vm4567_vm12, %v11489_v49, %v4564_v34  ;;  %8636 = vrcp.f32 %v11385_v23 }
 0x4c8   : > { %2879 = vst.msk [vmem:[#allocation3 + $0x10] sm:$0xf] %vm2876_vm10, %v2857_v52  ;;  %v3719_v46 = vpack.c.bf16 %v3711_v0, %v3711_v0  ;;  %v2826_v50 = vor.u32 1.1754944e-38, %v2825_v24  ;;  %v4916_v18 = vadd.f32 %v11479_v37, %v4915_v59  ;;  %v2381_v21 = vmul.f32 %v2334_v6, %v13094_v56 }
 0x4c9   : > { %v11540_v47 = vpop.eup %8630  ;;  %v4924_v0 = vor.u32 1.1754944e-38, %v4923_v57  ;;  %v1771_v24 = vsel %vm1704_vm1, %v13097_v10, 0.0  ;;  %vm4946_vm14 = vweird.f32 %v11534_v41  ;;  %v4949_v56 = vand.u32 2147483647, %v11167_v30 }
 0x4ca   : > { %3727 = vst.msk [vmem:[#allocation3 + $0x2c] sm:$0xf] %vm1974_vm6, %v3719_v46  ;;  %v2827_v1 = vsel %vm2824_vm2, %v2826_v50, %v2822_v38  ;;  %v4920_v9 = vsel %vm11536_vm5, %v11479_v37, %v4916_v18  ;;  %v2389_v52 = vpack.c.bf16 %v2381_v21, %v2381_v21  ;;  %v4941_v46 = vmul.f32 %v11534_v41, %v11167_v30  ;;  %v11564_v28 = vpop.eup %8632 }
 0x4cb   : > { %v2835_v19 = vmul.f32 %v2827_v1, %v13093_v60  ;;  %v2773_v44 = vmul.f32 %v11540_v47, %v13092_v39  ;;  %v4571_v37 = vand.u32 2147483648, %v11008_v31  ;;  %v4925_v26 = vsel %vm4922_vm8, %v4924_v0, %v4920_v9  ;;  %v11574_v59 = vpop.eup %8634 }
 0x4cc   : > { %v4942_v27 = vsub.f32 1.0, %v4941_v46  ;;  %v5024_v58 = vmul.f32 %v4925_v26, %v11361_v8  ;;  %v4138_v31 = vpack.c.bf16 %v11133_v4, %v11133_v4  ;;  %v4083_v38 = vmul.f32 %v11564_v28, %v10892_v15  ;;  %v13098_v4 = vld [vmem:[#allocation22_spill] sm:$0xff] }
 0x4cd   : > { %v2843_v48 = vpack.c.bf16 %v2835_v19, %v2835_v19  ;;  %v2774_v54 = vsub.f32 1.0, %v2773_v44  ;;  %v4572_v17 = vor.u32 1.1754944e-38, %v4571_v37  ;;  %v3522_v16 = vsel %vm1704_vm1, %v13098_v4, 0.0 }
 0x4ce   : > { %v5032_v22 = vpack.c.bf16 %v5024_v58, %v5024_v58  ;;  %v4943_v49 = vmul.f32 %v11534_v41, %v4942_v27  ;;  %v4084_v6 = vsub.f32 1.0, %v4083_v38  ;;  %vm2778_vm0 = vweird.f32 %v11540_v47 }
 0x4cf   : > { %v2859_v42 = vpop.permute.xlu0 %2858  ;;  %2413 = vrot.lane.b32.xlu2 %v2391_v33, %s8759_s1  ;;  %v4573_v63 = vsel %vm4570_vm13, %v4572_v17, %v4568_v62  ;;  %v2775_v8 = vmul.f32 %v11540_v47, %v2774_v54  ;;  %v4459_v33 = vpop.f32.mrf.mxu1  ;;  %v3238_v19 = vmul.f32 %v11574_v59, %v10685_v13  ;;  %v4951_v18 = vand.u32 2147483648, %v11167_v30 }
 0x4d0   : > { %2880 = vst.msk [vmem:[#allocation3 + $0x18] sm:$0xf] %vm2876_vm10, %v2859_v42  ;;  %v4581_v50 = vmul.f32 %v4573_v63, %v4459_v33  ;;  %v11577_v42 = vpop.eup %8636  ;;  %v4944_v1 = vadd.f32 %v11534_v41, %v4943_v49  ;;  %vm4945_vm1 = vweird.f32 %v11167_v30  ;;  %vm2777_vm2 = vweird.f32 %v13092_v39 }
 0x4d1   : > { %3331 = vst.msk [vmem:[#allocation3 + $0x18] sm:$0xf] %vm3327_vm15, %v3310_v35  ;;  %v13099_v35 = vld [vmem:[#allocation30_spill] sm:$0xff]  ;;  %v2776_v60 = vadd.f32 %v11540_v47, %v2775_v8  ;;  %v4969_v21 = vmul.f32 %v11577_v42, %v11385_v23  ;;  %v2783_v11 = vand.u32 2147483648, %v13092_v39  ;;  %vm11595_vm3 = vmor %vm4945_vm1, %vm4946_vm14  ;;  %v3291_v9 = vpack.c.bf16 %v10694_v14, %v10694_v14 }
 0x4d2   : > { %8638 = vrcp.f32 %v13099_v35  ;;  %v4589_v57 = vpack.c.bf16 %v4581_v50, %v4581_v50  ;;  %v4085_v30 = vmul.f32 %v11564_v28, %v4084_v6  ;;  %v4948_v0 = vsel %vm11595_vm3, %v11534_v41, %v4944_v1  ;;  %vm11611_vm4 = vmor %vm2777_vm2, %vm2778_vm0 }
 0x4d3   : > { %v3239_v34 = vsub.f32 1.0, %v3238_v19  ;;  %v4952_v46 = vor.u32 1.1754944e-38, %v4951_v18  ;;  %v2780_v14 = vsel %vm11611_vm4, %v11540_v47, %v2776_v60  ;;  %vm4950_vm5 = vcmp.eq.f32.partialorder %v4949_v56, 8.507059e+37 }
 0x4d4   : > { %v4970_v41 = vsub.f32 1.0, %v4969_v21  ;;  %v2784_v37 = vor.u32 1.1754944e-38, %v2783_v11  ;;  %v4086_v25 = vadd.f32 %v11564_v28, %v4085_v30  ;;  %vm4088_vm8 = vweird.f32 %v11564_v28  ;;  %v4902_v30 = vpop.f32.mrf.mxu3 }
 0x4d5   : > { %v4953_v26 = vsel %vm4950_vm5, %v4952_v46, %v4948_v0  ;;  %v3240_v27 = vmul.f32 %v11574_v59, %v3239_v34  ;;  %v4093_v47 = vand.u32 2147483648, %v10892_v15  ;;  %vm4087_vm11 = vweird.f32 %v10892_v15 }
 0x4d6   : > { %v5026_v10 = vmul.f32 %v4953_v26, %v11437_v29  ;;  %v4091_v58 = vand.u32 2147483647, %v10892_v15  ;;  %v4971_v54 = vmul.f32 %v11577_v42, %v4970_v41  ;;  %vm11633_vm12 = vmor %vm4087_vm11, %vm4088_vm8  ;;  %vm3243_vm13 = vweird.f32 %v11574_v59 }
 0x4d7   : > { %2866 = vrot.lane.b32.xlu2 %v2843_v48, %s8760_s28  ;;  %v2781_v48 = vand.u32 2147483647, %v13092_v39  ;;  %v11615_v39 = vpop.permute.xlu2 %4598  ;;  %v4090_v63 = vsel %vm11633_vm12, %v11564_v28, %v4086_v25  ;;  %v3241_v49 = vadd.f32 %v11574_v59, %v3240_v27  ;;  %v4094_v8 = vor.u32 1.1754944e-38, %v4093_v47 }
 0x4d8   : > { %v11617_v44 = vpop.eup %8638  ;;  %v5034_v38 = vpack.c.bf16 %v5026_v10, %v5026_v10  ;;  %v3248_v33 = vand.u32 2147483648, %v10685_v13  ;;  %vm4092_vm14 = vcmp.eq.f32.partialorder %v4091_v58, 8.507059e+37  ;;  %v4972_v50 = vadd.f32 %v11577_v42, %v4971_v54  ;;  %v8257_v47 = vld [vmem:[#allocation3 + $0x14] sm:$0xf0] }
 0x4d9   : > { %vm2782_vm7 = vcmp.eq.f32.partialorder %v2781_v48, 8.507059e+37  ;;  %v2364_v62 = vmul.f32 %v11617_v44, %v13099_v35  ;;  %vm4974_vm0 = vweird.f32 %v11577_v42  ;;  %vm3242_vm1 = vweird.f32 %v10685_v13 }
 0x4da   : > { %v11599_v55 = vpop.xlane.xlu1 %4827  ;;  %v3246_v28 = vand.u32 2147483647, %v10685_v13  ;;  %v4095_v4 = vsel %vm4092_vm14, %v4094_v8, %v4090_v63  ;;  %vm3244_vm2 = vmor %vm3242_vm1, %vm3243_vm13  ;;  %vm4973_vm3 = vweird.f32 %v11385_v23  ;;  %v4977_v60 = vand.u32 2147483647, %v11385_v23  ;;  %v13107_v63 = vld [vmem:[#allocation33_spill] sm:$0xff] }
 0x4db   : > { %2409 = vrot.lane.b32.xlu1 %v2389_v52, %s8759_s1  ;;  %v4129_v1 = vmul.f32 %v4095_v4, %v11081_v43  ;;  %8640 = vrcp.f32 %v11599_v55  ;;  %v3245_v19 = vsel %vm3244_vm2, %v11574_v59, %v3241_v49  ;;  %vm4975_vm4 = vmor %vm4973_vm3, %vm4974_vm0  ;;  %v3249_v13 = vor.u32 1.1754944e-38, %v3248_v33 }
 0x4dc   : > { %vm3247_vm5 = vcmp.eq.f32.partialorder %v3246_v28, 8.507059e+37  ;;  %8642 = vrcp.f32 %v11131_v32  ;;  %vm2369_vm8 = vweird.f32 %v11617_v44  ;;  %vm2368_vm11 = vweird.f32 %v13099_v35 }
 0x4dd   : > { %1772 = vadd.xlane.f32.xlu0 %v1771_v24  ;;  %v2785_v24 = vsel %vm2782_vm7, %v2784_v37, %v2780_v14  ;;  %v3250_v43 = vsel %vm3247_vm5, %v3249_v13, %v3245_v19  ;;  %v4137_v11 = vpack.c.bf16 %v4129_v1, %v4129_v1  ;;  %vm4978_vm7 = vcmp.eq.f32.partialorder %v4977_v60, 8.507059e+37  ;;  %vm2370_vm12 = vmor %vm2368_vm11, %vm2369_vm8 }
 0x4de   : > { %8644 = vrcp.f32 %v10873_v5  ;;  %v2372_v52 = vand.u32 2147483647, %v13099_v35  ;;  %v4586_v60 = vpack.c.bf16 %v11233_v2, %v11233_v2  ;;  %vm4987_vm3 = vweird.f32 %v11599_v55 }
 0x4df   : > { %4160 = vrot.lane.b32.xlu2 %v4138_v31, %s8759_s1  ;;  %v13106_v31 = vld [vmem:[#allocation24_spill] sm:$0xff]  ;;  %v11652_v6 = vpop.permute.xlu2 %4602  ;;  %vm4115_vm8 = vweird.f32 %v11131_v32 }
 0x4e0   : > { %v2832_v29 = vmul.f32 %v2785_v24, %v13106_v31  ;;  %vm2373_vm13 = vcmp.eq.f32.partialorder %v2372_v52, 8.507059e+37 }
 0x4e1   : > { %v11664_v53 = vpop.eup %8640 }
 0x4e2   : > { %v11643_v15 = vpop.xlane.xlu1 %4830  ;;  %v2840_v56 = vpack.c.bf16 %v2832_v29, %v2832_v29  ;;  %v11677_v46 = vpop.eup %8642  ;;  %v4983_v14 = vmul.f32 %v11664_v53, %v11599_v55  ;;  %vm4988_vm0 = vweird.f32 %v11664_v53 }
 0x4e3   : > { %5048 = vrot.lane.b32.xlu1 %v5032_v22, %s8758_s16  ;;  %v2365_v22 = vsub.f32 1.0, %v2364_v62  ;;  %vm4116_vm5 = vweird.f32 %v11677_v46 }
 0x4e4   : > { %v11683_v41 = vpop.eup %8644  ;;  %v4984_v24 = vsub.f32 1.0, %v4983_v14  ;;  %vm11744_vm11 = vmor %vm4115_vm8, %vm4116_vm5 }
 0x4e5   : > { %3523 = vadd.xlane.f32.xlu0 %v3522_v16  ;;  %v4979_v16 = vand.u32 2147483648, %v11385_v23  ;;  %v2366_v18 = vmul.f32 %v11617_v44, %v2365_v22 }
 0x4e6   : > { %v4985_v49 = vmul.f32 %v11664_v53, %v4984_v24 }
 0x4e7   : > { %4612 = vrot.lane.b32.xlu2 %v4589_v57, %s8760_s28  ;;  %v4976_v57 = vsel %vm4975_vm4, %v11577_v42, %v4972_v50  ;;  %v4980_v21 = vor.u32 1.1754944e-38, %v4979_v16  ;;  %v2367_v48 = vadd.f32 %v11617_v44, %v2366_v18  ;;  %v2374_v42 = vand.u32 2147483648, %v13099_v35 }
 0x4e8   : > { %v4111_v35 = vmul.f32 %v11677_v46, %v11131_v32  ;;  %v4986_v13 = vadd.f32 %v11664_v53, %v4985_v49  ;;  %v5005_v49 = vand.u32 2147483647, %v11643_v15 }
 0x4e9   : > { %v4981_v59 = vsel %vm4978_vm7, %v4980_v21, %v4976_v57  ;;  %v2375_v37 = vor.u32 1.1754944e-38, %v2374_v42  ;;  %vm11725_vm7 = vmor %vm4987_vm3, %vm4988_vm0  ;;  %vm5001_vm3 = vweird.f32 %v11643_v15 }
 0x4ea   : > { %v5028_v34 = vmul.f32 %v4981_v59, %v4902_v30  ;;  %v4112_v22 = vsub.f32 1.0, %v4111_v35  ;;  %v4991_v59 = vand.u32 2147483647, %v11599_v55  ;;  %v4990_v14 = vsel %vm11725_vm7, %v11664_v53, %v4986_v13 }
 0x4eb   : > { %3311 = vrot.lane.b32.xlu1 %v3291_v9, %s8758_s16  ;;  %v3284_v9 = vmul.f32 %v3250_v43, %v10751_v45  ;;  %v2371_v45 = vsel %vm2370_vm12, %v11617_v44, %v2367_v48  ;;  %v3266_v44 = vmul.f32 %v11683_v41, %v10873_v5  ;;  %v2842_v53 = vpack.c.bf16 %v10710_v12, %v10710_v12 }
 0x4ec   : > { %v5036_v25 = vpack.c.bf16 %v5028_v34, %v5028_v34  ;;  %v2376_v10 = vsel %vm2373_vm13, %v2375_v37, %v2371_v45  ;;  %v4113_v18 = vmul.f32 %v11677_v46, %v4112_v22  ;;  %v4119_v37 = vand.u32 2147483647, %v11131_v32 }
 0x4ed   : > { %v3292_v26 = vpack.c.bf16 %v3284_v9, %v3284_v9  ;;  %v3267_v50 = vsub.f32 1.0, %v3266_v44  ;;  %vm4992_vm12 = vcmp.eq.f32.partialorder %v4991_v59, 8.507059e+37  ;;  %vm3270_vm13 = vweird.f32 %v10873_v5 }
 0x4ee   : > { %v4114_v9 = vadd.f32 %v11677_v46, %v4113_v18  ;;  %vm4120_vm0 = vcmp.eq.f32.partialorder %v4119_v37, 8.507059e+37  ;;  %vm5006_vm7 = vcmp.eq.f32.partialorder %v5005_v49, 8.507059e+37  ;;  %v7794_v37 = vld [vmem:[%s12964_s5 + $0xf8] sm:$0xf0]  ;;  %v8286_v49 = vld [vmem:[%s12964_s5 + $0xc4] sm:$0xf] }
 0x4ef   : > { %v3268_v43 = vmul.f32 %v11683_v41, %v3267_v50 }
 0x4f3   : > { %5052 = vrot.lane.b32.xlu1 %v5034_v38, %s8758_s16  ;;  %v2384_v38 = vmul.f32 %v2376_v10, %v13107_v63  ;;  %v3293_v10 = vpack.c.bf16 %v10794_v7, %v10794_v7  ;;  %v3276_v7 = vand.u32 2147483648, %v10873_v5 }
 0x4f5   : > { %v2392_v19 = vpack.c.bf16 %v2384_v38, %v2384_v38  ;;  %v7768_v38 = vld [vmem:[%s12964_s5 + $0xc0] sm:$0xf] }
 0x4f9   : > { %2860 = vrot.lane.b32.xlu0 %v2840_v56, %s8760_s28 }
 0x4fa   : > { %v3308_v23 = vpop.permute.xlu1 %3307  ;;  %v11672_v0 = vpop.xlane.xlu2 %3520 }
 0x4fb   : > { %3330 = vst.msk [vmem:[#allocation3 + $0x10] sm:$0xf] %vm3327_vm15, %v3308_v23  ;;  %4158 = vrot.lane.b32.xlu1 %v4137_v11, %s8759_s1  ;;  %8646 = vrcp.f32 %v11672_v0  ;;  %v11699_v8 = vpop.xlane.xlu0 %4833  ;;  %v3689_v4 = vand.u32 2147483648, %v11672_v0  ;;  %v3687_v1 = vand.u32 2147483647, %v11672_v0  ;;  %vm3683_vm1 = vweird.f32 %v11672_v0 }
 0x4fc   : > { %8648 = vrcp.f32 %v11643_v15  ;;  %v4993_v11 = vand.u32 2147483648, %v11599_v55  ;;  %v4121_v55 = vand.u32 2147483648, %v11131_v32  ;;  %v4118_v32 = vsel %vm11744_vm11, %v11677_v46, %v4114_v9 }
 0x4fd   : > { %8650 = vrcp.f32 %v11401_v51  ;;  %v3690_v23 = vor.u32 1.1754944e-38, %v3689_v4  ;;  %vm3688_vm4 = vcmp.eq.f32.partialorder %v3687_v1, 8.507059e+37  ;;  %v3274_v46 = vand.u32 2147483647, %v10873_v5 }
 0x4fe   : > { %8652 = vrcp.f32 %v11699_v8  ;;  %v3277_v4 = vor.u32 1.1754944e-38, %v3276_v7  ;;  %vm4551_vm11 = vweird.f32 %v11401_v51  ;;  %v8288_v7 = vld [vmem:[%s12964_s5 + $0xd4] sm:$0xf] }
 0x4ff   : > { %vm3275_vm5 = vcmp.eq.f32.partialorder %v3274_v46, 8.507059e+37 }
 0x501   : > { %3313 = vrot.lane.b32.xlu0 %v3292_v26, %s8758_s16  ;;  %v8647_v58 = vpop.eup %8646  ;;  %v4994_v26 = vor.u32 1.1754944e-38, %v4993_v11 }
 0x502   : > { %v4151_v62 = vpop.permute.xlu1 %4150  ;;  %v7648_v27 = vld [vmem:[#allocation3 + $0x10] sm:$0xf]  ;;  %v11692_v17 = vpop.eup %8648  ;;  %v3679_v31 = vmul.f32 %v8647_v58, %v11672_v0  ;;  %vm3684_vm14 = vweird.f32 %v8647_v58 }
 0x503   : > { %4173 = vst.msk [vmem:[#allocation3 + $0xc] sm:$0xf] %vm2425_vm9, %v4151_v62  ;;  %5056 = vrot.lane.b32.xlu1 %v5036_v25, %s8758_s16  ;;  %v7649_v54 = vor.u32 %v8257_v47, %v7648_v27  ;;  %v2412_v29 = vpop.permute.xlu2 %2411  ;;  %v4997_v28 = vmul.f32 %v11692_v17, %v11643_v15  ;;  %v11712_v21 = vpop.eup %8650  ;;  %vm3685_vm2 = vmor %vm3683_vm1, %vm3684_vm14  ;;  %v4995_v24 = vsel %vm4992_vm12, %v4994_v26, %v4990_v14  ;;  %vm3271_vm14 = vweird.f32 %v11683_v41  ;;  %v7784_v25 = vld [vmem:[%s12964_s5 + $0xe0] sm:$0xf]  ;;  %v8279_v26 = vld [vmem:[%s12964_s5 + $0x84] sm:$0xf0] }
 0x504   : > { %2431 = vst.msk [vmem:[#allocation3 + $0x28] sm:$0xf] %vm2425_vm9, %v2412_v29  ;;  %v3680_v33 = vsub.f32 1.0, %v3679_v31  ;;  %v4547_v52 = vmul.f32 %v11712_v21, %v11401_v51  ;;  %v3269_v62 = vadd.f32 %v11683_v41, %v3268_v43  ;;  %v4122_v27 = vor.u32 1.1754944e-38, %v4121_v55  ;;  %v4904_v47 = vpop.f32.mrf.mxu3  ;;  %v11760_v12 = vpop.eup %8652  ;;  %v8293_v55 = vld [vmem:[%s12964_s5 + $0xf4] sm:$0xf0] }
 0x505   : > { %5339 = vmatmul.bf16.gmra.mxu0 %v7649_v54  ;;  %5397 = vmatmul.bf16.gmra.mxu2 %v7649_v54  ;;  %v4998_v2 = vsub.f32 1.0, %v4997_v28  ;;  %vm5002_vm1 = vweird.f32 %v11692_v17  ;;  %v5007_v31 = vand.u32 2147483648, %v11643_v15  ;;  %v5029_v63 = vmul.f32 %v4995_v24, %v4904_v47  ;;  %v8290_v24 = vld [vmem:[%s12964_s5 + $0xe4] sm:$0xf]  ;;  %v7776_v47 = vld [vmem:[%s12964_s5 + $0xd0] sm:$0xf] }
 0x506   : > { %v3681_v16 = vmul.f32 %v8647_v58, %v3680_v33  ;;  %v4123_v54 = vsel %vm4120_vm0, %v4122_v27, %v4118_v32  ;;  %v5011_v5 = vmul.f32 %v11760_v12, %v11699_v8  ;;  %vm4552_vm8 = vweird.f32 %v11712_v21 }
 0x507   : > { %v4999_v35 = vmul.f32 %v11692_v17, %v4998_v2  ;;  %v4131_v22 = vmul.f32 %v4123_v54, %v11298_v3  ;;  %v5037_v1 = vpack.c.bf16 %v5029_v63, %v5029_v63  ;;  %vm4553_vm12 = vmor %vm4551_vm11, %vm4552_vm8  ;;  %vm5015_vm0 = vweird.f32 %v11699_v8 }
 0x508   : > { %v3682_v57 = vadd.f32 %v8647_v58, %v3681_v16  ;;  %v5008_v16 = vor.u32 1.1754944e-38, %v5007_v31 }
 0x509   : > { %4606 = vrot.lane.b32.xlu0 %v4586_v60, %s8760_s28  ;;  %v5000_v44 = vadd.f32 %v11692_v17, %v4999_v35  ;;  %v4139_v60 = vpack.c.bf16 %v4131_v22, %v4131_v22  ;;  %v8287_v22 = vld [vmem:[%s12964_s5 + $0xc4] sm:$0xf0] }
 0x50a   : > { %v4155_v56 = vpop.permute.xlu1 %4154  ;;  %v3686_v42 = vsel %vm3685_vm2, %v8647_v58, %v3682_v57  ;;  %v4548_v58 = vsub.f32 1.0, %v4547_v52  ;;  %vm11772_vm2 = vmor %vm3270_vm13, %vm3271_vm14  ;;  %v4557_v57 = vand.u32 2147483648, %v11401_v51  ;;  %vm5016_vm14 = vweird.f32 %v11760_v12  ;;  %v8292_v52 = vld [vmem:[%s12964_s5 + $0xf4] sm:$0xf] }
 0x50b   : > { %4175 = vst.msk [vmem:[#allocation3 + $0x1c] sm:$0xf] %vm2425_vm9, %v4155_v56  ;;  %2415 = vrot.lane.b32.xlu1 %v2392_v19, %s8759_s1  ;;  %v2863_v48 = vpop.permute.xlu2 %2862  ;;  %v3691_v0 = vsel %vm3688_vm4, %v3690_v23, %v3686_v42  ;;  %vm11781_vm4 = vmor %vm5001_vm3, %vm5002_vm1  ;;  %v3273_v3 = vsel %vm11772_vm2, %v11683_v41, %v3269_v62  ;;  %v5012_v41 = vsub.f32 1.0, %v5011_v5  ;;  %v7797_v35 = vor.u32 %v8292_v52, %v7794_v37  ;;  %v7786_v62 = vld [vmem:[%s12964_s5 + $0xe8] sm:$0xf0] }
 0x50c   : > { %2882 = vst.msk [vmem:[#allocation3 + $0x28] sm:$0xf] %vm2876_vm10, %v2863_v48  ;;  %v3712_v45 = vmul.f32 %v3691_v0, %v10862_v61  ;;  %v4549_v33 = vmul.f32 %v11712_v21, %v4548_v58  ;;  %v5004_v15 = vsel %vm11781_vm4, %v11692_v17, %v5000_v44  ;;  %v3278_v19 = vsel %vm3275_vm5, %v3277_v4, %v3273_v3  ;;  %v4907_v17 = vpop.f32.mrf.mxu3  ;;  %vm11828_vm1 = vmor %vm5015_vm0, %vm5016_vm14  ;;  %v8289_v58 = vld [vmem:[%s12964_s5 + $0xd4] sm:$0xf0]  ;;  %v7778_v44 = vld [vmem:[%s12964_s5 + $0xd8] sm:$0xf0] }
 0x50d   : > { %v4601_v34 = vpop.permute.xlu0 %4600  ;;  %v5009_v13 = vsel %vm5006_vm7, %v5008_v16, %v5004_v15  ;;  %v3286_v43 = vmul.f32 %v3278_v19, %v10834_v20  ;;  %v5013_v2 = vmul.f32 %v11760_v12, %v5012_v41  ;;  %v4558_v48 = vor.u32 1.1754944e-38, %v4557_v57  ;;  %5413 = vmatpush.bf16.msrb.mxu3 %v7797_v35  ;;  %v8285_v3 = vld [vmem:[%s12964_s5 + $0xb4] sm:$0xf0]  ;;  %v8284_v15 = vld [vmem:[%s12964_s5 + $0xb4] sm:$0xf] }
 0x50e   : > { %4623 = vst.msk [vmem:[#allocation3 + $0xc] sm:$0xf] %vm2876_vm10, %v4601_v34  ;;  %v3720_v61 = vpack.c.bf16 %v3712_v45, %v3712_v45  ;;  %v4550_v18 = vadd.f32 %v11712_v21, %v4549_v33  ;;  %v5030_v11 = vmul.f32 %v5009_v13, %v4907_v17  ;;  %v5019_v20 = vand.u32 2147483647, %v11699_v8  ;;  %v7770_v33 = vld [vmem:[%s12964_s5 + $0xc8] sm:$0xf0] }
 0x50f   : > { %v3294_v42 = vpack.c.bf16 %v3286_v43, %v3286_v43  ;;  %v5021_v0 = vand.u32 2147483648, %v11699_v8  ;;  %v7789_v27 = vor.u32 %v8290_v24, %v7786_v62  ;;  %v7777_v54 = vor.u32 %v8289_v58, %v7776_v47  ;;  %v7762_v16 = vld [vmem:[%s12964_s5 + $0xb8] sm:$0xf0]  ;;  %v7736_v37 = vld [vmem:[%s12964_s5 + $0x80] sm:$0xf] }
 0x510   : > { %3728 = vst.msk [vmem:[#allocation3 + $0x34] sm:$0xf] %vm1974_vm6, %v3720_v61  ;;  %v4554_v59 = vsel %vm4553_vm12, %v11712_v21, %v4550_v18  ;;  %v5038_v9 = vpack.c.bf16 %v5030_v11, %v5030_v11  ;;  %v7792_v21 = vld [vmem:[%s12964_s5 + $0xf0] sm:$0xf]  ;;  %vm11839_vm2 = vcmp.eq.f32.partialorder %v5019_v20, 8.507059e+37  ;;  %v7769_v50 = vor.u32 %v8287_v22, %v7768_v38 }
 0x511   : > { %2864 = vrot.lane.b32.xlu0 %v2842_v53, %s8760_s28  ;;  %v7793_v45 = vor.u32 %v8293_v55, %v7792_v21  ;;  %v5022_v53 = vor.u32 1.1754944e-38, %v5021_v0  ;;  %5414 = vmatpush.bf16.msrb.mxu3 %v7789_v27  ;;  %v7773_v5 = vor.u32 %v8286_v49, %v7770_v33  ;;  %v7752_v11 = vld [vmem:[%s12964_s5 + $0xa0] sm:$0xf]  ;;  %v8280_v20 = vld [vmem:[%s12964_s5 + $0x94] sm:$0xf]  ;;  %v7737_v8 = vor.u32 %v8279_v26, %v7736_v37 }
 0x512   : > { %v7746_v0 = vld [vmem:[%s12964_s5 + $0x98] sm:$0xf0]  ;;  %v8278_v35 = vld [vmem:[%s12964_s5 + $0x84] sm:$0xf] }
 0x513   : > { %3315 = vrot.lane.b32.xlu1 %v3293_v10, %s8758_s16  ;;  %v5051_v29 = vpop.permute.xlu2 %5050  ;;  %5355 = vmatpush.bf16.msrb.mxu1 %v7793_v45 }
 0x514   : > { %5073 = vst.msk [vmem:[#allocation3 + $0xc] sm:$0xf] %vm3327_vm15, %v5051_v29  ;;  %v4909_v31 = vpop.f32.mrf.mxu3  ;;  %v7781_v29 = vor.u32 %v8288_v7, %v7778_v44 }
 0x515   : > { %v4149_v28 = vpop.permute.xlu0 %4148 }
 0x516   : > { %4172 = vst.msk [vmem:[#allocation3 + $0x4] sm:$0xf] %vm2425_vm9, %v4149_v28  ;;  %5415 = vmatpush.bf16.msrb.mxu3 %v7781_v29  ;;  %v7760_v28 = vld [vmem:[%s12964_s5 + $0xb0] sm:$0xf] }
 0x517   : > { %4622 = vst.msk [vmem:[#allocation3 + $0x4] sm:$0xf] %vm2876_vm10, %v11615_v39  ;;  %v4555_v39 = vand.u32 2147483647, %v11401_v51  ;;  %v5014_v51 = vadd.f32 %v11760_v12, %v5013_v2  ;;  %v8283_v2 = vld [vmem:[%s12964_s5 + $0xa4] sm:$0xf0] }
 0x519   : > { %5058 = vrot.lane.b32.xlu0 %v5037_v1, %s8758_s16  ;;  %vm4556_vm13 = vcmp.eq.f32.partialorder %v4555_v39, 8.507059e+37  ;;  %v5018_v10 = vsel %vm11828_vm1, %v11760_v12, %v5014_v51  ;;  %v7761_v1 = vor.u32 %v8285_v3, %v7760_v28  ;;  %v13121_v3 = vld [vmem:[#allocation21_spill] sm:$0xff] }
 0x51a   : > { %v4559_v30 = vsel %vm4556_vm13, %v4558_v48, %v4554_v59  ;;  %v5023_v46 = vsel %vm11839_vm2, %v5022_v53, %v5018_v10  ;;  %5416 = vmatpush.bf16.msrb.mxu3 %v7773_v5  ;;  %v7753_v59 = vor.u32 %v8283_v2, %v7752_v11  ;;  %v7754_v48 = vld [vmem:[%s12964_s5 + $0xa8] sm:$0xf0] }
 0x51b   : > { %4162 = vrot.lane.b32.xlu1 %v4139_v60, %s8759_s1  ;;  %v4157_v56 = vpop.permute.xlu2 %4156  ;;  %v4580_v14 = vmul.f32 %v4559_v30, %v11546_v40  ;;  %v8291_v40 = vld [vmem:[%s12964_s5 + $0xe4] sm:$0xf0]  ;;  %v5031_v63 = vmul.f32 %v5023_v46, %v4909_v31  ;;  %v7765_v60 = vor.u32 %v8284_v15, %v7762_v16  ;;  %v7738_v53 = vld [vmem:[%s12964_s5 + $0x88] sm:$0xf0] }
 0x51c   : > { %4176 = vst.msk [vmem:[#allocation3 + $0x24] sm:$0xf] %vm2425_vm9, %v4157_v56  ;;  %v7785_v32 = vor.u32 %v8291_v40, %v7784_v25  ;;  %v13120_v25 = vld [vmem:[#allocation19_spill] sm:$0xff]  ;;  %v7642_v29 = vld [vmem:[#allocation3 + $0x8] sm:$0xf0] }
 0x51d   : > { %v4605_v23 = vpop.permute.xlu0 %4604  ;;  %v4588_v12 = vpack.c.bf16 %v4580_v14, %v4580_v14  ;;  %v5039_v4 = vpack.c.bf16 %v5031_v63, %v5031_v63 }
 0x51e   : > { %4625 = vst.msk [vmem:[#allocation3 + $0x1c] sm:$0xf] %vm2876_vm10, %v4605_v23  ;;  %5356 = vmatpush.bf16.msrb.mxu1 %v7785_v32  ;;  %5417 = vmatpush.bf16.msrb.mxu3 %v7765_v60  ;;  %v8282_v23 = vld [vmem:[%s12964_s5 + $0xa4] sm:$0xf] }
 0x51f   : > { %v7757_v51 = vor.u32 %v8282_v23, %v7754_v48 }
 0x521   : > { %3317 = vrot.lane.b32.xlu0 %v3294_v42, %s8758_s16  ;;  %v7744_v42 = vld [vmem:[%s12964_s5 + $0x90] sm:$0xf] }
 0x522   : > { %5357 = vmatpush.bf16.msrb.mxu1 %v7777_v54  ;;  %5418 = vmatpush.bf16.msrb.mxu3 %v7757_v51 }
 0x523   : > { %5060 = vrot.lane.b32.xlu1 %v5038_v9, %s8758_s16  ;;  %v5055_v34 = vpop.permute.xlu2 %5054  ;;  %v8281_v9 = vld [vmem:[%s12964_s5 + $0x94] sm:$0xf0] }
 0x524   : > { %5075 = vst.msk [vmem:[#allocation3 + $0x1c] sm:$0xf] %vm3327_vm15, %v5055_v34  ;;  %v7745_v52 = vor.u32 %v8281_v9, %v7744_v42  ;;  %v7749_v34 = vor.u32 %v8280_v20, %v7746_v0 }
 0x525   : > { %v4153_v61 = vpop.permute.xlu0 %4152 }
 0x526   : > { %4174 = vst.msk [vmem:[#allocation3 + $0x14] sm:$0xf] %vm2425_vm9, %v4153_v61  ;;  %5358 = vmatpush.bf16.msrb.mxu1 %v7769_v50  ;;  %5419 = vmatpush.bf16.msrb.mxu3 %v7749_v34  ;;  %v7741_v61 = vor.u32 %v8278_v35, %v7738_v53 }
 0x527   : > { %4624 = vst.msk [vmem:[#allocation3 + $0x14] sm:$0xf] %vm2876_vm10, %v11652_v6 }
 0x529   : > { %4610 = vrot.lane.b32.xlu0 %v4588_v12, %s8760_s28 }
 0x52a   : > { %5359 = vmatpush.bf16.msrb.mxu1 %v7761_v1  ;;  %5420 = vmatpush.bf16.msrb.mxu3 %v7741_v61 }
 0x52b   : > { %v11870_v6 = vpop.permute.xlu2 %4608  ;;  %v7650_v23 = vld [vmem:[#allocation3 + $0x18] sm:$0xf0] }
 0x52e   : > { %5360 = vmatpush.bf16.msrb.mxu1 %v7753_v59 }
 0x531   : > { %5062 = vrot.lane.b32.xlu0 %v5039_v4, %s8758_s16  ;;  %s8358_s16 = sshll.u32 %s8865_s22, 7 }
 0x532   : > { %5361 = vmatpush.bf16.msrb.mxu1 %v7745_v52  ;;  %s6705_s28 = scalar_lea.hbm %s12974_s15, %s8358_s16 }
 0x533   : > { %v11897_v19 = vpop.permute.xlu2 %2413  ;;  %s6708_s22 = sshll.u32 %s6705_s28, 4  ;;  %s6709_s22 = int_to_ptr.hbm [resolvable:$true] %s6708_s22 }
 0x534   : > { %s8708_s29 = sshra.s32 %s6709_s22, 4  ;;  %s8709_s29 = int_to_ptr.hbm [resolvable:$true] %s8708_s29 }
 0x535   : > { %v1776_v18 = vpop.xlane.xlu1 %1775  ;;  %s8710_s1 = scalar_lea.hbm %s8709_s29, 128  ;;  %p8715_p0 = scmp.lt.s32.totalorder %s8709_s29, %s12974_s15 }
 0x536   : > { %8654 = vrcp.f32 %v1776_v18  ;;  %v1953_v39 = vand.u32 2147483647, %v1776_v18  ;;  %v1955_v56 = vand.u32 2147483648, %v1776_v18  ;;  %vm1949_vm4 = vweird.f32 %v1776_v18  ;;  %5362 = vmatpush.bf16.msrb.mxu1 %v7737_v8  ;;  %p8711_p11 = scmp.ne.s32.totalorder %s8709_s29, %s8710_s1  ;;  %p8716_p1 = scmp.lt.s32.totalorder %s8714_s25, %s8710_s1 }
 0x538   : > { %v1956_v21 = vor.u32 1.1754944e-38, %v1955_v56  ;;  %vm1954_vm7 = vcmp.eq.f32.partialorder %v1953_v39, 8.507059e+37  ;;  %p8712_p12 = pnand %p8711_p11, %p8882_p5  ;;  %p8717_p2 = por %p8716_p1, %p8715_p0 }
 0x53a   : > { %p8713_p13 = pneg %p8712_p12 }
 0x53b   : > { %v11899_v13 = vpop.permute.xlu2 %2866 }
 0x53c   : > { %v8655_v41 = vpop.eup %8654  ;;  %p8718_p3 = pnand %p8717_p2, %p8713_p13 }
 0x53d   : > { %v1945_v57 = vmul.f32 %v8655_v41, %v1776_v18  ;;  %vm1950_vm3 = vweird.f32 %v8655_v41 }
 0x53e   : > { %vm1951_vm5 = vmor %vm1949_vm4, %vm1950_vm3 }
 0x53f   : > { %v1946_v17 = vsub.f32 1.0, %v1945_v57 }
 0x541   : > { %v1947_v43 = vmul.f32 %v8655_v41, %v1946_v17 }
 0x543   : > { %v1948_v30 = vadd.f32 %v8655_v41, %v1947_v43  ;;  %v4161_v55 = vpop.permute.xlu2 %4160 }
 0x544   : > { %4178 = vst.msk [vmem:[#allocation3 + $0x34] sm:$0xf] %vm2425_vm9, %v4161_v55 }
 0x545   : > { %v1952_v14 = vsel %vm1951_vm5, %v8655_v41, %v1948_v30 }
 0x546   : > { %v1957_v45 = vsel %vm1954_vm7, %v1956_v21, %v1952_v14 }
 0x547   : > { %v1965_v40 = vmul.f32 %v1957_v45, %v13120_v25 }
 0x549   : > { %v1973_v10 = vpack.c.bf16 %v1965_v40, %v1965_v40 }
 0x54b   : > { %1982 = vst.msk [vmem:[#allocation3 + $0x38] sm:$0xf] %vm1974_vm6, %v1973_v10  ;;  %v4613_v52 = vpop.permute.xlu2 %4612 }
 0x54d   : > { %v2410_v32 = vpop.permute.xlu1 %2409 }
 0x54e   : > { %2430 = vst.msk [vmem:[#allocation3 + $0x20] sm:$0xf] %vm2425_vm9, %v2410_v32  ;;  %v5335_v32 = vpop.f32.mrf.mxu0 }
 0x550   : > { %v1773_v24 = vpop.xlane.xlu0 %1772 }
 0x551   : > { %8656 = vrcp.f32 %v1773_v24  ;;  %v1941_v7 = vand.u32 2147483648, %v1773_v24  ;;  %v1939_v46 = vand.u32 2147483647, %v1773_v24  ;;  %vm1935_vm11 = vweird.f32 %v1773_v24 }
 0x553   : > { %v1942_v49 = vor.u32 1.1754944e-38, %v1941_v7  ;;  %vm1940_vm13 = vcmp.eq.f32.partialorder %v1939_v46, 8.507059e+37 }
 0x555   : > { %v5049_v62 = vpop.permute.xlu1 %5048 }
 0x556   : > { %5072 = vst.msk [vmem:[#allocation3 + $0x4] sm:$0xf] %vm3327_vm15, %v5049_v62  ;;  %v5393_v62 = vpop.f32.mrf.mxu2  ;;  %v5337_v46 = vpop.f32.mrf.mxu0 }
 0x557   : > { %v8657_v27 = vpop.eup %8656 }
 0x558   : > { %v1931_v47 = vmul.f32 %v8657_v27, %v1773_v24  ;;  %v3524_v58 = vpop.xlane.xlu0 %3523  ;;  %vm1936_vm8 = vweird.f32 %v8657_v27  ;;  %v5120_v24 = vld [vmem:[%s12965_s6] sm:$0x3] }
 0x559   : > { %8658 = vrcp.f32 %v3524_v58  ;;  %vm1937_vm12 = vmor %vm1935_vm11, %vm1936_vm8  ;;  %v3703_v15 = vand.u32 2147483648, %v3524_v58  ;;  %v3701_v1 = vand.u32 2147483647, %v3524_v58  ;;  %vm3697_vm0 = vweird.f32 %v3524_v58 }
 0x55a   : > { %v1932_v12 = vsub.f32 1.0, %v1931_v47  ;;  %v11972_v47 = vperm.slane %v5120_v24, 0 }
 0x55b   : > { %v3704_v57 = vor.u32 1.1754944e-38, %v3703_v15  ;;  %vm3702_vm2 = vcmp.eq.f32.partialorder %v3701_v1, 8.507059e+37 }
 0x55c   : > { %v1933_v44 = vmul.f32 %v8657_v27, %v1932_v12  ;;  %v5336_v12 = vadd.f32 %v5335_v32, %v11972_v47 }
 0x55d   : > { %v3312_v54 = vpop.permute.xlu1 %3311  ;;  %v8254_v31 = vld [vmem:[#allocation3 + $0x4] sm:$0xf] }
 0x55e   : > { %v7645_v63 = vor.u32 %v8254_v31, %v7642_v29  ;;  %v1934_v38 = vadd.f32 %v8657_v27, %v1933_v44  ;;  %v5395_v29 = vpop.f32.mrf.mxu2 }
 0x55f   : > { %v8659_v22 = vpop.eup %8658 }
 0x560   : > { %5363 = vmatmul.bf16.vlgmr.msrb.gmra.mxu1 %v7645_v63  ;;  %5421 = vmatmul.bf16.vlgmr.msrb.gmra.mxu3 %v7645_v63  ;;  %v1938_v33 = vsel %vm1937_vm12, %v8657_v27, %v1934_v38  ;;  %v3693_v50 = vmul.f32 %v8659_v22, %v3524_v58  ;;  %vm3698_vm14 = vweird.f32 %v8659_v22  ;;  %v11974_v58 = vperm.slane %v5120_v24, 1 }
 0x561   : > { %v1943_v5 = vsel %vm1940_vm13, %v1942_v49, %v1938_v33  ;;  %vm3699_vm1 = vmor %vm3697_vm0, %vm3698_vm14 }
 0x562   : > { %v3694_v28 = vsub.f32 1.0, %v3693_v50  ;;  %v1964_v4 = vmul.f32 %v1943_v5, %v13121_v3  ;;  %v5394_v7 = vadd.f32 %v5393_v62, %v11974_v58  ;;  %v5396_v49 = vadd.f32 %v5395_v29, %v11974_v58 }
 0x564   : > { %v3695_v16 = vmul.f32 %v8659_v22, %v3694_v28  ;;  %v1972_v18 = vpack.c.bf16 %v1964_v4, %v1964_v4 }
 0x565   : > { %v5053_v60 = vpop.permute.xlu1 %5052 }
 0x566   : > { %5074 = vst.msk [vmem:[#allocation3 + $0x14] sm:$0xf] %vm3327_vm15, %v5053_v60  ;;  %v3696_v41 = vadd.f32 %v8659_v22, %v3695_v16 }
 0x567   : > { %1981 = vst.msk [vmem:[#allocation3 + $0x30] sm:$0xf] %vm1974_vm6, %v1972_v18 }
 0x568   : > { %2432 = vst.msk [vmem:[#allocation3 + $0x30] sm:$0xf] %vm2425_vm9, %v11897_v19  ;;  %v3700_v17 = vsel %vm3699_vm1, %v8659_v22, %v3696_v41  ;;  %v5338_v22 = vadd.f32 %v5337_v46, %v11972_v47 }
 0x569   : > { %v3705_v39 = vsel %vm3702_vm2, %v3704_v57, %v3700_v17 }
 0x56a   : > { %v3713_v56 = vmul.f32 %v3705_v39, %v10895_v36 }
 0x56b   : > { %v2861_v43 = vpop.permute.xlu0 %2860 }
 0x56c   : > { %2881 = vst.msk [vmem:[#allocation3 + $0x20] sm:$0xf] %vm2876_vm10, %v2861_v43  ;;  %v3721_v59 = vpack.c.bf16 %v3713_v56, %v3713_v56 }
 0x56d   : > { %v4159_v11 = vpop.permute.xlu1 %4158  ;;  %v8256_v2 = vld [vmem:[#allocation3 + $0x14] sm:$0xf]  ;;  %3332 = vst.msk [vmem:[#allocation3 + $0x20] sm:$0xf] %vm3327_vm15, %v3312_v54 }
 0x56e   : > { %v7653_v48 = vor.u32 %v8256_v2, %v7650_v23  ;;  %4177 = vst.msk [vmem:[#allocation3 + $0x2c] sm:$0xf] %vm2425_vm9, %v4159_v11 }
 0x56f   : > { %4627 = vst.msk [vmem:[#allocation3 + $0x2c] sm:$0xf] %vm2876_vm10, %v11870_v6 }
 0x570   : > { %5368 = vmatmul.bf16.gmra.mxu1 %v7653_v48  ;;  %5426 = vmatmul.bf16.gmra.mxu3 %v7653_v48  ;;  %3729 = vst.msk [vmem:[#allocation3 + $0x3c] sm:$0xf] %vm1974_vm6, %v3721_v59 }
 0x573   : > { %v3314_v36 = vpop.permute.xlu0 %3313 }
 0x574   : > { %3333 = vst.msk [vmem:[#allocation3 + $0x28] sm:$0xf] %vm3327_vm15, %v3314_v36  ;;  %v7656_v9 = vld [vmem:[#allocation3 + $0x20] sm:$0xf] }
 0x575   : > { %v5057_v19 = vpop.permute.xlu1 %5056 }
 0x57b   : > { %v4607_v42 = vpop.permute.xlu0 %4606  ;;  %v8259_v30 = vld [vmem:[#allocation3 + $0x24] sm:$0xf0] }
 0x57c   : > { %4626 = vst.msk [vmem:[#allocation3 + $0x24] sm:$0xf] %vm2876_vm10, %v4607_v42  ;;  %v7657_v20 = vor.u32 %v8259_v30, %v7656_v9 }
 0x57d   : > { %v2416_v51 = vpop.permute.xlu1 %2415  ;;  %5076 = vst.msk [vmem:[#allocation3 + $0x24] sm:$0xf] %vm3327_vm15, %v5057_v19 }
 0x57e   : > { %2433 = vst.msk [vmem:[#allocation3 + $0x38] sm:$0xf] %vm2425_vm9, %v2416_v51  ;;  %5344 = vmatmul.bf16.gmra.mxu0 %v7657_v20  ;;  %5402 = vmatmul.bf16.gmra.mxu2 %v7657_v20 }
 0x57f   : > { %2884 = vst.msk [vmem:[#allocation3 + $0x38] sm:$0xf] %vm2876_vm10, %v11899_v13 }
 0x582   : > { %v5340_v28 = vpop.f32.mrf.mxu0 }
 0x583   : > { %v2865_v6 = vpop.permute.xlu0 %2864  ;;  %v5341_v16 = vadd.f32 %v5340_v28, %v11972_v47 }
 0x584   : > { %2883 = vst.msk [vmem:[#allocation3 + $0x30] sm:$0xf] %vm2876_vm10, %v2865_v6  ;;  %v8258_v14 = vld [vmem:[#allocation3 + $0x24] sm:$0xf] }
 0x585   : > { %v3316_v0 = vpop.permute.xlu1 %3315 }
 0x586   : > { %3334 = vst.msk [vmem:[#allocation3 + $0x30] sm:$0xf] %vm3327_vm15, %v3316_v0 }
 0x588   : > { %v5398_v3 = vpop.f32.mrf.mxu2 }
 0x589   : > { %v5399_v1 = vadd.f32 %v5398_v3, %v11974_v58 }
 0x58a   : > { %v5342_v17 = vpop.f32.mrf.mxu0 }
 0x58b   : > { %v5059_v21 = vpop.permute.xlu0 %5058  ;;  %v5343_v43 = vadd.f32 %v5342_v17, %v11972_v47 }
 0x58c   : > { %5077 = vst.msk [vmem:[#allocation3 + $0x2c] sm:$0xf] %vm3327_vm15, %v5059_v21 }
 0x58d   : > { %v4163_v55 = vpop.permute.xlu1 %4162  ;;  %v7664_v26 = vld [vmem:[#allocation3 + $0x30] sm:$0xf] }
 0x58e   : > { %4179 = vst.msk [vmem:[#allocation3 + $0x3c] sm:$0xf] %vm2425_vm9, %v4163_v55 }
 0x58f   : > { %4629 = vst.msk [vmem:[#allocation3 + $0x3c] sm:$0xf] %vm2876_vm10, %v4613_v52 }
 0x590   : > { %v5400_v39 = vpop.f32.mrf.mxu2 }
 0x591   : > { %v5401_v11 = vadd.f32 %v5400_v39, %v11974_v58 }
 0x593   : > { %v3318_v34 = vpop.permute.xlu0 %3317  ;;  %v7658_v45 = vld [vmem:[#allocation3 + $0x28] sm:$0xf0] }
 0x594   : > { %3335 = vst.msk [vmem:[#allocation3 + $0x38] sm:$0xf] %vm3327_vm15, %v3318_v34  ;;  %v7661_v13 = vor.u32 %v8258_v14, %v7658_v45 }
 0x595   : > { %v5061_v25 = vpop.permute.xlu1 %5060 }
 0x596   : > { %5373 = vmatmul.bf16.gmra.mxu1 %v7661_v13  ;;  %5431 = vmatmul.bf16.gmra.mxu3 %v7661_v13 }
 0x59b   : > { %v4611_v37 = vpop.permute.xlu0 %4610  ;;  %v8261_v35 = vld [vmem:[#allocation3 + $0x34] sm:$0xf0] }
 0x59c   : > { %4628 = vst.msk [vmem:[#allocation3 + $0x34] sm:$0xf] %vm2876_vm10, %v4611_v37  ;;  %v7665_v40 = vor.u32 %v8261_v35, %v7664_v26 }
 0x59d   : > { %5078 = vst.msk [vmem:[#allocation3 + $0x34] sm:$0xf] %vm3327_vm15, %v5061_v25 }
 0x59e   : > { %5349 = vmatmul.bf16.gmra.mxu0 %v7665_v40  ;;  %5407 = vmatmul.bf16.gmra.mxu2 %v7665_v40 }
 0x5a3   : > { %v5063_v8 = vpop.permute.xlu0 %5062 }
 0x5a4   : > { %5079 = vst.msk [vmem:[#allocation3 + $0x3c] sm:$0xf] %vm3327_vm15, %v5063_v8  ;;  %v8260_v53 = vld [vmem:[#allocation3 + $0x34] sm:$0xf] }
 0x5ab   : > { %v7666_v61 = vld [vmem:[#allocation3 + $0x38] sm:$0xf0] }
 0x5ac   : > { %v7669_v10 = vor.u32 %v8260_v53, %v7666_v61 }
 0x5ae   : > { %5378 = vmatmul.bf16.gmra.mxu1 %v7669_v10  ;;  %5436 = vmatmul.bf16.gmra.mxu3 %v7669_v10 }
 0x5dd   : > { %v5364_v27 = vpop.f32.mrf.mxu1 }
 0x5de   : > { %v11978_v54 = vadd.f32 %v5364_v27, %v5336_v12 }
 0x5e3   : > { %v5422_v44 = vpop.f32.mrf.mxu3 }
 0x5e4   : > { %v11980_v31 = vadd.f32 %v5422_v44, %v5394_v7 }
 0x5e5   : > { %v5366_v63 = vpop.f32.mrf.mxu1 }
 0x5e6   : > { %v5476_v38 = vadd.f32 %v11980_v31, %v11978_v54  ;;  %v11986_v50 = vadd.f32 %v5366_v63, %v5338_v22  ;;  %v8761_v22 = vmov 256.0  }
 0x5e7   : > { %8660 = vrcp.f32 %v8761_v22 }
 0x5e8   : > { %5477 = vadd.xlane.f32.xlu2 %v5476_v38 }
 0x5eb   : > { %v5424_v33 = vpop.f32.mrf.mxu3 }
 0x5ec   : > { %v11988_v5 = vadd.f32 %v5424_v33, %v5396_v49 }
 0x5ed   : > { %v5369_v15 = vpop.f32.mrf.mxu1  ;;  %v8661_v49 = vpop.eup %8660 }
 0x5ee   : > { %v5479_v4 = vadd.f32 %v11988_v5, %v11986_v50  ;;  %v11994_v18 = vadd.f32 %v5369_v15, %v5341_v16  ;;  %v5501_v33 = vmul.f32 256.0, %v8661_v49  ;;  %vm5505_vm6 = vweird.f32 %v8661_v49 }
 0x5f0   : > { %5480 = vadd.xlane.f32.xlu1 %v5479_v4  ;;  %v5502_v28 = vsub.f32 1.0, %v5501_v33 }
 0x5f2   : > { %v5503_v3 = vmul.f32 %v8661_v49, %v5502_v28 }
 0x5f3   : > { %v5427_v60 = vpop.f32.mrf.mxu3 }
 0x5f4   : > { %v11996_v41 = vadd.f32 %v5427_v60, %v5399_v1  ;;  %v5504_v4 = vadd.f32 %v8661_v49, %v5503_v3 }
 0x5f5   : > { %v5371_v56 = vpop.f32.mrf.mxu1 }
 0x5f6   : > { %v5482_v57 = vadd.f32 %v11996_v41, %v11994_v18  ;;  %v12002_v23 = vadd.f32 %v5371_v56, %v5343_v43 }
 0x5f8   : > { %5483 = vadd.xlane.f32.xlu0 %v5482_v57 }
 0x5fb   : > { %v5429_v2 = vpop.f32.mrf.mxu3  ;;  %v5345_v36 = vpop.f32.mrf.mxu0 }
 0x5fc   : > { %v12004_v59 = vadd.f32 %v5429_v2, %v5401_v11  ;;  %v5346_v9 = vadd.f32 %v5345_v36, %v11972_v47 }
 0x5fe   : > { %v5485_v48 = vadd.f32 %v12004_v59, %v12002_v23 }
 0x600   : > { %5486 = vadd.xlane.f32.xlu2 %v5485_v48 }
 0x601   : > { %v5403_v19 = vpop.f32.mrf.mxu2 }
 0x602   : > { %v5404_v30 = vadd.f32 %v5403_v19, %v11974_v58 }
 0x603   : > { %v5347_v21 = vpop.f32.mrf.mxu0 }
 0x604   : > { %v5348_v34 = vadd.f32 %v5347_v21, %v11972_v47 }
 0x609   : > { %v5405_v55 = vpop.f32.mrf.mxu2 }
 0x60a   : > { %v5406_v14 = vadd.f32 %v5405_v55, %v11974_v58 }
 0x613   : > { %v5374_v42 = vpop.f32.mrf.mxu1 }
 0x614   : > { %v12010_v20 = vadd.f32 %v5374_v42, %v5346_v9 }
 0x619   : > { %v5432_v51 = vpop.f32.mrf.mxu3 }
 0x61a   : > { %v12012_v6 = vadd.f32 %v5432_v51, %v5404_v30 }
 0x61b   : > { %v5376_v52 = vpop.f32.mrf.mxu1  ;;  %v5350_v35 = vpop.f32.mrf.mxu0 }
 0x61c   : > { %v5488_v0 = vadd.f32 %v12012_v6, %v12010_v20  ;;  %v12018_v13 = vadd.f32 %v5376_v52, %v5348_v34  ;;  %v5351_v8 = vadd.f32 %v5350_v35, %v11972_v47 }
 0x61e   : > { %5489 = vadd.xlane.f32.xlu1 %v5488_v0 }
 0x621   : > { %v5434_v45 = vpop.f32.mrf.mxu3  ;;  %v5408_v25 = vpop.f32.mrf.mxu2 }
 0x622   : > { %v12020_v37 = vadd.f32 %v5434_v45, %v5406_v14  ;;  %v5409_v53 = vadd.f32 %v5408_v25, %v11974_v58 }
 0x623   : > { %v5352_v62 = vpop.f32.mrf.mxu0 }
 0x624   : > { %v5491_v26 = vadd.f32 %v12020_v37, %v12018_v13  ;;  %v5353_v7 = vadd.f32 %v5352_v62, %v11972_v47  ;;  %v12040_v47 = vsel %vm5505_vm6, %v8661_v49, %v5504_v4 }
 0x626   : > { %5492 = vadd.xlane.f32.xlu0 %v5491_v26 }
 0x629   : > { %v5410_v27 = vpop.f32.mrf.mxu2 }
 0x62a   : > { %v5411_v44 = vadd.f32 %v5410_v27, %v11974_v58 }
 0x62b   : > { %v5379_v40 = vpop.f32.mrf.mxu1 }
 0x62c   : > { %v12026_v10 = vadd.f32 %v5379_v40, %v5351_v8 }
 0x631   : > { %v5437_v61 = vpop.f32.mrf.mxu3 }
 0x632   : > { %v12028_v32 = vadd.f32 %v5437_v61, %v5409_v53 }
 0x633   : > { %v5381_v12 = vpop.f32.mrf.mxu1 }
 0x634   : > { %v5494_v24 = vadd.f32 %v12028_v32, %v12026_v10  ;;  %v12034_v29 = vadd.f32 %v5381_v12, %v5353_v7 }
 0x636   : > { %5495 = vadd.xlane.f32.xlu2 %v5494_v24 }
 0x639   : > { %v5439_v46 = vpop.f32.mrf.mxu3 }
 0x63a   : > { %v12036_v63 = vadd.f32 %v5439_v46, %v5411_v44 }
 0x63c   : > { %v5497_v38 = vadd.f32 %v12036_v63, %v12034_v29 }
 0x63e   : > { %5498 = vadd.xlane.f32.xlu1 %v5497_v38 }
 0x65b   : > { %v5478_v58 = vpop.xlane.xlu2 %5477 }
 0x65c   : > { %v5507_v15 = vmul.f32 %v12040_v47, %v5478_v58 }
 0x65e   : > { %v12044_v16 = vsub.f32 %v11978_v54, %v5507_v15  ;;  %v12047_v1 = vsub.f32 %v11980_v31, %v5507_v15 }
 0x660   : > { %v5531_v60 = vmul.f32 %v12044_v16, %v12044_v16  ;;  %v5532_v57 = vmul.f32 %v12047_v1, %v12047_v1 }
 0x662   : > { %v5547_v17 = vadd.f32 %v5532_v57, %v5531_v60 }
 0x663   : > { %v5481_v39 = vpop.xlane.xlu1 %5480 }
 0x664   : > { %v5508_v56 = vmul.f32 %v12040_v47, %v5481_v39  ;;  %5548 = vadd.xlane.f32.xlu0 %v5547_v17 }
 0x666   : > { %v12055_v43 = vsub.f32 %v11986_v50, %v5508_v56  ;;  %v12058_v11 = vsub.f32 %v11988_v5, %v5508_v56 }
 0x668   : > { %v5533_v2 = vmul.f32 %v12055_v43, %v12055_v43  ;;  %v5534_v48 = vmul.f32 %v12058_v11, %v12058_v11 }
 0x66a   : > { %v5550_v36 = vadd.f32 %v5534_v48, %v5533_v2 }
 0x66b   : > { %v5484_v19 = vpop.xlane.xlu0 %5483 }
 0x66c   : > { %v5509_v42 = vmul.f32 %v12040_v47, %v5484_v19  ;;  %5551 = vadd.xlane.f32.xlu2 %v5550_v36  ;;  %v7856_v36 = vld [vmem:[%s12968_s9 + $0x70] sm:$0xf]  ;;  %v8309_v19 = vld [vmem:[%s12968_s9 + $0x74] sm:$0xf0] }
 0x66e   : > { %v12066_v9 = vsub.f32 %v11994_v18, %v5509_v42  ;;  %v12069_v30 = vsub.f32 %v11996_v41, %v5509_v42  ;;  %v7920_v42 = vld [vmem:[%s12968_s9 + $0xf0] sm:$0xf] }
 0x670   : > { %v5535_v51 = vmul.f32 %v12066_v9, %v12066_v9  ;;  %v5536_v0 = vmul.f32 %v12069_v30, %v12069_v30 }
 0x672   : > { %v5553_v21 = vadd.f32 %v5536_v0, %v5535_v51  ;;  %v7857_v51 = vor.u32 %v8309_v19, %v7856_v36  ;;  %v8325_v0 = vld [vmem:[%s12968_s9 + $0xf4] sm:$0xf0]  ;;  %v8304_v19 = vld [vmem:[%s12968_s9 + $0x54] sm:$0xf] }
 0x673   : > { %v5487_v55 = vpop.xlane.xlu2 %5486  ;;  %v8321_v36 = vld [vmem:[%s12968_s9 + $0xd4] sm:$0xf0] }
 0x674   : > { %v5510_v52 = vmul.f32 %v12040_v47, %v5487_v55  ;;  %5554 = vadd.xlane.f32.xlu1 %v5553_v21  ;;  %v8308_v21 = vld [vmem:[%s12968_s9 + $0x74] sm:$0xf]  ;;  %v7858_v55 = vld [vmem:[%s12968_s9 + $0x78] sm:$0xf0]  ;;  %5931 = vmatpush.bf16.msra.mxu0 %v7857_v51 }
 0x676   : > { %v12077_v34 = vsub.f32 %v12002_v23, %v5510_v52  ;;  %v12080_v14 = vsub.f32 %v12004_v59, %v5510_v52  ;;  %v7921_v52 = vor.u32 %v8325_v0, %v7920_v42  ;;  %v7842_v42 = vld [vmem:[%s12968_s9 + $0x58] sm:$0xf0] }
 0x678   : > { %v5537_v45 = vmul.f32 %v12077_v34, %v12077_v34  ;;  %v5538_v26 = vmul.f32 %v12080_v14, %v12080_v14  ;;  %5960 = vmatpush.bf16.msra.mxu1 %v7921_v52  ;;  %v7906_v52 = vld [vmem:[%s12968_s9 + $0xd8] sm:$0xf0] }
 0x67a   : > { %v5556_v35 = vadd.f32 %v5538_v26, %v5537_v45  ;;  %v7861_v45 = vor.u32 %v8308_v21, %v7858_v55  ;;  %v8324_v26 = vld [vmem:[%s12968_s9 + $0xf4] sm:$0xf]  ;;  %v7845_v21 = vor.u32 %v8304_v19, %v7842_v42 }
 0x67b   : > { %v8320_v55 = vld [vmem:[%s12968_s9 + $0xd4] sm:$0xf] }
 0x67c   : > { %5557 = vadd.xlane.f32.xlu0 %v5556_v35  ;;  %v7922_v35 = vld [vmem:[%s12968_s9 + $0xf8] sm:$0xf0]  ;;  %5989 = vmatpush.bf16.msra.mxu2 %v7861_v45  ;;  %v7832_v45 = vld [vmem:[%s12968_s9 + $0x40] sm:$0xf] }
 0x691   : > { %v5490_v25 = vpop.xlane.xlu1 %5489 }
 0x692   : > { %v5511_v40 = vmul.f32 %v12040_v47, %v5490_v25  ;;  %v7925_v25 = vor.u32 %v8324_v26, %v7922_v35  ;;  %v7909_v35 = vor.u32 %v8320_v55, %v7906_v52  ;;  %v7816_v55 = vld [vmem:[%s12968_s9 + $0x20] sm:$0xf]  ;;  %v8299_v52 = vld [vmem:[%s12968_s9 + $0x24] sm:$0xf0] }
 0x694   : > { %v12088_v8 = vsub.f32 %v12010_v20, %v5511_v40  ;;  %v12091_v53 = vsub.f32 %v12012_v6, %v5511_v40  ;;  %6018 = vmatpush.bf16.msra.mxu3 %v7925_v25  ;;  %v8303_v25 = vld [vmem:[%s12968_s9 + $0x44] sm:$0xf0] }
 0x696   : > { %v5539_v61 = vmul.f32 %v12088_v8, %v12088_v8  ;;  %v5540_v24 = vmul.f32 %v12091_v53, %v12091_v53 }
 0x698   : > { %v5559_v62 = vadd.f32 %v5540_v24, %v5539_v61 }
 0x699   : > { %v5493_v27 = vpop.xlane.xlu0 %5492 }
 0x69a   : > { %v5512_v12 = vmul.f32 %v12040_v47, %v5493_v27  ;;  %5560 = vadd.xlane.f32.xlu2 %v5559_v62  ;;  %v7848_v62 = vld [vmem:[%s12968_s9 + $0x60] sm:$0xf]  ;;  %v8307_v27 = vld [vmem:[%s12968_s9 + $0x64] sm:$0xf0] }
 0x69c   : > { %v12099_v7 = vsub.f32 %v12018_v13, %v5512_v12  ;;  %v12102_v44 = vsub.f32 %v12020_v37, %v5512_v12  ;;  %v7849_v12 = vor.u32 %v8307_v27, %v7848_v62  ;;  %v7833_v62 = vor.u32 %v8303_v25, %v7832_v45  ;;  %v8302_v27 = vld [vmem:[%s12968_s9 + $0x44] sm:$0xf]  ;;  %v7880_v45 = vld [vmem:[%s12968_s9 + $0xa0] sm:$0xf] }
 0x69e   : > { %v5541_v46 = vmul.f32 %v12099_v7, %v12099_v7  ;;  %v5542_v38 = vmul.f32 %v12102_v44, %v12102_v44  ;;  %5932 = vmatpush.bf16.msra.mxu0 %v7849_v12  ;;  %v7834_v12 = vld [vmem:[%s12968_s9 + $0x48] sm:$0xf0] }
 0x6a0   : > { %v5562_v22 = vadd.f32 %v5542_v38, %v5541_v46  ;;  %v7912_v46 = vld [vmem:[%s12968_s9 + $0xe0] sm:$0xf]  ;;  %v8323_v38 = vld [vmem:[%s12968_s9 + $0xe4] sm:$0xf0] }
 0x6a2   : > { %5563 = vadd.xlane.f32.xlu1 %v5562_v22  ;;  %v8306_v22 = vld [vmem:[%s12968_s9 + $0x64] sm:$0xf] }
 0x6a9   : > { %v5496_v49 = vpop.xlane.xlu2 %5495 }
 0x6aa   : > { %v5513_v33 = vmul.f32 %v12040_v47, %v5496_v49  ;;  %v7913_v49 = vor.u32 %v8323_v38, %v7912_v46  ;;  %v8318_v46 = vld [vmem:[%s12968_s9 + $0xc4] sm:$0xf] }
 0x6ac   : > { %v12110_v28 = vsub.f32 %v12026_v10, %v5513_v33  ;;  %v12113_v3 = vsub.f32 %v12028_v32, %v5513_v33  ;;  %v7850_v33 = vld [vmem:[%s12968_s9 + $0x68] sm:$0xf0]  ;;  %5961 = vmatpush.bf16.msra.mxu1 %v7913_v49 }
 0x6ae   : > { %v5543_v4 = vmul.f32 %v12110_v28, %v12110_v28  ;;  %v5544_v58 = vmul.f32 %v12113_v3, %v12113_v3 }
 0x6b0   : > { %v5565_v15 = vadd.f32 %v5544_v58, %v5543_v4  ;;  %v8322_v4 = vld [vmem:[%s12968_s9 + $0xe4] sm:$0xf]  ;;  %v7914_v58 = vld [vmem:[%s12968_s9 + $0xe8] sm:$0xf0] }
 0x6b1   : > { %v5499_v60 = vpop.xlane.xlu1 %5498 }
 0x6b2   : > { %v5514_v57 = vmul.f32 %v12040_v47, %v5499_v60  ;;  %5566 = vadd.xlane.f32.xlu0 %v5565_v15  ;;  %v7853_v15 = vor.u32 %v8306_v22, %v7850_v33  ;;  %v7917_v60 = vor.u32 %v8322_v4, %v7914_v58  ;;  %v7898_v33 = vld [vmem:[%s12968_s9 + $0xc8] sm:$0xf0]  ;;  %v7824_v4 = vld [vmem:[%s12968_s9 + $0x30] sm:$0xf] }
 0x6b4   : > { %v12121_v17 = vsub.f32 %v12034_v29, %v5514_v57  ;;  %v12124_v39 = vsub.f32 %v12036_v63, %v5514_v57  ;;  %v7840_v57 = vld [vmem:[%s12968_s9 + $0x50] sm:$0xf]  ;;  %5990 = vmatpush.bf16.msra.mxu2 %v7853_v15  ;;  %6019 = vmatpush.bf16.msra.mxu3 %v7917_v60  ;;  %v7837_v15 = vor.u32 %v8302_v27, %v7834_v12  ;;  %v7818_v12 = vld [vmem:[%s12968_s9 + $0x28] sm:$0xf0] }
 0x6b5   : > { %v7901_v60 = vor.u32 %v8318_v46, %v7898_v33  ;;  %v8314_v46 = vld [vmem:[%s12968_s9 + $0xa4] sm:$0xf] }
 0x6b6   : > { %v5545_v56 = vmul.f32 %v12121_v17, %v12121_v17  ;;  %v5546_v2 = vmul.f32 %v12124_v39, %v12124_v39 }
 0x6b8   : > { %v5568_v48 = vadd.f32 %v5546_v2, %v5545_v56  ;;  %v8305_v56 = vld [vmem:[%s12968_s9 + $0x54] sm:$0xf0]  ;;  %v7904_v2 = vld [vmem:[%s12968_s9 + $0xd0] sm:$0xf]  ;;  %5991 = vmatpush.bf16.msra.mxu2 %v7845_v21  ;;  %6020 = vmatpush.bf16.msra.mxu3 %v7909_v35 }
 0x6b9   : > { %v7905_v0 = vor.u32 %v8321_v36, %v7904_v2  ;;  %v8317_v2 = vld [vmem:[%s12968_s9 + $0xb4] sm:$0xf0]  ;;  %v7826_v36 = vld [vmem:[%s12968_s9 + $0x38] sm:$0xf0] }
 0x6ba   : > { %5569 = vadd.xlane.f32.xlu2 %v5568_v48  ;;  %v7841_v48 = vor.u32 %v8305_v56, %v7840_v57  ;;  %v8301_v57 = vld [vmem:[%s12968_s9 + $0x34] sm:$0xf0]  ;;  %v7888_v56 = vld [vmem:[%s12968_s9 + $0xb0] sm:$0xf] }
 0x6bb   : > { %5962 = vmatpush.bf16.msra.mxu1 %v7905_v0  ;;  %v7825_v42 = vor.u32 %v8301_v57, %v7824_v4  ;;  %v7890_v0 = vld [vmem:[%s12968_s9 + $0xb8] sm:$0xf0]  ;;  %v7889_v21 = vor.u32 %v8317_v2, %v7888_v56  ;;  %v7817_v4 = vor.u32 %v8299_v52, %v7816_v55  ;;  %v7808_v56 = vld [vmem:[%s12968_s9 + $0x10] sm:$0xf]  ;;  %v8297_v2 = vld [vmem:[%s12968_s9 + $0x14] sm:$0xf0] }
 0x6bc   : > { %5933 = vmatpush.bf16.msra.mxu0 %v7841_v48  ;;  %v8300_v48 = vld [vmem:[%s12968_s9 + $0x34] sm:$0xf]  ;;  %5992 = vmatpush.bf16.msra.mxu2 %v7837_v15  ;;  %v7874_v52 = vld [vmem:[%s12968_s9 + $0x98] sm:$0xf0] }
 0x6bd   : > { %6021 = vmatpush.bf16.msra.mxu3 %v7901_v60  ;;  %v7829_v25 = vor.u32 %v8300_v48, %v7826_v36  ;;  %v8312_v55 = vld [vmem:[%s12968_s9 + $0x94] sm:$0xf] }
 0x6c0   : > { %5934 = vmatpush.bf16.msra.mxu0 %v7833_v62  ;;  %v8298_v62 = vld [vmem:[%s12968_s9 + $0x24] sm:$0xf]  ;;  %5993 = vmatpush.bf16.msra.mxu2 %v7829_v25 }
 0x6c1   : > { %v7821_v57 = vor.u32 %v8298_v62, %v7818_v12  ;;  %v7864_v62 = vld [vmem:[%s12968_s9 + $0x80] sm:$0xf] }
 0x6c4   : > { %5935 = vmatpush.bf16.msra.mxu0 %v7825_v42  ;;  %v7872_v42 = vld [vmem:[%s12968_s9 + $0x90] sm:$0xf]  ;;  %5994 = vmatpush.bf16.msra.mxu2 %v7821_v57  ;;  %v8310_v57 = vld [vmem:[%s12968_s9 + $0x84] sm:$0xf] }
 0x6c8   : > { %5936 = vmatpush.bf16.msra.mxu0 %v7817_v4  ;;  %v7802_v4 = vld [vmem:[%s12968_s9 + $0x8] sm:$0xf0] }
 0x6d7   : > { %v5549_v40 = vpop.xlane.xlu0 %5548 }
 0x6d8   : > { %v5571_v61 = vmul.f32 %v5549_v40, %v12040_v47  ;;  %v7896_v40 = vld [vmem:[%s12968_s9 + $0xc0] sm:$0xf] }
 0x6da   : > { %v12155_v24 = vadd.f32 1e-05, %v5571_v61  ;;  %v8319_v61 = vld [vmem:[%s12968_s9 + $0xc4] sm:$0xf0] }
 0x6db   : > { %v7897_v49 = vor.u32 %v8319_v61, %v7896_v40  ;;  %v8315_v61 = vld [vmem:[%s12968_s9 + $0xa4] sm:$0xf0] }
 0x6dc   : > { %8662 = vrsqrt.f32 %v12155_v24  ;;  %v7881_v60 = vor.u32 %v8315_v61, %v7880_v45  ;;  %vm5593_vm10 = vweird.f32 %v12155_v24  ;;  %v5474_v45 = vld [vmem:[%s12966_s7] sm:$0x3]  ;;  %v8295_v61 = vld [vmem:[%s12968_s9 + $0x4] sm:$0xf0] }
 0x6dd   : > { %5963 = vmatpush.bf16.msra.mxu1 %v7897_v49  ;;  %v7882_v49 = vld [vmem:[%s12968_s9 + $0xa8] sm:$0xf0] }
 0x6df   : > { %v5552_v51 = vpop.xlane.xlu2 %5551 }
 0x6e0   : > { %v5572_v26 = vmul.f32 %v5552_v51, %v12040_v47  ;;  %v8316_v51 = vld [vmem:[%s12968_s9 + $0xb4] sm:$0xf] }
 0x6e1   : > { %v7893_v40 = vor.u32 %v8316_v51, %v7890_v0  ;;  %5964 = vmatpush.bf16.msra.mxu1 %v7889_v21  ;;  %v8313_v51 = vld [vmem:[%s12968_s9 + $0x94] sm:$0xf0]  ;;  %v8296_v0 = vld [vmem:[%s12968_s9 + $0x14] sm:$0xf]  ;;  %v7810_v21 = vld [vmem:[%s12968_s9 + $0x18] sm:$0xf0] }
 0x6e2   : > { %v12228_v38 = vpop.eup %8662  ;;  %v12230_v22 = vadd.f32 1e-05, %v5572_v26 }
 0x6e3   : > { %v5588_v58 = vmul.f32 %v12228_v38, %v12155_v24  ;;  %vm5594_vm9 = vweird.f32 %v12228_v38  ;;  %6022 = vmatpush.bf16.msra.mxu3 %v7893_v40  ;;  %v7873_v40 = vor.u32 %v8313_v51, %v7872_v42 }
 0x6e4   : > { %8664 = vrsqrt.f32 %v12230_v22  ;;  %vm5595_vm15 = vmor %vm5593_vm10, %vm5594_vm9  ;;  %vm5603_vm4 = vweird.f32 %v12230_v22 }
 0x6e5   : > { %v5589_v19 = vmul.f32 %v12228_v38, %v5588_v58  ;;  %5965 = vmatpush.bf16.msra.mxu1 %v7881_v60  ;;  %v12347_v60 = vperm.slane %v5474_v45, 0 }
 0x6e7   : > { %v5590_v26 = vmul.f32 0.5, %v5589_v19  ;;  %v5555_v35 = vpop.xlane.xlu1 %5554  ;;  %v7885_v19 = vor.u32 %v8314_v46, %v7882_v49  ;;  %v7813_v49 = vor.u32 %v8296_v0, %v7810_v21  ;;  %v5475_v0 = vld [vmem:[%s12967_s8] sm:$0x3] }
 0x6e8   : > { %v5573_v27 = vmul.f32 %v5555_v35, %v12040_v47  ;;  %v7800_v35 = vld [vmem:[%s12968_s9] sm:$0xf] }
 0x6e9   : > { %v5591_v33 = vsub.f32 1.5, %v5590_v26  ;;  %v7809_v26 = vor.u32 %v8297_v2, %v7808_v56  ;;  %6023 = vmatpush.bf16.msra.mxu3 %v7885_v19  ;;  %v12349_v56 = vperm.slane %v5474_v45, 1  ;;  %v7801_v42 = vor.u32 %v8295_v61, %v7800_v35  ;;  %5966 = vmatpush.bf16.msra.mxu1 %v7873_v40 }
 0x6ea   : > { %v12288_v58 = vpop.eup %8664  ;;  %v12291_v15 = vadd.f32 1e-05, %v5573_v27  ;;  %v8311_v27 = vld [vmem:[%s12968_s9 + $0x84] sm:$0xf0]  ;;  %5995 = vmatpush.bf16.msra.mxu2 %v7813_v49  ;;  %v12369_v35 = vperm.slane %v5475_v0, 0 }
 0x6eb   : > { %v5592_v48 = vmul.f32 %v12228_v38, %v5591_v33  ;;  %v5598_v36 = vmul.f32 %v12288_v58, %v12230_v22  ;;  %v8294_v33 = vld [vmem:[%s12968_s9 + $0x4] sm:$0xf]  ;;  %vm5604_vm3 = vweird.f32 %v12288_v58  ;;  %5937 = vmatpush.bf16.msra.mxu0 %v7809_v26 }
 0x6ec   : > { %8666 = vrsqrt.f32 %v12291_v15  ;;  %v7805_v45 = vor.u32 %v8294_v33, %v7802_v4  ;;  %vm5605_vm5 = vmor %vm5603_vm4, %vm5604_vm3  ;;  %vm5613_vm8 = vweird.f32 %v12291_v15 }
 0x6ed   : > { %v5599_v24 = vmul.f32 %v12288_v58, %v5598_v36  ;;  %v5596_v25 = vsel %vm5595_vm15, %v12228_v38, %v5592_v48  ;;  %v7877_v38 = vor.u32 %v8312_v55, %v7874_v52  ;;  %v7866_v48 = vld [vmem:[%s12968_s9 + $0x88] sm:$0xf0]  ;;  %v7865_v52 = vor.u32 %v8311_v27, %v7864_v62 }
 0x6ee   : > { %v5667_v36 = vmul.f32 %v5596_v25, %v12044_v16  ;;  %v5668_v21 = vmul.f32 %v5596_v25, %v12047_v1  ;;  %v7869_v26 = vor.u32 %v8310_v57, %v7866_v48  ;;  %v12371_v1 = vperm.slane %v5475_v0, 1  ;;  %5996 = vmatpush.bf16.msra.mxu2 %v7805_v45 }
 0x6ef   : > { %v5600_v12 = vmul.f32 0.5, %v5599_v24  ;;  %v5558_v46 = vpop.xlane.xlu0 %5557  ;;  %6024 = vmatpush.bf16.msra.mxu3 %v7877_v38  ;;  %5938 = vmatpush.bf16.msra.mxu0 %v7801_v42 }
 0x6f0   : > { %v5574_v2 = vmul.f32 %v5558_v46, %v12040_v47  ;;  %v5688_v61 = vmul.f32 %v12347_v60, %v5667_v36  ;;  %v5689_v22 = vmul.f32 %v12349_v56, %v5668_v21  ;;  %5967 = vmatpush.bf16.msra.mxu1 %v7865_v52 }
 0x6f1   : > { %v5601_v19 = vsub.f32 1.5, %v5600_v12 }
 0x6f2   : > { %v8667_v51 = vpop.eup %8666  ;;  %v5582_v55 = vadd.f32 1e-05, %v5574_v2  ;;  %v5709_v33 = vadd.f32 %v12369_v35, %v5688_v61  ;;  %v5710_v4 = vadd.f32 %v12371_v1, %v5689_v22 }
 0x6f3   : > { %v5602_v24 = vmul.f32 %v12288_v58, %v5601_v19  ;;  %v5608_v16 = vmul.f32 %v8667_v51, %v12291_v15  ;;  %6025 = vmatpush.bf16.msra.mxu3 %v7869_v26  ;;  %vm5614_vm7 = vweird.f32 %v8667_v51 }
 0x6f4   : > { %8668 = vrsqrt.f32 %v5582_v55  ;;  %vm5615_vm11 = vmor %vm5613_vm8, %vm5614_vm7  ;;  %vm5623_vm13 = vweird.f32 %v5582_v55 }
 0x6f5   : > { %v5606_v25 = vsel %vm5605_vm5, %v12288_v58, %v5602_v24  ;;  %v5609_v40 = vmul.f32 %v8667_v51, %v5608_v16 }
 0x6f6   : > { %v5669_v62 = vmul.f32 %v5606_v25, %v12055_v43  ;;  %v5670_v27 = vmul.f32 %v5606_v25, %v12058_v11 }
 0x6f7   : > { %v5610_v12 = vmul.f32 0.5, %v5609_v40 }
 0x6f8   : > { %v5690_v46 = vmul.f32 %v12347_v60, %v5669_v62  ;;  %v5691_v49 = vmul.f32 %v12349_v56, %v5670_v27 }
 0x6f9   : > { %v5611_v38 = vsub.f32 1.5, %v5610_v12 }
 0x6fa   : > { %v8669_v58 = vpop.eup %8668  ;;  %v5711_v2 = vadd.f32 %v12369_v35, %v5690_v46  ;;  %v5712_v43 = vadd.f32 %v12371_v1, %v5691_v49 }
 0x6fb   : > { %v5612_v57 = vmul.f32 %v8667_v51, %v5611_v38  ;;  %v5618_v11 = vmul.f32 %v8669_v58, %v5582_v55  ;;  %vm5624_vm12 = vweird.f32 %v8669_v58 }
 0x6fc   : > { %v5725_v48 = vpack.c.bf16 %v5711_v2, %v5709_v33  ;;  %v5726_v36 = vpack.c.bf16 %v5712_v43, %v5710_v4  ;;  %vm5625_vm14 = vmor %vm5623_vm13, %vm5624_vm12 }
 0x6fd   : > { %v5619_v19 = vmul.f32 %v8669_v58, %v5618_v11  ;;  %v5616_v42 = vsel %vm5615_vm11, %v8667_v51, %v5612_v57 }
 0x6fe   : > { %5939 = vmatmul.bf16.vlgmr.msra.gmra.mxu0 %v5725_v48  ;;  %5968 = vmatmul.bf16.vlgmr.msra.gmra.mxu1 %v5726_v36  ;;  %v5671_v52 = vmul.f32 %v5616_v42, %v12066_v9  ;;  %v5672_v45 = vmul.f32 %v5616_v42, %v12069_v30 }
 0x6ff   : > { %v5620_v0 = vmul.f32 0.5, %v5619_v19  ;;  %5997 = vmatmul.bf16.vlgmr.msra.gmra.mxu2 %v5725_v48  ;;  %6026 = vmatmul.bf16.vlgmr.msra.gmra.mxu3 %v5726_v36 }
 0x700   : > { %v5692_v25 = vmul.f32 %v12347_v60, %v5671_v52  ;;  %v5693_v51 = vmul.f32 %v12349_v56, %v5672_v45 }
 0x701   : > { %v5621_v21 = vsub.f32 1.5, %v5620_v0 }
 0x702   : > { %v5713_v9 = vadd.f32 %v12369_v35, %v5692_v25  ;;  %v5714_v55 = vadd.f32 %v12371_v1, %v5693_v51 }
 0x703   : > { %v5622_v24 = vmul.f32 %v8669_v58, %v5621_v21 }
 0x705   : > { %v5626_v16 = vsel %vm5625_vm14, %v8669_v58, %v5622_v24 }
 0x706   : > { %v5673_v15 = vmul.f32 %v5626_v16, %v12077_v34  ;;  %v5674_v26 = vmul.f32 %v5626_v16, %v12080_v14 }
 0x708   : > { %v5694_v40 = vmul.f32 %v12347_v60, %v5673_v15  ;;  %v5695_v61 = vmul.f32 %v12349_v56, %v5674_v26 }
 0x70a   : > { %v5715_v30 = vadd.f32 %v12369_v35, %v5694_v40  ;;  %v5716_v22 = vadd.f32 %v12371_v1, %v5695_v61 }
 0x70c   : > { %v5727_v62 = vpack.c.bf16 %v5715_v30, %v5713_v9  ;;  %v5728_v34 = vpack.c.bf16 %v5716_v22, %v5714_v55  ;;  %v8341_v9 = vld [vmem:[%s12970_s11 + $0x74] sm:$0xf0]  ;;  %v8340_v30 = vld [vmem:[%s12970_s11 + $0x74] sm:$0xf] }
 0x70d   : > { %v5561_v14 = vpop.xlane.xlu2 %5560 }
 0x70e   : > { %5944 = vmatmul.bf16.gmra.mxu0 %v5727_v62  ;;  %5973 = vmatmul.bf16.gmra.mxu1 %v5728_v34  ;;  %v5575_v27 = vmul.f32 %v5561_v14, %v12040_v47  ;;  %v8339_v14 = vld [vmem:[%s12970_s11 + $0x64] sm:$0xf0] }
 0x70f   : > { %6002 = vmatmul.bf16.gmra.mxu2 %v5727_v62  ;;  %6031 = vmatmul.bf16.gmra.mxu3 %v5728_v34  ;;  %v7986_v62 = vld [vmem:[%s12970_s11 + $0x78] sm:$0xf0]  ;;  %v7976_v34 = vld [vmem:[%s12970_s11 + $0x60] sm:$0xf] }
 0x710   : > { %v5583_v12 = vadd.f32 1e-05, %v5575_v27 }
 0x712   : > { %8670 = vrsqrt.f32 %v5583_v12  ;;  %vm5633_vm1 = vweird.f32 %v5583_v12 }
 0x715   : > { %v5564_v46 = vpop.xlane.xlu1 %5563 }
 0x716   : > { %v5576_v49 = vmul.f32 %v5564_v46, %v12040_v47  ;;  %v8338_v46 = vld [vmem:[%s12970_s11 + $0x64] sm:$0xf] }
 0x718   : > { %v8671_v38 = vpop.eup %8670  ;;  %v5584_v58 = vadd.f32 1e-05, %v5576_v49  ;;  %v7978_v49 = vld [vmem:[%s12970_s11 + $0x68] sm:$0xf0] }
 0x719   : > { %v5628_v33 = vmul.f32 %v8671_v38, %v5583_v12  ;;  %vm5634_vm0 = vweird.f32 %v8671_v38  ;;  %v7989_v12 = vor.u32 %v8340_v30, %v7986_v62 }
 0x71a   : > { %8672 = vrsqrt.f32 %v5584_v58  ;;  %vm5635_vm2 = vmor %vm5633_vm1, %vm5634_vm0  ;;  %vm5643_vm9 = vweird.f32 %v5584_v58 }
 0x71b   : > { %v5629_v4 = vmul.f32 %v8671_v38, %v5628_v33  ;;  %6359 = vmatpush.bf16.msrb.mxu2 %v7989_v12 }
 0x71d   : > { %v5630_v2 = vmul.f32 0.5, %v5629_v4 }
 0x71f   : > { %v5631_v43 = vsub.f32 1.5, %v5630_v2 }
 0x720   : > { %v8673_v57 = vpop.eup %8672 }
 0x721   : > { %v5632_v11 = vmul.f32 %v8671_v38, %v5631_v43  ;;  %v5638_v48 = vmul.f32 %v8673_v57, %v5584_v58  ;;  %vm5644_vm6 = vweird.f32 %v8673_v57 }
 0x722   : > { %vm5645_vm10 = vmor %vm5643_vm9, %vm5644_vm6 }
 0x723   : > { %v5639_v36 = vmul.f32 %v8673_v57, %v5638_v48  ;;  %v5636_v19 = vsel %vm5635_vm2, %v8671_v38, %v5632_v11  ;;  %v8048_v38 = vld [vmem:[%s12970_s11 + $0xf0] sm:$0xf]  ;;  %v8356_v11 = vld [vmem:[%s12970_s11 + $0xf4] sm:$0xf] }
 0x724   : > { %v5675_v52 = vmul.f32 %v5636_v19, %v12088_v8  ;;  %v5676_v24 = vmul.f32 %v5636_v19, %v12091_v53  ;;  %v7984_v53 = vld [vmem:[%s12970_s11 + $0x70] sm:$0xf] }
 0x725   : > { %v5640_v42 = vmul.f32 0.5, %v5639_v36  ;;  %v5567_v0 = vpop.xlane.xlu0 %5566  ;;  %v7985_v22 = vor.u32 %v8341_v9, %v7984_v53  ;;  %v7977_v36 = vor.u32 %v8339_v14, %v7976_v34  ;;  %v8354_v53 = vld [vmem:[%s12970_s11 + $0xe4] sm:$0xf]  ;;  %v8042_v9 = vld [vmem:[%s12970_s11 + $0xe8] sm:$0xf0] }
 0x726   : > { %v5577_v21 = vmul.f32 %v5567_v0, %v12040_v47  ;;  %v5696_v25 = vmul.f32 %v12347_v60, %v5675_v52  ;;  %v5697_v8 = vmul.f32 %v12349_v56, %v5676_v24  ;;  %v7981_v52 = vor.u32 %v8338_v46, %v7978_v49  ;;  %v8337_v24 = vld [vmem:[%s12970_s11 + $0x54] sm:$0xf0] }
 0x727   : > { %v5641_v45 = vsub.f32 1.5, %v5640_v42  ;;  %6301 = vmatpush.bf16.msrb.mxu0 %v7985_v22  ;;  %v8050_v42 = vld [vmem:[%s12970_s11 + $0xf8] sm:$0xf0]  ;;  %v8045_v22 = vor.u32 %v8354_v53, %v8042_v9  ;;  %v8024_v9 = vld [vmem:[%s12970_s11 + $0xc0] sm:$0xf] }
 0x728   : > { %v12402_v16 = vadd.f32 1e-05, %v5577_v21  ;;  %v5717_v27 = vadd.f32 %v12369_v35, %v5696_v25  ;;  %v5718_v2 = vadd.f32 %v12371_v1, %v5697_v8  ;;  %v8053_v25 = vor.u32 %v8356_v11, %v8050_v42  ;;  %v8355_v8 = vld [vmem:[%s12970_s11 + $0xe4] sm:$0xf0]  ;;  %6360 = vmatpush.bf16.msrb.mxu2 %v7981_v52 }
 0x729   : > { %v5642_v15 = vmul.f32 %v8673_v57, %v5641_v45  ;;  %v7968_v45 = vld [vmem:[%s12970_s11 + $0x50] sm:$0xf] }
 0x72a   : > { %8674 = vrsqrt.f32 %v12402_v16  ;;  %6388 = vmatpush.bf16.msrb.mxu3 %v8053_v25  ;;  %vm5653_vm3 = vweird.f32 %v12402_v16 }
 0x72b   : > { %v5646_v26 = vsel %vm5645_vm10, %v8673_v57, %v5642_v15  ;;  %v8357_v57 = vld [vmem:[%s12970_s11 + $0xf4] sm:$0xf0]  ;;  %v8336_v15 = vld [vmem:[%s12970_s11 + $0x54] sm:$0xf]  ;;  %6302 = vmatpush.bf16.msrb.mxu0 %v7977_v36 }
 0x72c   : > { %v5677_v51 = vmul.f32 %v5646_v26, %v12099_v7  ;;  %v5678_v40 = vmul.f32 %v5646_v26, %v12102_v44  ;;  %v8049_v19 = vor.u32 %v8357_v57, %v8048_v38 }
 0x72d   : > { %v5570_v61 = vpop.xlane.xlu2 %5569 }
 0x72e   : > { %v5578_v55 = vmul.f32 %v5570_v61, %v12040_v47  ;;  %v5698_v7 = vmul.f32 %v12347_v60, %v5677_v51  ;;  %v5699_v44 = vmul.f32 %v12349_v56, %v5678_v40  ;;  %6330 = vmatpush.bf16.msrb.mxu1 %v8049_v19  ;;  %v7970_v51 = vld [vmem:[%s12970_s11 + $0x58] sm:$0xf0]  ;;  %v8040_v40 = vld [vmem:[%s12970_s11 + $0xe0] sm:$0xf]  ;;  %6389 = vmatpush.bf16.msrb.mxu3 %v8045_v22 }
 0x72f   : > { %v8041_v61 = vor.u32 %v8355_v8, %v8040_v40  ;;  %v8332_v40 = vld [vmem:[%s12970_s11 + $0x34] sm:$0xf]  ;;  %v7954_v8 = vld [vmem:[%s12970_s11 + $0x38] sm:$0xf0] }
 0x730   : > { %v8675_v58 = vpop.eup %8674  ;;  %v5586_v33 = vadd.f32 1e-05, %v5578_v55  ;;  %v5719_v4 = vadd.f32 %v12369_v35, %v5698_v7  ;;  %v5720_v43 = vadd.f32 %v12371_v1, %v5699_v44  ;;  %v7969_v55 = vor.u32 %v8337_v24, %v7968_v45  ;;  %v8352_v24 = vld [vmem:[%s12970_s11 + $0xd4] sm:$0xf] }
 0x731   : > { %v5648_v48 = vmul.f32 %v8675_v58, %v12402_v16  ;;  %v7973_v7 = vor.u32 %v8336_v15, %v7970_v51  ;;  %vm5654_vm15 = vweird.f32 %v8675_v58  ;;  %v8034_v15 = vld [vmem:[%s12970_s11 + $0xd8] sm:$0xf0]  ;;  %v8333_v51 = vld [vmem:[%s12970_s11 + $0x34] sm:$0xf0]  ;;  %v7957_v53 = vor.u32 %v8332_v40, %v7954_v8  ;;  %v7992_v40 = vld [vmem:[%s12970_s11 + $0x80] sm:$0xf] }
 0x732   : > { %8676 = vrsqrt.f32 %v5586_v33  ;;  %v5729_v0 = vpack.c.bf16 %v5719_v4, %v5717_v27  ;;  %v5730_v21 = vpack.c.bf16 %v5720_v43, %v5718_v2  ;;  %6331 = vmatpush.bf16.msrb.mxu1 %v8041_v61  ;;  %6303 = vmatpush.bf16.msrb.mxu0 %v7969_v55  ;;  %vm5655_vm4 = vmor %vm5653_vm3, %vm5654_vm15  ;;  %vm5663_vm7 = vweird.f32 %v5586_v33  ;;  %v8350_v55 = vld [vmem:[%s12970_s11 + $0xc4] sm:$0xf]  ;;  %v8343_v8 = vld [vmem:[%s12970_s11 + $0x84] sm:$0xf0] }
 0x733   : > { %v5649_v26 = vmul.f32 %v8675_v58, %v5648_v48  ;;  %6361 = vmatpush.bf16.msrb.mxu2 %v7973_v7  ;;  %v8037_v25 = vor.u32 %v8352_v24, %v8034_v15  ;;  %v8344_v24 = vld [vmem:[%s12970_s11 + $0x94] sm:$0xf]  ;;  %v5765_v15 = vld [vmem:[%s12969_s10] sm:$0x3] }
 0x734   : > { %5949 = vmatmul.bf16.gmra.mxu0 %v5729_v0  ;;  %5978 = vmatmul.bf16.gmra.mxu1 %v5730_v21 }
 0x735   : > { %v5650_v30 = vmul.f32 0.5, %v5649_v26  ;;  %6007 = vmatmul.bf16.gmra.mxu2 %v5729_v0  ;;  %6036 = vmatmul.bf16.gmra.mxu3 %v5730_v21  ;;  %v8032_v0 = vld [vmem:[%s12970_s11 + $0xd0] sm:$0xf]  ;;  %v8353_v21 = vld [vmem:[%s12970_s11 + $0xd4] sm:$0xf0] }
 0x736   : > { %v8033_v45 = vor.u32 %v8353_v21, %v8032_v0  ;;  %v7952_v26 = vld [vmem:[%s12970_s11 + $0x30] sm:$0xf]  ;;  %6390 = vmatpush.bf16.msrb.mxu3 %v8037_v25  ;;  %v8002_v25 = vld [vmem:[%s12970_s11 + $0x98] sm:$0xf0] }
 0x737   : > { %v5651_v44 = vsub.f32 1.5, %v5650_v30  ;;  %v7953_v61 = vor.u32 %v8333_v51, %v7952_v26  ;;  %v8351_v30 = vld [vmem:[%s12970_s11 + $0xc4] sm:$0xf0]  ;;  %v8005_v51 = vor.u32 %v8344_v24, %v8002_v25 }
 0x738   : > { %v8677_v62 = vpop.eup %8676  ;;  %6332 = vmatpush.bf16.msrb.mxu1 %v8033_v45  ;;  %v8025_v7 = vor.u32 %v8351_v30, %v8024_v9  ;;  %v8345_v45 = vld [vmem:[%s12970_s11 + $0x94] sm:$0xf0]  ;;  %v7993_v9 = vor.u32 %v8343_v8, %v7992_v40  ;;  %v7994_v30 = vld [vmem:[%s12970_s11 + $0x88] sm:$0xf0] }
 0x739   : > { %v5652_v34 = vmul.f32 %v8675_v58, %v5651_v44  ;;  %v5658_v14 = vmul.f32 %v8677_v62, %v5586_v33  ;;  %vm5664_vm5 = vweird.f32 %v8677_v62  ;;  %v8026_v44 = vld [vmem:[%s12970_s11 + $0xc8] sm:$0xf0] }
 0x73a   : > { %vm5665_vm8 = vmor %vm5663_vm7, %vm5664_vm5  ;;  %v8029_v22 = vor.u32 %v8350_v55, %v8026_v44 }
 0x73b   : > { %v5659_v27 = vmul.f32 %v8677_v62, %v5658_v14  ;;  %v5656_v12 = vsel %vm5655_vm4, %v8675_v58, %v5652_v34  ;;  %v8331_v34 = vld [vmem:[%s12970_s11 + $0x24] sm:$0xf0]  ;;  %v8330_v14 = vld [vmem:[%s12970_s11 + $0x24] sm:$0xf] }
 0x73c   : > { %v5679_v38 = vmul.f32 %v5656_v12, %v12110_v28  ;;  %v5680_v4 = vmul.f32 %v5656_v12, %v12113_v3  ;;  %6333 = vmatpush.bf16.msrb.mxu1 %v8025_v7  ;;  %6391 = vmatpush.bf16.msrb.mxu3 %v8029_v22  ;;  %v7946_v12 = vld [vmem:[%s12970_s11 + $0x28] sm:$0xf0] }
 0x73d   : > { %v5660_v46 = vmul.f32 0.5, %v5659_v27 }
 0x73e   : > { %v5700_v16 = vmul.f32 %v12347_v60, %v5679_v38  ;;  %v5701_v48 = vmul.f32 %v12349_v56, %v5680_v4  ;;  %v7949_v38 = vor.u32 %v8330_v14, %v7946_v12  ;;  %v6047_v12 = vld [vmem:[%s12632_s27] sm:$0xff] }
 0x73f   : > { %v5661_v49 = vsub.f32 1.5, %v5660_v46  ;;  %v8016_v46 = vld [vmem:[%s12970_s11 + $0xb0] sm:$0xf] }
 0x740   : > { %v5721_v28 = vadd.f32 %v12369_v35, %v5700_v16  ;;  %v5722_v33 = vadd.f32 %v12371_v1, %v5701_v48  ;;  %v8329_v16 = vld [vmem:[%s12970_s11 + $0x14] sm:$0xf0]  ;;  %v8328_v48 = vld [vmem:[%s12970_s11 + $0x14] sm:$0xf] }
 0x741   : > { %v5662_v2 = vmul.f32 %v8677_v62, %v5661_v49  ;;  %v8349_v49 = vld [vmem:[%s12970_s11 + $0xb4] sm:$0xf0] }
 0x742   : > { %v8017_v4 = vor.u32 %v8349_v49, %v8016_v46 }
 0x743   : > { %v5666_v43 = vsel %vm5665_vm8, %v8677_v62, %v5662_v2  ;;  %v7944_v62 = vld [vmem:[%s12970_s11 + $0x20] sm:$0xf]  ;;  %v8348_v2 = vld [vmem:[%s12970_s11 + $0xb4] sm:$0xf] }
 0x744   : > { %v5681_v57 = vmul.f32 %v5666_v43, %v12121_v17  ;;  %v5682_v11 = vmul.f32 %v5666_v43, %v12124_v39  ;;  %v7960_v39 = vld [vmem:[%s12970_s11 + $0x40] sm:$0xf]  ;;  %v7945_v27 = vor.u32 %v8331_v34, %v7944_v62  ;;  %v8018_v43 = vld [vmem:[%s12970_s11 + $0xb8] sm:$0xf0]  ;;  %6334 = vmatpush.bf16.msrb.mxu1 %v8017_v4  ;;  %v12634_v62 = vperm.slane %v5765_v15, 1 }
 0x746   : > { %v5702_v58 = vmul.f32 %v12347_v60, %v5681_v57  ;;  %v5703_v36 = vmul.f32 %v12349_v56, %v5682_v11  ;;  %v8335_v60 = vld [vmem:[%s12970_s11 + $0x44] sm:$0xf0]  ;;  %v8334_v56 = vld [vmem:[%s12970_s11 + $0x44] sm:$0xf]  ;;  %v7936_v57 = vld [vmem:[%s12970_s11 + $0x10] sm:$0xf]  ;;  %v8021_v11 = vor.u32 %v8348_v2, %v8018_v43 }
 0x747   : > { %v6049_v2 = vld [vmem:[%s12632_s27 + $0x10] sm:$0xff] }
 0x748   : > { %v5723_v3 = vadd.f32 %v12369_v35, %v5702_v58  ;;  %v5724_v19 = vadd.f32 %v12371_v1, %v5703_v36  ;;  %v7961_v35 = vor.u32 %v8335_v60, %v7960_v39  ;;  %v7962_v1 = vld [vmem:[%s12970_s11 + $0x48] sm:$0xf0]  ;;  %v7938_v58 = vld [vmem:[%s12970_s11 + $0x18] sm:$0xf0]  ;;  %v7937_v36 = vor.u32 %v8329_v16, %v7936_v57  ;;  %6392 = vmatpush.bf16.msrb.mxu3 %v8021_v11  ;;  %v7928_v39 = vld [vmem:[%s12970_s11] sm:$0xf] }
 0x749   : > { %v7965_v52 = vor.u32 %v8334_v56, %v7962_v1  ;;  %v8327_v56 = vld [vmem:[%s12970_s11 + $0x4] sm:$0xf0]  ;;  %v7930_v1 = vld [vmem:[%s12970_s11 + $0x8] sm:$0xf0] }
 0x74a   : > { %v5731_v42 = vpack.c.bf16 %v5723_v3, %v5721_v28  ;;  %v5732_v17 = vpack.c.bf16 %v5724_v19, %v5722_v33  ;;  %6304 = vmatpush.bf16.msrb.mxu0 %v7961_v35  ;;  %v7941_v28 = vor.u32 %v8328_v48, %v7938_v58  ;;  %v8008_v3 = vld [vmem:[%s12970_s11 + $0xa0] sm:$0xf]  ;;  %v8347_v33 = vld [vmem:[%s12970_s11 + $0xa4] sm:$0xf0]  ;;  %v8346_v19 = vld [vmem:[%s12970_s11 + $0xa4] sm:$0xf]  ;;  %v7929_v0 = vor.u32 %v8327_v56, %v7928_v39 }
 0x74b   : > { %6362 = vmatpush.bf16.msrb.mxu2 %v7965_v52  ;;  %v8326_v35 = vld [vmem:[%s12970_s11 + $0x4] sm:$0xf]  ;;  %v8000_v52 = vld [vmem:[%s12970_s11 + $0x90] sm:$0xf]  ;;  %v6048_v58 = vld [vmem:[%s12632_s27 + $0x8] sm:$0xff] }
 0x74c   : > { %5954 = vmatmul.bf16.gmra.mxu0 %v5731_v42  ;;  %5983 = vmatmul.bf16.gmra.mxu1 %v5732_v17  ;;  %v7933_v21 = vor.u32 %v8326_v35, %v7930_v1  ;;  %v8001_v26 = vor.u32 %v8345_v45, %v8000_v52  ;;  %v6050_v39 = vld [vmem:[%s12632_s27 + $0x18] sm:$0xff] }
 0x74d   : > { %6012 = vmatmul.bf16.gmra.mxu2 %v5731_v42  ;;  %6041 = vmatmul.bf16.gmra.mxu3 %v5732_v17  ;;  %v8009_v42 = vor.u32 %v8347_v33, %v8008_v3  ;;  %v8010_v17 = vld [vmem:[%s12970_s11 + $0xa8] sm:$0xf0] }
 0x74e   : > { %6305 = vmatpush.bf16.msrb.mxu0 %v7953_v61  ;;  %v8013_v60 = vor.u32 %v8346_v19, %v8010_v17  ;;  %v8342_v61 = vld [vmem:[%s12970_s11 + $0x84] sm:$0xf] }
 0x74f   : > { %6363 = vmatpush.bf16.msrb.mxu2 %v7957_v53  ;;  %6335 = vmatpush.bf16.msrb.mxu1 %v8009_v42  ;;  %v12622_v53 = vperm.slane %v5765_v15, 0  ;;  %v7997_v44 = vor.u32 %v8342_v61, %v7994_v30  ;;  %v6053_v61 = vld [vmem:[%s12632_s27 + $0x30] sm:$0xff] }
 0x750   : > { %6393 = vmatpush.bf16.msrb.mxu3 %v8013_v60 }
 0x752   : > { %6306 = vmatpush.bf16.msrb.mxu0 %v7945_v27 }
 0x753   : > { %6364 = vmatpush.bf16.msrb.mxu2 %v7949_v38  ;;  %6336 = vmatpush.bf16.msrb.mxu1 %v8001_v26  ;;  %v6051_v26 = vld [vmem:[%s12632_s27 + $0x20] sm:$0xff] }
 0x754   : > { %6394 = vmatpush.bf16.msrb.mxu3 %v8005_v51 }
 0x756   : > { %6307 = vmatpush.bf16.msrb.mxu0 %v7937_v36 }
 0x757   : > { %6365 = vmatpush.bf16.msrb.mxu2 %v7941_v28  ;;  %6337 = vmatpush.bf16.msrb.mxu1 %v7993_v9 }
 0x758   : > { %6395 = vmatpush.bf16.msrb.mxu3 %v7997_v44 }
 0x75a   : > { %6308 = vmatpush.bf16.msrb.mxu0 %v7929_v0 }
 0x75b   : > { %6366 = vmatpush.bf16.msrb.mxu2 %v7933_v21 }
 0x77b   : > { %v5940_v55 = vpop.f32.mrf.mxu0  ;;  %v5969_v7 = vpop.f32.mrf.mxu1 }
 0x77c   : > { %v5941_v22 = vadd.f32 %v5940_v55, %v12622_v53 }
 0x77e   : > { %v5970_v34 = vadd.f32 %v5969_v7, %v5941_v22  ;;  %v6052_v22 = vld [vmem:[%s12632_s27 + $0x28] sm:$0xff] }
 0x780   : > { %v6063_v43 = vadd.f32 %v6047_v12, %v5970_v34 }
 0x782   : > { %v5998_v14 = vpop.f32.mrf.mxu2  ;;  %v6027_v27 = vpop.f32.mrf.mxu3  ;;  %v6079_v48 = vmax.f32 %v6063_v43, 0.0 }
 0x783   : > { %v5942_v46 = vpop.f32.mrf.mxu0  ;;  %v5971_v49 = vpop.f32.mrf.mxu1  ;;  %v5999_v4 = vadd.f32 %v5998_v14, %v12634_v62 }
 0x784   : > { %v5943_v38 = vadd.f32 %v5942_v46, %v12622_v53  ;;  %v6054_v46 = vld [vmem:[%s12632_s27 + $0x38] sm:$0xff] }
 0x785   : > { %v6028_v16 = vadd.f32 %v6027_v27, %v5999_v4 }
 0x786   : > { %v5972_v57 = vadd.f32 %v5971_v49, %v5943_v38 }
 0x787   : > { %v6064_v60 = vadd.f32 %v6048_v58, %v6028_v16 }
 0x788   : > { %v6065_v11 = vadd.f32 %v6049_v2, %v5972_v57 }
 0x789   : > { %v6080_v0 = vmax.f32 %v6064_v60, 0.0  ;;  %v6057_v60 = vld [vmem:[%s12632_s27 + $0x50] sm:$0xff] }
 0x78a   : > { %v6081_v36 = vmax.f32 %v6065_v11, 0.0  ;;  %v6000_v28 = vpop.f32.mrf.mxu2  ;;  %v6029_v3 = vpop.f32.mrf.mxu3 }
 0x78b   : > { %v6001_v33 = vadd.f32 %v6000_v28, %v12634_v62  ;;  %v5945_v19 = vpop.f32.mrf.mxu0  ;;  %v5974_v42 = vpop.f32.mrf.mxu1 }
 0x78c   : > { %v6095_v17 = vpack.c.bf16 %v6081_v36, %v6079_v48  ;;  %v5946_v35 = vadd.f32 %v5945_v19, %v12622_v53 }
 0x78d   : > { %v6030_v56 = vadd.f32 %v6029_v3, %v6001_v33  ;;  %v6055_v33 = vld [vmem:[%s12632_s27 + $0x40] sm:$0xff] }
 0x78e   : > { %6309 = vmatmul.bf16.vlgmr.msrb.gmra.mxu0 %v6095_v17  ;;  %6367 = vmatmul.bf16.vlgmr.msrb.gmra.mxu2 %v6095_v17  ;;  %v5975_v52 = vadd.f32 %v5974_v42, %v5946_v35 }
 0x78f   : > { %v6066_v1 = vadd.f32 %v6050_v39, %v6030_v56 }
 0x790   : > { %v6067_v9 = vadd.f32 %v6051_v26, %v5975_v52  ;;  %v6056_v52 = vld [vmem:[%s12632_s27 + $0x48] sm:$0xff] }
 0x791   : > { %v6082_v21 = vmax.f32 %v6066_v1, 0.0 }
 0x792   : > { %v6003_v45 = vpop.f32.mrf.mxu2  ;;  %v6032_v24 = vpop.f32.mrf.mxu3  ;;  %v6083_v44 = vmax.f32 %v6067_v9, 0.0 }
 0x793   : > { %v6096_v15 = vpack.c.bf16 %v6082_v21, %v6080_v0  ;;  %v5947_v25 = vpop.f32.mrf.mxu0  ;;  %v6004_v40 = vadd.f32 %v6003_v45, %v12634_v62  ;;  %v5976_v8 = vpop.f32.mrf.mxu1 }
 0x794   : > { %v5948_v51 = vadd.f32 %v5947_v25, %v12622_v53  ;;  %v6058_v25 = vld [vmem:[%s12632_s27 + $0x58] sm:$0xff] }
 0x795   : > { %6338 = vmatmul.bf16.vlgmr.msrb.gmra.mxu1 %v6096_v15  ;;  %6396 = vmatmul.bf16.vlgmr.msrb.gmra.mxu3 %v6096_v15  ;;  %v6033_v7 = vadd.f32 %v6032_v24, %v6004_v40 }
 0x796   : > { %v5977_v30 = vadd.f32 %v5976_v8, %v5948_v51 }
 0x797   : > { %v6068_v38 = vadd.f32 %v6052_v22, %v6033_v7 }
 0x798   : > { %v6069_v55 = vadd.f32 %v6053_v61, %v5977_v30 }
 0x799   : > { %v6084_v43 = vmax.f32 %v6068_v38, 0.0 }
 0x79a   : > { %v6085_v34 = vmax.f32 %v6069_v55, 0.0  ;;  %v6005_v14 = vpop.f32.mrf.mxu2  ;;  %v6034_v12 = vpop.f32.mrf.mxu3 }
 0x79b   : > { %v6006_v27 = vadd.f32 %v6005_v14, %v12634_v62 }
 0x79c   : > { %v6097_v49 = vpack.c.bf16 %v6085_v34, %v6083_v44 }
 0x79d   : > { %v6035_v4 = vadd.f32 %v6034_v12, %v6006_v27  ;;  %v6059_v12 = vld [vmem:[%s12632_s27 + $0x60] sm:$0xff] }
 0x79e   : > { %6314 = vmatmul.bf16.gmra.mxu0 %v6097_v49  ;;  %6372 = vmatmul.bf16.gmra.mxu2 %v6097_v49 }
 0x79f   : > { %v6070_v2 = vadd.f32 %v6054_v46, %v6035_v4 }
 0x7a1   : > { %v6086_v57 = vmax.f32 %v6070_v2, 0.0  ;;  %v6061_v2 = vld [vmem:[%s12632_s27 + $0x70] sm:$0xff] }
 0x7a3   : > { %v6098_v11 = vpack.c.bf16 %v6086_v57, %v6084_v43 }
 0x7a5   : > { %6343 = vmatmul.bf16.gmra.mxu1 %v6098_v11  ;;  %6401 = vmatmul.bf16.gmra.mxu3 %v6098_v11 }
 0x7b1   : > { %v5950_v16 = vpop.f32.mrf.mxu0  ;;  %v5979_v48 = vpop.f32.mrf.mxu1 }
 0x7b2   : > { %v5951_v58 = vadd.f32 %v5950_v16, %v12622_v53 }
 0x7b4   : > { %v5980_v36 = vadd.f32 %v5979_v48, %v5951_v58  ;;  %v6060_v58 = vld [vmem:[%s12632_s27 + $0x68] sm:$0xff] }
 0x7b6   : > { %v6071_v56 = vadd.f32 %v6055_v33, %v5980_v36 }
 0x7b8   : > { %v6008_v28 = vpop.f32.mrf.mxu2  ;;  %v6037_v3 = vpop.f32.mrf.mxu3  ;;  %v6087_v21 = vmax.f32 %v6071_v56, 0.0 }
 0x7b9   : > { %v5952_v19 = vpop.f32.mrf.mxu0  ;;  %v6009_v17 = vadd.f32 %v6008_v28, %v12634_v62  ;;  %v5981_v39 = vpop.f32.mrf.mxu1 }
 0x7ba   : > { %v5953_v42 = vadd.f32 %v5952_v19, %v12622_v53  ;;  %v6062_v19 = vld [vmem:[%s12632_s27 + $0x78] sm:$0xff] }
 0x7bb   : > { %v6038_v0 = vadd.f32 %v6037_v3, %v6009_v17 }
 0x7bc   : > { %v5982_v35 = vadd.f32 %v5981_v39, %v5953_v42 }
 0x7bd   : > { %v6072_v40 = vadd.f32 %v6056_v52, %v6038_v0  ;;  %v6135_v0 = vld [vmem:[%s12971_s12] sm:$0x3] }
 0x7be   : > { %v6073_v1 = vadd.f32 %v6057_v60, %v5982_v35 }
 0x7bf   : > { %v6088_v9 = vmax.f32 %v6072_v40, 0.0 }
 0x7c0   : > { %v6089_v45 = vmax.f32 %v6073_v1, 0.0  ;;  %v6010_v24 = vpop.f32.mrf.mxu2  ;;  %v6039_v26 = vpop.f32.mrf.mxu3 }
 0x7c1   : > { %v6011_v15 = vadd.f32 %v6010_v24, %v12634_v62 }
 0x7c2   : > { %v6099_v51 = vpack.c.bf16 %v6089_v45, %v6087_v21  ;;  %v12670_v21 = vperm.slane %v6135_v0, 0  ;;  %v12672_v45 = vperm.slane %v6135_v0, 1 }
 0x7c3   : > { %v6040_v8 = vadd.f32 %v6039_v26, %v6011_v15 }
 0x7c4   : > { %6319 = vmatmul.bf16.gmra.mxu0 %v6099_v51  ;;  %6377 = vmatmul.bf16.gmra.mxu2 %v6099_v51 }
 0x7c5   : > { %v6074_v61 = vadd.f32 %v6058_v25, %v6040_v8 }
 0x7c7   : > { %v6090_v30 = vmax.f32 %v6074_v61, 0.0 }
 0x7c9   : > { %v5955_v55 = vpop.f32.mrf.mxu0  ;;  %v5984_v7 = vpop.f32.mrf.mxu1  ;;  %v6100_v44 = vpack.c.bf16 %v6090_v30, %v6088_v9 }
 0x7ca   : > { %v5956_v22 = vadd.f32 %v5955_v55, %v12622_v53 }
 0x7cb   : > { %6348 = vmatmul.bf16.gmra.mxu1 %v6100_v44  ;;  %6406 = vmatmul.bf16.gmra.mxu3 %v6100_v44 }
 0x7cc   : > { %v5985_v34 = vadd.f32 %v5984_v7, %v5956_v22 }
 0x7ce   : > { %v6075_v43 = vadd.f32 %v6059_v12, %v5985_v34 }
 0x7d0   : > { %v6013_v14 = vpop.f32.mrf.mxu2  ;;  %v6042_v27 = vpop.f32.mrf.mxu3  ;;  %v6091_v48 = vmax.f32 %v6075_v43, 0.0 }
 0x7d1   : > { %v5957_v46 = vpop.f32.mrf.mxu0  ;;  %v6014_v38 = vadd.f32 %v6013_v14, %v12634_v62  ;;  %v5986_v4 = vpop.f32.mrf.mxu1 }
 0x7d2   : > { %v5958_v49 = vadd.f32 %v5957_v46, %v12622_v53 }
 0x7d3   : > { %v6043_v16 = vadd.f32 %v6042_v27, %v6014_v38 }
 0x7d4   : > { %v5987_v57 = vadd.f32 %v5986_v4, %v5958_v49 }
 0x7d5   : > { %v6076_v17 = vadd.f32 %v6060_v58, %v6043_v16 }
 0x7d6   : > { %v6077_v11 = vadd.f32 %v6061_v2, %v5987_v57 }
 0x7d7   : > { %v6092_v60 = vmax.f32 %v6076_v17, 0.0 }
 0x7d8   : > { %v6093_v36 = vmax.f32 %v6077_v11, 0.0  ;;  %v6015_v28 = vpop.f32.mrf.mxu2  ;;  %v6044_v33 = vpop.f32.mrf.mxu3 }
 0x7d9   : > { %v6016_v3 = vadd.f32 %v6015_v28, %v12634_v62 }
 0x7da   : > { %v6101_v42 = vpack.c.bf16 %v6093_v36, %v6091_v48 }
 0x7db   : > { %v6045_v39 = vadd.f32 %v6044_v33, %v6016_v3 }
 0x7dc   : > { %6324 = vmatmul.bf16.gmra.mxu0 %v6101_v42  ;;  %6382 = vmatmul.bf16.gmra.mxu2 %v6101_v42 }
 0x7dd   : > { %v6078_v53 = vadd.f32 %v6062_v19, %v6045_v39 }
 0x7df   : > { %v6094_v56 = vmax.f32 %v6078_v53, 0.0 }
 0x7e1   : > { %v6102_v35 = vpack.c.bf16 %v6094_v56, %v6092_v60 }
 0x7e3   : > { %6353 = vmatmul.bf16.gmra.mxu1 %v6102_v35  ;;  %6411 = vmatmul.bf16.gmra.mxu3 %v6102_v35 }
 0x80b   : > { %v6310_v1 = vpop.f32.mrf.mxu0 }
 0x80c   : > { %v6311_v24 = vadd.f32 %v6310_v1, %v12670_v21 }
 0x811   : > { %v6368_v62 = vpop.f32.mrf.mxu2 }
 0x812   : > { %v6339_v52 = vpop.f32.mrf.mxu1  ;;  %v6369_v25 = vadd.f32 %v6368_v62, %v12672_v45 }
 0x813   : > { %v6312_v15 = vpop.f32.mrf.mxu0  ;;  %v6340_v26 = vadd.f32 %v6339_v52, %v6311_v24 }
 0x814   : > { %v6313_v55 = vadd.f32 %v6312_v15, %v12670_v21 }
 0x815   : > { %v12677_v9 = vadd.f32 %v6340_v26, %v11978_v54 }
 0x818   : > { %v6397_v51 = vpop.f32.mrf.mxu3 }
 0x819   : > { %v6398_v40 = vadd.f32 %v6397_v51, %v6369_v25  ;;  %v6370_v8 = vpop.f32.mrf.mxu2 }
 0x81a   : > { %v6341_v61 = vpop.f32.mrf.mxu1  ;;  %v6371_v22 = vadd.f32 %v6370_v8, %v12672_v45 }
 0x81b   : > { %v12680_v30 = vadd.f32 %v6398_v40, %v11980_v31  ;;  %v6342_v44 = vadd.f32 %v6341_v61, %v6313_v55  ;;  %v6315_v34 = vpop.f32.mrf.mxu0 }
 0x81c   : > { %v6316_v49 = vadd.f32 %v6315_v34, %v12670_v21 }
 0x81d   : > { %v6435_v7 = vadd.f32 %v12680_v30, %v12677_v9  ;;  %v12687_v54 = vadd.f32 %v6342_v44, %v11986_v50 }
 0x81f   : > { %6436 = vadd.xlane.f32.xlu1 %v6435_v7 }
 0x820   : > { %v6399_v14 = vpop.f32.mrf.mxu3 }
 0x821   : > { %v6400_v27 = vadd.f32 %v6399_v14, %v6371_v22  ;;  %v6373_v46 = vpop.f32.mrf.mxu2 }
 0x822   : > { %v6344_v12 = vpop.f32.mrf.mxu1  ;;  %v6374_v2 = vadd.f32 %v6373_v46, %v12672_v45 }
 0x823   : > { %v12690_v31 = vadd.f32 %v6400_v27, %v11988_v5  ;;  %v6345_v4 = vadd.f32 %v6344_v12, %v6316_v49  ;;  %v6317_v11 = vpop.f32.mrf.mxu0 }
 0x824   : > { %v6318_v58 = vadd.f32 %v6317_v11, %v12670_v21 }
 0x825   : > { %v6438_v38 = vadd.f32 %v12690_v31, %v12687_v54  ;;  %v12697_v16 = vadd.f32 %v6345_v4, %v11994_v18 }
 0x827   : > { %6439 = vadd.xlane.f32.xlu0 %v6438_v38 }
 0x828   : > { %v6402_v43 = vpop.f32.mrf.mxu3 }
 0x829   : > { %v6403_v57 = vadd.f32 %v6402_v43, %v6374_v2  ;;  %v6375_v48 = vpop.f32.mrf.mxu2 }
 0x82a   : > { %v6346_v5 = vpop.f32.mrf.mxu1  ;;  %v6376_v3 = vadd.f32 %v6375_v48, %v12672_v45 }
 0x82b   : > { %v12700_v50 = vadd.f32 %v6403_v57, %v11996_v41  ;;  %v6347_v28 = vadd.f32 %v6346_v5, %v6318_v58 }
 0x82d   : > { %v6441_v36 = vadd.f32 %v12700_v50, %v12697_v16  ;;  %v12707_v42 = vadd.f32 %v6347_v28, %v12002_v23 }
 0x82f   : > { %6442 = vadd.xlane.f32.xlu2 %v6441_v36 }
 0x830   : > { %v6404_v33 = vpop.f32.mrf.mxu3 }
 0x831   : > { %v6405_v19 = vadd.f32 %v6404_v33, %v6376_v3 }
 0x833   : > { %v12710_v18 = vadd.f32 %v6405_v19, %v12004_v59 }
 0x835   : > { %v6444_v41 = vadd.f32 %v12710_v18, %v12707_v42 }
 0x837   : > { %6445 = vadd.xlane.f32.xlu1 %v6444_v41 }
 0x841   : > { %v6320_v17 = vpop.f32.mrf.mxu0 }
 0x842   : > { %v6321_v60 = vadd.f32 %v6320_v17, %v12670_v21 }
 0x847   : > { %v6378_v53 = vpop.f32.mrf.mxu2 }
 0x848   : > { %v6349_v39 = vpop.f32.mrf.mxu1  ;;  %v6379_v35 = vadd.f32 %v6378_v53, %v12672_v45 }
 0x849   : > { %v6350_v56 = vadd.f32 %v6349_v39, %v6321_v60  ;;  %v6322_v62 = vpop.f32.mrf.mxu0 }
 0x84a   : > { %v6323_v15 = vadd.f32 %v6322_v62, %v12670_v21 }
 0x84b   : > { %v12717_v23 = vadd.f32 %v6350_v56, %v12010_v20 }
 0x84e   : > { %v6407_v1 = vpop.f32.mrf.mxu3 }
 0x84f   : > { %v6408_v0 = vadd.f32 %v6407_v1, %v6379_v35  ;;  %v6380_v24 = vpop.f32.mrf.mxu2 }
 0x850   : > { %v6351_v52 = vpop.f32.mrf.mxu1  ;;  %v6381_v51 = vadd.f32 %v6380_v24, %v12672_v45 }
 0x851   : > { %v12720_v59 = vadd.f32 %v6408_v0, %v12012_v6  ;;  %v6352_v25 = vadd.f32 %v6351_v52, %v6323_v15 }
 0x853   : > { %v6447_v26 = vadd.f32 %v12720_v59, %v12717_v23  ;;  %v12727_v61 = vadd.f32 %v6352_v25, %v12018_v13 }
 0x855   : > { %6448 = vadd.xlane.f32.xlu0 %v6447_v26 }
 0x856   : > { %v6409_v40 = vpop.f32.mrf.mxu3 }
 0x857   : > { %v6410_v8 = vadd.f32 %v6409_v40, %v6381_v51 }
 0x859   : > { %v12730_v20 = vadd.f32 %v6410_v8, %v12020_v37  ;;  %v6325_v55 = vpop.f32.mrf.mxu0 }
 0x85a   : > { %v6326_v22 = vadd.f32 %v6325_v55, %v12670_v21 }
 0x85b   : > { %v6450_v6 = vadd.f32 %v12730_v20, %v12727_v61 }
 0x85d   : > { %6451 = vadd.xlane.f32.xlu2 %v6450_v6 }
 0x85f   : > { %v6383_v44 = vpop.f32.mrf.mxu2 }
 0x860   : > { %v6354_v7 = vpop.f32.mrf.mxu1  ;;  %v6384_v14 = vadd.f32 %v6383_v44, %v12672_v45 }
 0x861   : > { %v6355_v34 = vadd.f32 %v6354_v7, %v6326_v22  ;;  %v6327_v46 = vpop.f32.mrf.mxu0 }
 0x862   : > { %v6328_v4 = vadd.f32 %v6327_v46, %v12670_v21 }
 0x863   : > { %v12737_v13 = vadd.f32 %v6355_v34, %v12026_v10 }
 0x866   : > { %v6412_v27 = vpop.f32.mrf.mxu3 }
 0x867   : > { %v6413_v12 = vadd.f32 %v6412_v27, %v6384_v14  ;;  %v6385_v38 = vpop.f32.mrf.mxu2 }
 0x868   : > { %v6356_v49 = vpop.f32.mrf.mxu1  ;;  %v6386_v57 = vadd.f32 %v6385_v38, %v12672_v45 }
 0x869   : > { %v12740_v37 = vadd.f32 %v6413_v12, %v12028_v32  ;;  %v6357_v43 = vadd.f32 %v6356_v49, %v6328_v4 }
 0x86b   : > { %v6453_v2 = vadd.f32 %v12740_v37, %v12737_v13  ;;  %v6431_v48 = vadd.f32 %v6357_v43, %v12034_v29 }
 0x86d   : > { %6454 = vadd.xlane.f32.xlu1 %v6453_v2 }
 0x86e   : > { %v6414_v11 = vpop.f32.mrf.mxu3 }
 0x86f   : > { %v6415_v5 = vadd.f32 %v6414_v11, %v6386_v57 }
 0x871   : > { %v6432_v10 = vadd.f32 %v6415_v5, %v12036_v63 }
 0x873   : > { %v6456_v58 = vadd.f32 %v6432_v10, %v6431_v48 }
 0x875   : > { %6457 = vadd.xlane.f32.xlu0 %v6456_v58 }
 0x892   : > { %v6437_v32 = vpop.xlane.xlu1 %6436 }
 0x893   : > { %v6459_v36 = vmul.f32 %v6437_v32, %v12040_v47 }
 0x895   : > { %v12750_v21 = vsub.f32 %v12677_v9, %v6459_v36  ;;  %v12753_v28 = vsub.f32 %v12680_v30, %v6459_v36 }
 0x897   : > { %v6483_v45 = vmul.f32 %v12750_v21, %v12750_v21  ;;  %v6484_v3 = vmul.f32 %v12753_v28, %v12753_v28 }
 0x899   : > { %v6499_v29 = vadd.f32 %v6484_v3, %v6483_v45 }
 0x89a   : > { %v6440_v33 = vpop.xlane.xlu0 %6439 }
 0x89b   : > { %v6460_v63 = vmul.f32 %v6440_v33, %v12040_v47  ;;  %6500 = vadd.xlane.f32.xlu2 %v6499_v29  ;;  %v6433_v33 = vld [vmem:[%s12972_s13] sm:$0x3] }
 0x89d   : > { %v12761_v19 = vsub.f32 %v12687_v54, %v6460_v63  ;;  %v12764_v9 = vsub.f32 %v12690_v31, %v6460_v63 }
 0x89f   : > { %v6485_v30 = vmul.f32 %v12761_v19, %v12761_v19  ;;  %v6486_v41 = vmul.f32 %v12764_v9, %v12764_v9 }
 0x8a1   : > { %v6502_v17 = vadd.f32 %v6486_v41, %v6485_v30 }
 0x8a2   : > { %v6443_v39 = vpop.xlane.xlu2 %6442 }
 0x8a3   : > { %v6461_v53 = vmul.f32 %v6443_v39, %v12040_v47  ;;  %6503 = vadd.xlane.f32.xlu1 %v6502_v17  ;;  %v6434_v17 = vld [vmem:[%s12973_s14] sm:$0x3] }
 0x8a5   : > { %v12772_v60 = vsub.f32 %v12697_v16, %v6461_v53  ;;  %v12775_v54 = vsub.f32 %v12700_v50, %v6461_v53 }
 0x8a7   : > { %v6487_v31 = vmul.f32 %v12772_v60, %v12772_v60  ;;  %v6488_v56 = vmul.f32 %v12775_v54, %v12775_v54 }
 0x8a9   : > { %v6505_v35 = vadd.f32 %v6488_v56, %v6487_v31  ;;  %v12844_v31 = vperm.slane %v6433_v33, 0  ;;  %v12846_v56 = vperm.slane %v6433_v33, 1 }
 0x8aa   : > { %v6446_v1 = vpop.xlane.xlu1 %6445 }
 0x8ab   : > { %v6462_v0 = vmul.f32 %v6446_v1, %v12040_v47  ;;  %6506 = vadd.xlane.f32.xlu0 %v6505_v35 }
 0x8ad   : > { %v12783_v62 = vsub.f32 %v12707_v42, %v6462_v0  ;;  %v12786_v16 = vsub.f32 %v12710_v18, %v6462_v0  ;;  %v12848_v0 = vperm.slane %v6434_v17, 0 }
 0x8af   : > { %v6489_v50 = vmul.f32 %v12783_v62, %v12783_v62  ;;  %v6490_v52 = vmul.f32 %v12786_v16, %v12786_v16 }
 0x8b1   : > { %v6508_v24 = vadd.f32 %v6490_v52, %v6489_v50  ;;  %v12850_v50 = vperm.slane %v6434_v17, 1 }
 0x8b3   : > { %6509 = vadd.xlane.f32.xlu2 %v6508_v24 }
 0x8c8   : > { %v6449_v15 = vpop.xlane.xlu0 %6448 }
 0x8c9   : > { %v6463_v26 = vmul.f32 %v6449_v15, %v12040_v47 }
 0x8cb   : > { %v12794_v25 = vsub.f32 %v12717_v23, %v6463_v26  ;;  %v12797_v42 = vsub.f32 %v12720_v59, %v6463_v26 }
 0x8cd   : > { %v6491_v18 = vmul.f32 %v12794_v25, %v12794_v25  ;;  %v6492_v51 = vmul.f32 %v12797_v42, %v12797_v42 }
 0x8cf   : > { %v6511_v40 = vadd.f32 %v6492_v51, %v6491_v18 }
 0x8d0   : > { %v6452_v8 = vpop.xlane.xlu2 %6451 }
 0x8d1   : > { %v6464_v6 = vmul.f32 %v6452_v8, %v12040_v47  ;;  %6512 = vadd.xlane.f32.xlu1 %v6511_v40 }
 0x8d3   : > { %v12805_v55 = vsub.f32 %v12727_v61, %v6464_v6  ;;  %v12808_v23 = vsub.f32 %v12730_v20, %v6464_v6 }
 0x8d5   : > { %v6493_v59 = vmul.f32 %v12805_v55, %v12805_v55  ;;  %v6494_v7 = vmul.f32 %v12808_v23, %v12808_v23 }
 0x8d7   : > { %v6514_v44 = vadd.f32 %v6494_v7, %v6493_v59 }
 0x8d9   : > { %6515 = vadd.xlane.f32.xlu0 %v6514_v44 }
 0x8e0   : > { %v6455_v22 = vpop.xlane.xlu1 %6454 }
 0x8e1   : > { %v6465_v34 = vmul.f32 %v6455_v22, %v12040_v47 }
 0x8e3   : > { %v12816_v14 = vsub.f32 %v12737_v13, %v6465_v34  ;;  %v12819_v61 = vsub.f32 %v12740_v37, %v6465_v34 }
 0x8e5   : > { %v6495_v20 = vmul.f32 %v12816_v14, %v12816_v14  ;;  %v6496_v27 = vmul.f32 %v12819_v61, %v12819_v61 }
 0x8e7   : > { %v6517_v12 = vadd.f32 %v6496_v27, %v6495_v20 }
 0x8e8   : > { %v6458_v46 = vpop.xlane.xlu0 %6457 }
 0x8e9   : > { %v6466_v49 = vmul.f32 %v6458_v46, %v12040_v47  ;;  %6518 = vadd.xlane.f32.xlu2 %v6517_v12 }
 0x8eb   : > { %v12826_v38 = vsub.f32 %v6431_v48, %v6466_v49  ;;  %v12828_v4 = vsub.f32 %v6432_v10, %v6466_v49 }
 0x8ed   : > { %v6497_v13 = vmul.f32 %v12826_v38, %v12826_v38  ;;  %v6498_v37 = vmul.f32 %v12828_v4, %v12828_v4 }
 0x8ef   : > { %v6520_v2 = vadd.f32 %v6498_v37, %v6497_v13 }
 0x8f1   : > { %6521 = vadd.xlane.f32.xlu1 %v6520_v2 }
 0x90e   : > { %v6501_v43 = vpop.xlane.xlu2 %6500 }
 0x90f   : > { %v6523_v57 = vmul.f32 %v6501_v43, %v12040_v47 }
 0x911   : > { %v6531_v11 = vadd.f32 1e-05, %v6523_v57 }
 0x913   : > { %8678 = vrsqrt.f32 %v6531_v11  ;;  %vm6545_vm12 = vweird.f32 %v6531_v11 }
 0x916   : > { %v6504_v5 = vpop.xlane.xlu1 %6503 }
 0x917   : > { %v6524_v48 = vmul.f32 %v6504_v5, %v12040_v47 }
 0x919   : > { %v8679_v58 = vpop.eup %8678  ;;  %v6532_v10 = vadd.f32 1e-05, %v6524_v48 }
 0x91a   : > { %v6540_v32 = vmul.f32 %v8679_v58, %v6531_v11  ;;  %vm6546_vm11 = vweird.f32 %v8679_v58 }
 0x91b   : > { %8680 = vrsqrt.f32 %v6532_v10  ;;  %vm6547_vm13 = vmor %vm6545_vm12, %vm6546_vm11  ;;  %vm6555_vm0 = vweird.f32 %v6532_v10 }
 0x91c   : > { %v6541_v36 = vmul.f32 %v8679_v58, %v6540_v32 }
 0x91e   : > { %v6542_v45 = vmul.f32 0.5, %v6541_v36  ;;  %v6507_v3 = vpop.xlane.xlu0 %6506 }
 0x91f   : > { %v6525_v29 = vmul.f32 %v6507_v3, %v12040_v47 }
 0x920   : > { %v6543_v63 = vsub.f32 1.5, %v6542_v45 }
 0x921   : > { %v8681_v30 = vpop.eup %8680  ;;  %v6533_v41 = vadd.f32 1e-05, %v6525_v29 }
 0x922   : > { %v6544_v39 = vmul.f32 %v8679_v58, %v6543_v63  ;;  %v6550_v53 = vmul.f32 %v8681_v30, %v6532_v10  ;;  %vm6556_vm14 = vweird.f32 %v8681_v30 }
 0x923   : > { %8682 = vrsqrt.f32 %v6533_v41  ;;  %vm6557_vm1 = vmor %vm6555_vm0, %vm6556_vm14  ;;  %vm6565_vm6 = vweird.f32 %v6533_v41 }
 0x924   : > { %v6548_v35 = vsel %vm6547_vm13, %v8679_v58, %v6544_v39  ;;  %v6551_v1 = vmul.f32 %v8681_v30, %v6550_v53 }
 0x925   : > { %v6619_v52 = vmul.f32 %v6548_v35, %v12750_v21  ;;  %v6620_v24 = vmul.f32 %v6548_v35, %v12753_v28 }
 0x926   : > { %v6552_v15 = vmul.f32 0.5, %v6551_v1  ;;  %v6510_v26 = vpop.xlane.xlu2 %6509 }
 0x927   : > { %v6640_v18 = vmul.f32 %v12844_v31, %v6619_v52  ;;  %v6641_v51 = vmul.f32 %v12846_v56, %v6620_v24  ;;  %v6526_v40 = vmul.f32 %v6510_v26, %v12040_v47 }
 0x928   : > { %v6553_v8 = vsub.f32 1.5, %v6552_v15 }
 0x929   : > { %v8683_v6 = vpop.eup %8682  ;;  %v6661_v59 = vadd.f32 %v12848_v0, %v6640_v18  ;;  %v6662_v7 = vadd.f32 %v12850_v50, %v6641_v51  ;;  %v6534_v44 = vadd.f32 1e-05, %v6526_v40 }
 0x92a   : > { %v6554_v22 = vmul.f32 %v8681_v30, %v6553_v8  ;;  %v6560_v21 = vmul.f32 %v8683_v6, %v6533_v41  ;;  %vm6566_vm2 = vweird.f32 %v8683_v6 }
 0x92b   : > { %6677 = vst [vmem:[%s12861_s30] sm:$0xff] %v6661_v59  ;;  %8684 = vrsqrt.f32 %v6534_v44  ;;  %vm6567_vm9 = vmor %vm6565_vm6, %vm6566_vm2  ;;  %vm6575_vm15 = vweird.f32 %v6534_v44 }
 0x92c   : > { %6678 = vst [vmem:[%s12861_s30 + $0x8] sm:$0xff] %v6662_v7  ;;  %v6558_v28 = vsel %vm6557_vm1, %v8681_v30, %v6554_v22  ;;  %v6561_v34 = vmul.f32 %v8683_v6, %v6560_v21 }
 0x92d   : > { %v6621_v20 = vmul.f32 %v6558_v28, %v12761_v19  ;;  %v6622_v27 = vmul.f32 %v6558_v28, %v12764_v9 }
 0x92e   : > { %v6562_v12 = vmul.f32 0.5, %v6561_v34 }
 0x92f   : > { %v6642_v46 = vmul.f32 %v12844_v31, %v6621_v20  ;;  %v6643_v49 = vmul.f32 %v12846_v56, %v6622_v27 }
 0x930   : > { %v6563_v13 = vsub.f32 1.5, %v6562_v12 }
 0x931   : > { %v8685_v37 = vpop.eup %8684  ;;  %v6663_v2 = vadd.f32 %v12848_v0, %v6642_v46  ;;  %v6664_v43 = vadd.f32 %v12850_v50, %v6643_v49 }
 0x932   : > { %v6564_v57 = vmul.f32 %v8683_v6, %v6563_v13  ;;  %v6570_v11 = vmul.f32 %v8685_v37, %v6534_v44  ;;  %vm6576_vm10 = vweird.f32 %v8685_v37 }
 0x933   : > { %6679 = vst [vmem:[%s12861_s30 + $0x10] sm:$0xff] %v6663_v2  ;;  %vm6577_vm3 = vmor %vm6575_vm15, %vm6576_vm10 }
 0x934   : > { %6680 = vst [vmem:[%s12861_s30 + $0x18] sm:$0xff] %v6664_v43  ;;  %v6568_v19 = vsel %vm6567_vm9, %v8683_v6, %v6564_v57  ;;  %v6571_v9 = vmul.f32 %v8685_v37, %v6570_v11 }
 0x935   : > { %v6623_v5 = vmul.f32 %v6568_v19, %v12772_v60  ;;  %v6624_v48 = vmul.f32 %v6568_v19, %v12775_v54 }
 0x936   : > { %v6572_v58 = vmul.f32 0.5, %v6571_v9 }
 0x937   : > { %v6644_v10 = vmul.f32 %v12844_v31, %v6623_v5  ;;  %v6645_v32 = vmul.f32 %v12846_v56, %v6624_v48 }
 0x938   : > { %v6573_v36 = vsub.f32 1.5, %v6572_v58 }
 0x939   : > { %v6665_v45 = vadd.f32 %v12848_v0, %v6644_v10  ;;  %v6666_v3 = vadd.f32 %v12850_v50, %v6645_v32 }
 0x93a   : > { %v6574_v29 = vmul.f32 %v8685_v37, %v6573_v36 }
 0x93b   : > { %6681 = vst [vmem:[%s12861_s30 + $0x20] sm:$0xff] %v6665_v45 }
 0x93c   : > { %6682 = vst [vmem:[%s12861_s30 + $0x28] sm:$0xff] %v6666_v3  ;;  %v6578_v60 = vsel %vm6577_vm3, %v8685_v37, %v6574_v29 }
 0x93d   : > { %v6625_v54 = vmul.f32 %v6578_v60, %v12783_v62  ;;  %v6626_v33 = vmul.f32 %v6578_v60, %v12786_v16 }
 0x93f   : > { %v6646_v63 = vmul.f32 %v12844_v31, %v6625_v54  ;;  %v6647_v30 = vmul.f32 %v12846_v56, %v6626_v33 }
 0x941   : > { %v6667_v41 = vadd.f32 %v12848_v0, %v6646_v63  ;;  %v6668_v17 = vadd.f32 %v12850_v50, %v6647_v30 }
 0x943   : > { %6683 = vst [vmem:[%s12861_s30 + $0x30] sm:$0xff] %v6667_v41 }
 0x944   : > { %6684 = vst [vmem:[%s12861_s30 + $0x38] sm:$0xff] %v6668_v17  ;;  %v6513_v39 = vpop.xlane.xlu1 %6512 }
 0x945   : > { %v6527_v53 = vmul.f32 %v6513_v39, %v12040_v47 }
 0x947   : > { %v6535_v35 = vadd.f32 1e-05, %v6527_v53 }
 0x949   : > { %8686 = vrsqrt.f32 %v6535_v35  ;;  %vm6585_vm5 = vweird.f32 %v6535_v35 }
 0x94c   : > { %v6516_v1 = vpop.xlane.xlu0 %6515 }
 0x94d   : > { %v6528_v62 = vmul.f32 %v6516_v1, %v12040_v47 }
 0x94f   : > { %v8687_v52 = vpop.eup %8686  ;;  %v6536_v16 = vadd.f32 1e-05, %v6528_v62 }
 0x950   : > { %v6580_v24 = vmul.f32 %v8687_v52, %v6535_v35  ;;  %vm6586_vm4 = vweird.f32 %v8687_v52 }
 0x951   : > { %8688 = vrsqrt.f32 %v6536_v16  ;;  %vm6587_vm7 = vmor %vm6585_vm5, %vm6586_vm4  ;;  %vm6595_vm11 = vweird.f32 %v6536_v16 }
 0x952   : > { %v6581_v15 = vmul.f32 %v8687_v52, %v6580_v24 }
 0x954   : > { %v6582_v26 = vmul.f32 0.5, %v6581_v15 }
 0x956   : > { %v6583_v18 = vsub.f32 1.5, %v6582_v26 }
 0x957   : > { %v8689_v51 = vpop.eup %8688 }
 0x958   : > { %v6584_v40 = vmul.f32 %v8687_v52, %v6583_v18  ;;  %v6590_v8 = vmul.f32 %v8689_v51, %v6536_v16  ;;  %vm6596_vm8 = vweird.f32 %v8689_v51 }
 0x959   : > { %vm6597_vm12 = vmor %vm6595_vm11, %vm6596_vm8 }
 0x95a   : > { %v6588_v6 = vsel %vm6587_vm7, %v8687_v52, %v6584_v40  ;;  %v6591_v59 = vmul.f32 %v8689_v51, %v6590_v8 }
 0x95b   : > { %v6627_v7 = vmul.f32 %v6588_v6, %v12794_v25  ;;  %v6628_v44 = vmul.f32 %v6588_v6, %v12797_v42 }
 0x95c   : > { %v6592_v22 = vmul.f32 0.5, %v6591_v59  ;;  %v6519_v21 = vpop.xlane.xlu2 %6518 }
 0x95d   : > { %v6648_v28 = vmul.f32 %v12844_v31, %v6627_v7  ;;  %v6649_v34 = vmul.f32 %v12846_v56, %v6628_v44  ;;  %v6529_v20 = vmul.f32 %v6519_v21, %v12040_v47 }
 0x95e   : > { %v6593_v27 = vsub.f32 1.5, %v6592_v22 }
 0x95f   : > { %v6669_v12 = vadd.f32 %v12848_v0, %v6648_v28  ;;  %v6670_v46 = vadd.f32 %v12850_v50, %v6649_v34  ;;  %v6537_v49 = vadd.f32 1e-05, %v6529_v20 }
 0x960   : > { %v6594_v13 = vmul.f32 %v8689_v51, %v6593_v27 }
 0x961   : > { %6685 = vst [vmem:[%s12861_s30 + $0x40] sm:$0xff] %v6669_v12  ;;  %8690 = vrsqrt.f32 %v6537_v49  ;;  %vm6605_vm14 = vweird.f32 %v6537_v49 }
 0x962   : > { %6686 = vst [vmem:[%s12861_s30 + $0x48] sm:$0xff] %v6670_v46  ;;  %v6598_v25 = vsel %vm6597_vm12, %v8689_v51, %v6594_v13 }
 0x963   : > { %v6629_v42 = vmul.f32 %v6598_v25, %v12805_v55  ;;  %v6630_v37 = vmul.f32 %v6598_v25, %v12808_v23 }
 0x964   : > { %v6522_v2 = vpop.xlane.xlu1 %6521 }
 0x965   : > { %v6650_v43 = vmul.f32 %v12844_v31, %v6629_v42  ;;  %v6651_v57 = vmul.f32 %v12846_v56, %v6630_v37  ;;  %v6530_v11 = vmul.f32 %v6522_v2, %v12040_v47 }
 0x967   : > { %v8691_v19 = vpop.eup %8690  ;;  %v6671_v9 = vadd.f32 %v12848_v0, %v6650_v43  ;;  %v6672_v5 = vadd.f32 %v12850_v50, %v6651_v57  ;;  %v6538_v48 = vadd.f32 1e-05, %v6530_v11 }
 0x968   : > { %v6600_v58 = vmul.f32 %v8691_v19, %v6537_v49  ;;  %vm6606_vm13 = vweird.f32 %v8691_v19 }
 0x969   : > { %6687 = vst [vmem:[%s12861_s30 + $0x50] sm:$0xff] %v6671_v9  ;;  %8692 = vrsqrt.f32 %v6538_v48  ;;  %vm6607_vm0 = vmor %vm6605_vm14, %vm6606_vm13  ;;  %vm6615_vm2 = vweird.f32 %v6538_v48 }
 0x96a   : > { %6688 = vst [vmem:[%s12861_s30 + $0x58] sm:$0xff] %v6672_v5  ;;  %v6601_v55 = vmul.f32 %v8691_v19, %v6600_v58 }
 0x96c   : > { %v6602_v10 = vmul.f32 0.5, %v6601_v55 }
 0x96e   : > { %v6603_v23 = vsub.f32 1.5, %v6602_v10 }
 0x96f   : > { %v8693_v32 = vpop.eup %8692 }
 0x970   : > { %v6604_v36 = vmul.f32 %v8691_v19, %v6603_v23  ;;  %v6610_v45 = vmul.f32 %v8693_v32, %v6538_v48  ;;  %vm6616_vm1 = vweird.f32 %v8693_v32 }
 0x971   : > { %vm6617_vm6 = vmor %vm6615_vm2, %vm6616_vm1 }
 0x972   : > { %v6608_v47 = vsel %vm6607_vm0, %v8691_v19, %v6604_v36  ;;  %v6611_v3 = vmul.f32 %v8693_v32, %v6610_v45 }
 0x973   : > { %v6631_v29 = vmul.f32 %v6608_v47, %v12816_v14  ;;  %v6632_v60 = vmul.f32 %v6608_v47, %v12819_v61 }
 0x974   : > { %v6612_v54 = vmul.f32 0.5, %v6611_v3 }
 0x975   : > { %v6652_v33 = vmul.f32 %v12844_v31, %v6631_v29  ;;  %v6653_v63 = vmul.f32 %v12846_v56, %v6632_v60 }
 0x976   : > { %v6613_v30 = vsub.f32 1.5, %v6612_v54 }
 0x977   : > { %v6673_v41 = vadd.f32 %v12848_v0, %v6652_v33  ;;  %v6674_v17 = vadd.f32 %v12850_v50, %v6653_v63 }
 0x978   : > { %v6614_v39 = vmul.f32 %v8693_v32, %v6613_v30 }
 0x979   : > { %6689 = vst [vmem:[%s12861_s30 + $0x60] sm:$0xff] %v6673_v41 }
 0x97a   : > { %6690 = vst [vmem:[%s12861_s30 + $0x68] sm:$0xff] %v6674_v17  ;;  %v6618_v14 = vsel %vm6617_vm6, %v8693_v32, %v6614_v39 }
 0x97b   : > { %v6633_v61 = vmul.f32 %v6618_v14, %v12826_v38  ;;  %v6634_v53 = vmul.f32 %v6618_v14, %v12828_v4 }
 0x97d   : > { %v6654_v35 = vmul.f32 %v12844_v31, %v6633_v61  ;;  %v6655_v1 = vmul.f32 %v12846_v56, %v6634_v53 }
 0x97f   : > { %v6675_v62 = vadd.f32 %v12848_v0, %v6654_v35  ;;  %v6676_v52 = vadd.f32 %v12850_v50, %v6655_v1 }
 0x981   : > { %6691 = vst [vmem:[%s12861_s30 + $0x70] sm:$0xff] %v6675_v62 }
 0x982   : > { %6692 = vst [vmem:[%s12861_s30 + $0x78] sm:$0xff] %v6676_v52 }
 0x983   : > { %8721 = shalt.err (!%p8718_p3)
}
 0x984   : > { %s8762_s21 = smov 256   ;;  %s8763_s30 = smov 16  }
 0x985   : > { %8359 = dma.vmem_to_hbm [thread:$0]  (%p8882_p5), %s6707_s20, 2048, %s6709_s22, %s6694_s24, %s8762_s21, %s8762_s21, %s8763_s30  }
 0x986 PF: > { %s13123_s23 = sld [smem:[#allocation10_spill]] }
 0x987   : > { %s13124_s28 = sld [smem:[#allocation8_spill]] }
 0x98c   : > { %p8365_p4 = scmp.ge.s32.totalorder %s13123_s23, 2 }
 0x98d   : > { %s6723_s18 = sand.u32 1, %s13124_s28  }
 0x98e   : > { %p8362_p7 = pnand %p8365_p4, %p8886_p6  ;;  %s6724_s26 = scalar_lea.sflag [#allocation6], %s6723_s18 }
 0x990   : > { %p8363_p8 = pneg %p8362_p7 }
 0x992   : > { %8739 = dma.done.wait (%p8363_p8), %s6724_s26, 2048  }
 0x993   : > { %8741 = vsyncadd (%p8363_p8), %s6724_s26, 4294965248  ;;  %s13126_s21 = sld [smem:[#allocation11_spill]]  ;;  %s13129_s18 = smov %s8748_s19 }
 0x994   : > { %s13127_s29 = sld [smem:[#allocation9_spill]] }
 0x995   : > { %s13128_s20 = sld [smem:[#allocation12_spill]] }
 0x999   : > { %p25_p9 = scmp.ge.s32.totalorder %s13126_s21, 4  }
 0x99a   : > { %s13130_s19 = smov %s13127_s29 }
 0x99b   :  { %27 = sbr.rel (!%p25_p9) target bundleno = 6 (0x6), region = 121 }
 0x9a0   :  { %6730 = vsyncpa [#allocation6], 1 }
 0x9a1   :  { %6732 = vsyncpa [#allocation6 + $0x1], 1 }

</bundles_post_ra>
